<compile_context>
chip_gen: v5e
topology: v5e:2x2
jax: 0.10.0
libtpu: 0.0.40
codegen_flags: <defaults>
</compile_context>

<pallas_src>
import jax
import jax.numpy as jnp
from jax.experimental import pallas as pl
from jax.experimental.pallas import tpu as pltpu


# -----------------------------------------------------------------------------
# Fused forward kernel (runs once per sample; grid=(N,)).
# -----------------------------------------------------------------------------
def _elu(v):
    # ELU(alpha=1.0); exp only sees values clamped to <= 0 (no wasted inf work).
    return jnp.where(v > 0, v, jnp.exp(jnp.minimum(v, 0.0)) - 1.0)


def _conv_bn_elu_pool(src_ref, w_ref, b_ref):
    """Conv(1,K) (BN scale pre-folded into taps) + shift + ELU + MaxPool(1,2).

    The pool is fused into the conv: outputs are computed only at even / odd
    positions via stride-2 reads of `src_ref`, then max-combined.

    src_ref: (W_in, C_in) VMEM ref; w_ref: (K, C_in, C_out); b_ref: (1, C_out).
    Returns the pooled activation value of shape (W_pool, C_out).
    """
    W_in = src_ref.shape[0]
    K, _, C_out = w_ref.shape
    W_pool = (W_in - K + 1) // 2
    b = b_ref[...]
    acc_e = jnp.zeros((W_pool, C_out), jnp.float32)
    acc_o = jnp.zeros((W_pool, C_out), jnp.float32)
    for k in range(K):                       # statically unrolled MXU matmuls
        wk = w_ref[k]
        acc_e = acc_e + jnp.dot(src_ref[pl.ds(k, W_pool, stride=2), :], wk,
                                preferred_element_type=jnp.float32)
        acc_o = acc_o + jnp.dot(src_ref[pl.ds(k + 1, W_pool, stride=2), :], wk,
                                preferred_element_type=jnp.float32)
    return jnp.maximum(_elu(acc_e + b), _elu(acc_o + b))


def _deepconv_kernel(x_ref, w1_ref, b1_ref, w2_ref, b2_ref, w3_ref, b3_ref,
                     w4_ref, b4_ref, wl_ref, bl_ref, out_ref,
                     h1_scr, h2_scr, h3_scr):
    # Block 1: input is already im2col'd (746, 10) -> one deep matmul / branch.
    h1_scr[...] = _conv_bn_elu_pool(x_ref, w1_ref, b1_ref)    # (373, 25)
    h2_scr[...] = _conv_bn_elu_pool(h1_scr, w2_ref, b2_ref)   # (184, 50)
    h3_scr[...] = _conv_bn_elu_pool(h2_scr, w3_ref, b3_ref)   # (90, 100)
    h4 = _conv_bn_elu_pool(h3_scr, w4_ref, b4_ref)            # (43, 200) value

    # Classifier: logits[o] = sum_{w,c} h4[w,c] * wl[o,w,c] + bl[o]
    W4 = h4.shape[0]
    s0 = jnp.sum(h4 * wl_ref[0], axis=1, keepdims=True)       # (43, 1)
    s1 = jnp.sum(h4 * wl_ref[1], axis=1, keepdims=True)       # (43, 1)
    col = jax.lax.broadcasted_iota(jnp.int32, (W4, 2), 1)
    z = jnp.where(col == 0, s0, s1)                           # (43, 2)
    out_ref[0] = jnp.sum(z, axis=0, keepdims=True) + bl_ref[...]


def deepconvnet_fused(x_ic, w1, b1, w2, b2, w3, b3, w4, b4, wlp, bl):
    """x_ic: (N, 746, 10) im2col'd input; weights/shifts pre-folded in glue."""
    N, W_ic, F_ic = x_ic.shape
    W_p1 = W_ic // 2                                  # 373
    C1 = w1.shape[2]                                  # 25
    W_p2 = (W_p1 - w2.shape[0] + 1) // 2              # 184
    C2 = w2.shape[2]                                  # 50
    W_p3 = (W_p2 - w3.shape[0] + 1) // 2              # 90
    C3 = w3.shape[2]                                  # 100

    out = pl.pallas_call(
        _deepconv_kernel,
        out_shape=jax.ShapeDtypeStruct((N, 1, 2), jnp.float32),
        grid_spec=pltpu.PrefetchScalarGridSpec(
            num_scalar_prefetch=0,
            grid=(N,),
            in_specs=[
                pl.BlockSpec((None, W_ic, F_ic), lambda n: (n, 0, 0)),
                pl.BlockSpec(w1.shape, lambda n: (0, 0, 0)),
                pl.BlockSpec(b1.shape, lambda n: (0, 0)),
                pl.BlockSpec(w2.shape, lambda n: (0, 0, 0)),
                pl.BlockSpec(b2.shape, lambda n: (0, 0)),
                pl.BlockSpec(w3.shape, lambda n: (0, 0, 0)),
                pl.BlockSpec(b3.shape, lambda n: (0, 0)),
                pl.BlockSpec(w4.shape, lambda n: (0, 0, 0)),
                pl.BlockSpec(b4.shape, lambda n: (0, 0)),
                pl.BlockSpec(wlp.shape, lambda n: (0, 0, 0)),
                pl.BlockSpec(bl.shape, lambda n: (0, 0)),
            ],
            out_specs=pl.BlockSpec((1, 1, 2), lambda n: (n, 0, 0)),
            scratch_shapes=[
                pltpu.VMEM((W_p1, C1), jnp.float32),
                pltpu.VMEM((W_p2, C2), jnp.float32),
                pltpu.VMEM((W_p3, C3), jnp.float32),
            ],
        ),
        compiler_params=pltpu.CompilerParams(
            dimension_semantics=("parallel",)),
    )(x_ic, w1, b1, w2, b2, w3, b3, w4, b4, wlp, bl)
    return out[:, 0, :]


# -----------------------------------------------------------------------------
# Deterministic parameter construction (synthetic, matches nn.Module shapes).
# -----------------------------------------------------------------------------
def init_params(key):
    ks = jax.random.split(key, 11)

    def nrm(k, shape, s=0.1):
        return s * jax.random.normal(k, shape, jnp.float32)

    p = {
        "w1": nrm(ks[0], (25, 1, 1, 5)),      # Conv2d(1, 25, (1,5), bias=False)
        "w2": nrm(ks[1], (25, 25, 2, 1)),     # Conv2d(25, 25, (2,1), bias=False)
        "w3": nrm(ks[2], (50, 25, 1, 5)),     # Conv2d(25, 50, (1,5), bias=False)
        "w4": nrm(ks[3], (100, 50, 1, 5)),    # Conv2d(50, 100, (1,5), bias=False)
        "w5": nrm(ks[4], (200, 100, 1, 5)),   # Conv2d(100, 200, (1,5), bias=False)
        "wl": nrm(ks[5], (2, 8600)),          # Linear(8600, 2) weight
        "bl": nrm(ks[6], (2,)),               # Linear bias
    }
    for i, c in enumerate((25, 50, 100, 200)):
        kk = jax.random.split(ks[7 + i], 4)
        p[f"bn{i + 1}"] = dict(
            gamma=1.0 + 0.1 * jax.random.normal(kk[0], (c,), jnp.float32),
            beta=0.1 * jax.random.normal(kk[1], (c,), jnp.float32),
            mean=0.1 * jax.random.normal(kk[2], (c,), jnp.float32),
            var=jax.random.uniform(kk[3], (c,), jnp.float32, 0.5, 1.5),
        )
    return p


def bn_affine(bn, eps=1e-5):
    scale = bn["gamma"] / jnp.sqrt(bn["var"] + eps)
    shift = bn["beta"] - bn["mean"] * scale
    return scale[None, :], shift[None, :]


def conv_taps(w):
    """(C_out, C_in, 1, K) PyTorch conv weight -> (K, C_in, C_out) taps."""
    return jnp.transpose(w[:, :, 0, :], (2, 1, 0))


# -----------------------------------------------------------------------------
# Forward pass (glue: layout / weight folding only — all math is in the kernel).
# -----------------------------------------------------------------------------
def forward(x_nchw, p):
    N = x_nchw.shape[0]
    # NCHW (N, 1, 2, 750) -> (N, W=750, C=2): the 2 EEG rows become channels.
    x = jnp.transpose(x_nchw[:, 0, :, :], (0, 2, 1))
    W_c1 = x.shape[1] - 5 + 1                              # 746
    # im2col for conv1: feature index = k*2 + h (5 taps x 2 rows = 10).
    x_ic = jnp.stack([x[:, k:k + W_c1, :] for k in range(5)],
                     axis=2).reshape(N, W_c1, 10)

    s1, b1 = bn_affine(p["bn1"])
    s2, b2 = bn_affine(p["bn2"])
    s3, b3 = bn_affine(p["bn3"])
    s4, b4 = bn_affine(p["bn4"])

    # Compose conv1's (1,5) conv with its (2,1) conv:
    # Wf[k, h, co] = sum_m W1[m,0,0,k] * W2[co,m,h,0]; fold BN1 scale; -> (1,10,25).
    w_taps1 = jnp.einsum("mk,omh->kho", p["w1"][:, 0, 0, :], p["w2"][:, :, :, 0])
    w1f = (w_taps1 * s1[0][None, None, :]).reshape(1, 10, 25)
    w2f = conv_taps(p["w3"]) * s2[0][None, None, :]        # (5, 25, 50)
    w3f = conv_taps(p["w4"]) * s3[0][None, None, :]        # (5, 50, 100)
    w4f = conv_taps(p["w5"]) * s4[0][None, None, :]        # (5, 100, 200)

    # Linear weight re-layout: wlp[o, w, c] = wl[o, c*43 + w]  (PyTorch flatten
    # of (N,200,1,43) is channel-major) -> kernel needs no transpose/flatten.
    wlp = p["wl"].reshape(2, 200, 43).transpose(0, 2, 1)   # (2, 43, 200)
    bl = p["bl"].reshape(1, 2)

    return deepconvnet_fused(x_ic, w1f, b1, w2f, b2, w3f, b3, w4f, b4, wlp, bl)


if __name__ == "__main__":
    key = jax.random.PRNGKey(0)
    pkey, xkey = jax.random.split(key)
    params = init_params(pkey)
    # Input shape is fixed by Linear(in_features=8600): (N, 1, 2, 750).
    x = jax.random.normal(xkey, (2, 1, 2, 750), jnp.float32)
    out = jax.jit(forward)(x, params)
    jax.block_until_ready(out)
    assert out.shape == (2, 2) and out.dtype == jnp.float32
    print("KERNEL_OK")
</pallas_src>

<mosaic_0001>
module attributes {stable_mosaic.version = 11 : i64} {
  func.func @_deepconv_kernel(%arg0: i32, %arg1: memref<1x746x10xf32, #tpu.memory_space<vmem>>, %arg2: memref<1x10x25xf32, #tpu.memory_space<vmem>>, %arg3: memref<1x25xf32, #tpu.memory_space<vmem>>, %arg4: memref<5x25x50xf32, #tpu.memory_space<vmem>>, %arg5: memref<1x50xf32, #tpu.memory_space<vmem>>, %arg6: memref<5x50x100xf32, #tpu.memory_space<vmem>>, %arg7: memref<1x100xf32, #tpu.memory_space<vmem>>, %arg8: memref<5x100x200xf32, #tpu.memory_space<vmem>>, %arg9: memref<1x200xf32, #tpu.memory_space<vmem>>, %arg10: memref<2x43x200xf32, #tpu.memory_space<vmem>>, %arg11: memref<1x2xf32, #tpu.memory_space<vmem>>, %arg12: memref<1x1x2xf32, #tpu.memory_space<vmem>>, %arg13: memref<373x25xf32, #tpu.memory_space<vmem>>, %arg14: memref<184x50xf32, #tpu.memory_space<vmem>>, %arg15: memref<90x100xf32, #tpu.memory_space<vmem>>) attributes {dimension_semantics = [#tpu.dimension_semantics<parallel>], iteration_bounds = array<i64: 2>, scalar_prefetch = 0 : i64, scratch_operands = 3 : i64, tpu.core_type = #tpu.core_type<tc>, window_params = [{transform_indices = @transform_0, window_bounds = array<i64: 1, 746, 10>}, {pipeline_mode = #tpu.pipeline_mode<synchronous>, transform_indices = @transform_1, window_bounds = array<i64: 1, 10, 25>}, {pipeline_mode = #tpu.pipeline_mode<synchronous>, transform_indices = @transform_2, window_bounds = array<i64: 1, 25>}, {pipeline_mode = #tpu.pipeline_mode<synchronous>, transform_indices = @transform_3, window_bounds = array<i64: 5, 25, 50>}, {pipeline_mode = #tpu.pipeline_mode<synchronous>, transform_indices = @transform_4, window_bounds = array<i64: 1, 50>}, {pipeline_mode = #tpu.pipeline_mode<synchronous>, transform_indices = @transform_5, window_bounds = array<i64: 5, 50, 100>}, {pipeline_mode = #tpu.pipeline_mode<synchronous>, transform_indices = @transform_6, window_bounds = array<i64: 1, 100>}, {pipeline_mode = #tpu.pipeline_mode<synchronous>, transform_indices = @transform_7, window_bounds = array<i64: 5, 100, 200>}, {pipeline_mode = #tpu.pipeline_mode<synchronous>, transform_indices = @transform_8, window_bounds = array<i64: 1, 200>}, {pipeline_mode = #tpu.pipeline_mode<synchronous>, transform_indices = @transform_9, window_bounds = array<i64: 2, 43, 200>}, {pipeline_mode = #tpu.pipeline_mode<synchronous>, transform_indices = @transform_10, window_bounds = array<i64: 1, 2>}, {transform_indices = @transform_11, window_bounds = array<i64: 1, 1, 2>}]} {
    %c0 = arith.constant 0 : index
    %c0_0 = arith.constant 0 : index
    %0 = vector.load %arg3[%c0, %c0_0] : memref<1x25xf32, #tpu.memory_space<vmem>>, vector<1x25xf32>
    %cst = arith.constant 0.000000e+00 : f32
    %1 = vector.broadcast %cst : f32 to vector<373x25xf32>
    %cst_1 = arith.constant 0.000000e+00 : f32
    %2 = vector.broadcast %cst_1 : f32 to vector<373x25xf32>
    %c0_2 = arith.constant 0 : index
    %c0_3 = arith.constant 0 : index
    %c0_4 = arith.constant 0 : index
    %3 = vector.load %arg2[%c0_2, %c0_3, %c0_4] : memref<1x10x25xf32, #tpu.memory_space<vmem>>, vector<1x10x25xf32>
    %4 = vector.shape_cast %3 : vector<1x10x25xf32> to vector<10x25xf32>
    %c0_5 = arith.constant 0 : index
    %c0_6 = arith.constant 0 : index
    %c0_7 = arith.constant 0 : index
    %5 = tpu.strided_load %arg1[%c0_5, %c0_6, %c0_7] {strides = array<i32: 1, 2, 1>} : memref<1x746x10xf32, #tpu.memory_space<vmem>>, vector<1x373x10xf32>
    %6 = vector.shape_cast %5 : vector<1x373x10xf32> to vector<373x10xf32>
    %cst_8 = arith.constant dense<0.000000e+00> : vector<373x25xf32>
    %7 = tpu.matmul %6, %4, %cst_8 {dimension_numbers = #tpu.dot_dimension_numbers<[1], [0], [0], [1], [0, 0, 1, 1], [], []>} : vector<373x10xf32>, vector<10x25xf32>, vector<373x25xf32> -> vector<373x25xf32>
    %8 = arith.addf %1, %7 : vector<373x25xf32>
    %c0_9 = arith.constant 0 : index
    %c1 = arith.constant 1 : index
    %c0_10 = arith.constant 0 : index
    %9 = tpu.strided_load %arg1[%c0_9, %c1, %c0_10] {strides = array<i32: 1, 2, 1>} : memref<1x746x10xf32, #tpu.memory_space<vmem>>, vector<1x373x10xf32>
    %10 = vector.shape_cast %9 : vector<1x373x10xf32> to vector<373x10xf32>
    %cst_11 = arith.constant dense<0.000000e+00> : vector<373x25xf32>
    %11 = tpu.matmul %10, %4, %cst_11 {dimension_numbers = #tpu.dot_dimension_numbers<[1], [0], [0], [1], [0, 0, 1, 1], [], []>} : vector<373x10xf32>, vector<10x25xf32>, vector<373x25xf32> -> vector<373x25xf32>
    %12 = arith.addf %2, %11 : vector<373x25xf32>
    %13 = vector.broadcast %0 : vector<1x25xf32> to vector<373x25xf32>
    %14 = arith.addf %8, %13 : vector<373x25xf32>
    %cst_12 = arith.constant 0.000000e+00 : f32
    %15 = vector.broadcast %cst_12 : f32 to vector<373x25xf32>
    %16 = arith.cmpf ogt, %14, %15 : vector<373x25xf32>
    %cst_13 = arith.constant 0.000000e+00 : f32
    %17 = vector.broadcast %cst_13 : f32 to vector<373x25xf32>
    %18 = arith.minimumf %14, %17 : vector<373x25xf32>
    %19 = math.exp %18 : vector<373x25xf32>
    %cst_14 = arith.constant 1.000000e+00 : f32
    %20 = vector.broadcast %cst_14 : f32 to vector<373x25xf32>
    %21 = arith.subf %19, %20 : vector<373x25xf32>
    %22 = arith.select %16, %14, %21 : vector<373x25xi1>, vector<373x25xf32>
    %23 = vector.broadcast %0 : vector<1x25xf32> to vector<373x25xf32>
    %24 = arith.addf %12, %23 : vector<373x25xf32>
    %cst_15 = arith.constant 0.000000e+00 : f32
    %25 = vector.broadcast %cst_15 : f32 to vector<373x25xf32>
    %26 = arith.cmpf ogt, %24, %25 : vector<373x25xf32>
    %cst_16 = arith.constant 0.000000e+00 : f32
    %27 = vector.broadcast %cst_16 : f32 to vector<373x25xf32>
    %28 = arith.minimumf %24, %27 : vector<373x25xf32>
    %29 = math.exp %28 : vector<373x25xf32>
    %cst_17 = arith.constant 1.000000e+00 : f32
    %30 = vector.broadcast %cst_17 : f32 to vector<373x25xf32>
    %31 = arith.subf %29, %30 : vector<373x25xf32>
    %32 = arith.select %26, %24, %31 : vector<373x25xi1>, vector<373x25xf32>
    %33 = arith.maximumf %22, %32 : vector<373x25xf32>
    %c0_18 = arith.constant 0 : index
    %c0_19 = arith.constant 0 : index
    %34 = vector.load %arg13[%c0_18, %c0_19] : memref<373x25xf32, #tpu.memory_space<vmem>>, vector<373x25xf32>
    tpu.vector_store %arg13[%c0_18, %c0_19], %33 {strides = array<i32>} : memref<373x25xf32, #tpu.memory_space<vmem>>, vector<373x25xf32>,
    %c0_20 = arith.constant 0 : index
    %c0_21 = arith.constant 0 : index
    %35 = vector.load %arg5[%c0_20, %c0_21] : memref<1x50xf32, #tpu.memory_space<vmem>>, vector<1x50xf32>
    %cst_22 = arith.constant 0.000000e+00 : f32
    %36 = vector.broadcast %cst_22 : f32 to vector<184x50xf32>
    %cst_23 = arith.constant 0.000000e+00 : f32
    %37 = vector.broadcast %cst_23 : f32 to vector<184x50xf32>
    %c0_24 = arith.constant 0 : index
    %c0_25 = arith.constant 0 : index
    %c0_26 = arith.constant 0 : index
    %38 = vector.load %arg4[%c0_24, %c0_25, %c0_26] : memref<5x25x50xf32, #tpu.memory_space<vmem>>, vector<1x25x50xf32>
    %39 = vector.shape_cast %38 : vector<1x25x50xf32> to vector<25x50xf32>
    %c0_27 = arith.constant 0 : index
    %c0_28 = arith.constant 0 : index
    %40 = tpu.strided_load %arg13[%c0_27, %c0_28] {strides = array<i32: 2, 1>} : memref<373x25xf32, #tpu.memory_space<vmem>>, vector<184x25xf32>
    %cst_29 = arith.constant dense<0.000000e+00> : vector<184x50xf32>
    %41 = tpu.matmul %40, %39, %cst_29 {dimension_numbers = #tpu.dot_dimension_numbers<[1], [0], [0], [1], [0, 0, 1, 1], [], []>} : vector<184x25xf32>, vector<25x50xf32>, vector<184x50xf32> -> vector<184x50xf32>
    %42 = arith.addf %36, %41 : vector<184x50xf32>
    %c1_30 = arith.constant 1 : index
    %c0_31 = arith.constant 0 : index
    %43 = tpu.strided_load %arg13[%c1_30, %c0_31] {strides = array<i32: 2, 1>} : memref<373x25xf32, #tpu.memory_space<vmem>>, vector<184x25xf32>
    %cst_32 = arith.constant dense<0.000000e+00> : vector<184x50xf32>
    %44 = tpu.matmul %43, %39, %cst_32 {dimension_numbers = #tpu.dot_dimension_numbers<[1], [0], [0], [1], [0, 0, 1, 1], [], []>} : vector<184x25xf32>, vector<25x50xf32>, vector<184x50xf32> -> vector<184x50xf32>
    %45 = arith.addf %37, %44 : vector<184x50xf32>
    %c1_33 = arith.constant 1 : index
    %c0_34 = arith.constant 0 : index
    %c0_35 = arith.constant 0 : index
    %46 = vector.load %arg4[%c1_33, %c0_34, %c0_35] : memref<5x25x50xf32, #tpu.memory_space<vmem>>, vector<1x25x50xf32>
    %47 = vector.shape_cast %46 : vector<1x25x50xf32> to vector<25x50xf32>
    %c1_36 = arith.constant 1 : index
    %c0_37 = arith.constant 0 : index
    %48 = tpu.strided_load %arg13[%c1_36, %c0_37] {strides = array<i32: 2, 1>} : memref<373x25xf32, #tpu.memory_space<vmem>>, vector<184x25xf32>
    %cst_38 = arith.constant dense<0.000000e+00> : vector<184x50xf32>
    %49 = tpu.matmul %48, %47, %cst_38 {dimension_numbers = #tpu.dot_dimension_numbers<[1], [0], [0], [1], [0, 0, 1, 1], [], []>} : vector<184x25xf32>, vector<25x50xf32>, vector<184x50xf32> -> vector<184x50xf32>
    %50 = arith.addf %42, %49 : vector<184x50xf32>
    %c2 = arith.constant 2 : index
    %c0_39 = arith.constant 0 : index
    %51 = tpu.strided_load %arg13[%c2, %c0_39] {strides = array<i32: 2, 1>} : memref<373x25xf32, #tpu.memory_space<vmem>>, vector<184x25xf32>
    %cst_40 = arith.constant dense<0.000000e+00> : vector<184x50xf32>
    %52 = tpu.matmul %51, %47, %cst_40 {dimension_numbers = #tpu.dot_dimension_numbers<[1], [0], [0], [1], [0, 0, 1, 1], [], []>} : vector<184x25xf32>, vector<25x50xf32>, vector<184x50xf32> -> vector<184x50xf32>
    %53 = arith.addf %45, %52 : vector<184x50xf32>
    %c2_41 = arith.constant 2 : index
    %c0_42 = arith.constant 0 : index
    %c0_43 = arith.constant 0 : index
    %54 = vector.load %arg4[%c2_41, %c0_42, %c0_43] : memref<5x25x50xf32, #tpu.memory_space<vmem>>, vector<1x25x50xf32>
    %55 = vector.shape_cast %54 : vector<1x25x50xf32> to vector<25x50xf32>
    %c2_44 = arith.constant 2 : index
    %c0_45 = arith.constant 0 : index
    %56 = tpu.strided_load %arg13[%c2_44, %c0_45] {strides = array<i32: 2, 1>} : memref<373x25xf32, #tpu.memory_space<vmem>>, vector<184x25xf32>
    %cst_46 = arith.constant dense<0.000000e+00> : vector<184x50xf32>
    %57 = tpu.matmul %56, %55, %cst_46 {dimension_numbers = #tpu.dot_dimension_numbers<[1], [0], [0], [1], [0, 0, 1, 1], [], []>} : vector<184x25xf32>, vector<25x50xf32>, vector<184x50xf32> -> vector<184x50xf32>
    %58 = arith.addf %50, %57 : vector<184x50xf32>
    %c3 = arith.constant 3 : index
    %c0_47 = arith.constant 0 : index
    %59 = tpu.strided_load %arg13[%c3, %c0_47] {strides = array<i32: 2, 1>} : memref<373x25xf32, #tpu.memory_space<vmem>>, vector<184x25xf32>
    %cst_48 = arith.constant dense<0.000000e+00> : vector<184x50xf32>
    %60 = tpu.matmul %59, %55, %cst_48 {dimension_numbers = #tpu.dot_dimension_numbers<[1], [0], [0], [1], [0, 0, 1, 1], [], []>} : vector<184x25xf32>, vector<25x50xf32>, vector<184x50xf32> -> vector<184x50xf32>
    %61 = arith.addf %53, %60 : vector<184x50xf32>
    %c3_49 = arith.constant 3 : index
    %c0_50 = arith.constant 0 : index
    %c0_51 = arith.constant 0 : index
    %62 = vector.load %arg4[%c3_49, %c0_50, %c0_51] : memref<5x25x50xf32, #tpu.memory_space<vmem>>, vector<1x25x50xf32>
    %63 = vector.shape_cast %62 : vector<1x25x50xf32> to vector<25x50xf32>
    %c3_52 = arith.constant 3 : index
    %c0_53 = arith.constant 0 : index
    %64 = tpu.strided_load %arg13[%c3_52, %c0_53] {strides = array<i32: 2, 1>} : memref<373x25xf32, #tpu.memory_space<vmem>>, vector<184x25xf32>
    %cst_54 = arith.constant dense<0.000000e+00> : vector<184x50xf32>
    %65 = tpu.matmul %64, %63, %cst_54 {dimension_numbers = #tpu.dot_dimension_numbers<[1], [0], [0], [1], [0, 0, 1, 1], [], []>} : vector<184x25xf32>, vector<25x50xf32>, vector<184x50xf32> -> vector<184x50xf32>
    %66 = arith.addf %58, %65 : vector<184x50xf32>
    %c4 = arith.constant 4 : index
    %c0_55 = arith.constant 0 : index
    %67 = tpu.strided_load %arg13[%c4, %c0_55] {strides = array<i32: 2, 1>} : memref<373x25xf32, #tpu.memory_space<vmem>>, vector<184x25xf32>
    %cst_56 = arith.constant dense<0.000000e+00> : vector<184x50xf32>
    %68 = tpu.matmul %67, %63, %cst_56 {dimension_numbers = #tpu.dot_dimension_numbers<[1], [0], [0], [1], [0, 0, 1, 1], [], []>} : vector<184x25xf32>, vector<25x50xf32>, vector<184x50xf32> -> vector<184x50xf32>
    %69 = arith.addf %61, %68 : vector<184x50xf32>
    %c4_57 = arith.constant 4 : index
    %c0_58 = arith.constant 0 : index
    %c0_59 = arith.constant 0 : index
    %70 = vector.load %arg4[%c4_57, %c0_58, %c0_59] : memref<5x25x50xf32, #tpu.memory_space<vmem>>, vector<1x25x50xf32>
    %71 = vector.shape_cast %70 : vector<1x25x50xf32> to vector<25x50xf32>
    %c4_60 = arith.constant 4 : index
    %c0_61 = arith.constant 0 : index
    %72 = tpu.strided_load %arg13[%c4_60, %c0_61] {strides = array<i32: 2, 1>} : memref<373x25xf32, #tpu.memory_space<vmem>>, vector<184x25xf32>
    %cst_62 = arith.constant dense<0.000000e+00> : vector<184x50xf32>
    %73 = tpu.matmul %72, %71, %cst_62 {dimension_numbers = #tpu.dot_dimension_numbers<[1], [0], [0], [1], [0, 0, 1, 1], [], []>} : vector<184x25xf32>, vector<25x50xf32>, vector<184x50xf32> -> vector<184x50xf32>
    %74 = arith.addf %66, %73 : vector<184x50xf32>
    %c5 = arith.constant 5 : index
    %c0_63 = arith.constant 0 : index
    %75 = tpu.strided_load %arg13[%c5, %c0_63] {strides = array<i32: 2, 1>} : memref<373x25xf32, #tpu.memory_space<vmem>>, vector<184x25xf32>
    %cst_64 = arith.constant dense<0.000000e+00> : vector<184x50xf32>
    %76 = tpu.matmul %75, %71, %cst_64 {dimension_numbers = #tpu.dot_dimension_numbers<[1], [0], [0], [1], [0, 0, 1, 1], [], []>} : vector<184x25xf32>, vector<25x50xf32>, vector<184x50xf32> -> vector<184x50xf32>
    %77 = arith.addf %69, %76 : vector<184x50xf32>
    %78 = vector.broadcast %35 : vector<1x50xf32> to vector<184x50xf32>
    %79 = arith.addf %74, %78 : vector<184x50xf32>
    %cst_65 = arith.constant 0.000000e+00 : f32
    %80 = vector.broadcast %cst_65 : f32 to vector<184x50xf32>
    %81 = arith.cmpf ogt, %79, %80 : vector<184x50xf32>
    %cst_66 = arith.constant 0.000000e+00 : f32
    %82 = vector.broadcast %cst_66 : f32 to vector<184x50xf32>
    %83 = arith.minimumf %79, %82 : vector<184x50xf32>
    %84 = math.exp %83 : vector<184x50xf32>
    %cst_67 = arith.constant 1.000000e+00 : f32
    %85 = vector.broadcast %cst_67 : f32 to vector<184x50xf32>
    %86 = arith.subf %84, %85 : vector<184x50xf32>
    %87 = arith.select %81, %79, %86 : vector<184x50xi1>, vector<184x50xf32>
    %88 = vector.broadcast %35 : vector<1x50xf32> to vector<184x50xf32>
    %89 = arith.addf %77, %88 : vector<184x50xf32>
    %cst_68 = arith.constant 0.000000e+00 : f32
    %90 = vector.broadcast %cst_68 : f32 to vector<184x50xf32>
    %91 = arith.cmpf ogt, %89, %90 : vector<184x50xf32>
    %cst_69 = arith.constant 0.000000e+00 : f32
    %92 = vector.broadcast %cst_69 : f32 to vector<184x50xf32>
    %93 = arith.minimumf %89, %92 : vector<184x50xf32>
    %94 = math.exp %93 : vector<184x50xf32>
    %cst_70 = arith.constant 1.000000e+00 : f32
    %95 = vector.broadcast %cst_70 : f32 to vector<184x50xf32>
    %96 = arith.subf %94, %95 : vector<184x50xf32>
    %97 = arith.select %91, %89, %96 : vector<184x50xi1>, vector<184x50xf32>
    %98 = arith.maximumf %87, %97 : vector<184x50xf32>
    %c0_71 = arith.constant 0 : index
    %c0_72 = arith.constant 0 : index
    %99 = vector.load %arg14[%c0_71, %c0_72] : memref<184x50xf32, #tpu.memory_space<vmem>>, vector<184x50xf32>
    tpu.vector_store %arg14[%c0_71, %c0_72], %98 {strides = array<i32>} : memref<184x50xf32, #tpu.memory_space<vmem>>, vector<184x50xf32>,
    %c0_73 = arith.constant 0 : index
    %c0_74 = arith.constant 0 : index
    %100 = vector.load %arg7[%c0_73, %c0_74] : memref<1x100xf32, #tpu.memory_space<vmem>>, vector<1x100xf32>
    %cst_75 = arith.constant 0.000000e+00 : f32
    %101 = vector.broadcast %cst_75 : f32 to vector<90x100xf32>
    %cst_76 = arith.constant 0.000000e+00 : f32
    %102 = vector.broadcast %cst_76 : f32 to vector<90x100xf32>
    %c0_77 = arith.constant 0 : index
    %c0_78 = arith.constant 0 : index
    %c0_79 = arith.constant 0 : index
    %103 = vector.load %arg6[%c0_77, %c0_78, %c0_79] : memref<5x50x100xf32, #tpu.memory_space<vmem>>, vector<1x50x100xf32>
    %104 = vector.shape_cast %103 : vector<1x50x100xf32> to vector<50x100xf32>
    %c0_80 = arith.constant 0 : index
    %c0_81 = arith.constant 0 : index
    %105 = tpu.strided_load %arg14[%c0_80, %c0_81] {strides = array<i32: 2, 1>} : memref<184x50xf32, #tpu.memory_space<vmem>>, vector<90x50xf32>
    %cst_82 = arith.constant dense<0.000000e+00> : vector<90x100xf32>
    %106 = tpu.matmul %105, %104, %cst_82 {dimension_numbers = #tpu.dot_dimension_numbers<[1], [0], [0], [1], [0, 0, 1, 1], [], []>} : vector<90x50xf32>, vector<50x100xf32>, vector<90x100xf32> -> vector<90x100xf32>
    %107 = arith.addf %101, %106 : vector<90x100xf32>
    %c1_83 = arith.constant 1 : index
    %c0_84 = arith.constant 0 : index
    %108 = tpu.strided_load %arg14[%c1_83, %c0_84] {strides = array<i32: 2, 1>} : memref<184x50xf32, #tpu.memory_space<vmem>>, vector<90x50xf32>
    %cst_85 = arith.constant dense<0.000000e+00> : vector<90x100xf32>
    %109 = tpu.matmul %108, %104, %cst_85 {dimension_numbers = #tpu.dot_dimension_numbers<[1], [0], [0], [1], [0, 0, 1, 1], [], []>} : vector<90x50xf32>, vector<50x100xf32>, vector<90x100xf32> -> vector<90x100xf32>
    %110 = arith.addf %102, %109 : vector<90x100xf32>
    %c1_86 = arith.constant 1 : index
    %c0_87 = arith.constant 0 : index
    %c0_88 = arith.constant 0 : index
    %111 = vector.load %arg6[%c1_86, %c0_87, %c0_88] : memref<5x50x100xf32, #tpu.memory_space<vmem>>, vector<1x50x100xf32>
    %112 = vector.shape_cast %111 : vector<1x50x100xf32> to vector<50x100xf32>
    %c1_89 = arith.constant 1 : index
    %c0_90 = arith.constant 0 : index
    %113 = tpu.strided_load %arg14[%c1_89, %c0_90] {strides = array<i32: 2, 1>} : memref<184x50xf32, #tpu.memory_space<vmem>>, vector<90x50xf32>
    %cst_91 = arith.constant dense<0.000000e+00> : vector<90x100xf32>
    %114 = tpu.matmul %113, %112, %cst_91 {dimension_numbers = #tpu.dot_dimension_numbers<[1], [0], [0], [1], [0, 0, 1, 1], [], []>} : vector<90x50xf32>, vector<50x100xf32>, vector<90x100xf32> -> vector<90x100xf32>
    %115 = arith.addf %107, %114 : vector<90x100xf32>
    %c2_92 = arith.constant 2 : index
    %c0_93 = arith.constant 0 : index
    %116 = tpu.strided_load %arg14[%c2_92, %c0_93] {strides = array<i32: 2, 1>} : memref<184x50xf32, #tpu.memory_space<vmem>>, vector<90x50xf32>
    %cst_94 = arith.constant dense<0.000000e+00> : vector<90x100xf32>
    %117 = tpu.matmul %116, %112, %cst_94 {dimension_numbers = #tpu.dot_dimension_numbers<[1], [0], [0], [1], [0, 0, 1, 1], [], []>} : vector<90x50xf32>, vector<50x100xf32>, vector<90x100xf32> -> vector<90x100xf32>
    %118 = arith.addf %110, %117 : vector<90x100xf32>
    %c2_95 = arith.constant 2 : index
    %c0_96 = arith.constant 0 : index
    %c0_97 = arith.constant 0 : index
    %119 = vector.load %arg6[%c2_95, %c0_96, %c0_97] : memref<5x50x100xf32, #tpu.memory_space<vmem>>, vector<1x50x100xf32>
    %120 = vector.shape_cast %119 : vector<1x50x100xf32> to vector<50x100xf32>
    %c2_98 = arith.constant 2 : index
    %c0_99 = arith.constant 0 : index
    %121 = tpu.strided_load %arg14[%c2_98, %c0_99] {strides = array<i32: 2, 1>} : memref<184x50xf32, #tpu.memory_space<vmem>>, vector<90x50xf32>
    %cst_100 = arith.constant dense<0.000000e+00> : vector<90x100xf32>
    %122 = tpu.matmul %121, %120, %cst_100 {dimension_numbers = #tpu.dot_dimension_numbers<[1], [0], [0], [1], [0, 0, 1, 1], [], []>} : vector<90x50xf32>, vector<50x100xf32>, vector<90x100xf32> -> vector<90x100xf32>
    %123 = arith.addf %115, %122 : vector<90x100xf32>
    %c3_101 = arith.constant 3 : index
    %c0_102 = arith.constant 0 : index
    %124 = tpu.strided_load %arg14[%c3_101, %c0_102] {strides = array<i32: 2, 1>} : memref<184x50xf32, #tpu.memory_space<vmem>>, vector<90x50xf32>
    %cst_103 = arith.constant dense<0.000000e+00> : vector<90x100xf32>
    %125 = tpu.matmul %124, %120, %cst_103 {dimension_numbers = #tpu.dot_dimension_numbers<[1], [0], [0], [1], [0, 0, 1, 1], [], []>} : vector<90x50xf32>, vector<50x100xf32>, vector<90x100xf32> -> vector<90x100xf32>
    %126 = arith.addf %118, %125 : vector<90x100xf32>
    %c3_104 = arith.constant 3 : index
    %c0_105 = arith.constant 0 : index
    %c0_106 = arith.constant 0 : index
    %127 = vector.load %arg6[%c3_104, %c0_105, %c0_106] : memref<5x50x100xf32, #tpu.memory_space<vmem>>, vector<1x50x100xf32>
    %128 = vector.shape_cast %127 : vector<1x50x100xf32> to vector<50x100xf32>
    %c3_107 = arith.constant 3 : index
    %c0_108 = arith.constant 0 : index
    %129 = tpu.strided_load %arg14[%c3_107, %c0_108] {strides = array<i32: 2, 1>} : memref<184x50xf32, #tpu.memory_space<vmem>>, vector<90x50xf32>
    %cst_109 = arith.constant dense<0.000000e+00> : vector<90x100xf32>
    %130 = tpu.matmul %129, %128, %cst_109 {dimension_numbers = #tpu.dot_dimension_numbers<[1], [0], [0], [1], [0, 0, 1, 1], [], []>} : vector<90x50xf32>, vector<50x100xf32>, vector<90x100xf32> -> vector<90x100xf32>
    %131 = arith.addf %123, %130 : vector<90x100xf32>
    %c4_110 = arith.constant 4 : index
    %c0_111 = arith.constant 0 : index
    %132 = tpu.strided_load %arg14[%c4_110, %c0_111] {strides = array<i32: 2, 1>} : memref<184x50xf32, #tpu.memory_space<vmem>>, vector<90x50xf32>
    %cst_112 = arith.constant dense<0.000000e+00> : vector<90x100xf32>
    %133 = tpu.matmul %132, %128, %cst_112 {dimension_numbers = #tpu.dot_dimension_numbers<[1], [0], [0], [1], [0, 0, 1, 1], [], []>} : vector<90x50xf32>, vector<50x100xf32>, vector<90x100xf32> -> vector<90x100xf32>
    %134 = arith.addf %126, %133 : vector<90x100xf32>
    %c4_113 = arith.constant 4 : index
    %c0_114 = arith.constant 0 : index
    %c0_115 = arith.constant 0 : index
    %135 = vector.load %arg6[%c4_113, %c0_114, %c0_115] : memref<5x50x100xf32, #tpu.memory_space<vmem>>, vector<1x50x100xf32>
    %136 = vector.shape_cast %135 : vector<1x50x100xf32> to vector<50x100xf32>
    %c4_116 = arith.constant 4 : index
    %c0_117 = arith.constant 0 : index
    %137 = tpu.strided_load %arg14[%c4_116, %c0_117] {strides = array<i32: 2, 1>} : memref<184x50xf32, #tpu.memory_space<vmem>>, vector<90x50xf32>
    %cst_118 = arith.constant dense<0.000000e+00> : vector<90x100xf32>
    %138 = tpu.matmul %137, %136, %cst_118 {dimension_numbers = #tpu.dot_dimension_numbers<[1], [0], [0], [1], [0, 0, 1, 1], [], []>} : vector<90x50xf32>, vector<50x100xf32>, vector<90x100xf32> -> vector<90x100xf32>
    %139 = arith.addf %131, %138 : vector<90x100xf32>
    %c5_119 = arith.constant 5 : index
    %c0_120 = arith.constant 0 : index
    %140 = tpu.strided_load %arg14[%c5_119, %c0_120] {strides = array<i32: 2, 1>} : memref<184x50xf32, #tpu.memory_space<vmem>>, vector<90x50xf32>
    %cst_121 = arith.constant dense<0.000000e+00> : vector<90x100xf32>
    %141 = tpu.matmul %140, %136, %cst_121 {dimension_numbers = #tpu.dot_dimension_numbers<[1], [0], [0], [1], [0, 0, 1, 1], [], []>} : vector<90x50xf32>, vector<50x100xf32>, vector<90x100xf32> -> vector<90x100xf32>
    %142 = arith.addf %134, %141 : vector<90x100xf32>
    %143 = vector.broadcast %100 : vector<1x100xf32> to vector<90x100xf32>
    %144 = arith.addf %139, %143 : vector<90x100xf32>
    %cst_122 = arith.constant 0.000000e+00 : f32
    %145 = vector.broadcast %cst_122 : f32 to vector<90x100xf32>
    %146 = arith.cmpf ogt, %144, %145 : vector<90x100xf32>
    %cst_123 = arith.constant 0.000000e+00 : f32
    %147 = vector.broadcast %cst_123 : f32 to vector<90x100xf32>
    %148 = arith.minimumf %144, %147 : vector<90x100xf32>
    %149 = math.exp %148 : vector<90x100xf32>
    %cst_124 = arith.constant 1.000000e+00 : f32
    %150 = vector.broadcast %cst_124 : f32 to vector<90x100xf32>
    %151 = arith.subf %149, %150 : vector<90x100xf32>
    %152 = arith.select %146, %144, %151 : vector<90x100xi1>, vector<90x100xf32>
    %153 = vector.broadcast %100 : vector<1x100xf32> to vector<90x100xf32>
    %154 = arith.addf %142, %153 : vector<90x100xf32>
    %cst_125 = arith.constant 0.000000e+00 : f32
    %155 = vector.broadcast %cst_125 : f32 to vector<90x100xf32>
    %156 = arith.cmpf ogt, %154, %155 : vector<90x100xf32>
    %cst_126 = arith.constant 0.000000e+00 : f32
    %157 = vector.broadcast %cst_126 : f32 to vector<90x100xf32>
    %158 = arith.minimumf %154, %157 : vector<90x100xf32>
    %159 = math.exp %158 : vector<90x100xf32>
    %cst_127 = arith.constant 1.000000e+00 : f32
    %160 = vector.broadcast %cst_127 : f32 to vector<90x100xf32>
    %161 = arith.subf %159, %160 : vector<90x100xf32>
    %162 = arith.select %156, %154, %161 : vector<90x100xi1>, vector<90x100xf32>
    %163 = arith.maximumf %152, %162 : vector<90x100xf32>
    %c0_128 = arith.constant 0 : index
    %c0_129 = arith.constant 0 : index
    %164 = vector.load %arg15[%c0_128, %c0_129] : memref<90x100xf32, #tpu.memory_space<vmem>>, vector<90x100xf32>
    tpu.vector_store %arg15[%c0_128, %c0_129], %163 {strides = array<i32>} : memref<90x100xf32, #tpu.memory_space<vmem>>, vector<90x100xf32>,
    %c0_130 = arith.constant 0 : index
    %c0_131 = arith.constant 0 : index
    %165 = vector.load %arg9[%c0_130, %c0_131] : memref<1x200xf32, #tpu.memory_space<vmem>>, vector<1x200xf32>
    %cst_132 = arith.constant 0.000000e+00 : f32
    %166 = vector.broadcast %cst_132 : f32 to vector<43x200xf32>
    %cst_133 = arith.constant 0.000000e+00 : f32
    %167 = vector.broadcast %cst_133 : f32 to vector<43x200xf32>
    %c0_134 = arith.constant 0 : index
    %c0_135 = arith.constant 0 : index
    %c0_136 = arith.constant 0 : index
    %168 = vector.load %arg8[%c0_134, %c0_135, %c0_136] : memref<5x100x200xf32, #tpu.memory_space<vmem>>, vector<1x100x200xf32>
    %169 = vector.shape_cast %168 : vector<1x100x200xf32> to vector<100x200xf32>
    %c0_137 = arith.constant 0 : index
    %c0_138 = arith.constant 0 : index
    %170 = tpu.strided_load %arg15[%c0_137, %c0_138] {strides = array<i32: 2, 1>} : memref<90x100xf32, #tpu.memory_space<vmem>>, vector<43x100xf32>
    %cst_139 = arith.constant dense<0.000000e+00> : vector<43x200xf32>
    %171 = tpu.matmul %170, %169, %cst_139 {dimension_numbers = #tpu.dot_dimension_numbers<[1], [0], [0], [1], [0, 0, 1, 1], [], []>} : vector<43x100xf32>, vector<100x200xf32>, vector<43x200xf32> -> vector<43x200xf32>
    %172 = arith.addf %166, %171 : vector<43x200xf32>
    %c1_140 = arith.constant 1 : index
    %c0_141 = arith.constant 0 : index
    %173 = tpu.strided_load %arg15[%c1_140, %c0_141] {strides = array<i32: 2, 1>} : memref<90x100xf32, #tpu.memory_space<vmem>>, vector<43x100xf32>
    %cst_142 = arith.constant dense<0.000000e+00> : vector<43x200xf32>
    %174 = tpu.matmul %173, %169, %cst_142 {dimension_numbers = #tpu.dot_dimension_numbers<[1], [0], [0], [1], [0, 0, 1, 1], [], []>} : vector<43x100xf32>, vector<100x200xf32>, vector<43x200xf32> -> vector<43x200xf32>
    %175 = arith.addf %167, %174 : vector<43x200xf32>
    %c1_143 = arith.constant 1 : index
    %c0_144 = arith.constant 0 : index
    %c0_145 = arith.constant 0 : index
    %176 = vector.load %arg8[%c1_143, %c0_144, %c0_145] : memref<5x100x200xf32, #tpu.memory_space<vmem>>, vector<1x100x200xf32>
    %177 = vector.shape_cast %176 : vector<1x100x200xf32> to vector<100x200xf32>
    %c1_146 = arith.constant 1 : index
    %c0_147 = arith.constant 0 : index
    %178 = tpu.strided_load %arg15[%c1_146, %c0_147] {strides = array<i32: 2, 1>} : memref<90x100xf32, #tpu.memory_space<vmem>>, vector<43x100xf32>
    %cst_148 = arith.constant dense<0.000000e+00> : vector<43x200xf32>
    %179 = tpu.matmul %178, %177, %cst_148 {dimension_numbers = #tpu.dot_dimension_numbers<[1], [0], [0], [1], [0, 0, 1, 1], [], []>} : vector<43x100xf32>, vector<100x200xf32>, vector<43x200xf32> -> vector<43x200xf32>
    %180 = arith.addf %172, %179 : vector<43x200xf32>
    %c2_149 = arith.constant 2 : index
    %c0_150 = arith.constant 0 : index
    %181 = tpu.strided_load %arg15[%c2_149, %c0_150] {strides = array<i32: 2, 1>} : memref<90x100xf32, #tpu.memory_space<vmem>>, vector<43x100xf32>
    %cst_151 = arith.constant dense<0.000000e+00> : vector<43x200xf32>
    %182 = tpu.matmul %181, %177, %cst_151 {dimension_numbers = #tpu.dot_dimension_numbers<[1], [0], [0], [1], [0, 0, 1, 1], [], []>} : vector<43x100xf32>, vector<100x200xf32>, vector<43x200xf32> -> vector<43x200xf32>
    %183 = arith.addf %175, %182 : vector<43x200xf32>
    %c2_152 = arith.constant 2 : index
    %c0_153 = arith.constant 0 : index
    %c0_154 = arith.constant 0 : index
    %184 = vector.load %arg8[%c2_152, %c0_153, %c0_154] : memref<5x100x200xf32, #tpu.memory_space<vmem>>, vector<1x100x200xf32>
    %185 = vector.shape_cast %184 : vector<1x100x200xf32> to vector<100x200xf32>
    %c2_155 = arith.constant 2 : index
    %c0_156 = arith.constant 0 : index
    %186 = tpu.strided_load %arg15[%c2_155, %c0_156] {strides = array<i32: 2, 1>} : memref<90x100xf32, #tpu.memory_space<vmem>>, vector<43x100xf32>
    %cst_157 = arith.constant dense<0.000000e+00> : vector<43x200xf32>
    %187 = tpu.matmul %186, %185, %cst_157 {dimension_numbers = #tpu.dot_dimension_numbers<[1], [0], [0], [1], [0, 0, 1, 1], [], []>} : vector<43x100xf32>, vector<100x200xf32>, vector<43x200xf32> -> vector<43x200xf32>
    %188 = arith.addf %180, %187 : vector<43x200xf32>
    %c3_158 = arith.constant 3 : index
    %c0_159 = arith.constant 0 : index
    %189 = tpu.strided_load %arg15[%c3_158, %c0_159] {strides = array<i32: 2, 1>} : memref<90x100xf32, #tpu.memory_space<vmem>>, vector<43x100xf32>
    %cst_160 = arith.constant dense<0.000000e+00> : vector<43x200xf32>
    %190 = tpu.matmul %189, %185, %cst_160 {dimension_numbers = #tpu.dot_dimension_numbers<[1], [0], [0], [1], [0, 0, 1, 1], [], []>} : vector<43x100xf32>, vector<100x200xf32>, vector<43x200xf32> -> vector<43x200xf32>
    %191 = arith.addf %183, %190 : vector<43x200xf32>
    %c3_161 = arith.constant 3 : index
    %c0_162 = arith.constant 0 : index
    %c0_163 = arith.constant 0 : index
    %192 = vector.load %arg8[%c3_161, %c0_162, %c0_163] : memref<5x100x200xf32, #tpu.memory_space<vmem>>, vector<1x100x200xf32>
    %193 = vector.shape_cast %192 : vector<1x100x200xf32> to vector<100x200xf32>
    %c3_164 = arith.constant 3 : index
    %c0_165 = arith.constant 0 : index
    %194 = tpu.strided_load %arg15[%c3_164, %c0_165] {strides = array<i32: 2, 1>} : memref<90x100xf32, #tpu.memory_space<vmem>>, vector<43x100xf32>
    %cst_166 = arith.constant dense<0.000000e+00> : vector<43x200xf32>
    %195 = tpu.matmul %194, %193, %cst_166 {dimension_numbers = #tpu.dot_dimension_numbers<[1], [0], [0], [1], [0, 0, 1, 1], [], []>} : vector<43x100xf32>, vector<100x200xf32>, vector<43x200xf32> -> vector<43x200xf32>
    %196 = arith.addf %188, %195 : vector<43x200xf32>
    %c4_167 = arith.constant 4 : index
    %c0_168 = arith.constant 0 : index
    %197 = tpu.strided_load %arg15[%c4_167, %c0_168] {strides = array<i32: 2, 1>} : memref<90x100xf32, #tpu.memory_space<vmem>>, vector<43x100xf32>
    %cst_169 = arith.constant dense<0.000000e+00> : vector<43x200xf32>
    %198 = tpu.matmul %197, %193, %cst_169 {dimension_numbers = #tpu.dot_dimension_numbers<[1], [0], [0], [1], [0, 0, 1, 1], [], []>} : vector<43x100xf32>, vector<100x200xf32>, vector<43x200xf32> -> vector<43x200xf32>
    %199 = arith.addf %191, %198 : vector<43x200xf32>
    %c4_170 = arith.constant 4 : index
    %c0_171 = arith.constant 0 : index
    %c0_172 = arith.constant 0 : index
    %200 = vector.load %arg8[%c4_170, %c0_171, %c0_172] : memref<5x100x200xf32, #tpu.memory_space<vmem>>, vector<1x100x200xf32>
    %201 = vector.shape_cast %200 : vector<1x100x200xf32> to vector<100x200xf32>
    %c4_173 = arith.constant 4 : index
    %c0_174 = arith.constant 0 : index
    %202 = tpu.strided_load %arg15[%c4_173, %c0_174] {strides = array<i32: 2, 1>} : memref<90x100xf32, #tpu.memory_space<vmem>>, vector<43x100xf32>
    %cst_175 = arith.constant dense<0.000000e+00> : vector<43x200xf32>
    %203 = tpu.matmul %202, %201, %cst_175 {dimension_numbers = #tpu.dot_dimension_numbers<[1], [0], [0], [1], [0, 0, 1, 1], [], []>} : vector<43x100xf32>, vector<100x200xf32>, vector<43x200xf32> -> vector<43x200xf32>
    %204 = arith.addf %196, %203 : vector<43x200xf32>
    %c5_176 = arith.constant 5 : index
    %c0_177 = arith.constant 0 : index
    %205 = tpu.strided_load %arg15[%c5_176, %c0_177] {strides = array<i32: 2, 1>} : memref<90x100xf32, #tpu.memory_space<vmem>>, vector<43x100xf32>
    %cst_178 = arith.constant dense<0.000000e+00> : vector<43x200xf32>
    %206 = tpu.matmul %205, %201, %cst_178 {dimension_numbers = #tpu.dot_dimension_numbers<[1], [0], [0], [1], [0, 0, 1, 1], [], []>} : vector<43x100xf32>, vector<100x200xf32>, vector<43x200xf32> -> vector<43x200xf32>
    %207 = arith.addf %199, %206 : vector<43x200xf32>
    %208 = vector.broadcast %165 : vector<1x200xf32> to vector<43x200xf32>
    %209 = arith.addf %204, %208 : vector<43x200xf32>
    %cst_179 = arith.constant 0.000000e+00 : f32
    %210 = vector.broadcast %cst_179 : f32 to vector<43x200xf32>
    %211 = arith.cmpf ogt, %209, %210 : vector<43x200xf32>
    %cst_180 = arith.constant 0.000000e+00 : f32
    %212 = vector.broadcast %cst_180 : f32 to vector<43x200xf32>
    %213 = arith.minimumf %209, %212 : vector<43x200xf32>
    %214 = math.exp %213 : vector<43x200xf32>
    %cst_181 = arith.constant 1.000000e+00 : f32
    %215 = vector.broadcast %cst_181 : f32 to vector<43x200xf32>
    %216 = arith.subf %214, %215 : vector<43x200xf32>
    %217 = arith.select %211, %209, %216 : vector<43x200xi1>, vector<43x200xf32>
    %218 = vector.broadcast %165 : vector<1x200xf32> to vector<43x200xf32>
    %219 = arith.addf %207, %218 : vector<43x200xf32>
    %cst_182 = arith.constant 0.000000e+00 : f32
    %220 = vector.broadcast %cst_182 : f32 to vector<43x200xf32>
    %221 = arith.cmpf ogt, %219, %220 : vector<43x200xf32>
    %cst_183 = arith.constant 0.000000e+00 : f32
    %222 = vector.broadcast %cst_183 : f32 to vector<43x200xf32>
    %223 = arith.minimumf %219, %222 : vector<43x200xf32>
    %224 = math.exp %223 : vector<43x200xf32>
    %cst_184 = arith.constant 1.000000e+00 : f32
    %225 = vector.broadcast %cst_184 : f32 to vector<43x200xf32>
    %226 = arith.subf %224, %225 : vector<43x200xf32>
    %227 = arith.select %221, %219, %226 : vector<43x200xi1>, vector<43x200xf32>
    %228 = arith.maximumf %217, %227 : vector<43x200xf32>
    %c0_185 = arith.constant 0 : index
    %c0_186 = arith.constant 0 : index
    %c0_187 = arith.constant 0 : index
    %229 = vector.load %arg10[%c0_185, %c0_186, %c0_187] : memref<2x43x200xf32, #tpu.memory_space<vmem>>, vector<1x43x200xf32>
    %230 = vector.shape_cast %229 : vector<1x43x200xf32> to vector<43x200xf32>
    %231 = arith.mulf %228, %230 : vector<43x200xf32>
    %cst_188 = arith.constant dense<0.000000e+00> : vector<43xf32>
    %232 = vector.multi_reduction <add>, %231, %cst_188 [1] : vector<43x200xf32> to vector<43xf32>
    %233 = vector.shape_cast %232 : vector<43xf32> to vector<43x1xf32>
    %c1_189 = arith.constant 1 : index
    %c0_190 = arith.constant 0 : index
    %c0_191 = arith.constant 0 : index
    %234 = vector.load %arg10[%c1_189, %c0_190, %c0_191] : memref<2x43x200xf32, #tpu.memory_space<vmem>>, vector<1x43x200xf32>
    %235 = vector.shape_cast %234 : vector<1x43x200xf32> to vector<43x200xf32>
    %236 = arith.mulf %228, %235 : vector<43x200xf32>
    %cst_192 = arith.constant dense<0.000000e+00> : vector<43xf32>
    %237 = vector.multi_reduction <add>, %236, %cst_192 [1] : vector<43x200xf32> to vector<43xf32>
    %238 = vector.shape_cast %237 : vector<43xf32> to vector<43x1xf32>
    %239 = tpu.iota {dimensions = array<i32: 1>} : vector<43x2xi32>
    %c0_i32 = arith.constant 0 : i32
    %240 = vector.broadcast %c0_i32 : i32 to vector<43x2xi32>
    %241 = arith.cmpi eq, %239, %240 : vector<43x2xi32>
    %242 = vector.shape_cast %233 : vector<43x1xf32> to vector<43x1xf32>
    %243 = vector.broadcast %242 : vector<43x1xf32> to vector<43x2xf32>
    %244 = vector.shape_cast %238 : vector<43x1xf32> to vector<43x1xf32>
    %245 = vector.broadcast %244 : vector<43x1xf32> to vector<43x2xf32>
    %246 = arith.select %241, %243, %245 : vector<43x2xi1>, vector<43x2xf32>
    %cst_193 = arith.constant dense<0.000000e+00> : vector<2xf32>
    %247 = vector.multi_reduction <add>, %246, %cst_193 [0] : vector<43x2xf32> to vector<2xf32>
    %248 = vector.shape_cast %247 : vector<2xf32> to vector<1x2xf32>
    %c0_194 = arith.constant 0 : index
    %c0_195 = arith.constant 0 : index
    %249 = vector.load %arg11[%c0_194, %c0_195] : memref<1x2xf32, #tpu.memory_space<vmem>>, vector<1x2xf32>
    %250 = arith.addf %248, %249 : vector<1x2xf32>
    %c0_196 = arith.constant 0 : index
    %c0_197 = arith.constant 0 : index
    %c0_198 = arith.constant 0 : index
    %251 = vector.load %arg12[%c0_196, %c0_197, %c0_198] : memref<1x1x2xf32, #tpu.memory_space<vmem>>, vector<1x1x2xf32>
    %252 = vector.shape_cast %251 : vector<1x1x2xf32> to vector<1x2xf32>
    %253 = vector.shape_cast %250 : vector<1x2xf32> to vector<1x1x2xf32>
    tpu.vector_store %arg12[%c0_196, %c0_197, %c0_198], %253 {strides = array<i32>} : memref<1x1x2xf32, #tpu.memory_space<vmem>>, vector<1x1x2xf32>,
    return
  }
  func.func @transform_0(%arg0: i32) -> (i32, i32, i32) {
    %c0_i32 = arith.constant 0 : i32
    %c0_i32_0 = arith.constant 0 : i32
    %c0_i32_1 = arith.constant 0 : i32
    return %arg0, %c0_i32, %c0_i32_0 : i32, i32, i32
  }
  func.func @transform_1(%arg0: i32) -> (i32, i32, i32) {
    %c0_i32 = arith.constant 0 : i32
    %c0_i32_0 = arith.constant 0 : i32
    %c0_i32_1 = arith.constant 0 : i32
    %c0_i32_2 = arith.constant 0 : i32
    return %c0_i32, %c0_i32_0, %c0_i32_1 : i32, i32, i32
  }
  func.func @transform_2(%arg0: i32) -> (i32, i32) {
    %c0_i32 = arith.constant 0 : i32
    %c0_i32_0 = arith.constant 0 : i32
    %c0_i32_1 = arith.constant 0 : i32
    return %c0_i32, %c0_i32_0 : i32, i32
  }
  func.func @transform_3(%arg0: i32) -> (i32, i32, i32) {
    %c0_i32 = arith.constant 0 : i32
    %c0_i32_0 = arith.constant 0 : i32
    %c0_i32_1 = arith.constant 0 : i32
    %c0_i32_2 = arith.constant 0 : i32
    return %c0_i32, %c0_i32_0, %c0_i32_1 : i32, i32, i32
  }
  func.func @transform_4(%arg0: i32) -> (i32, i32) {
    %c0_i32 = arith.constant 0 : i32
    %c0_i32_0 = arith.constant 0 : i32
    %c0_i32_1 = arith.constant 0 : i32
    return %c0_i32, %c0_i32_0 : i32, i32
  }
  func.func @transform_5(%arg0: i32) -> (i32, i32, i32) {
    %c0_i32 = arith.constant 0 : i32
    %c0_i32_0 = arith.constant 0 : i32
    %c0_i32_1 = arith.constant 0 : i32
    %c0_i32_2 = arith.constant 0 : i32
    return %c0_i32, %c0_i32_0, %c0_i32_1 : i32, i32, i32
  }
  func.func @transform_6(%arg0: i32) -> (i32, i32) {
    %c0_i32 = arith.constant 0 : i32
    %c0_i32_0 = arith.constant 0 : i32
    %c0_i32_1 = arith.constant 0 : i32
    return %c0_i32, %c0_i32_0 : i32, i32
  }
  func.func @transform_7(%arg0: i32) -> (i32, i32, i32) {
    %c0_i32 = arith.constant 0 : i32
    %c0_i32_0 = arith.constant 0 : i32
    %c0_i32_1 = arith.constant 0 : i32
    %c0_i32_2 = arith.constant 0 : i32
    return %c0_i32, %c0_i32_0, %c0_i32_1 : i32, i32, i32
  }
  func.func @transform_8(%arg0: i32) -> (i32, i32) {
    %c0_i32 = arith.constant 0 : i32
    %c0_i32_0 = arith.constant 0 : i32
    %c0_i32_1 = arith.constant 0 : i32
    return %c0_i32, %c0_i32_0 : i32, i32
  }
  func.func @transform_9(%arg0: i32) -> (i32, i32, i32) {
    %c0_i32 = arith.constant 0 : i32
    %c0_i32_0 = arith.constant 0 : i32
    %c0_i32_1 = arith.constant 0 : i32
    %c0_i32_2 = arith.constant 0 : i32
    return %c0_i32, %c0_i32_0, %c0_i32_1 : i32, i32, i32
  }
  func.func @transform_10(%arg0: i32) -> (i32, i32) {
    %c0_i32 = arith.constant 0 : i32
    %c0_i32_0 = arith.constant 0 : i32
    %c0_i32_1 = arith.constant 0 : i32
    return %c0_i32, %c0_i32_0 : i32, i32
  }
  func.func @transform_11(%arg0: i32) -> (i32, i32, i32) {
    %c0_i32 = arith.constant 0 : i32
    %c0_i32_0 = arith.constant 0 : i32
    %c0_i32_1 = arith.constant 0 : i32
    return %arg0, %c0_i32, %c0_i32_0 : i32, i32, i32
  }
}

</mosaic_0001>

<bundles_post_ra>
// kernel: forward.1
= control target key start
LH: loop header
LB: loop body
LE: loop exit
PB: predicated region body
PF: predicated region fallthrough
CT: control target
= control target key end

     0   :  { %s12270_s0 = inlined_call_operand.vmem [shape: f32[2,746,10], index: 0, kind: input, shape index: {}]   ;;  %s12271_s1 = inlined_call_operand.vmem [shape: f32[1,10,25], index: 1, kind: input, shape index: {}]   ;;  %s12272_s2 = inlined_call_operand.vmem [shape: f32[1,25], index: 2, kind: input, shape index: {}]   ;;  %s12273_s3 = inlined_call_operand.vmem [shape: f32[5,25,50], index: 3, kind: input, shape index: {}]   ;;  %s12274_s4 = inlined_call_operand.vmem [shape: f32[1,50], index: 4, kind: input, shape index: {}]   ;;  %s12275_s5 = inlined_call_operand.vmem [shape: f32[5,50,100], index: 5, kind: input, shape index: {}]   ;;  %s12276_s6 = inlined_call_operand.vmem [shape: f32[1,100], index: 6, kind: input, shape index: {}]   ;;  %s12277_s7 = inlined_call_operand.vmem [shape: f32[5,100,200], index: 7, kind: input, shape index: {}]   ;;  %s12278_s8 = inlined_call_operand.vmem [shape: f32[1,200], index: 8, kind: input, shape index: {}]   ;;  %s12279_s9 = inlined_call_operand.vmem [shape: f32[2,43,200], index: 9, kind: input, shape index: {}]   ;;  %s12280_s10 = inlined_call_operand.vmem [shape: f32[1,2], index: 10, kind: input, shape index: {}]   ;;  %s12281_s11 = inlined_call_operand.hbm [shape: f32[2,1,2], index: 11, kind: output, shape index: {}]  }
   0x1   :  { %12290 = sst [smem:[#allocation74_spill]] %s12270_s0 }
   0x2   :  { %16 = vsyncpa [#allocation6], 0 }
   0x3   :  { %18 = vsyncpa [#allocation6 + $0x1], 0  ;;  %s8301_s17 = smov 0   ;;  %s8303_s18 = smov 0  }
   0x4   :  { %s8305_s19 = smov 0   ;;  %s8307_s20 = smov 0  }
   0x5 LB: > { %s8322_s21 = sadd.s32 4294967295, %s8239_s20   ;;  %s6657_s22 = sadd.s32 4294967294, %s8239_s20   ;;  %s8239_s20 = sphi %s8307_s20, %s12479_s20   ;;  %s8235_s19 = sphi %s8305_s19, %s12478_s19   ;;  %s8231_s18 = sphi %s8303_s18, %s12477_s18   ;;  %s8227_s17 = sphi %s8301_s17, %s12476_s17  }
   0x6   : > { %s8326_s23 = sadd.s32 1, %s8239_s20   ;;  %s267_s24 = sadd.s32 1, %s8235_s19 }
   0x7   : > { %s264_s25 = ssub.s32 %s8239_s20, %s8326_s23  ;;  %p277_p0 = scmp.ne.s32.totalorder %s8235_s19, %s8231_s18 }
   0x8   : > { %p265_p1 = scmp.eq.s32.totalorder %s264_s25, 0  ;;  %p278_p2 = scmp.eq.s32.totalorder %s8322_s21, 1 }
   0x9   : > { %p283_p3 = scmp.ne.s32.totalorder %s8231_s18, %s8227_s17  ;;  %p284_p4 = scmp.eq.s32.totalorder %s6657_s22, 1 }
   0xa   : > { %s8337_s26 = scalar_select %p265_p1, %s8235_s19, %s267_s24  }
   0xb   : > { %p8339_p5 = por %p278_p2, %p277_p0  ;;  %p8343_p6 = por %p284_p4, %p283_p3 }
   0xc   : > { %p6660_p7 = scmp.ge.s32.totalorder %s8239_s20, 1  ;;  %p340_p8 = scmp.lt.s32.totalorder %s8239_s20, 3 }
   0xe   : > { %p341_p9 = pnand %p6660_p7, %p340_p8 }
  0x10   : > { %344 = sbr.rel (%p341_p9) target bundleno = 2127 (0x84f), region = 64 }
  0x15   : > { %v386_v0 = vld [vmem:[%s12271_s1 + $0x8] sm:$0x3]  ;;  %vm719_vm0 = vcmask 1041408   ;;  %v385_v1 = vld [vmem:[%s12271_s1] sm:$0xff]  ;;  %p379_p10 = scmp.lt.s32.totalorder %s8322_s21, 1  ;;  %vm577_vm1 = vcmask 80896   ;;  %s6598_s16 = scalar_lea.hbm %s12281_s11, %s8322_s21 }
  0x16   : > { %6755 = vmatpush.msk.msra.mxu0 %vm719_vm0, %v386_v0  ;;  %6850 = vmatpush.msk.msra.mxu1 %vm719_vm0, %v386_v0  ;;  %s12293_s0 = sld [smem:[#allocation74_spill]]  ;;  %v6948_v34 = vld [vmem:[%s12273_s3 + $0x38] sm:$0x1]  ;;  %vm2010_vm2 = vcmask 1040384   ;;  %v8437_v36 = vld [vmem:[%s12272_s2] ss:$0 sm:$0xff] }
  0x17   : > { %s380_s14 = scalar_select %p379_p10, %s8322_s21, 1  ;;  %v1844_v35 = vld [vmem:[%s12273_s3 + $0x18] sm:$0x1]  ;;  %6949 = vmatpush.msk.msra.mxu2 %vm2010_vm2, %v6948_v34  ;;  %v6947_v37 = vld [vmem:[%s12273_s3 + $0x30] sm:$0xff]  ;;  %v6946_v43 = vld [vmem:[%s12273_s3 + $0x28] sm:$0xff]  ;;  %vm1791_vm5 = vcmask 203776  }
  0x18   : > { %738 = vmatpush.msra.mxu0 %v385_v1  ;;  %1319 = vmatpush.msra.mxu1 %v385_v1  ;;  %v1843_v38 = vld [vmem:[%s12273_s3 + $0x10] sm:$0xff]  ;;  %v1842_v44 = vld [vmem:[%s12273_s3 + $0x8] sm:$0xff]  ;;  %v6945_v47 = vld [vmem:[%s12273_s3 + $0x20] sm:$0xff]  ;;  %s377_s13 = sand.u32 1, %s8231_s18   ;;  %s6602_s30 = sshll.u32 %s6598_s16, 4  ;;  %s6603_s30 = int_to_ptr.hbm [resolvable:$true] %s6602_s30 }
  0x19   : > { %s7711_s15 = smul.u32 752, %s380_s14  ;;  %6973 = vmatpush.msk.msra.mxu3 %vm2010_vm2, %v1844_v35  ;;  %2027 = vmatpush.msra.mxu2 %v6947_v37  ;;  %v1841_v48 = vld [vmem:[%s12273_s3] sm:$0xff]  ;;  %s6590_s12 = scalar_lea.sflag [#allocation6], %s377_s13 }
  0x1a   : > { %s8197_s22 = scalar_lea.hbm %s12281_s11, 2 }
  0x1b   : > { %2185 = vmatpush.msra.mxu3 %v1843_v38  ;;  %2028 = vmatpush.msra.mxu2 %v6946_v43 }
  0x1c   : > { %s8362_s24 = scalar_lea.vmem %s12293_s0, %s7711_s15  ;;  %s8191_s0 = sshra.s32 %s6603_s30, 4  ;;  %s8192_s0 = int_to_ptr.hbm [resolvable:$true] %s8191_s0 }
  0x1d   : > { %v387_v2 = vld [vmem:[%s8362_s24] ss:$2 sm:$0xff]  ;;  %v6708_v3 = vld [vmem:[%s8362_s24 + $0x1] ss:$2 sm:$0xff]  ;;  %v6662_v4 = vld [vmem:[%s8362_s24 + $0x10] ss:$2 sm:$0xff]  ;;  %2186 = vmatpush.msra.mxu3 %v1842_v44  ;;  %2029 = vmatpush.msra.mxu2 %v6945_v47  ;;  %p8198_p0 = scmp.lt.s32.totalorder %s8192_s0, %s12281_s11 }
  0x1e   : > { %6756 = vmatmul.msk.f32.vlgmr.msra.gmra.mxu0 %vm577_vm1, %v387_v2  ;;  %6851 = vmatmul.msk.f32.vlgmr.msra.gmra.mxu1 %vm577_vm1, %v6708_v3  ;;  %v6709_v5 = vld [vmem:[%s8362_s24 + $0x11] ss:$2 sm:$0xff]  ;;  %v6663_v6 = vld [vmem:[%s8362_s24 + $0x20] ss:$2 sm:$0xff]  ;;  %v6710_v7 = vld [vmem:[%s8362_s24 + $0x21] ss:$2 sm:$0xff] }
  0x1f   : > { %v6664_v8 = vld [vmem:[%s8362_s24 + $0x30] ss:$2 sm:$0xff]  ;;  %v6711_v9 = vld [vmem:[%s8362_s24 + $0x31] ss:$2 sm:$0xff]  ;;  %v6665_v10 = vld [vmem:[%s8362_s24 + $0x40] ss:$2 sm:$0xff]  ;;  %2187 = vmatpush.msra.mxu3 %v1841_v48  ;;  %6997 = vmatpush.msk.msrb.mxu2 %vm2010_vm2, %v6948_v34 }
  0x20   : > { %v6712_v11 = vld [vmem:[%s8362_s24 + $0x41] ss:$2 sm:$0xff]  ;;  %v6666_v12 = vld [vmem:[%s8362_s24 + $0x50] ss:$2 sm:$0xff]  ;;  %v6713_v13 = vld [vmem:[%s8362_s24 + $0x51] ss:$2 sm:$0xff] }
  0x21   : > { %v6667_v14 = vld [vmem:[%s8362_s24 + $0x60] ss:$2 sm:$0xff]  ;;  %v6714_v15 = vld [vmem:[%s8362_s24 + $0x61] ss:$2 sm:$0xff]  ;;  %v6668_v16 = vld [vmem:[%s8362_s24 + $0x70] ss:$2 sm:$0xff]  ;;  %7021 = vmatpush.msk.msrb.mxu3 %vm2010_vm2, %v1844_v35  ;;  %2386 = vmatpush.msrb.mxu2 %v6947_v37 }
  0x22   : > { %v6715_v17 = vld [vmem:[%s8362_s24 + $0x71] ss:$2 sm:$0xff]  ;;  %v6669_v18 = vld [vmem:[%s8362_s24 + $0x80] ss:$2 sm:$0xff]  ;;  %v6716_v19 = vld [vmem:[%s8362_s24 + $0x81] ss:$2 sm:$0xff] }
  0x23   : > { %v6670_v20 = vld [vmem:[%s8362_s24 + $0x90] ss:$2 sm:$0xff]  ;;  %v6717_v21 = vld [vmem:[%s8362_s24 + $0x91] ss:$2 sm:$0xff]  ;;  %v6671_v22 = vld [vmem:[%s8362_s24 + $0xa0] ss:$2 sm:$0xff]  ;;  %2472 = vmatpush.msrb.mxu3 %v1843_v38  ;;  %2387 = vmatpush.msrb.mxu2 %v6946_v43 }
  0x24   : > { %v6718_v23 = vld [vmem:[%s8362_s24 + $0xa1] ss:$2 sm:$0xff]  ;;  %v6672_v24 = vld [vmem:[%s8362_s24 + $0xb0] ss:$2 sm:$0xff]  ;;  %v6719_v25 = vld [vmem:[%s8362_s24 + $0xb1] ss:$2 sm:$0xff] }
  0x25   : > { %v6673_v26 = vld [vmem:[%s8362_s24 + $0xc0] ss:$2 sm:$0xff]  ;;  %v6720_v27 = vld [vmem:[%s8362_s24 + $0xc1] ss:$2 sm:$0xff]  ;;  %v6674_v28 = vld [vmem:[%s8362_s24 + $0xd0] ss:$2 sm:$0xff]  ;;  %2473 = vmatpush.msrb.mxu3 %v1842_v44  ;;  %2388 = vmatpush.msrb.mxu2 %v6945_v47 }
  0x26   : > { %6757 = vmatmul.msk.f32.gmra.mxu0 %vm577_vm1, %v6662_v4  ;;  %6852 = vmatmul.msk.f32.gmra.mxu1 %vm577_vm1, %v6709_v5  ;;  %v6721_v29 = vld [vmem:[%s8362_s24 + $0xd1] ss:$2 sm:$0xff]  ;;  %v6675_v30 = vld [vmem:[%s8362_s24 + $0xe0] ss:$2 sm:$0xff]  ;;  %v6722_v31 = vld [vmem:[%s8362_s24 + $0xe1] ss:$2 sm:$0xff] }
  0x27   : > { %v6676_v32 = vld [vmem:[%s8362_s24 + $0xf0] ss:$2 sm:$0xff]  ;;  %v6723_v33 = vld [vmem:[%s8362_s24 + $0xf1] ss:$2 sm:$0xff]  ;;  %v6677_v39 = vld [vmem:[%s8362_s24 + $0x100] ss:$2 sm:$0xff]  ;;  %2474 = vmatpush.msrb.mxu3 %v1841_v48 }
  0x28   : > { %v6724_v42 = vld [vmem:[%s8362_s24 + $0x101] ss:$2 sm:$0xff]  ;;  %v6678_v55 = vld [vmem:[%s8362_s24 + $0x110] ss:$2 sm:$0xff]  ;;  %v6725_v56 = vld [vmem:[%s8362_s24 + $0x111] ss:$2 sm:$0xff] }
  0x29   : > { %s8193_s14 = scalar_lea.hbm %s8192_s0, 1 }
  0x2a   : > { %p8194_p11 = scmp.ne.s32.totalorder %s8192_s0, %s8193_s14  ;;  %p8199_p1 = scmp.lt.s32.totalorder %s8197_s22, %s8193_s14 }
  0x2c   : > { %p8195_p12 = pnand %p8194_p11, %p8339_p5  ;;  %p8200_p2 = por %p8199_p1, %p8198_p0 }
  0x2e   : > { %6758 = vmatmul.msk.f32.gmra.mxu0 %vm577_vm1, %v6663_v6  ;;  %6853 = vmatmul.msk.f32.gmra.mxu1 %vm577_vm1, %v6710_v7  ;;  %v6679_v6 = vld [vmem:[%s8362_s24 + $0x120] ss:$2 sm:$0xff]  ;;  %v6726_v7 = vld [vmem:[%s8362_s24 + $0x121] ss:$2 sm:$0xff]  ;;  %p8196_p13 = pneg %p8195_p12 }
  0x30   : > { %p8201_p3 = pnand %p8200_p2, %p8196_p13 }
  0x36   : > { %6759 = vmatmul.msk.f32.gmra.mxu0 %vm577_vm1, %v6664_v8  ;;  %6854 = vmatmul.msk.f32.gmra.mxu1 %vm577_vm1, %v6711_v9 }
  0x3e   : > { %6760 = vmatmul.msk.f32.gmra.mxu0 %vm577_vm1, %v6665_v10  ;;  %6855 = vmatmul.msk.f32.gmra.mxu1 %vm577_vm1, %v6712_v11 }
  0x46   : > { %6761 = vmatmul.msk.f32.gmra.mxu0 %vm577_vm1, %v6666_v12  ;;  %6856 = vmatmul.msk.f32.gmra.mxu1 %vm577_vm1, %v6713_v13 }
  0x4e   : > { %6762 = vmatmul.msk.f32.gmra.mxu0 %vm577_vm1, %v6667_v14  ;;  %6857 = vmatmul.msk.f32.gmra.mxu1 %vm577_vm1, %v6714_v15 }
  0x56   : > { %6763 = vmatmul.msk.f32.gmra.mxu0 %vm577_vm1, %v6668_v16  ;;  %6858 = vmatmul.msk.f32.gmra.mxu1 %vm577_vm1, %v6715_v17 }
  0x5e   : > { %6764 = vmatmul.msk.f32.gmra.mxu0 %vm577_vm1, %v6669_v18  ;;  %6859 = vmatmul.msk.f32.gmra.mxu1 %vm577_vm1, %v6716_v19 }
  0x66   : > { %6765 = vmatmul.msk.f32.gmra.mxu0 %vm577_vm1, %v6670_v20  ;;  %6860 = vmatmul.msk.f32.gmra.mxu1 %vm577_vm1, %v6717_v21 }
  0x6e   : > { %6766 = vmatmul.msk.f32.gmra.mxu0 %vm577_vm1, %v6671_v22  ;;  %6861 = vmatmul.msk.f32.gmra.mxu1 %vm577_vm1, %v6718_v23  ;;  %v6680_v23 = vld [vmem:[%s8362_s24 + $0x130] ss:$2 sm:$0xff] }
  0x76   : > { %6767 = vmatmul.msk.f32.gmra.mxu0 %vm577_vm1, %v6672_v24  ;;  %6862 = vmatmul.msk.f32.gmra.mxu1 %vm577_vm1, %v6719_v25  ;;  %v6727_v24 = vld [vmem:[%s8362_s24 + $0x131] ss:$2 sm:$0xff] }
  0x7e   : > { %6768 = vmatmul.msk.f32.gmra.mxu0 %vm577_vm1, %v6673_v26  ;;  %6863 = vmatmul.msk.f32.gmra.mxu1 %vm577_vm1, %v6720_v27 }
  0x86   : > { %6769 = vmatmul.msk.f32.gmra.mxu0 %vm577_vm1, %v6674_v28  ;;  %6864 = vmatmul.msk.f32.gmra.mxu1 %vm577_vm1, %v6721_v29 }
  0x8e   : > { %6770 = vmatmul.msk.f32.gmra.mxu0 %vm577_vm1, %v6675_v30  ;;  %6865 = vmatmul.msk.f32.gmra.mxu1 %vm577_vm1, %v6722_v31 }
  0x96   : > { %6771 = vmatmul.msk.f32.gmra.mxu0 %vm577_vm1, %v6676_v32  ;;  %6866 = vmatmul.msk.f32.gmra.mxu1 %vm577_vm1, %v6723_v33 }
  0x9b   : > { %v740_v40 = vpop.f32.mrf.mxu0  ;;  %v1321_v41 = vpop.f32.mrf.mxu1 }
  0x9c   : > { %v741_v45 = vadd.f32 %v8437_v36, %v740_v40  ;;  %v1322_v46 = vadd.f32 %v8437_v36, %v1321_v41  ;;  %v6681_v41 = vld [vmem:[%s8362_s24 + $0x140] ss:$2 sm:$0xff] }
  0x9e   : > { %v928_v49 = vmin.f32 %v741_v45, 0.0  ;;  %v1509_v50 = vmin.f32 %v1322_v46, 0.0  ;;  %6772 = vmatmul.msk.f32.gmra.mxu0 %vm577_vm1, %v6677_v39  ;;  %6867 = vmatmul.msk.f32.gmra.mxu1 %vm577_vm1, %v6724_v42  ;;  %vm881_vm3 = vcmp.gt.f32.partialorder %v741_v45, 0.0  ;;  %vm1462_vm4 = vcmp.gt.f32.partialorder %v1322_v46, 0.0  ;;  %v6728_v42 = vld [vmem:[%s8362_s24 + $0x141] ss:$2 sm:$0xff] }
  0xa0   : > { %v975_v51 = vmul.f32 1.442695, %v928_v49  ;;  %v1556_v52 = vmul.f32 1.442695, %v1509_v50 }
  0xa2   : > { %7754 = vpow2.f32 %v975_v51 }
  0xa3   : > { %7756 = vpow2.f32 %v1556_v52  ;;  %v743_v53 = vpop.f32.mrf.mxu0  ;;  %v1324_v54 = vpop.f32.mrf.mxu1 }
  0xa4   : > { %v744_v57 = vadd.f32 %v8437_v36, %v743_v53  ;;  %v1325_v58 = vadd.f32 %v8437_v36, %v1324_v54 }
  0xa6   : > { %v929_v59 = vmin.f32 %v744_v57, 0.0  ;;  %v1510_v60 = vmin.f32 %v1325_v58, 0.0  ;;  %6773 = vmatmul.msk.f32.gmra.mxu0 %vm577_vm1, %v6678_v55  ;;  %6868 = vmatmul.msk.f32.gmra.mxu1 %vm577_vm1, %v6725_v56  ;;  %vm882_vm6 = vcmp.gt.f32.partialorder %v744_v57, 0.0  ;;  %vm1463_vm7 = vcmp.gt.f32.partialorder %v1325_v58, 0.0 }
  0xa8   : > { %v7755_v61 = vpop.eup %7754  ;;  %v977_v62 = vmul.f32 1.442695, %v929_v59  ;;  %v1558_v63 = vmul.f32 1.442695, %v1510_v60  ;;  %v6682_v60 = vld [vmem:[%s8362_s24 + $0x150] ss:$2 sm:$0xff] }
  0xa9   : > { %v7757_v0 = vpop.eup %7756  ;;  %v6803_v1 = vadd.f32 -1.0, %v7755_v61  ;;  %v6729_v61 = vld [vmem:[%s8362_s24 + $0x151] ss:$2 sm:$0xff] }
  0xaa   : > { %v6898_v2 = vadd.f32 -1.0, %v7757_v0  ;;  %7758 = vpow2.f32 %v977_v62 }
  0xab   : > { %v1116_v3 = vsel %vm881_vm3, %v741_v45, %v6803_v1  ;;  %7760 = vpow2.f32 %v1558_v63  ;;  %v746_v4 = vpop.f32.mrf.mxu0  ;;  %v1327_v5 = vpop.f32.mrf.mxu1 }
  0xac   : > { %v1697_v8 = vsel %vm1462_vm4, %v1322_v46, %v6898_v2  ;;  %v747_v9 = vadd.f32 %v8437_v36, %v746_v4  ;;  %v1328_v10 = vadd.f32 %v8437_v36, %v1327_v5 }
  0xad   : > { %v1744_v11 = vmax.f32 %v1116_v3, %v1697_v8 }
  0xae   : > { %v930_v12 = vmin.f32 %v747_v9, 0.0  ;;  %v1511_v13 = vmin.f32 %v1328_v10, 0.0  ;;  %6774 = vmatmul.msk.f32.gmra.mxu0 %vm577_vm1, %v6679_v6  ;;  %6869 = vmatmul.msk.f32.gmra.mxu1 %vm577_vm1, %v6726_v7  ;;  %vm883_vm8 = vcmp.gt.f32.partialorder %v747_v9, 0.0  ;;  %vm1464_vm9 = vcmp.gt.f32.partialorder %v1328_v10, 0.0 }
  0xaf   : > { %1792 = vst.msk [vmem:[#allocation2] sm:$0xff] %vm1791_vm5, %v1744_v11 }
  0xb0   : > { %v7759_v14 = vpop.eup %7758  ;;  %v979_v15 = vmul.f32 1.442695, %v930_v12  ;;  %v1560_v16 = vmul.f32 1.442695, %v1511_v13  ;;  %v6683_v13 = vld [vmem:[%s8362_s24 + $0x160] ss:$2 sm:$0xff] }
  0xb1   : > { %v7761_v17 = vpop.eup %7760  ;;  %v6804_v18 = vadd.f32 -1.0, %v7759_v14  ;;  %v6730_v14 = vld [vmem:[%s8362_s24 + $0x161] ss:$2 sm:$0xff] }
  0xb2   : > { %v6899_v19 = vadd.f32 -1.0, %v7761_v17  ;;  %7762 = vpow2.f32 %v979_v15 }
  0xb3   : > { %v1117_v20 = vsel %vm882_vm6, %v744_v57, %v6804_v18  ;;  %7764 = vpow2.f32 %v1560_v16  ;;  %v749_v21 = vpop.f32.mrf.mxu0  ;;  %v1330_v22 = vpop.f32.mrf.mxu1 }
  0xb4   : > { %v1698_v25 = vsel %vm1463_vm7, %v1325_v58, %v6899_v19  ;;  %v750_v26 = vadd.f32 %v8437_v36, %v749_v21  ;;  %v1331_v27 = vadd.f32 %v8437_v36, %v1330_v22 }
  0xb5   : > { %v1745_v28 = vmax.f32 %v1117_v20, %v1698_v25 }
  0xb6   : > { %v931_v29 = vmin.f32 %v750_v26, 0.0  ;;  %v1512_v30 = vmin.f32 %v1331_v27, 0.0  ;;  %6775 = vmatmul.msk.f32.gmra.mxu0 %vm577_vm1, %v6680_v23  ;;  %6870 = vmatmul.msk.f32.gmra.mxu1 %vm577_vm1, %v6727_v24  ;;  %vm884_vm10 = vcmp.gt.f32.partialorder %v750_v26, 0.0  ;;  %vm1465_vm11 = vcmp.gt.f32.partialorder %v1331_v27, 0.0 }
  0xb7   : > { %1793 = vst.msk [vmem:[#allocation2 + $0x8] sm:$0xff] %vm1791_vm5, %v1745_v28 }
  0xb8   : > { %v7763_v31 = vpop.eup %7762  ;;  %v981_v32 = vmul.f32 1.442695, %v931_v29  ;;  %v1562_v33 = vmul.f32 1.442695, %v1512_v30 }
  0xb9   : > { %v7765_v34 = vpop.eup %7764  ;;  %v6805_v35 = vadd.f32 -1.0, %v7763_v31 }
  0xba   : > { %v6900_v37 = vadd.f32 -1.0, %v7765_v34  ;;  %7766 = vpow2.f32 %v981_v32  ;;  %v6684_v32 = vld [vmem:[%s8362_s24 + $0x170] ss:$2 sm:$0xff] }
  0xbb   : > { %v1118_v38 = vsel %vm883_vm8, %v747_v9, %v6805_v35  ;;  %7768 = vpow2.f32 %v1562_v33  ;;  %v752_v39 = vpop.f32.mrf.mxu0  ;;  %v1333_v40 = vpop.f32.mrf.mxu1  ;;  %v6731_v33 = vld [vmem:[%s8362_s24 + $0x171] ss:$2 sm:$0xff] }
  0xbc   : > { %v1699_v43 = vsel %vm1464_vm9, %v1328_v10, %v6900_v37  ;;  %v753_v44 = vadd.f32 %v8437_v36, %v752_v39  ;;  %v1334_v45 = vadd.f32 %v8437_v36, %v1333_v40 }
  0xbd   : > { %v1746_v46 = vmax.f32 %v1118_v38, %v1699_v43 }
  0xbe   : > { %v932_v47 = vmin.f32 %v753_v44, 0.0  ;;  %v1513_v48 = vmin.f32 %v1334_v45, 0.0  ;;  %6776 = vmatmul.msk.f32.gmra.mxu0 %vm577_vm1, %v6681_v41  ;;  %6871 = vmatmul.msk.f32.gmra.mxu1 %vm577_vm1, %v6728_v42  ;;  %v1891_v49 = vld [vmem:[#allocation2 + $0x1] ss:$2 sm:$0xff]  ;;  %v1845_v50 = vld [vmem:[#allocation2] ss:$2 sm:$0xff] }
  0xbf   : > { %1794 = vst.msk [vmem:[#allocation2 + $0x10] sm:$0xff] %vm1791_vm5, %v1746_v46  ;;  %6950 = vmatmul.msk.f32.vlgmr.msra.gmra.mxu2 %vm1791_vm5, %v1891_v49  ;;  %6974 = vmatmul.msk.f32.vlgmr.msra.gmra.mxu3 %vm1791_vm5, %v1845_v50  ;;  %vm885_vm12 = vcmp.gt.f32.partialorder %v753_v44, 0.0  ;;  %vm1466_vm13 = vcmp.gt.f32.partialorder %v1334_v45, 0.0  ;;  %v6685_v50 = vld [vmem:[%s8362_s24 + $0x180] ss:$2 sm:$0xff] }
  0xc0   : > { %v7767_v51 = vpop.eup %7766  ;;  %v983_v52 = vmul.f32 1.442695, %v932_v47  ;;  %v1564_v53 = vmul.f32 1.442695, %v1513_v48 }
  0xc1   : > { %v7769_v54 = vpop.eup %7768  ;;  %v6806_v55 = vadd.f32 -1.0, %v7767_v51  ;;  %v6732_v51 = vld [vmem:[%s8362_s24 + $0x181] ss:$2 sm:$0xff] }
  0xc2   : > { %v6901_v56 = vadd.f32 -1.0, %v7769_v54  ;;  %7770 = vpow2.f32 %v983_v52 }
  0xc3   : > { %v1119_v57 = vsel %vm884_vm10, %v750_v26, %v6806_v55  ;;  %7772 = vpow2.f32 %v1564_v53  ;;  %v755_v58 = vpop.f32.mrf.mxu0  ;;  %v1336_v59 = vpop.f32.mrf.mxu1 }
  0xc4   : > { %v1700_v62 = vsel %vm1465_vm11, %v1331_v27, %v6901_v56  ;;  %v756_v63 = vadd.f32 %v8437_v36, %v755_v58  ;;  %v1337_v0 = vadd.f32 %v8437_v36, %v1336_v59 }
  0xc5   : > { %v1747_v1 = vmax.f32 %v1119_v57, %v1700_v62 }
  0xc6   : > { %v933_v2 = vmin.f32 %v756_v63, 0.0  ;;  %v1514_v3 = vmin.f32 %v1337_v0, 0.0  ;;  %6777 = vmatmul.msk.f32.gmra.mxu0 %vm577_vm1, %v6682_v60  ;;  %6872 = vmatmul.msk.f32.gmra.mxu1 %vm577_vm1, %v6729_v61  ;;  %vm886_vm14 = vcmp.gt.f32.partialorder %v756_v63, 0.0  ;;  %vm1467_vm15 = vcmp.gt.f32.partialorder %v1337_v0, 0.0 }
  0xc7   : > { %1795 = vst.msk [vmem:[#allocation2 + $0x18] sm:$0xff] %vm1791_vm5, %v1747_v1 }
  0xc8   : > { %v7771_v4 = vpop.eup %7770  ;;  %v985_v5 = vmul.f32 1.442695, %v933_v2  ;;  %v1566_v6 = vmul.f32 1.442695, %v1514_v3 }
  0xc9   : > { %v7773_v7 = vpop.eup %7772  ;;  %v6807_v8 = vadd.f32 -1.0, %v7771_v4 }
  0xca   : > { %v6902_v9 = vadd.f32 -1.0, %v7773_v7  ;;  %7774 = vpow2.f32 %v985_v5  ;;  %v6686_v5 = vld [vmem:[%s8362_s24 + $0x190] ss:$2 sm:$0xff] }
  0xcb   : > { %v1120_v10 = vsel %vm885_vm12, %v753_v44, %v6807_v8  ;;  %7776 = vpow2.f32 %v1566_v6  ;;  %v758_v11 = vpop.f32.mrf.mxu0  ;;  %v1339_v12 = vpop.f32.mrf.mxu1  ;;  %v6733_v6 = vld [vmem:[%s8362_s24 + $0x191] ss:$2 sm:$0xff] }
  0xcc   : > { %v1701_v15 = vsel %vm1466_vm13, %v1334_v45, %v6902_v9  ;;  %v759_v16 = vadd.f32 %v8437_v36, %v758_v11  ;;  %v1340_v17 = vadd.f32 %v8437_v36, %v1339_v12 }
  0xcd   : > { %v1748_v18 = vmax.f32 %v1120_v10, %v1701_v15 }
  0xce   : > { %v934_v19 = vmin.f32 %v759_v16, 0.0  ;;  %v1515_v20 = vmin.f32 %v1340_v17, 0.0  ;;  %6778 = vmatmul.msk.f32.gmra.mxu0 %vm577_vm1, %v6683_v13  ;;  %6873 = vmatmul.msk.f32.gmra.mxu1 %vm577_vm1, %v6730_v14  ;;  %v1893_v21 = vld [vmem:[#allocation2 + $0x11] ss:$2 sm:$0xff]  ;;  %v1847_v22 = vld [vmem:[#allocation2 + $0x10] ss:$2 sm:$0xff] }
  0xcf   : > { %1796 = vst.msk [vmem:[#allocation2 + $0x20] sm:$0xff] %vm1791_vm5, %v1748_v18  ;;  %6951 = vmatmul.msk.f32.gmra.mxu2 %vm1791_vm5, %v1893_v21  ;;  %6975 = vmatmul.msk.f32.gmra.mxu3 %vm1791_vm5, %v1847_v22  ;;  %vm887_vm3 = vcmp.gt.f32.partialorder %v759_v16, 0.0  ;;  %vm1468_vm4 = vcmp.gt.f32.partialorder %v1340_v17, 0.0  ;;  %v6687_v22 = vld [vmem:[%s8362_s24 + $0x1a0] ss:$2 sm:$0xff] }
  0xd0   : > { %v7775_v23 = vpop.eup %7774  ;;  %v987_v24 = vmul.f32 1.442695, %v934_v19  ;;  %v1568_v25 = vmul.f32 1.442695, %v1515_v20 }
  0xd1   : > { %v7777_v26 = vpop.eup %7776  ;;  %v6808_v27 = vadd.f32 -1.0, %v7775_v23  ;;  %v6734_v23 = vld [vmem:[%s8362_s24 + $0x1a1] ss:$2 sm:$0xff] }
  0xd2   : > { %v6903_v28 = vadd.f32 -1.0, %v7777_v26  ;;  %7778 = vpow2.f32 %v987_v24 }
  0xd3   : > { %v1121_v29 = vsel %vm886_vm14, %v756_v63, %v6808_v27  ;;  %7780 = vpow2.f32 %v1568_v25  ;;  %v761_v30 = vpop.f32.mrf.mxu0  ;;  %v1342_v31 = vpop.f32.mrf.mxu1 }
  0xd4   : > { %v1702_v34 = vsel %vm1467_vm15, %v1337_v0, %v6903_v28  ;;  %v762_v35 = vadd.f32 %v8437_v36, %v761_v30  ;;  %v1343_v37 = vadd.f32 %v8437_v36, %v1342_v31 }
  0xd5   : > { %v1749_v38 = vmax.f32 %v1121_v29, %v1702_v34 }
  0xd6   : > { %v935_v39 = vmin.f32 %v762_v35, 0.0  ;;  %v1516_v40 = vmin.f32 %v1343_v37, 0.0  ;;  %6779 = vmatmul.msk.f32.gmra.mxu0 %vm577_vm1, %v6684_v32  ;;  %6874 = vmatmul.msk.f32.gmra.mxu1 %vm577_vm1, %v6731_v33  ;;  %vm888_vm6 = vcmp.gt.f32.partialorder %v762_v35, 0.0  ;;  %vm1469_vm7 = vcmp.gt.f32.partialorder %v1343_v37, 0.0 }
  0xd7   : > { %1797 = vst.msk [vmem:[#allocation2 + $0x28] sm:$0xff] %vm1791_vm5, %v1749_v38 }
  0xd8   : > { %v7779_v41 = vpop.eup %7778  ;;  %v989_v42 = vmul.f32 1.442695, %v935_v39  ;;  %v1570_v43 = vmul.f32 1.442695, %v1516_v40 }
  0xd9   : > { %v7781_v44 = vpop.eup %7780  ;;  %v6809_v45 = vadd.f32 -1.0, %v7779_v41 }
  0xda   : > { %v6904_v46 = vadd.f32 -1.0, %v7781_v44  ;;  %7782 = vpow2.f32 %v989_v42  ;;  %v6688_v42 = vld [vmem:[%s8362_s24 + $0x1b0] ss:$2 sm:$0xff] }
  0xdb   : > { %v1122_v47 = vsel %vm887_vm3, %v759_v16, %v6809_v45  ;;  %7784 = vpow2.f32 %v1570_v43  ;;  %v764_v48 = vpop.f32.mrf.mxu0  ;;  %v1345_v49 = vpop.f32.mrf.mxu1  ;;  %v6735_v43 = vld [vmem:[%s8362_s24 + $0x1b1] ss:$2 sm:$0xff] }
  0xdc   : > { %v1703_v52 = vsel %vm1468_vm4, %v1340_v17, %v6904_v46  ;;  %v765_v53 = vadd.f32 %v8437_v36, %v764_v48  ;;  %v1346_v54 = vadd.f32 %v8437_v36, %v1345_v49 }
  0xdd   : > { %v1750_v55 = vmax.f32 %v1122_v47, %v1703_v52 }
  0xde   : > { %v936_v56 = vmin.f32 %v765_v53, 0.0  ;;  %v1517_v57 = vmin.f32 %v1346_v54, 0.0  ;;  %6780 = vmatmul.msk.f32.gmra.mxu0 %vm577_vm1, %v6685_v50  ;;  %6875 = vmatmul.msk.f32.gmra.mxu1 %vm577_vm1, %v6732_v51  ;;  %v1895_v58 = vld [vmem:[#allocation2 + $0x21] ss:$2 sm:$0xff]  ;;  %v1849_v59 = vld [vmem:[#allocation2 + $0x20] ss:$2 sm:$0xff] }
  0xdf   : > { %1798 = vst.msk [vmem:[#allocation2 + $0x30] sm:$0xff] %vm1791_vm5, %v1750_v55  ;;  %6952 = vmatmul.msk.f32.gmra.mxu2 %vm1791_vm5, %v1895_v58  ;;  %6976 = vmatmul.msk.f32.gmra.mxu3 %vm1791_vm5, %v1849_v59  ;;  %vm889_vm8 = vcmp.gt.f32.partialorder %v765_v53, 0.0  ;;  %vm1470_vm9 = vcmp.gt.f32.partialorder %v1346_v54, 0.0  ;;  %v6689_v59 = vld [vmem:[%s8362_s24 + $0x1c0] ss:$2 sm:$0xff] }
  0xe0   : > { %v7783_v60 = vpop.eup %7782  ;;  %v991_v61 = vmul.f32 1.442695, %v936_v56  ;;  %v1572_v62 = vmul.f32 1.442695, %v1517_v57 }
  0xe1   : > { %v7785_v63 = vpop.eup %7784  ;;  %v6810_v0 = vadd.f32 -1.0, %v7783_v60  ;;  %v6736_v60 = vld [vmem:[%s8362_s24 + $0x1c1] ss:$2 sm:$0xff] }
  0xe2   : > { %v6905_v1 = vadd.f32 -1.0, %v7785_v63  ;;  %7786 = vpow2.f32 %v991_v61 }
  0xe3   : > { %v1123_v2 = vsel %vm888_vm6, %v762_v35, %v6810_v0  ;;  %7788 = vpow2.f32 %v1572_v62  ;;  %v767_v3 = vpop.f32.mrf.mxu0  ;;  %v1348_v4 = vpop.f32.mrf.mxu1 }
  0xe4   : > { %v1704_v7 = vsel %vm1469_vm7, %v1343_v37, %v6905_v1  ;;  %v768_v8 = vadd.f32 %v8437_v36, %v767_v3  ;;  %v1349_v9 = vadd.f32 %v8437_v36, %v1348_v4 }
  0xe5   : > { %v1751_v10 = vmax.f32 %v1123_v2, %v1704_v7 }
  0xe6   : > { %v937_v11 = vmin.f32 %v768_v8, 0.0  ;;  %v1518_v12 = vmin.f32 %v1349_v9, 0.0  ;;  %6781 = vmatmul.msk.f32.gmra.mxu0 %vm577_vm1, %v6686_v5  ;;  %6876 = vmatmul.msk.f32.gmra.mxu1 %vm577_vm1, %v6733_v6  ;;  %vm890_vm10 = vcmp.gt.f32.partialorder %v768_v8, 0.0  ;;  %vm1471_vm11 = vcmp.gt.f32.partialorder %v1349_v9, 0.0 }
  0xe7   : > { %1799 = vst.msk [vmem:[#allocation2 + $0x38] sm:$0xff] %vm1791_vm5, %v1751_v10 }
  0xe8   : > { %v7787_v13 = vpop.eup %7786  ;;  %v993_v14 = vmul.f32 1.442695, %v937_v11  ;;  %v1574_v15 = vmul.f32 1.442695, %v1518_v12 }
  0xe9   : > { %v7789_v16 = vpop.eup %7788  ;;  %v6811_v17 = vadd.f32 -1.0, %v7787_v13 }
  0xea   : > { %v6906_v18 = vadd.f32 -1.0, %v7789_v16  ;;  %7790 = vpow2.f32 %v993_v14  ;;  %v6690_v14 = vld [vmem:[%s8362_s24 + $0x1d0] ss:$2 sm:$0xff] }
  0xeb   : > { %v1124_v19 = vsel %vm889_vm8, %v765_v53, %v6811_v17  ;;  %7792 = vpow2.f32 %v1574_v15  ;;  %v770_v20 = vpop.f32.mrf.mxu0  ;;  %v1351_v21 = vpop.f32.mrf.mxu1  ;;  %v6737_v15 = vld [vmem:[%s8362_s24 + $0x1d1] ss:$2 sm:$0xff] }
  0xec   : > { %v1705_v24 = vsel %vm1470_vm9, %v1346_v54, %v6906_v18  ;;  %v771_v25 = vadd.f32 %v8437_v36, %v770_v20  ;;  %v1352_v26 = vadd.f32 %v8437_v36, %v1351_v21 }
  0xed   : > { %v1752_v27 = vmax.f32 %v1124_v19, %v1705_v24 }
  0xee   : > { %v938_v28 = vmin.f32 %v771_v25, 0.0  ;;  %v1519_v29 = vmin.f32 %v1352_v26, 0.0  ;;  %6782 = vmatmul.msk.f32.gmra.mxu0 %vm577_vm1, %v6687_v22  ;;  %6877 = vmatmul.msk.f32.gmra.mxu1 %vm577_vm1, %v6734_v23  ;;  %v1897_v30 = vld [vmem:[#allocation2 + $0x31] ss:$2 sm:$0xff]  ;;  %v1851_v31 = vld [vmem:[#allocation2 + $0x30] ss:$2 sm:$0xff] }
  0xef   : > { %1800 = vst.msk [vmem:[#allocation2 + $0x40] sm:$0xff] %vm1791_vm5, %v1752_v27  ;;  %6953 = vmatmul.msk.f32.gmra.mxu2 %vm1791_vm5, %v1897_v30  ;;  %6977 = vmatmul.msk.f32.gmra.mxu3 %vm1791_vm5, %v1851_v31  ;;  %vm891_vm12 = vcmp.gt.f32.partialorder %v771_v25, 0.0  ;;  %vm1472_vm13 = vcmp.gt.f32.partialorder %v1352_v26, 0.0  ;;  %v6691_v31 = vld [vmem:[%s8362_s24 + $0x1e0] ss:$2 sm:$0xff] }
  0xf0   : > { %v7791_v32 = vpop.eup %7790  ;;  %v995_v33 = vmul.f32 1.442695, %v938_v28  ;;  %v1576_v34 = vmul.f32 1.442695, %v1519_v29 }
  0xf1   : > { %v7793_v35 = vpop.eup %7792  ;;  %v6812_v37 = vadd.f32 -1.0, %v7791_v32  ;;  %v6738_v32 = vld [vmem:[%s8362_s24 + $0x1e1] ss:$2 sm:$0xff] }
  0xf2   : > { %v6907_v38 = vadd.f32 -1.0, %v7793_v35  ;;  %7794 = vpow2.f32 %v995_v33 }
  0xf3   : > { %v1125_v39 = vsel %vm890_vm10, %v768_v8, %v6812_v37  ;;  %7796 = vpow2.f32 %v1576_v34  ;;  %v773_v40 = vpop.f32.mrf.mxu0  ;;  %v1354_v41 = vpop.f32.mrf.mxu1 }
  0xf4   : > { %v1706_v44 = vsel %vm1471_vm11, %v1349_v9, %v6907_v38  ;;  %v774_v45 = vadd.f32 %v8437_v36, %v773_v40  ;;  %v1355_v46 = vadd.f32 %v8437_v36, %v1354_v41 }
  0xf5   : > { %v1753_v47 = vmax.f32 %v1125_v39, %v1706_v44 }
  0xf6   : > { %v939_v48 = vmin.f32 %v774_v45, 0.0  ;;  %v1520_v49 = vmin.f32 %v1355_v46, 0.0  ;;  %6783 = vmatmul.msk.f32.gmra.mxu0 %vm577_vm1, %v6688_v42  ;;  %6878 = vmatmul.msk.f32.gmra.mxu1 %vm577_vm1, %v6735_v43  ;;  %vm892_vm14 = vcmp.gt.f32.partialorder %v774_v45, 0.0  ;;  %vm1473_vm15 = vcmp.gt.f32.partialorder %v1355_v46, 0.0 }
  0xf7   : > { %1801 = vst.msk [vmem:[#allocation2 + $0x48] sm:$0xff] %vm1791_vm5, %v1753_v47 }
  0xf8   : > { %v7795_v50 = vpop.eup %7794  ;;  %v997_v51 = vmul.f32 1.442695, %v939_v48  ;;  %v1578_v52 = vmul.f32 1.442695, %v1520_v49 }
  0xf9   : > { %v7797_v53 = vpop.eup %7796  ;;  %v6813_v54 = vadd.f32 -1.0, %v7795_v50 }
  0xfa   : > { %v6908_v55 = vadd.f32 -1.0, %v7797_v53  ;;  %7798 = vpow2.f32 %v997_v51  ;;  %v6692_v51 = vld [vmem:[%s8362_s24 + $0x1f0] ss:$2 sm:$0xff] }
  0xfb   : > { %v1126_v56 = vsel %vm891_vm12, %v771_v25, %v6813_v54  ;;  %7800 = vpow2.f32 %v1578_v52  ;;  %v776_v57 = vpop.f32.mrf.mxu0  ;;  %v1357_v58 = vpop.f32.mrf.mxu1  ;;  %v6739_v52 = vld [vmem:[%s8362_s24 + $0x1f1] ss:$2 sm:$0xff] }
  0xfc   : > { %v1707_v61 = vsel %vm1472_vm13, %v1352_v26, %v6908_v55  ;;  %v777_v62 = vadd.f32 %v8437_v36, %v776_v57  ;;  %v1358_v63 = vadd.f32 %v8437_v36, %v1357_v58 }
  0xfd   : > { %v1754_v0 = vmax.f32 %v1126_v56, %v1707_v61 }
  0xfe   : > { %v940_v1 = vmin.f32 %v777_v62, 0.0  ;;  %v1521_v2 = vmin.f32 %v1358_v63, 0.0  ;;  %6784 = vmatmul.msk.f32.gmra.mxu0 %vm577_vm1, %v6689_v59  ;;  %6879 = vmatmul.msk.f32.gmra.mxu1 %vm577_vm1, %v6736_v60  ;;  %v1899_v3 = vld [vmem:[#allocation2 + $0x41] ss:$2 sm:$0xff]  ;;  %v1853_v4 = vld [vmem:[#allocation2 + $0x40] ss:$2 sm:$0xff] }
  0xff   : > { %1802 = vst.msk [vmem:[#allocation2 + $0x50] sm:$0xff] %vm1791_vm5, %v1754_v0  ;;  %6954 = vmatmul.msk.f32.gmra.mxu2 %vm1791_vm5, %v1899_v3  ;;  %6978 = vmatmul.msk.f32.gmra.mxu3 %vm1791_vm5, %v1853_v4  ;;  %vm893_vm3 = vcmp.gt.f32.partialorder %v777_v62, 0.0  ;;  %vm1474_vm4 = vcmp.gt.f32.partialorder %v1358_v63, 0.0  ;;  %v6693_v4 = vld [vmem:[%s8362_s24 + $0x200] ss:$2 sm:$0xff] }
 0x100   : > { %v7799_v5 = vpop.eup %7798  ;;  %v999_v6 = vmul.f32 1.442695, %v940_v1  ;;  %v1580_v7 = vmul.f32 1.442695, %v1521_v2 }
 0x101   : > { %v7801_v8 = vpop.eup %7800  ;;  %v6814_v9 = vadd.f32 -1.0, %v7799_v5  ;;  %v6740_v5 = vld [vmem:[%s8362_s24 + $0x201] ss:$2 sm:$0xff] }
 0x102   : > { %v6909_v10 = vadd.f32 -1.0, %v7801_v8  ;;  %7802 = vpow2.f32 %v999_v6 }
 0x103   : > { %v1127_v11 = vsel %vm892_vm14, %v774_v45, %v6814_v9  ;;  %7804 = vpow2.f32 %v1580_v7  ;;  %v779_v12 = vpop.f32.mrf.mxu0  ;;  %v1360_v13 = vpop.f32.mrf.mxu1 }
 0x104   : > { %v1708_v16 = vsel %vm1473_vm15, %v1355_v46, %v6909_v10  ;;  %v780_v17 = vadd.f32 %v8437_v36, %v779_v12  ;;  %v1361_v18 = vadd.f32 %v8437_v36, %v1360_v13 }
 0x105   : > { %v1755_v19 = vmax.f32 %v1127_v11, %v1708_v16 }
 0x106   : > { %v941_v20 = vmin.f32 %v780_v17, 0.0  ;;  %v1522_v21 = vmin.f32 %v1361_v18, 0.0  ;;  %6785 = vmatmul.msk.f32.gmra.mxu0 %vm577_vm1, %v6690_v14  ;;  %6880 = vmatmul.msk.f32.gmra.mxu1 %vm577_vm1, %v6737_v15  ;;  %vm894_vm6 = vcmp.gt.f32.partialorder %v780_v17, 0.0  ;;  %vm1475_vm7 = vcmp.gt.f32.partialorder %v1361_v18, 0.0 }
 0x107   : > { %1803 = vst.msk [vmem:[#allocation2 + $0x58] sm:$0xff] %vm1791_vm5, %v1755_v19 }
 0x108   : > { %v7803_v22 = vpop.eup %7802  ;;  %v1001_v23 = vmul.f32 1.442695, %v941_v20  ;;  %v1582_v24 = vmul.f32 1.442695, %v1522_v21 }
 0x109   : > { %v7805_v25 = vpop.eup %7804  ;;  %v6815_v26 = vadd.f32 -1.0, %v7803_v22 }
 0x10a   : > { %v6910_v27 = vadd.f32 -1.0, %v7805_v25  ;;  %7806 = vpow2.f32 %v1001_v23  ;;  %v6694_v23 = vld [vmem:[%s8362_s24 + $0x210] ss:$2 sm:$0xff] }
 0x10b   : > { %v1128_v28 = vsel %vm893_vm3, %v777_v62, %v6815_v26  ;;  %7808 = vpow2.f32 %v1582_v24  ;;  %v782_v29 = vpop.f32.mrf.mxu0  ;;  %v1363_v30 = vpop.f32.mrf.mxu1  ;;  %v6741_v24 = vld [vmem:[%s8362_s24 + $0x211] ss:$2 sm:$0xff] }
 0x10c   : > { %v1709_v33 = vsel %vm1474_vm4, %v1358_v63, %v6910_v27  ;;  %v783_v34 = vadd.f32 %v8437_v36, %v782_v29  ;;  %v1364_v35 = vadd.f32 %v8437_v36, %v1363_v30 }
 0x10d   : > { %v1756_v37 = vmax.f32 %v1128_v28, %v1709_v33 }
 0x10e   : > { %v942_v38 = vmin.f32 %v783_v34, 0.0  ;;  %v1523_v39 = vmin.f32 %v1364_v35, 0.0  ;;  %6786 = vmatmul.msk.f32.gmra.mxu0 %vm577_vm1, %v6691_v31  ;;  %6881 = vmatmul.msk.f32.gmra.mxu1 %vm577_vm1, %v6738_v32  ;;  %v1901_v40 = vld [vmem:[#allocation2 + $0x51] ss:$2 sm:$0xff]  ;;  %v1855_v41 = vld [vmem:[#allocation2 + $0x50] ss:$2 sm:$0xff] }
 0x10f   : > { %1804 = vst.msk [vmem:[#allocation2 + $0x60] sm:$0xff] %vm1791_vm5, %v1756_v37  ;;  %6955 = vmatmul.msk.f32.gmra.mxu2 %vm1791_vm5, %v1901_v40  ;;  %6979 = vmatmul.msk.f32.gmra.mxu3 %vm1791_vm5, %v1855_v41  ;;  %vm895_vm8 = vcmp.gt.f32.partialorder %v783_v34, 0.0  ;;  %vm1476_vm9 = vcmp.gt.f32.partialorder %v1364_v35, 0.0  ;;  %v6695_v41 = vld [vmem:[%s8362_s24 + $0x220] ss:$2 sm:$0xff] }
 0x110   : > { %v7807_v42 = vpop.eup %7806  ;;  %v1003_v43 = vmul.f32 1.442695, %v942_v38  ;;  %v1584_v44 = vmul.f32 1.442695, %v1523_v39 }
 0x111   : > { %v7809_v45 = vpop.eup %7808  ;;  %v6816_v46 = vadd.f32 -1.0, %v7807_v42  ;;  %v6742_v42 = vld [vmem:[%s8362_s24 + $0x221] ss:$2 sm:$0xff] }
 0x112   : > { %v6911_v47 = vadd.f32 -1.0, %v7809_v45  ;;  %7810 = vpow2.f32 %v1003_v43 }
 0x113   : > { %v1129_v48 = vsel %vm894_vm6, %v780_v17, %v6816_v46  ;;  %7812 = vpow2.f32 %v1584_v44  ;;  %v785_v49 = vpop.f32.mrf.mxu0  ;;  %v1366_v50 = vpop.f32.mrf.mxu1 }
 0x114   : > { %v1710_v53 = vsel %vm1475_vm7, %v1361_v18, %v6911_v47  ;;  %v786_v54 = vadd.f32 %v8437_v36, %v785_v49  ;;  %v1367_v55 = vadd.f32 %v8437_v36, %v1366_v50 }
 0x115   : > { %v1757_v56 = vmax.f32 %v1129_v48, %v1710_v53 }
 0x116   : > { %v943_v57 = vmin.f32 %v786_v54, 0.0  ;;  %v1524_v58 = vmin.f32 %v1367_v55, 0.0  ;;  %6787 = vmatmul.msk.f32.gmra.mxu0 %vm577_vm1, %v6692_v51  ;;  %6882 = vmatmul.msk.f32.gmra.mxu1 %vm577_vm1, %v6739_v52  ;;  %vm896_vm10 = vcmp.gt.f32.partialorder %v786_v54, 0.0  ;;  %vm1477_vm11 = vcmp.gt.f32.partialorder %v1367_v55, 0.0 }
 0x117   : > { %1805 = vst.msk [vmem:[#allocation2 + $0x68] sm:$0xff] %vm1791_vm5, %v1757_v56 }
 0x118   : > { %v7811_v59 = vpop.eup %7810  ;;  %v1005_v60 = vmul.f32 1.442695, %v943_v57  ;;  %v1586_v61 = vmul.f32 1.442695, %v1524_v58 }
 0x119   : > { %v7813_v62 = vpop.eup %7812  ;;  %v6817_v63 = vadd.f32 -1.0, %v7811_v59 }
 0x11a   : > { %v6912_v0 = vadd.f32 -1.0, %v7813_v62  ;;  %7814 = vpow2.f32 %v1005_v60  ;;  %v6696_v60 = vld [vmem:[%s8362_s24 + $0x230] ss:$2 sm:$0xff] }
 0x11b   : > { %v1130_v1 = vsel %vm895_vm8, %v783_v34, %v6817_v63  ;;  %7816 = vpow2.f32 %v1586_v61  ;;  %v788_v2 = vpop.f32.mrf.mxu0  ;;  %v1369_v3 = vpop.f32.mrf.mxu1  ;;  %v6743_v61 = vld [vmem:[%s8362_s24 + $0x231] ss:$2 sm:$0xff] }
 0x11c   : > { %v1711_v6 = vsel %vm1476_vm9, %v1364_v35, %v6912_v0  ;;  %v789_v7 = vadd.f32 %v8437_v36, %v788_v2  ;;  %v1370_v8 = vadd.f32 %v8437_v36, %v1369_v3 }
 0x11d   : > { %v1758_v9 = vmax.f32 %v1130_v1, %v1711_v6 }
 0x11e   : > { %v944_v10 = vmin.f32 %v789_v7, 0.0  ;;  %v1525_v11 = vmin.f32 %v1370_v8, 0.0  ;;  %6788 = vmatmul.msk.f32.gmra.mxu0 %vm577_vm1, %v6693_v4  ;;  %6883 = vmatmul.msk.f32.gmra.mxu1 %vm577_vm1, %v6740_v5  ;;  %v1903_v12 = vld [vmem:[#allocation2 + $0x61] ss:$2 sm:$0xff]  ;;  %v1857_v13 = vld [vmem:[#allocation2 + $0x60] ss:$2 sm:$0xff] }
 0x11f   : > { %1806 = vst.msk [vmem:[#allocation2 + $0x70] sm:$0xff] %vm1791_vm5, %v1758_v9  ;;  %6956 = vmatmul.msk.f32.gmra.mxu2 %vm1791_vm5, %v1903_v12  ;;  %6980 = vmatmul.msk.f32.gmra.mxu3 %vm1791_vm5, %v1857_v13  ;;  %vm897_vm12 = vcmp.gt.f32.partialorder %v789_v7, 0.0  ;;  %vm1478_vm13 = vcmp.gt.f32.partialorder %v1370_v8, 0.0  ;;  %v6697_v12 = vld [vmem:[%s8362_s24 + $0x240] ss:$2 sm:$0xff] }
 0x120   : > { %v7815_v14 = vpop.eup %7814  ;;  %v1007_v15 = vmul.f32 1.442695, %v944_v10  ;;  %v1588_v16 = vmul.f32 1.442695, %v1525_v11  ;;  %v6744_v13 = vld [vmem:[%s8362_s24 + $0x241] ss:$2 sm:$0xff] }
 0x121   : > { %v7817_v17 = vpop.eup %7816  ;;  %v6818_v18 = vadd.f32 -1.0, %v7815_v14 }
 0x122   : > { %v6913_v19 = vadd.f32 -1.0, %v7817_v17  ;;  %7818 = vpow2.f32 %v1007_v15  ;;  %v8620_v15 = vld [vmem:[%s12272_s2] ss:$0 sm:$0xff] }
 0x123   : > { %v1131_v20 = vsel %vm896_vm10, %v786_v54, %v6818_v18  ;;  %7820 = vpow2.f32 %v1588_v16  ;;  %v791_v21 = vpop.f32.mrf.mxu0  ;;  %v1372_v22 = vpop.f32.mrf.mxu1 }
 0x124   : > { %v1712_v25 = vsel %vm1477_vm11, %v1367_v55, %v6913_v19  ;;  %v792_v26 = vadd.f32 %v8437_v36, %v791_v21  ;;  %v1373_v27 = vadd.f32 %v8437_v36, %v1372_v22 }
 0x125   : > { %v1759_v28 = vmax.f32 %v1131_v20, %v1712_v25 }
 0x126   : > { %v945_v29 = vmin.f32 %v792_v26, 0.0  ;;  %v1526_v30 = vmin.f32 %v1373_v27, 0.0  ;;  %6789 = vmatmul.msk.f32.gmra.mxu0 %vm577_vm1, %v6694_v23  ;;  %6884 = vmatmul.msk.f32.gmra.mxu1 %vm577_vm1, %v6741_v24  ;;  %vm898_vm14 = vcmp.gt.f32.partialorder %v792_v26, 0.0  ;;  %vm1479_vm15 = vcmp.gt.f32.partialorder %v1373_v27, 0.0 }
 0x127   : > { %1807 = vst.msk [vmem:[#allocation2 + $0x78] sm:$0xff] %vm1791_vm5, %v1759_v28 }
 0x128   : > { %v7819_v31 = vpop.eup %7818  ;;  %v1009_v32 = vmul.f32 1.442695, %v945_v29  ;;  %v1590_v33 = vmul.f32 1.442695, %v1526_v30 }
 0x129   : > { %v7821_v34 = vpop.eup %7820  ;;  %v6819_v35 = vadd.f32 -1.0, %v7819_v31  ;;  %v6698_v31 = vld [vmem:[%s8362_s24 + $0x250] ss:$2 sm:$0xff] }
 0x12a   : > { %v6914_v37 = vadd.f32 -1.0, %v7821_v34  ;;  %7822 = vpow2.f32 %v1009_v32  ;;  %v6745_v32 = vld [vmem:[%s8362_s24 + $0x251] ss:$2 sm:$0xff] }
 0x12b   : > { %v1132_v38 = vsel %vm897_vm12, %v789_v7, %v6819_v35  ;;  %7824 = vpow2.f32 %v1590_v33  ;;  %v794_v39 = vpop.f32.mrf.mxu0  ;;  %v1375_v40 = vpop.f32.mrf.mxu1 }
 0x12c   : > { %v1713_v43 = vsel %vm1478_vm13, %v1370_v8, %v6914_v37  ;;  %v795_v44 = vadd.f32 %v8437_v36, %v794_v39  ;;  %v1376_v45 = vadd.f32 %v8437_v36, %v1375_v40 }
 0x12d   : > { %v1760_v46 = vmax.f32 %v1132_v38, %v1713_v43 }
 0x12e   : > { %v946_v47 = vmin.f32 %v795_v44, 0.0  ;;  %v1527_v48 = vmin.f32 %v1376_v45, 0.0  ;;  %6790 = vmatmul.msk.f32.gmra.mxu0 %vm577_vm1, %v6695_v41  ;;  %6885 = vmatmul.msk.f32.gmra.mxu1 %vm577_vm1, %v6742_v42  ;;  %v1905_v49 = vld [vmem:[#allocation2 + $0x71] ss:$2 sm:$0xff]  ;;  %v1859_v50 = vld [vmem:[#allocation2 + $0x70] ss:$2 sm:$0xff] }
 0x12f   : > { %1808 = vst.msk [vmem:[#allocation2 + $0x80] sm:$0xff] %vm1791_vm5, %v1760_v46  ;;  %6957 = vmatmul.msk.f32.gmra.mxu2 %vm1791_vm5, %v1905_v49  ;;  %6981 = vmatmul.msk.f32.gmra.mxu3 %vm1791_vm5, %v1859_v50  ;;  %vm899_vm3 = vcmp.gt.f32.partialorder %v795_v44, 0.0  ;;  %vm1480_vm4 = vcmp.gt.f32.partialorder %v1376_v45, 0.0  ;;  %v6699_v49 = vld [vmem:[%s8362_s24 + $0x260] ss:$2 sm:$0xff] }
 0x130   : > { %v7823_v51 = vpop.eup %7822  ;;  %v1011_v52 = vmul.f32 1.442695, %v946_v47  ;;  %v1592_v53 = vmul.f32 1.442695, %v1527_v48  ;;  %v6746_v50 = vld [vmem:[%s8362_s24 + $0x261] ss:$2 sm:$0xff] }
 0x131   : > { %v7825_v54 = vpop.eup %7824  ;;  %v6820_v55 = vadd.f32 -1.0, %v7823_v51 }
 0x132   : > { %v6915_v56 = vadd.f32 -1.0, %v7825_v54  ;;  %7826 = vpow2.f32 %v1011_v52 }
 0x133   : > { %v1133_v57 = vsel %vm898_vm14, %v792_v26, %v6820_v55  ;;  %7828 = vpow2.f32 %v1592_v53  ;;  %v797_v58 = vpop.f32.mrf.mxu0  ;;  %v1378_v59 = vpop.f32.mrf.mxu1 }
 0x134   : > { %v1714_v62 = vsel %vm1479_vm15, %v1373_v27, %v6915_v56  ;;  %v798_v63 = vadd.f32 %v8437_v36, %v797_v58  ;;  %v1379_v0 = vadd.f32 %v8437_v36, %v1378_v59 }
 0x135   : > { %v1761_v1 = vmax.f32 %v1133_v57, %v1714_v62 }
 0x136   : > { %v947_v2 = vmin.f32 %v798_v63, 0.0  ;;  %v1528_v3 = vmin.f32 %v1379_v0, 0.0  ;;  %6791 = vmatmul.msk.f32.gmra.mxu0 %vm577_vm1, %v6696_v60  ;;  %6886 = vmatmul.msk.f32.gmra.mxu1 %vm577_vm1, %v6743_v61  ;;  %vm900_vm6 = vcmp.gt.f32.partialorder %v798_v63, 0.0  ;;  %vm1481_vm7 = vcmp.gt.f32.partialorder %v1379_v0, 0.0 }
 0x137   : > { %1809 = vst.msk [vmem:[#allocation2 + $0x88] sm:$0xff] %vm1791_vm5, %v1761_v1 }
 0x138   : > { %v7827_v4 = vpop.eup %7826  ;;  %v1013_v5 = vmul.f32 1.442695, %v947_v2  ;;  %v1594_v6 = vmul.f32 1.442695, %v1528_v3 }
 0x139   : > { %v7829_v7 = vpop.eup %7828  ;;  %v6821_v8 = vadd.f32 -1.0, %v7827_v4  ;;  %v6700_v4 = vld [vmem:[%s8362_s24 + $0x270] ss:$2 sm:$0xff] }
 0x13a   : > { %v6916_v9 = vadd.f32 -1.0, %v7829_v7  ;;  %7830 = vpow2.f32 %v1013_v5  ;;  %v6747_v5 = vld [vmem:[%s8362_s24 + $0x271] ss:$2 sm:$0xff] }
 0x13b   : > { %v1134_v36 = vsel %vm899_vm3, %v795_v44, %v6821_v8  ;;  %7832 = vpow2.f32 %v1594_v6  ;;  %v800_v10 = vpop.f32.mrf.mxu0  ;;  %v1381_v11 = vpop.f32.mrf.mxu1 }
 0x13c   : > { %v1715_v14 = vsel %vm1480_vm4, %v1376_v45, %v6916_v9  ;;  %v801_v16 = vadd.f32 %v8620_v15, %v800_v10  ;;  %v1382_v17 = vadd.f32 %v8620_v15, %v1381_v11 }
 0x13d   : > { %v1762_v18 = vmax.f32 %v1134_v36, %v1715_v14 }
 0x13e   : > { %v948_v19 = vmin.f32 %v801_v16, 0.0  ;;  %v1529_v20 = vmin.f32 %v1382_v17, 0.0  ;;  %6792 = vmatmul.msk.f32.gmra.mxu0 %vm577_vm1, %v6697_v12  ;;  %6887 = vmatmul.msk.f32.gmra.mxu1 %vm577_vm1, %v6744_v13  ;;  %v1907_v21 = vld [vmem:[#allocation2 + $0x81] ss:$2 sm:$0xff]  ;;  %v1861_v22 = vld [vmem:[#allocation2 + $0x80] ss:$2 sm:$0xff] }
 0x13f   : > { %1810 = vst.msk [vmem:[#allocation2 + $0x90] sm:$0xff] %vm1791_vm5, %v1762_v18  ;;  %6958 = vmatmul.msk.f32.gmra.mxu2 %vm1791_vm5, %v1907_v21  ;;  %6982 = vmatmul.msk.f32.gmra.mxu3 %vm1791_vm5, %v1861_v22  ;;  %vm901_vm8 = vcmp.gt.f32.partialorder %v801_v16, 0.0  ;;  %vm1482_vm9 = vcmp.gt.f32.partialorder %v1382_v17, 0.0  ;;  %v6701_v21 = vld [vmem:[%s8362_s24 + $0x280] ss:$2 sm:$0xff] }
 0x140   : > { %v7831_v23 = vpop.eup %7830  ;;  %v1015_v24 = vmul.f32 1.442695, %v948_v19  ;;  %v1596_v25 = vmul.f32 1.442695, %v1529_v20  ;;  %v6748_v22 = vld [vmem:[%s8362_s24 + $0x281] ss:$2 sm:$0xff] }
 0x141   : > { %v7833_v26 = vpop.eup %7832  ;;  %v6822_v27 = vadd.f32 -1.0, %v7831_v23 }
 0x142   : > { %v6917_v28 = vadd.f32 -1.0, %v7833_v26  ;;  %7834 = vpow2.f32 %v1015_v24 }
 0x143   : > { %v1135_v29 = vsel %vm900_vm6, %v798_v63, %v6822_v27  ;;  %7836 = vpow2.f32 %v1596_v25  ;;  %v803_v30 = vpop.f32.mrf.mxu0  ;;  %v1384_v35 = vpop.f32.mrf.mxu1 }
 0x144   : > { %v1716_v33 = vsel %vm1481_vm7, %v1379_v0, %v6917_v28  ;;  %v804_v34 = vadd.f32 %v8620_v15, %v803_v30  ;;  %v1385_v38 = vadd.f32 %v8620_v15, %v1384_v35 }
 0x145   : > { %v1763_v37 = vmax.f32 %v1135_v29, %v1716_v33 }
 0x146   : > { %v949_v39 = vmin.f32 %v804_v34, 0.0  ;;  %6793 = vmatmul.msk.f32.gmra.mxu0 %vm577_vm1, %v6698_v31  ;;  %6888 = vmatmul.msk.f32.gmra.mxu1 %vm577_vm1, %v6745_v32  ;;  %v1530_v40 = vmin.f32 %v1385_v38, 0.0  ;;  %vm902_vm10 = vcmp.gt.f32.partialorder %v804_v34, 0.0  ;;  %vm1483_vm11 = vcmp.gt.f32.partialorder %v1385_v38, 0.0 }
 0x147   : > { %1811 = vst.msk [vmem:[#allocation2 + $0x98] sm:$0xff] %vm1791_vm5, %v1763_v37 }
 0x148   : > { %v7835_v41 = vpop.eup %7834  ;;  %v1017_v42 = vmul.f32 1.442695, %v949_v39  ;;  %v1598_v45 = vmul.f32 1.442695, %v1530_v40 }
 0x149   : > { %v7837_v43 = vpop.eup %7836  ;;  %v6823_v44 = vadd.f32 -1.0, %v7835_v41  ;;  %v6702_v41 = vld [vmem:[%s8362_s24 + $0x290] ss:$2 sm:$0xff] }
 0x14a   : > { %v6918_v46 = vadd.f32 -1.0, %v7837_v43  ;;  %7838 = vpow2.f32 %v1017_v42  ;;  %v6749_v42 = vld [vmem:[%s8362_s24 + $0x291] ss:$2 sm:$0xff] }
 0x14b   : > { %v1136_v47 = vsel %vm901_vm8, %v801_v16, %v6823_v44  ;;  %7840 = vpow2.f32 %v1598_v45  ;;  %v806_v48 = vpop.f32.mrf.mxu0  ;;  %v1387_v53 = vpop.f32.mrf.mxu1 }
 0x14c   : > { %v1717_v51 = vsel %vm1482_vm9, %v1382_v17, %v6918_v46  ;;  %v807_v52 = vadd.f32 %v8620_v15, %v806_v48  ;;  %v1388_v55 = vadd.f32 %v8620_v15, %v1387_v53 }
 0x14d   : > { %v1764_v54 = vmax.f32 %v1136_v47, %v1717_v51 }
 0x14e   : > { %v950_v56 = vmin.f32 %v807_v52, 0.0  ;;  %6794 = vmatmul.msk.f32.gmra.mxu0 %vm577_vm1, %v6699_v49  ;;  %6889 = vmatmul.msk.f32.gmra.mxu1 %vm577_vm1, %v6746_v50  ;;  %v1909_v57 = vld [vmem:[#allocation2 + $0x91] ss:$2 sm:$0xff]  ;;  %v1863_v58 = vld [vmem:[#allocation2 + $0x90] ss:$2 sm:$0xff]  ;;  %v1531_v59 = vmin.f32 %v1388_v55, 0.0 }
 0x14f   : > { %1812 = vst.msk [vmem:[#allocation2 + $0xa0] sm:$0xff] %vm1791_vm5, %v1764_v54  ;;  %6959 = vmatmul.msk.f32.gmra.mxu2 %vm1791_vm5, %v1909_v57  ;;  %6983 = vmatmul.msk.f32.gmra.mxu3 %vm1791_vm5, %v1863_v58  ;;  %vm903_vm12 = vcmp.gt.f32.partialorder %v807_v52, 0.0  ;;  %vm1484_vm13 = vcmp.gt.f32.partialorder %v1388_v55, 0.0  ;;  %v6703_v58 = vld [vmem:[%s8362_s24 + $0x2a0] ss:$2 sm:$0xff] }
 0x150   : > { %v7839_v60 = vpop.eup %7838  ;;  %v1019_v61 = vmul.f32 1.442695, %v950_v56  ;;  %v1600_v0 = vmul.f32 1.442695, %v1531_v59  ;;  %v6750_v59 = vld [vmem:[%s8362_s24 + $0x2a1] ss:$2 sm:$0xff] }
 0x151   : > { %v7841_v62 = vpop.eup %7840  ;;  %v6824_v63 = vadd.f32 -1.0, %v7839_v60 }
 0x152   : > { %v6919_v1 = vadd.f32 -1.0, %v7841_v62  ;;  %7842 = vpow2.f32 %v1019_v61 }
 0x153   : > { %v1137_v2 = vsel %vm902_vm10, %v804_v34, %v6824_v63  ;;  %7844 = vpow2.f32 %v1600_v0  ;;  %v809_v3 = vpop.f32.mrf.mxu0  ;;  %v1390_v8 = vpop.f32.mrf.mxu1 }
 0x154   : > { %v1718_v6 = vsel %vm1483_vm11, %v1385_v38, %v6919_v1  ;;  %v810_v7 = vadd.f32 %v8620_v15, %v809_v3  ;;  %v1391_v36 = vadd.f32 %v8620_v15, %v1390_v8 }
 0x155   : > { %v1765_v9 = vmax.f32 %v1137_v2, %v1718_v6 }
 0x156   : > { %v951_v10 = vmin.f32 %v810_v7, 0.0  ;;  %6795 = vmatmul.msk.f32.gmra.mxu0 %vm577_vm1, %v6700_v4  ;;  %6890 = vmatmul.msk.f32.gmra.mxu1 %vm577_vm1, %v6747_v5  ;;  %v1532_v11 = vmin.f32 %v1391_v36, 0.0  ;;  %vm904_vm14 = vcmp.gt.f32.partialorder %v810_v7, 0.0  ;;  %vm1485_vm15 = vcmp.gt.f32.partialorder %v1391_v36, 0.0 }
 0x157   : > { %1813 = vst.msk [vmem:[#allocation2 + $0xa8] sm:$0xff] %vm1791_vm5, %v1765_v9 }
 0x158   : > { %v7843_v12 = vpop.eup %7842  ;;  %v1021_v13 = vmul.f32 1.442695, %v951_v10  ;;  %v1602_v17 = vmul.f32 1.442695, %v1532_v11  ;;  %v7099_v11 = vld [vmem:[%s12273_s3 + $0x70] sm:$0xff] }
 0x159   : > { %v7845_v14 = vpop.eup %7844  ;;  %v6825_v16 = vadd.f32 -1.0, %v7843_v12 }
 0x15a   : > { %v6920_v18 = vadd.f32 -1.0, %v7845_v14  ;;  %7846 = vpow2.f32 %v1021_v13  ;;  %v6704_v14 = vld [vmem:[%s8362_s24 + $0x2b0] ss:$2 sm:$0xff] }
 0x15b   : > { %v1138_v19 = vsel %vm903_vm12, %v807_v52, %v6825_v16  ;;  %7848 = vpow2.f32 %v1602_v17  ;;  %v812_v20 = vpop.f32.mrf.mxu0  ;;  %v1393_v25 = vpop.f32.mrf.mxu1  ;;  %v6751_v16 = vld [vmem:[%s8362_s24 + $0x2b1] ss:$2 sm:$0xff] }
 0x15c   : > { %v1719_v23 = vsel %vm1484_vm13, %v1388_v55, %v6920_v18  ;;  %v813_v24 = vadd.f32 %v8620_v15, %v812_v20  ;;  %v1394_v27 = vadd.f32 %v8620_v15, %v1393_v25  ;;  %v7098_v20 = vld [vmem:[%s12273_s3 + $0x68] sm:$0xff] }
 0x15d   : > { %v1766_v26 = vmax.f32 %v1138_v19, %v1719_v23 }
 0x15e   : > { %v952_v28 = vmin.f32 %v813_v24, 0.0  ;;  %6796 = vmatmul.msk.f32.gmra.mxu0 %vm577_vm1, %v6701_v21  ;;  %6891 = vmatmul.msk.f32.gmra.mxu1 %vm577_vm1, %v6748_v22  ;;  %v1911_v29 = vld [vmem:[#allocation2 + $0xa1] ss:$2 sm:$0xff]  ;;  %v1865_v30 = vld [vmem:[#allocation2 + $0xa0] ss:$2 sm:$0xff]  ;;  %v1533_v31 = vmin.f32 %v1394_v27, 0.0 }
 0x15f   : > { %1814 = vst.msk [vmem:[#allocation2 + $0xb0] sm:$0xff] %vm1791_vm5, %v1766_v26  ;;  %6960 = vmatmul.msk.f32.gmra.mxu2 %vm1791_vm5, %v1911_v29  ;;  %6984 = vmatmul.msk.f32.gmra.mxu3 %vm1791_vm5, %v1865_v30  ;;  %vm905_vm3 = vcmp.gt.f32.partialorder %v813_v24, 0.0  ;;  %vm1486_vm4 = vcmp.gt.f32.partialorder %v1394_v27, 0.0 }
 0x160   : > { %v7847_v32 = vpop.eup %7846  ;;  %v1023_v33 = vmul.f32 1.442695, %v952_v28  ;;  %v1604_v37 = vmul.f32 1.442695, %v1533_v31 }
 0x161   : > { %v7849_v34 = vpop.eup %7848  ;;  %v6826_v35 = vadd.f32 -1.0, %v7847_v32 }
 0x162   : > { %v6921_v38 = vadd.f32 -1.0, %v7849_v34  ;;  %7850 = vpow2.f32 %v1023_v33  ;;  %v6705_v34 = vld [vmem:[%s8362_s24 + $0x2c0] ss:$2 sm:$0xff] }
 0x163   : > { %v1139_v39 = vsel %vm904_vm14, %v810_v7, %v6826_v35  ;;  %7852 = vpow2.f32 %v1604_v37  ;;  %v815_v40 = vpop.f32.mrf.mxu0  ;;  %v1396_v45 = vpop.f32.mrf.mxu1  ;;  %v6752_v35 = vld [vmem:[%s8362_s24 + $0x2c1] ss:$2 sm:$0xff] }
 0x164   : > { %v1720_v43 = vsel %vm1485_vm15, %v1391_v36, %v6921_v38  ;;  %v816_v44 = vadd.f32 %v8620_v15, %v815_v40  ;;  %v1397_v47 = vadd.f32 %v8620_v15, %v1396_v45  ;;  %v7100_v36 = vld [vmem:[%s12273_s3 + $0x78] sm:$0x1] }
 0x165   : > { %v1767_v46 = vmax.f32 %v1139_v39, %v1720_v43  ;;  %7101 = vmatpush.msk.msrb.mxu0 %vm2010_vm2, %v7100_v36  ;;  %7125 = vmatpush.msk.msrb.mxu1 %vm2010_vm2, %v7100_v36 }
 0x166   : > { %v953_v48 = vmin.f32 %v816_v44, 0.0  ;;  %6797 = vmatmul.msk.f32.gmra.mxu0 %vm577_vm1, %v6702_v41  ;;  %6892 = vmatmul.msk.f32.gmra.mxu1 %vm577_vm1, %v6749_v42  ;;  %v1534_v49 = vmin.f32 %v1397_v47, 0.0  ;;  %vm906_vm6 = vcmp.gt.f32.partialorder %v816_v44, 0.0  ;;  %vm1487_vm7 = vcmp.gt.f32.partialorder %v1397_v47, 0.0 }
 0x167   : > { %1815 = vst.msk [vmem:[#allocation2 + $0xb8] sm:$0xff] %vm1791_vm5, %v1767_v46  ;;  %2907 = vmatpush.msrb.mxu0 %v7099_v11  ;;  %3131 = vmatpush.msrb.mxu1 %v7099_v11 }
 0x168   : > { %v7851_v50 = vpop.eup %7850  ;;  %v1025_v51 = vmul.f32 1.442695, %v953_v48  ;;  %v1606_v54 = vmul.f32 1.442695, %v1534_v49 }
 0x169   : > { %v7853_v52 = vpop.eup %7852  ;;  %v6827_v53 = vadd.f32 -1.0, %v7851_v50  ;;  %2908 = vmatpush.msrb.mxu0 %v7098_v20  ;;  %3132 = vmatpush.msrb.mxu1 %v7098_v20 }
 0x16a   : > { %v6922_v55 = vadd.f32 -1.0, %v7853_v52  ;;  %7854 = vpow2.f32 %v1025_v51 }
 0x16b   : > { %v1140_v56 = vsel %vm905_vm3, %v813_v24, %v6827_v53  ;;  %7856 = vpow2.f32 %v1606_v54  ;;  %v818_v57 = vpop.f32.mrf.mxu0  ;;  %v1399_v62 = vpop.f32.mrf.mxu1  ;;  %v7097_v24 = vld [vmem:[%s12273_s3 + $0x60] sm:$0xff]  ;;  %v6706_v54 = vld [vmem:[%s8362_s24 + $0x2d0] ss:$2 sm:$0xff] }
 0x16c   : > { %v1721_v60 = vsel %vm1486_vm4, %v1394_v27, %v6922_v55  ;;  %v819_v61 = vadd.f32 %v8620_v15, %v818_v57  ;;  %v1400_v0 = vadd.f32 %v8620_v15, %v1399_v62  ;;  %2909 = vmatpush.msrb.mxu0 %v7097_v24  ;;  %3133 = vmatpush.msrb.mxu1 %v7097_v24  ;;  %v6753_v55 = vld [vmem:[%s8362_s24 + $0x2d1] ss:$2 sm:$0xff] }
 0x16d   : > { %v1768_v63 = vmax.f32 %v1140_v56, %v1721_v60 }
 0x16e   : > { %v954_v1 = vmin.f32 %v819_v61, 0.0  ;;  %6798 = vmatmul.msk.f32.gmra.mxu0 %vm577_vm1, %v6703_v58  ;;  %6893 = vmatmul.msk.f32.gmra.mxu1 %vm577_vm1, %v6750_v59  ;;  %v1913_v2 = vld [vmem:[#allocation2 + $0xb1] ss:$2 sm:$0xff]  ;;  %v1867_v3 = vld [vmem:[#allocation2 + $0xb0] ss:$2 sm:$0xff]  ;;  %v1535_v4 = vmin.f32 %v1400_v0, 0.0 }
 0x16f   : > { %1816 = vst.msk [vmem:[#allocation2 + $0xc0] sm:$0xff] %vm1791_vm5, %v1768_v63  ;;  %6961 = vmatmul.msk.f32.gmra.mxu2 %vm1791_vm5, %v1913_v2  ;;  %6985 = vmatmul.msk.f32.gmra.mxu3 %vm1791_vm5, %v1867_v3  ;;  %vm907_vm8 = vcmp.gt.f32.partialorder %v819_v61, 0.0  ;;  %vm1488_vm9 = vcmp.gt.f32.partialorder %v1400_v0, 0.0 }
 0x170   : > { %v7855_v5 = vpop.eup %7854  ;;  %v1027_v6 = vmul.f32 1.442695, %v954_v1  ;;  %v1608_v9 = vmul.f32 1.442695, %v1535_v4 }
 0x171   : > { %v7857_v7 = vpop.eup %7856  ;;  %v6828_v8 = vadd.f32 -1.0, %v7855_v5  ;;  %v6707_v5 = vld [vmem:[%s8362_s24 + $0x2e0] ss:$2 sm:$0x1f] }
 0x172   : > { %v6923_v10 = vadd.f32 -1.0, %v7857_v7  ;;  %7858 = vpow2.f32 %v1027_v6 }
 0x173   : > { %v1141_v12 = vsel %vm906_vm6, %v816_v44, %v6828_v8  ;;  %7860 = vpow2.f32 %v1608_v9  ;;  %v821_v13 = vpop.f32.mrf.mxu0  ;;  %v1402_v19 = vpop.f32.mrf.mxu1  ;;  %v6754_v8 = vld [vmem:[%s8362_s24 + $0x2e1] ss:$2 sm:$0x1f]  ;;  %s378_s24 = scalar_lea.vmem [#allocation5], %s377_s13 }
 0x174   : > { %v1722_v17 = vsel %vm1487_vm7, %v1397_v47, %v6923_v10  ;;  %v822_v18 = vadd.f32 %v8620_v15, %v821_v13  ;;  %v1403_v22 = vadd.f32 %v8620_v15, %v1402_v19  ;;  %s6600_s29 = sshll.u32 %s378_s24, 4  ;;  %s6601_s29 = int_to_ptr.vmem [resolvable:$true] %s6600_s29 }
 0x175   : > { %v1769_v21 = vmax.f32 %v1141_v12, %v1722_v17 }
 0x176   : > { %v955_v23 = vmin.f32 %v822_v18, 0.0  ;;  %6799 = vmatmul.msk.f32.gmra.mxu0 %vm577_vm1, %v6704_v14  ;;  %6894 = vmatmul.msk.f32.gmra.mxu1 %vm577_vm1, %v6751_v16  ;;  %v1536_v25 = vmin.f32 %v1403_v22, 0.0  ;;  %vm908_vm10 = vcmp.gt.f32.partialorder %v822_v18, 0.0  ;;  %vm1489_vm11 = vcmp.gt.f32.partialorder %v1403_v22, 0.0 }
 0x177   : > { %1817 = vst.msk [vmem:[#allocation2 + $0xc8] sm:$0xff] %vm1791_vm5, %v1769_v21 }
 0x178   : > { %v7859_v26 = vpop.eup %7858  ;;  %v1029_v27 = vmul.f32 1.442695, %v955_v23  ;;  %v1610_v30 = vmul.f32 1.442695, %v1536_v25 }
 0x179   : > { %v7861_v28 = vpop.eup %7860  ;;  %v6829_v29 = vadd.f32 -1.0, %v7859_v26 }
 0x17a   : > { %v6924_v31 = vadd.f32 -1.0, %v7861_v28  ;;  %7862 = vpow2.f32 %v1029_v27 }
 0x17b   : > { %v1142_v32 = vsel %vm907_vm8, %v819_v61, %v6829_v29  ;;  %7864 = vpow2.f32 %v1610_v30  ;;  %v824_v33 = vpop.f32.mrf.mxu0  ;;  %v1405_v39 = vpop.f32.mrf.mxu1 }
 0x17c   : > { %v1723_v37 = vsel %vm1488_vm9, %v1400_v0, %v6924_v31  ;;  %v825_v38 = vadd.f32 %v8620_v15, %v824_v33  ;;  %v1406_v41 = vadd.f32 %v8620_v15, %v1405_v39  ;;  %v2663_v31 = vld [vmem:[#allocation2 + $0x3] ss:$2 sm:$0xff] }
 0x17d   : > { %v1770_v40 = vmax.f32 %v1142_v32, %v1723_v37  ;;  %v3004_v32 = vld [vmem:[#allocation2 + $0x4] ss:$2 sm:$0xff] }
 0x17e   : > { %v956_v42 = vmin.f32 %v825_v38, 0.0  ;;  %6800 = vmatmul.msk.f32.gmra.mxu0 %vm577_vm1, %v6705_v34  ;;  %6895 = vmatmul.msk.f32.gmra.mxu1 %vm577_vm1, %v6752_v35  ;;  %v1915_v43 = vld [vmem:[#allocation2 + $0xc1] ss:$2 sm:$0xff]  ;;  %v1869_v44 = vld [vmem:[#allocation2 + $0xc0] ss:$2 sm:$0xff]  ;;  %v1537_v45 = vmin.f32 %v1406_v41, 0.0 }
 0x17f   : > { %1818 = vst.msk [vmem:[#allocation2 + $0xd0] sm:$0xff] %vm1791_vm5, %v1770_v40  ;;  %6962 = vmatmul.msk.f32.gmra.mxu2 %vm1791_vm5, %v1915_v43  ;;  %6986 = vmatmul.msk.f32.gmra.mxu3 %vm1791_vm5, %v1869_v44  ;;  %vm909_vm12 = vcmp.gt.f32.partialorder %v825_v38, 0.0  ;;  %vm1490_vm13 = vcmp.gt.f32.partialorder %v1406_v41, 0.0 }
 0x180   : > { %v7863_v46 = vpop.eup %7862  ;;  %v1031_v47 = vmul.f32 1.442695, %v956_v42  ;;  %v1612_v50 = vmul.f32 1.442695, %v1537_v45 }
 0x181   : > { %v7865_v48 = vpop.eup %7864  ;;  %v6830_v49 = vadd.f32 -1.0, %v7863_v46 }
 0x182   : > { %v6925_v51 = vadd.f32 -1.0, %v7865_v48  ;;  %7866 = vpow2.f32 %v1031_v47 }
 0x183   : > { %v1143_v52 = vsel %vm908_vm10, %v822_v18, %v6830_v49  ;;  %7868 = vpow2.f32 %v1612_v50  ;;  %v827_v53 = vpop.f32.mrf.mxu0  ;;  %v1408_v58 = vpop.f32.mrf.mxu1  ;;  %v2665_v49 = vld [vmem:[#allocation2 + $0x13] ss:$2 sm:$0xff]  ;;  %v3006_v50 = vld [vmem:[#allocation2 + $0x14] ss:$2 sm:$0xff] }
 0x184   : > { %v1724_v56 = vsel %vm1489_vm11, %v1403_v22, %v6925_v51  ;;  %v828_v57 = vadd.f32 %v8620_v15, %v827_v53  ;;  %v1409_v60 = vadd.f32 %v8620_v15, %v1408_v58 }
 0x185   : > { %v1771_v59 = vmax.f32 %v1143_v52, %v1724_v56 }
 0x186   : > { %v957_v61 = vmin.f32 %v828_v57, 0.0  ;;  %6801 = vmatmul.msk.f32.gmra.mxu0 %vm577_vm1, %v6706_v54  ;;  %6896 = vmatmul.msk.f32.gmra.mxu1 %vm577_vm1, %v6753_v55  ;;  %v1538_v62 = vmin.f32 %v1409_v60, 0.0  ;;  %vm910_vm14 = vcmp.gt.f32.partialorder %v828_v57, 0.0  ;;  %vm1491_vm15 = vcmp.gt.f32.partialorder %v1409_v60, 0.0 }
 0x187   : > { %1819 = vst.msk [vmem:[#allocation2 + $0xd8] sm:$0xff] %vm1791_vm5, %v1771_v59 }
 0x188   : > { %v7867_v63 = vpop.eup %7866  ;;  %v1033_v0 = vmul.f32 1.442695, %v957_v61  ;;  %v1614_v3 = vmul.f32 1.442695, %v1538_v62 }
 0x189   : > { %v7869_v1 = vpop.eup %7868  ;;  %v6831_v2 = vadd.f32 -1.0, %v7867_v63 }
 0x18a   : > { %v6926_v4 = vadd.f32 -1.0, %v7869_v1  ;;  %7870 = vpow2.f32 %v1033_v0 }
 0x18b   : > { %v1144_v6 = vsel %vm909_vm12, %v825_v38, %v6831_v2  ;;  %7872 = vpow2.f32 %v1614_v3  ;;  %v830_v7 = vpop.f32.mrf.mxu0  ;;  %v1411_v10 = vpop.f32.mrf.mxu1 }
 0x18c   : > { %v1725_v9 = vsel %vm1490_vm13, %v1406_v41, %v6926_v4  ;;  %v831_v36 = vadd.f32 %v8620_v15, %v830_v7  ;;  %v1412_v12 = vadd.f32 %v8620_v15, %v1411_v10  ;;  %v2667_v4 = vld [vmem:[#allocation2 + $0x23] ss:$2 sm:$0xff] }
 0x18d   : > { %v1772_v11 = vmax.f32 %v1144_v6, %v1725_v9 }
 0x18e   : > { %v958_v13 = vmin.f32 %v831_v36, 0.0  ;;  %6802 = vmatmul.msk.f32.gmra.mxu0 %vm577_vm1, %v6707_v5  ;;  %6897 = vmatmul.msk.f32.gmra.mxu1 %vm577_vm1, %v6754_v8  ;;  %v1917_v14 = vld [vmem:[#allocation2 + $0xd1] ss:$2 sm:$0xff]  ;;  %v1871_v16 = vld [vmem:[#allocation2 + $0xd0] ss:$2 sm:$0xff]  ;;  %v1539_v17 = vmin.f32 %v1412_v12, 0.0 }
 0x18f   : > { %1820 = vst.msk [vmem:[#allocation2 + $0xe0] sm:$0xff] %vm1791_vm5, %v1772_v11  ;;  %6963 = vmatmul.msk.f32.gmra.mxu2 %vm1791_vm5, %v1917_v14  ;;  %6987 = vmatmul.msk.f32.gmra.mxu3 %vm1791_vm5, %v1871_v16  ;;  %vm911_vm1 = vcmp.gt.f32.partialorder %v831_v36, 0.0  ;;  %vm1492_vm3 = vcmp.gt.f32.partialorder %v1412_v12, 0.0  ;;  %v3008_v5 = vld [vmem:[#allocation2 + $0x24] ss:$2 sm:$0xff] }
 0x190   : > { %v7871_v18 = vpop.eup %7870  ;;  %v1035_v19 = vmul.f32 1.442695, %v958_v13  ;;  %v1616_v22 = vmul.f32 1.442695, %v1539_v17 }
 0x191   : > { %v7873_v20 = vpop.eup %7872  ;;  %v6832_v21 = vadd.f32 -1.0, %v7871_v18 }
 0x192   : > { %v6927_v23 = vadd.f32 -1.0, %v7873_v20  ;;  %7874 = vpow2.f32 %v1035_v19 }
 0x193   : > { %v1145_v24 = vsel %vm910_vm14, %v828_v57, %v6832_v21  ;;  %7876 = vpow2.f32 %v1616_v22  ;;  %v833_v25 = vpop.f32.mrf.mxu0  ;;  %v1414_v28 = vpop.f32.mrf.mxu1  ;;  %v2669_v21 = vld [vmem:[#allocation2 + $0x33] ss:$2 sm:$0xff]  ;;  %v3010_v22 = vld [vmem:[#allocation2 + $0x34] ss:$2 sm:$0xff] }
 0x194   : > { %v1726_v26 = vsel %vm1491_vm15, %v1409_v60, %v6927_v23  ;;  %v834_v27 = vadd.f32 %v8620_v15, %v833_v25  ;;  %v1415_v30 = vadd.f32 %v8620_v15, %v1414_v28 }
 0x195   : > { %v1773_v29 = vmax.f32 %v1145_v24, %v1726_v26 }
 0x196   : > { %v959_v33 = vmin.f32 %v834_v27, 0.0  ;;  %7102 = vmatmul.msk.f32.vlgmr.msrb.gmra.mxu0 %vm1791_vm5, %v2663_v31  ;;  %7126 = vmatmul.msk.f32.vlgmr.msrb.gmra.mxu1 %vm1791_vm5, %v3004_v32  ;;  %v1540_v34 = vmin.f32 %v1415_v30, 0.0  ;;  %vm912_vm4 = vcmp.gt.f32.partialorder %v834_v27, 0.0  ;;  %vm1493_vm6 = vcmp.gt.f32.partialorder %v1415_v30, 0.0 }
 0x197   : > { %1821 = vst.msk [vmem:[#allocation2 + $0xe8] sm:$0xff] %vm1791_vm5, %v1773_v29 }
 0x198   : > { %v7875_v35 = vpop.eup %7874  ;;  %v1037_v37 = vmul.f32 1.442695, %v959_v33  ;;  %v1618_v40 = vmul.f32 1.442695, %v1540_v34 }
 0x199   : > { %v7877_v38 = vpop.eup %7876  ;;  %v6833_v39 = vadd.f32 -1.0, %v7875_v35 }
 0x19a   : > { %v6928_v41 = vadd.f32 -1.0, %v7877_v38  ;;  %7878 = vpow2.f32 %v1037_v37 }
 0x19b   : > { %v1146_v42 = vsel %vm911_vm1, %v831_v36, %v6833_v39  ;;  %7880 = vpow2.f32 %v1618_v40  ;;  %v836_v43 = vpop.f32.mrf.mxu0  ;;  %v1417_v46 = vpop.f32.mrf.mxu1 }
 0x19c   : > { %v1727_v44 = vsel %vm1492_vm3, %v1412_v12, %v6928_v41  ;;  %v837_v45 = vadd.f32 %v8620_v15, %v836_v43  ;;  %v1418_v48 = vadd.f32 %v8620_v15, %v1417_v46  ;;  %v2671_v41 = vld [vmem:[#allocation2 + $0x43] ss:$2 sm:$0xff] }
 0x19d   : > { %v1774_v47 = vmax.f32 %v1146_v42, %v1727_v44  ;;  %v3012_v42 = vld [vmem:[#allocation2 + $0x44] ss:$2 sm:$0xff] }
 0x19e   : > { %v960_v51 = vmin.f32 %v837_v45, 0.0  ;;  %v1919_v52 = vld [vmem:[#allocation2 + $0xe1] ss:$2 sm:$0xff]  ;;  %v1873_v53 = vld [vmem:[#allocation2 + $0xe0] ss:$2 sm:$0xff]  ;;  %7103 = vmatmul.msk.f32.gmra.mxu0 %vm1791_vm5, %v2665_v49  ;;  %7127 = vmatmul.msk.f32.gmra.mxu1 %vm1791_vm5, %v3006_v50  ;;  %v1541_v54 = vmin.f32 %v1418_v48, 0.0 }
 0x19f   : > { %1822 = vst.msk [vmem:[#allocation2 + $0xf0] sm:$0xff] %vm1791_vm5, %v1774_v47  ;;  %6964 = vmatmul.msk.f32.gmra.mxu2 %vm1791_vm5, %v1919_v52  ;;  %6988 = vmatmul.msk.f32.gmra.mxu3 %vm1791_vm5, %v1873_v53  ;;  %vm913_vm7 = vcmp.gt.f32.partialorder %v837_v45, 0.0  ;;  %vm1494_vm8 = vcmp.gt.f32.partialorder %v1418_v48, 0.0 }
 0x1a0   : > { %v7879_v55 = vpop.eup %7878  ;;  %v1039_v56 = vmul.f32 1.442695, %v960_v51  ;;  %v1620_v59 = vmul.f32 1.442695, %v1541_v54 }
 0x1a1   : > { %v7881_v57 = vpop.eup %7880  ;;  %v6834_v58 = vadd.f32 -1.0, %v7879_v55 }
 0x1a2   : > { %v6929_v60 = vadd.f32 -1.0, %v7881_v57  ;;  %7882 = vpow2.f32 %v1039_v56 }
 0x1a3   : > { %v1147_v61 = vsel %vm912_vm4, %v834_v27, %v6834_v58  ;;  %7884 = vpow2.f32 %v1620_v59  ;;  %v839_v62 = vpop.f32.mrf.mxu0  ;;  %v1420_v1 = vpop.f32.mrf.mxu1  ;;  %v8757_v58 = vld [vmem:[#allocation2 + $0x53] ss:$2 sm:$0xff]  ;;  %v3014_v59 = vld [vmem:[#allocation2 + $0x54] ss:$2 sm:$0xff] }
 0x1a4   : > { %v1728_v63 = vsel %vm1493_vm6, %v1415_v30, %v6929_v60  ;;  %v840_v0 = vadd.f32 %v8620_v15, %v839_v62  ;;  %v1421_v3 = vadd.f32 %v8620_v15, %v1420_v1 }
 0x1a5   : > { %v1775_v2 = vmax.f32 %v1147_v61, %v1728_v63 }
 0x1a6   : > { %v961_v6 = vmin.f32 %v840_v0, 0.0  ;;  %7104 = vmatmul.msk.f32.gmra.mxu0 %vm1791_vm5, %v2667_v4  ;;  %7128 = vmatmul.msk.f32.gmra.mxu1 %vm1791_vm5, %v3008_v5  ;;  %v1542_v7 = vmin.f32 %v1421_v3, 0.0  ;;  %vm914_vm9 = vcmp.gt.f32.partialorder %v840_v0, 0.0  ;;  %vm1495_vm10 = vcmp.gt.f32.partialorder %v1421_v3, 0.0 }
 0x1a7   : > { %1823 = vst.msk [vmem:[#allocation2 + $0xf8] sm:$0xff] %vm1791_vm5, %v1775_v2 }
 0x1a8   : > { %v7883_v8 = vpop.eup %7882  ;;  %v1041_v9 = vmul.f32 1.442695, %v961_v6  ;;  %v1622_v11 = vmul.f32 1.442695, %v1542_v7 }
 0x1a9   : > { %v7885_v36 = vpop.eup %7884  ;;  %v6835_v10 = vadd.f32 -1.0, %v7883_v8 }
 0x1aa   : > { %v6930_v12 = vadd.f32 -1.0, %v7885_v36  ;;  %7886 = vpow2.f32 %v1041_v9 }
 0x1ab   : > { %v1148_v13 = vsel %vm913_vm7, %v837_v45, %v6835_v10  ;;  %7888 = vpow2.f32 %v1622_v11  ;;  %v842_v14 = vpop.f32.mrf.mxu0  ;;  %v1423_v18 = vpop.f32.mrf.mxu1 }
 0x1ac   : > { %v1729_v16 = vsel %vm1494_vm8, %v1418_v48, %v6930_v12  ;;  %v843_v17 = vadd.f32 %v8620_v15, %v842_v14  ;;  %v1424_v20 = vadd.f32 %v8620_v15, %v1423_v18  ;;  %v8770_v12 = vld [vmem:[#allocation2 + $0x63] ss:$2 sm:$0xff] }
 0x1ad   : > { %v1776_v19 = vmax.f32 %v1148_v13, %v1729_v16  ;;  %v3016_v13 = vld [vmem:[#allocation2 + $0x64] ss:$2 sm:$0xff] }
 0x1ae   : > { %v962_v23 = vmin.f32 %v843_v17, 0.0  ;;  %v8742_v24 = vld [vmem:[#allocation2 + $0xf1] ss:$2 sm:$0xff]  ;;  %v1875_v25 = vld [vmem:[#allocation2 + $0xf0] ss:$2 sm:$0xff]  ;;  %7105 = vmatmul.msk.f32.gmra.mxu0 %vm1791_vm5, %v2669_v21  ;;  %7129 = vmatmul.msk.f32.gmra.mxu1 %vm1791_vm5, %v3010_v22  ;;  %v1543_v26 = vmin.f32 %v1424_v20, 0.0 }
 0x1af   : > { %1824 = vst.msk [vmem:[#allocation2 + $0x100] sm:$0xff] %vm1791_vm5, %v1776_v19  ;;  %6965 = vmatmul.msk.f32.gmra.mxu2 %vm1791_vm5, %v8742_v24  ;;  %6989 = vmatmul.msk.f32.gmra.mxu3 %vm1791_vm5, %v1875_v25  ;;  %vm915_vm11 = vcmp.gt.f32.partialorder %v843_v17, 0.0  ;;  %vm1496_vm12 = vcmp.gt.f32.partialorder %v1424_v20, 0.0 }
 0x1b0   : > { %v7887_v27 = vpop.eup %7886  ;;  %v1043_v28 = vmul.f32 1.442695, %v962_v23  ;;  %v1624_v31 = vmul.f32 1.442695, %v1543_v26 }
 0x1b1   : > { %v7889_v29 = vpop.eup %7888  ;;  %v6836_v30 = vadd.f32 -1.0, %v7887_v27 }
 0x1b2   : > { %v6931_v32 = vadd.f32 -1.0, %v7889_v29  ;;  %7890 = vpow2.f32 %v1043_v28 }
 0x1b3   : > { %v1149_v33 = vsel %vm914_vm9, %v840_v0, %v6836_v30  ;;  %7892 = vpow2.f32 %v1624_v31  ;;  %v845_v34 = vpop.f32.mrf.mxu0  ;;  %v1426_v38 = vpop.f32.mrf.mxu1  ;;  %v8778_v31 = vld [vmem:[#allocation2 + $0x73] ss:$2 sm:$0xff] }
 0x1b4   : > { %v1730_v35 = vsel %vm1495_vm10, %v1421_v3, %v6931_v32  ;;  %v846_v37 = vadd.f32 %v8620_v15, %v845_v34  ;;  %v1427_v40 = vadd.f32 %v8620_v15, %v1426_v38  ;;  %v3018_v32 = vld [vmem:[#allocation2 + $0x74] ss:$2 sm:$0xff] }
 0x1b5   : > { %v1777_v39 = vmax.f32 %v1149_v33, %v1730_v35 }
 0x1b6   : > { %v963_v43 = vmin.f32 %v846_v37, 0.0  ;;  %7106 = vmatmul.msk.f32.gmra.mxu0 %vm1791_vm5, %v2671_v41  ;;  %7130 = vmatmul.msk.f32.gmra.mxu1 %vm1791_vm5, %v3012_v42  ;;  %v1544_v44 = vmin.f32 %v1427_v40, 0.0  ;;  %vm916_vm13 = vcmp.gt.f32.partialorder %v846_v37, 0.0  ;;  %vm1497_vm14 = vcmp.gt.f32.partialorder %v1427_v40, 0.0 }
 0x1b7   : > { %1825 = vst.msk [vmem:[#allocation2 + $0x108] sm:$0xff] %vm1791_vm5, %v1777_v39 }
 0x1b8   : > { %v7891_v45 = vpop.eup %7890  ;;  %v1045_v46 = vmul.f32 1.442695, %v963_v43  ;;  %v1626_v49 = vmul.f32 1.442695, %v1544_v44 }
 0x1b9   : > { %v7893_v47 = vpop.eup %7892  ;;  %v6837_v48 = vadd.f32 -1.0, %v7891_v45 }
 0x1ba   : > { %v6932_v50 = vadd.f32 -1.0, %v7893_v47  ;;  %7894 = vpow2.f32 %v1045_v46 }
 0x1bb   : > { %v1150_v51 = vsel %vm915_vm11, %v843_v17, %v6837_v48  ;;  %7896 = vpow2.f32 %v1626_v49  ;;  %v848_v52 = vpop.f32.mrf.mxu0  ;;  %v1429_v55 = vpop.f32.mrf.mxu1 }
 0x1bc   : > { %v1731_v53 = vsel %vm1496_vm12, %v1424_v20, %v6932_v50  ;;  %v849_v54 = vadd.f32 %v8620_v15, %v848_v52  ;;  %v1430_v57 = vadd.f32 %v8620_v15, %v1429_v55  ;;  %v3020_v52 = vld [vmem:[#allocation2 + $0x84] ss:$2 sm:$0xff] }
 0x1bd   : > { %v1778_v56 = vmax.f32 %v1150_v51, %v1731_v53  ;;  %v8791_v51 = vld [vmem:[#allocation2 + $0x83] ss:$2 sm:$0xff] }
 0x1be   : > { %v964_v60 = vmin.f32 %v849_v54, 0.0  ;;  %v8759_v61 = vld [vmem:[#allocation2 + $0x101] ss:$2 sm:$0xff]  ;;  %v1877_v62 = vld [vmem:[#allocation2 + $0x100] ss:$2 sm:$0xff]  ;;  %7107 = vmatmul.msk.f32.gmra.mxu0 %vm1791_vm5, %v8757_v58  ;;  %7131 = vmatmul.msk.f32.gmra.mxu1 %vm1791_vm5, %v3014_v59  ;;  %v1545_v63 = vmin.f32 %v1430_v57, 0.0 }
 0x1bf   : > { %1826 = vst.msk [vmem:[#allocation2 + $0x110] sm:$0xff] %vm1791_vm5, %v1778_v56  ;;  %6966 = vmatmul.msk.f32.gmra.mxu2 %vm1791_vm5, %v8759_v61  ;;  %6990 = vmatmul.msk.f32.gmra.mxu3 %vm1791_vm5, %v1877_v62  ;;  %vm917_vm15 = vcmp.gt.f32.partialorder %v849_v54, 0.0  ;;  %vm1498_vm1 = vcmp.gt.f32.partialorder %v1430_v57, 0.0 }
 0x1c0   : > { %v7895_v0 = vpop.eup %7894  ;;  %v1047_v1 = vmul.f32 1.442695, %v964_v60  ;;  %v1628_v4 = vmul.f32 1.442695, %v1545_v63 }
 0x1c1   : > { %v7897_v2 = vpop.eup %7896  ;;  %v6838_v3 = vadd.f32 -1.0, %v7895_v0 }
 0x1c2   : > { %v6933_v5 = vadd.f32 -1.0, %v7897_v2  ;;  %7898 = vpow2.f32 %v1047_v1  ;;  %v8800_v1 = vld [vmem:[%s12272_s2] ss:$0 sm:$0xff] }
 0x1c3   : > { %v1151_v6 = vsel %vm916_vm13, %v846_v37, %v6838_v3  ;;  %7900 = vpow2.f32 %v1628_v4  ;;  %v851_v7 = vpop.f32.mrf.mxu0  ;;  %v1432_v36 = vpop.f32.mrf.mxu1 }
 0x1c4   : > { %v1732_v8 = vsel %vm1497_vm14, %v1427_v40, %v6933_v5  ;;  %v852_v9 = vadd.f32 %v8620_v15, %v851_v7  ;;  %v1433_v11 = vadd.f32 %v8620_v15, %v1432_v36  ;;  %v3022_v7 = vld [vmem:[#allocation2 + $0x94] ss:$2 sm:$0xff] }
 0x1c5   : > { %v1779_v10 = vmax.f32 %v1151_v6, %v1732_v8  ;;  %v8804_v6 = vld [vmem:[#allocation2 + $0x93] ss:$2 sm:$0xff] }
 0x1c6   : > { %v965_v14 = vmin.f32 %v852_v9, 0.0  ;;  %7108 = vmatmul.msk.f32.gmra.mxu0 %vm1791_vm5, %v8770_v12  ;;  %7132 = vmatmul.msk.f32.gmra.mxu1 %vm1791_vm5, %v3016_v13  ;;  %v1546_v16 = vmin.f32 %v1433_v11, 0.0  ;;  %vm918_vm3 = vcmp.gt.f32.partialorder %v852_v9, 0.0  ;;  %vm1499_vm4 = vcmp.gt.f32.partialorder %v1433_v11, 0.0 }
 0x1c7   : > { %1827 = vst.msk [vmem:[#allocation2 + $0x118] sm:$0xff] %vm1791_vm5, %v1779_v10 }
 0x1c8   : > { %v7899_v17 = vpop.eup %7898  ;;  %v1049_v18 = vmul.f32 1.442695, %v965_v14  ;;  %v1630_v21 = vmul.f32 1.442695, %v1546_v16 }
 0x1c9   : > { %v7901_v19 = vpop.eup %7900  ;;  %v6839_v20 = vadd.f32 -1.0, %v7899_v17 }
 0x1ca   : > { %v6934_v22 = vadd.f32 -1.0, %v7901_v19  ;;  %7902 = vpow2.f32 %v1049_v18 }
 0x1cb   : > { %v1152_v23 = vsel %vm917_vm15, %v849_v54, %v6839_v20  ;;  %7904 = vpow2.f32 %v1630_v21  ;;  %v854_v25 = vpop.f32.mrf.mxu0  ;;  %v1435_v28 = vpop.f32.mrf.mxu1 }
 0x1cc   : > { %v1733_v26 = vsel %vm1498_vm1, %v1430_v57, %v6934_v22  ;;  %v855_v27 = vadd.f32 %v8620_v15, %v854_v25  ;;  %v1436_v30 = vadd.f32 %v8620_v15, %v1435_v28  ;;  %v3024_v28 = vld [vmem:[#allocation2 + $0xa4] ss:$2 sm:$0xff] }
 0x1cd   : > { %v1780_v29 = vmax.f32 %v1152_v23, %v1733_v26 }
 0x1ce   : > { %v966_v33 = vmin.f32 %v855_v27, 0.0  ;;  %v8780_v34 = vld [vmem:[#allocation2 + $0x111] ss:$2 sm:$0xff]  ;;  %v1879_v35 = vld [vmem:[#allocation2 + $0x110] ss:$2 sm:$0xff]  ;;  %7109 = vmatmul.msk.f32.gmra.mxu0 %vm1791_vm5, %v8778_v31  ;;  %7133 = vmatmul.msk.f32.gmra.mxu1 %vm1791_vm5, %v3018_v32  ;;  %v1547_v37 = vmin.f32 %v1436_v30, 0.0 }
 0x1cf   : > { %1828 = vst.msk [vmem:[#allocation2 + $0x120] sm:$0xff] %vm1791_vm5, %v1780_v29  ;;  %6967 = vmatmul.msk.f32.gmra.mxu2 %vm1791_vm5, %v8780_v34  ;;  %6991 = vmatmul.msk.f32.gmra.mxu3 %vm1791_vm5, %v1879_v35  ;;  %vm919_vm6 = vcmp.gt.f32.partialorder %v855_v27, 0.0  ;;  %vm1500_vm7 = vcmp.gt.f32.partialorder %v1436_v30, 0.0 }
 0x1d0   : > { %v7903_v38 = vpop.eup %7902  ;;  %v1051_v39 = vmul.f32 1.442695, %v966_v33  ;;  %v1632_v42 = vmul.f32 1.442695, %v1547_v37 }
 0x1d1   : > { %v7905_v40 = vpop.eup %7904  ;;  %v6840_v41 = vadd.f32 -1.0, %v7903_v38 }
 0x1d2   : > { %v6935_v43 = vadd.f32 -1.0, %v7905_v40  ;;  %7906 = vpow2.f32 %v1051_v39 }
 0x1d3   : > { %v1153_v44 = vsel %vm918_vm3, %v852_v9, %v6840_v41  ;;  %7908 = vpow2.f32 %v1632_v42  ;;  %v857_v45 = vpop.f32.mrf.mxu0  ;;  %v1438_v48 = vpop.f32.mrf.mxu1 }
 0x1d4   : > { %v1734_v46 = vsel %vm1499_vm4, %v1433_v11, %v6935_v43  ;;  %v858_v47 = vadd.f32 %v8620_v15, %v857_v45  ;;  %v1439_v50 = vadd.f32 %v8620_v15, %v1438_v48  ;;  %v3026_v48 = vld [vmem:[#allocation2 + $0xb4] ss:$2 sm:$0xff] }
 0x1d5   : > { %v1781_v49 = vmax.f32 %v1153_v44, %v1734_v46 }
 0x1d6   : > { %v967_v53 = vmin.f32 %v858_v47, 0.0  ;;  %7110 = vmatmul.msk.f32.gmra.mxu0 %vm1791_vm5, %v8791_v51  ;;  %7134 = vmatmul.msk.f32.gmra.mxu1 %vm1791_vm5, %v3020_v52  ;;  %v1548_v54 = vmin.f32 %v1439_v50, 0.0  ;;  %vm920_vm8 = vcmp.gt.f32.partialorder %v858_v47, 0.0  ;;  %vm1501_vm9 = vcmp.gt.f32.partialorder %v1439_v50, 0.0 }
 0x1d7   : > { %1829 = vst.msk [vmem:[#allocation2 + $0x128] sm:$0xff] %vm1791_vm5, %v1781_v49 }
 0x1d8   : > { %v7907_v55 = vpop.eup %7906  ;;  %v1053_v56 = vmul.f32 1.442695, %v967_v53  ;;  %v1634_v60 = vmul.f32 1.442695, %v1548_v54 }
 0x1d9   : > { %v7909_v57 = vpop.eup %7908  ;;  %v6841_v59 = vadd.f32 -1.0, %v7907_v55 }
 0x1da   : > { %v6936_v62 = vadd.f32 -1.0, %v7909_v57  ;;  %7910 = vpow2.f32 %v1053_v56 }
 0x1db   : > { %v1154_v15 = vsel %vm919_vm6, %v855_v27, %v6841_v59  ;;  %7912 = vpow2.f32 %v1634_v60  ;;  %v860_v63 = vpop.f32.mrf.mxu0  ;;  %v1441_v3 = vpop.f32.mrf.mxu1  ;;  %v8817_v27 = vld [vmem:[#allocation2 + $0xa3] ss:$2 sm:$0xff] }
 0x1dc   : > { %v1735_v0 = vsel %vm1500_vm7, %v1436_v30, %v6936_v62  ;;  %v861_v2 = vadd.f32 %v8800_v1, %v860_v63  ;;  %v1442_v5 = vadd.f32 %v8800_v1, %v1441_v3  ;;  %v8836_v60 = vpop.f32.mrf.mxu2  ;;  %v8838_v62 = vpop.f32.mrf.mxu3 }
 0x1dd   : > { %v1782_v4 = vmax.f32 %v1154_v15, %v1735_v0 }
 0x1de   : > { %v968_v8 = vmin.f32 %v861_v2, 0.0  ;;  %v8806_v9 = vld [vmem:[#allocation2 + $0x121] ss:$2 sm:$0xff]  ;;  %v1881_v36 = vld [vmem:[#allocation2 + $0x120] ss:$2 sm:$0xff]  ;;  %7111 = vmatmul.msk.f32.gmra.mxu0 %vm1791_vm5, %v8804_v6  ;;  %7135 = vmatmul.msk.f32.gmra.mxu1 %vm1791_vm5, %v3022_v7  ;;  %v1549_v10 = vmin.f32 %v1442_v5, 0.0 }
 0x1df   : > { %1830 = vst.msk [vmem:[#allocation2 + $0x130] sm:$0xff] %vm1791_vm5, %v1782_v4  ;;  %6968 = vmatmul.msk.f32.gmra.mxu2 %vm1791_vm5, %v8806_v9  ;;  %6992 = vmatmul.msk.f32.gmra.mxu3 %vm1791_vm5, %v1881_v36  ;;  %vm921_vm10 = vcmp.gt.f32.partialorder %v861_v2, 0.0  ;;  %vm1502_vm11 = vcmp.gt.f32.partialorder %v1442_v5, 0.0  ;;  %v8844_v36 = vld [vmem:[#allocation2 + $0xc4] ss:$2 sm:$0xff] }
 0x1e0   : > { %v7911_v11 = vpop.eup %7910  ;;  %v1055_v13 = vmul.f32 1.442695, %v968_v8  ;;  %v1636_v17 = vmul.f32 1.442695, %v1549_v10  ;;  %v8842_v8 = vld [vmem:[#allocation2 + $0xc3] ss:$2 sm:$0xff] }
 0x1e1   : > { %v7913_v14 = vpop.eup %7912  ;;  %v6842_v16 = vadd.f32 -1.0, %v7911_v11 }
 0x1e2   : > { %v6937_v18 = vadd.f32 -1.0, %v7913_v14  ;;  %7914 = vpow2.f32 %v1055_v13 }
 0x1e3   : > { %v1155_v19 = vsel %vm920_vm8, %v858_v47, %v6842_v16  ;;  %7916 = vpow2.f32 %v1636_v17  ;;  %v863_v20 = vpop.f32.mrf.mxu0  ;;  %v1444_v23 = vpop.f32.mrf.mxu1  ;;  %v8825_v47 = vld [vmem:[#allocation2 + $0xb3] ss:$2 sm:$0xff] }
 0x1e4   : > { %v1736_v21 = vsel %vm1501_vm9, %v1439_v50, %v6937_v18  ;;  %v864_v22 = vadd.f32 %v8800_v1, %v863_v20  ;;  %v1445_v26 = vadd.f32 %v8800_v1, %v1444_v23  ;;  %v8853_v20 = vpop.f32.mrf.mxu3 }
 0x1e5   : > { %v1783_v25 = vmax.f32 %v1155_v19, %v1736_v21  ;;  %v8851_v19 = vpop.f32.mrf.mxu2  ;;  %12295 = vst [vmem:[#allocation9_spill] sm:$0xff] %v8853_v20 }
 0x1e6   : > { %v969_v29 = vmin.f32 %v864_v22, 0.0  ;;  %7112 = vmatmul.msk.f32.gmra.mxu0 %vm1791_vm5, %v8817_v27  ;;  %7136 = vmatmul.msk.f32.gmra.mxu1 %vm1791_vm5, %v3024_v28  ;;  %v1550_v30 = vmin.f32 %v1445_v26, 0.0  ;;  %vm922_vm12 = vcmp.gt.f32.partialorder %v864_v22, 0.0  ;;  %vm1503_vm13 = vcmp.gt.f32.partialorder %v1445_v26, 0.0  ;;  %12294 = vst [vmem:[#allocation8_spill] sm:$0xff] %v8851_v19 }
 0x1e7   : > { %1831 = vst.msk [vmem:[#allocation2 + $0x138] sm:$0xff] %vm1791_vm5, %v1783_v25  ;;  %v8148_v19 = vld [vmem:[#allocation2 + $0x13] ss:$2 sm:$0xff] }
 0x1e8   : > { %v7915_v32 = vpop.eup %7914  ;;  %v1057_v33 = vmul.f32 1.442695, %v969_v29  ;;  %v1638_v38 = vmul.f32 1.442695, %v1550_v30 }
 0x1e9   : > { %v7917_v35 = vpop.eup %7916  ;;  %v6843_v37 = vadd.f32 -1.0, %v7915_v32  ;;  %v8857_v32 = vld [vmem:[#allocation2 + $0xd3] ss:$2 sm:$0xff] }
 0x1ea   : > { %v6938_v39 = vadd.f32 -1.0, %v7917_v35  ;;  %7918 = vpow2.f32 %v1057_v33  ;;  %v8859_v33 = vld [vmem:[#allocation2 + $0xd4] ss:$2 sm:$0xff] }
 0x1eb   : > { %v1156_v40 = vsel %vm921_vm10, %v861_v2, %v6843_v37  ;;  %7920 = vpow2.f32 %v1638_v38  ;;  %v866_v41 = vpop.f32.mrf.mxu0  ;;  %v1447_v44 = vpop.f32.mrf.mxu1 }
 0x1ec   : > { %v1737_v42 = vsel %vm1502_vm11, %v1442_v5, %v6938_v39  ;;  %v867_v43 = vadd.f32 %v8800_v1, %v866_v41  ;;  %v1448_v46 = vadd.f32 %v8800_v1, %v1447_v44  ;;  %vm1838_vm11 = vcmask 200704  }
 0x1ed   : > { %v1784_v45 = vmax.f32 %v1156_v40, %v1737_v42 }
 0x1ee   : > { %v970_v49 = vmin.f32 %v867_v43, 0.0  ;;  %v8827_v50 = vld [vmem:[#allocation2 + $0x131] ss:$2 sm:$0xff]  ;;  %v1883_v52 = vld [vmem:[#allocation2 + $0x130] ss:$2 sm:$0xff]  ;;  %7113 = vmatmul.msk.f32.gmra.mxu0 %vm1791_vm5, %v8825_v47  ;;  %7137 = vmatmul.msk.f32.gmra.mxu1 %vm1791_vm5, %v3026_v48  ;;  %v1551_v53 = vmin.f32 %v1448_v46, 0.0 }
 0x1ef   : > { %1832 = vst.msk [vmem:[#allocation2 + $0x140] sm:$0xff] %vm1791_vm5, %v1784_v45  ;;  %6969 = vmatmul.msk.f32.gmra.mxu2 %vm1791_vm5, %v8827_v50  ;;  %6993 = vmatmul.msk.f32.gmra.mxu3 %vm1791_vm5, %v1883_v52  ;;  %vm923_vm14 = vcmp.gt.f32.partialorder %v867_v43, 0.0  ;;  %vm1504_vm15 = vcmp.gt.f32.partialorder %v1448_v46, 0.0  ;;  %v8871_v45 = vpop.f32.mrf.mxu2 }
 0x1f0   : > { %v7919_v54 = vpop.eup %7918  ;;  %v1059_v55 = vmul.f32 1.442695, %v970_v49  ;;  %v1640_v59 = vmul.f32 1.442695, %v1551_v53  ;;  %12296 = vst [vmem:[#allocation10_spill] sm:$0xff] %v8871_v45 }
 0x1f1   : > { %v7921_v56 = vpop.eup %7920  ;;  %v6844_v57 = vadd.f32 -1.0, %v7919_v54 }
 0x1f2   : > { %v6939_v15 = vadd.f32 -1.0, %v7921_v56  ;;  %7922 = vpow2.f32 %v1059_v55 }
 0x1f3   : > { %v1157_v63 = vsel %vm922_vm12, %v864_v22, %v6844_v57  ;;  %7924 = vpow2.f32 %v1640_v59  ;;  %v869_v0 = vpop.f32.mrf.mxu0  ;;  %v1450_v4 = vpop.f32.mrf.mxu1  ;;  %v8877_v59 = vld [vmem:[#allocation2 + $0xe3] ss:$2 sm:$0xff] }
 0x1f4   : > { %v1738_v2 = vsel %vm1503_vm13, %v1445_v26, %v6939_v15  ;;  %v870_v3 = vadd.f32 %v8800_v1, %v869_v0  ;;  %v1451_v7 = vadd.f32 %v8800_v1, %v1450_v4  ;;  %v8879_v15 = vld [vmem:[#allocation2 + $0xe4] ss:$2 sm:$0xff]  ;;  %vm3916_vm13 = vcmask 408576  }
 0x1f5   : > { %v1785_v5 = vmax.f32 %v1157_v63, %v1738_v2  ;;  %v7048_v2 = vld [vmem:[%s12273_s3 + $0x58] sm:$0x1] }
 0x1f6   : > { %v971_v10 = vmin.f32 %v870_v3, 0.0  ;;  %7114 = vmatmul.msk.f32.gmra.mxu0 %vm1791_vm5, %v8842_v8  ;;  %7138 = vmatmul.msk.f32.gmra.mxu1 %vm1791_vm5, %v8844_v36  ;;  %v1552_v11 = vmin.f32 %v1451_v7, 0.0  ;;  %vm924_vm1 = vcmp.gt.f32.partialorder %v870_v3, 0.0  ;;  %vm1505_vm3 = vcmp.gt.f32.partialorder %v1451_v7, 0.0 }
 0x1f7   : > { %1833 = vst.msk [vmem:[#allocation2 + $0x148] sm:$0xff] %vm1791_vm5, %v1785_v5  ;;  %7049 = vmatpush.msk.msra.mxu2 %vm2010_vm2, %v7048_v2  ;;  %7073 = vmatpush.msk.msra.mxu3 %vm2010_vm2, %v7048_v2 }
 0x1f8   : > { %v7923_v13 = vpop.eup %7922  ;;  %v1061_v14 = vmul.f32 1.442695, %v971_v10  ;;  %v1642_v18 = vmul.f32 1.442695, %v1552_v11  ;;  %v8891_v11 = vpop.f32.mrf.mxu2 }
 0x1f9   : > { %v7925_v16 = vpop.eup %7924  ;;  %v6845_v17 = vadd.f32 -1.0, %v7923_v13  ;;  %12298 = vst [vmem:[#allocation12_spill] sm:$0xff] %v8891_v11  ;;  %v9144_v11 = vld [vmem:[#allocation2 + $0x122] ss:$2 sm:$0xff] }
 0x1fa   : > { %v6940_v21 = vadd.f32 -1.0, %v7925_v16  ;;  %7926 = vpow2.f32 %v1061_v14 }
 0x1fb   : > { %v1158_v22 = vsel %vm923_vm14, %v867_v43, %v6845_v17  ;;  %7928 = vpow2.f32 %v1642_v18  ;;  %v872_v23 = vpop.f32.mrf.mxu0  ;;  %v1453_v28 = vpop.f32.mrf.mxu1 }
 0x1fc   : > { %v1739_v25 = vsel %vm1504_vm15, %v1448_v46, %v6940_v21  ;;  %v873_v26 = vadd.f32 %v8800_v1, %v872_v23  ;;  %v1454_v30 = vadd.f32 %v8800_v1, %v1453_v28  ;;  %v8873_v46 = vpop.f32.mrf.mxu3  ;;  %v8897_v28 = vld [vmem:[#allocation2 + $0xf3] ss:$2 sm:$0xff] }
 0x1fd   : > { %v1786_v29 = vmax.f32 %v1158_v22, %v1739_v25  ;;  %12297 = vst [vmem:[#allocation11_spill] sm:$0xff] %v8873_v46 }
 0x1fe   : > { %v972_v35 = vmin.f32 %v873_v26, 0.0  ;;  %v8861_v37 = vld [vmem:[#allocation2 + $0x141] ss:$2 sm:$0xff]  ;;  %v1885_v38 = vld [vmem:[#allocation2 + $0x140] ss:$2 sm:$0xff]  ;;  %7115 = vmatmul.msk.f32.gmra.mxu0 %vm1791_vm5, %v8857_v32  ;;  %7139 = vmatmul.msk.f32.gmra.mxu1 %vm1791_vm5, %v8859_v33  ;;  %v1553_v39 = vmin.f32 %v1454_v30, 0.0 }
 0x1ff   : > { %1834 = vst.msk [vmem:[#allocation2 + $0x150] sm:$0xff] %vm1791_vm5, %v1786_v29  ;;  %6970 = vmatmul.msk.f32.gmra.mxu2 %vm1791_vm5, %v8861_v37  ;;  %6994 = vmatmul.msk.f32.gmra.mxu3 %vm1791_vm5, %v1885_v38  ;;  %vm925_vm4 = vcmp.gt.f32.partialorder %v873_v26, 0.0  ;;  %vm1506_vm6 = vcmp.gt.f32.partialorder %v1454_v30, 0.0  ;;  %v8899_v29 = vld [vmem:[#allocation2 + $0xf4] ss:$2 sm:$0xff] }
 0x200   : > { %v7927_v40 = vpop.eup %7926  ;;  %v1063_v41 = vmul.f32 1.442695, %v972_v35  ;;  %v1644_v44 = vmul.f32 1.442695, %v1553_v39 }
 0x201   : > { %v7929_v42 = vpop.eup %7928  ;;  %v6846_v43 = vadd.f32 -1.0, %v7927_v40 }
 0x202   : > { %v6941_v48 = vadd.f32 -1.0, %v7929_v42  ;;  %7930 = vpow2.f32 %v1063_v41 }
 0x203   : > { %v1159_v49 = vsel %vm924_vm1, %v870_v3, %v6846_v43  ;;  %7932 = vpow2.f32 %v1644_v44  ;;  %v875_v52 = vpop.f32.mrf.mxu0  ;;  %v1456_v55 = vpop.f32.mrf.mxu1 }
 0x204   : > { %v1740_v53 = vsel %vm1505_vm3, %v1451_v7, %v6941_v48  ;;  %v876_v54 = vadd.f32 %v8800_v1, %v875_v52  ;;  %v1457_v57 = vadd.f32 %v8800_v1, %v1456_v55  ;;  %v8893_v13 = vpop.f32.mrf.mxu3  ;;  %v8911_v43 = vpop.f32.mrf.mxu2  ;;  %v8915_v55 = vld [vmem:[#allocation2 + $0x103] ss:$2 sm:$0xff] }
 0x205   : > { %v1787_v56 = vmax.f32 %v1159_v49, %v1740_v53  ;;  %12299 = vst [vmem:[#allocation13_spill] sm:$0xff] %v8893_v13  ;;  %v9136_v13 = vld [vmem:[#allocation2 + $0x112] ss:$2 sm:$0xff] }
 0x206   : > { %v973_v63 = vmin.f32 %v876_v54, 0.0  ;;  %7116 = vmatmul.msk.f32.gmra.mxu0 %vm1791_vm5, %v8877_v59  ;;  %7140 = vmatmul.msk.f32.gmra.mxu1 %vm1791_vm5, %v8879_v15  ;;  %v1554_v0 = vmin.f32 %v1457_v57, 0.0  ;;  %12300 = vst [vmem:[#allocation14_spill] sm:$0xff] %v8911_v43  ;;  %vm926_vm7 = vcmp.gt.f32.partialorder %v876_v54, 0.0  ;;  %vm1507_vm8 = vcmp.gt.f32.partialorder %v1457_v57, 0.0 }
 0x207   : > { %1835 = vst.msk [vmem:[#allocation2 + $0x158] sm:$0xff] %vm1791_vm5, %v1787_v56  ;;  %v8917_v56 = vld [vmem:[#allocation2 + $0x104] ss:$2 sm:$0xff] }
 0x208   : > { %v7931_v3 = vpop.eup %7930  ;;  %v1065_v4 = vmul.f32 1.442695, %v973_v63  ;;  %v1646_v10 = vmul.f32 1.442695, %v1554_v0  ;;  %12302 = vst [vmem:[#allocation16_spill] sm:$0xff] %v8917_v56 }
 0x209   : > { %v7933_v5 = vpop.eup %7932  ;;  %v6847_v7 = vadd.f32 -1.0, %v7931_v3  ;;  %v9120_v43 = vld [vmem:[#allocation2 + $0xf2] ss:$2 sm:$0xff] }
 0x20a   : > { %v6942_v14 = vadd.f32 -1.0, %v7933_v5  ;;  %7934 = vpow2.f32 %v1065_v4 }
 0x20b   : > { %v1160_v16 = vsel %vm925_vm4, %v873_v26, %v6847_v7  ;;  %7936 = vpow2.f32 %v1646_v10  ;;  %v878_v17 = vpop.f32.mrf.mxu0  ;;  %v1459_v22 = vpop.f32.mrf.mxu1  ;;  %v8928_v10 = vld [vmem:[#allocation2 + $0x113] ss:$2 sm:$0xff] }
 0x20c   : > { %v1741_v18 = vsel %vm1506_vm6, %v1454_v30, %v6942_v14  ;;  %v879_v21 = vadd.f32 %v8800_v1, %v878_v17  ;;  %v1460_v25 = vadd.f32 %v8800_v1, %v1459_v22  ;;  %v8913_v44 = vpop.f32.mrf.mxu3  ;;  %v8924_v2 = vpop.f32.mrf.mxu2  ;;  %v8930_v14 = vld [vmem:[#allocation2 + $0x114] ss:$2 sm:$0xff]  ;;  %v8945_v22 = vld [vmem:[#allocation2 + $0x123] ss:$2 sm:$0xff] }
 0x20d   : > { %v1788_v23 = vmax.f32 %v1160_v16, %v1741_v18  ;;  %12301 = vst [vmem:[#allocation15_spill] sm:$0xff] %v8913_v44 }
 0x20e   : > { %v974_v35 = vmin.f32 %v879_v21, 0.0  ;;  %v8901_v38 = vld [vmem:[#allocation2 + $0x151] ss:$2 sm:$0xff]  ;;  %v1887_v39 = vld [vmem:[#allocation2 + $0x150] ss:$2 sm:$0xff]  ;;  %7117 = vmatmul.msk.f32.gmra.mxu0 %vm1791_vm5, %v8897_v28  ;;  %7141 = vmatmul.msk.f32.gmra.mxu1 %vm1791_vm5, %v8899_v29  ;;  %v1555_v26 = vmin.f32 %v1460_v25, 0.0 }
 0x20f   : > { %1836 = vst.msk [vmem:[#allocation2 + $0x160] sm:$0xff] %vm1791_vm5, %v1788_v23  ;;  %6971 = vmatmul.msk.f32.gmra.mxu2 %vm1791_vm5, %v8901_v38  ;;  %6995 = vmatmul.msk.f32.gmra.mxu3 %vm1791_vm5, %v1887_v39  ;;  %vm927_vm9 = vcmp.gt.f32.partialorder %v879_v21, 0.0  ;;  %vm1508_vm10 = vcmp.gt.f32.partialorder %v1460_v25, 0.0  ;;  %v8947_v23 = vld [vmem:[#allocation2 + $0x124] ss:$2 sm:$0xff] }
 0x210   : > { %v7935_v1 = vpop.eup %7934  ;;  %v1067_v30 = vmul.f32 1.442695, %v974_v35  ;;  %v1648_v42 = vmul.f32 1.442695, %v1555_v26  ;;  %12303 = vst [vmem:[#allocation17_spill] sm:$0xff] %v8924_v2 }
 0x211   : > { %v7937_v40 = vpop.eup %7936  ;;  %v6848_v41 = vadd.f32 -1.0, %v7935_v1  ;;  %12305 = vst [vmem:[#allocation19_spill] sm:$0xff] %v8930_v14  ;;  %v8132_v35 = vld [vmem:[#allocation2 + $0x1] ss:$2 sm:$0xff]  ;;  %v9099_v2 = vld [vmem:[#allocation2 + $0xd2] ss:$2 sm:$0xff] }
 0x212   : > { %v6943_v48 = vadd.f32 -1.0, %v7937_v40  ;;  %7938 = vpow2.f32 %v1067_v30  ;;  %12308 = vst [vmem:[#allocation22_spill] sm:$0xff] %v8947_v23  ;;  %v8962_v1 = vld [vmem:[#allocation2 + $0x133] ss:$2 sm:$0xff]  ;;  %v8964_v30 = vld [vmem:[#allocation2 + $0x134] ss:$2 sm:$0xff] }
 0x213   : > { %v1161_v49 = vsel %vm926_vm7, %v876_v54, %v6848_v41  ;;  %7940 = vpow2.f32 %v1648_v42  ;;  %12311 = vst [vmem:[#allocation25_spill] sm:$0xff] %v8964_v30  ;;  %v8966_v40 = vld [vmem:[#allocation2 + $0x12] ss:$2 sm:$0xff]  ;;  %v8133_v41 = vld [vmem:[#allocation2 + $0x11] ss:$2 sm:$0xff] }
 0x214   : > { %v1742_v52 = vsel %vm1507_vm8, %v1457_v57, %v6943_v48  ;;  %v8926_v57 = vpop.f32.mrf.mxu3  ;;  %v8941_v18 = vpop.f32.mrf.mxu2 }
 0x215   : > { %v1789_v53 = vmax.f32 %v1161_v49, %v1742_v52  ;;  %12304 = vst [vmem:[#allocation18_spill] sm:$0xff] %v8926_v57  ;;  %v7047_v49 = vld [vmem:[%s12273_s3 + $0x50] sm:$0xff] }
 0x216   : > { %7118 = vmatmul.msk.f32.gmra.mxu0 %vm1791_vm5, %v8915_v55  ;;  %7142 = vmatmul.msk.f32.gmra.mxu1 %vm1791_vm5, %v8917_v56  ;;  %12306 = vst [vmem:[#allocation20_spill] sm:$0xff] %v8941_v18  ;;  %v8982_v52 = vld [vmem:[#allocation2 + $0x143] ss:$2 sm:$0xff]  ;;  %v9081_v18 = vld [vmem:[#allocation2 + $0xb2] ss:$2 sm:$0xff] }
 0x217   : > { %1837 = vst.msk [vmem:[#allocation2 + $0x168] sm:$0xff] %vm1791_vm5, %v1789_v53  ;;  %v3044_v53 = vld [vmem:[#allocation2 + $0x144] ss:$2 sm:$0xff]  ;;  %2566 = vmatpush.msra.mxu2 %v7047_v49  ;;  %2790 = vmatpush.msra.mxu3 %v7047_v49 }
 0x218   : > { %v7939_v63 = vpop.eup %7938  ;;  %v9090_v57 = vld [vmem:[#allocation2 + $0xc2] ss:$2 sm:$0xff]  ;;  %v9173_v45 = vld [vmem:[#allocation2 + $0x152] ss:$2 sm:$0xff] }
 0x219   : > { %v7941_v0 = vpop.eup %7940  ;;  %v6849_v54 = vadd.f32 -1.0, %v7939_v63  ;;  %v8984_v63 = vld [vmem:[#allocation2 + $0x22] ss:$2 sm:$0xff] }
 0x21a   : > { %v6944_v3 = vadd.f32 -1.0, %v7941_v0  ;;  %v8134_v0 = vld [vmem:[#allocation2 + $0x21] ss:$2 sm:$0xff] }
 0x21b   : > { %v1162_v4 = vsel %vm927_vm9, %v879_v21, %v6849_v54 }
 0x21c   : > { %v1743_v5 = vsel %vm1508_vm10, %v1460_v25, %v6944_v3  ;;  %v8943_v21 = vpop.f32.mrf.mxu3  ;;  %v8949_v25 = vld [vmem:[#allocation2 + $0x2] ss:$2 sm:$0xff]  ;;  %v8958_v39 = vpop.f32.mrf.mxu2 }
 0x21d   : > { %v1790_v7 = vmax.f32 %v1162_v4, %v1743_v5  ;;  %12307 = vst [vmem:[#allocation21_spill] sm:$0xff] %v8943_v21  ;;  %v8996_v4 = vld [vmem:[#allocation2 + $0x153] ss:$2 sm:$0xff]  ;;  %v3046_v5 = vld [vmem:[#allocation2 + $0x154] ss:$2 sm:$0xff] }
 0x21e   : > { %v8932_v16 = vld [vmem:[#allocation2 + $0x161] ss:$2 sm:$0xff]  ;;  %v1889_v17 = vld [vmem:[#allocation2 + $0x160] ss:$2 sm:$0xff]  ;;  %7119 = vmatmul.msk.f32.gmra.mxu0 %vm1791_vm5, %v8928_v10  ;;  %7143 = vmatmul.msk.f32.gmra.mxu1 %vm1791_vm5, %v8930_v14  ;;  %12309 = vst [vmem:[#allocation23_spill] sm:$0xff] %v8958_v39 }
 0x21f   : > { %1839 = vst.msk [vmem:[#allocation2 + $0x170] sm:$0x1f] %vm1838_vm11, %v1790_v7  ;;  %6972 = vmatmul.msk.f32.gmra.mxu2 %vm1791_vm5, %v8932_v16  ;;  %6996 = vmatmul.msk.f32.gmra.mxu3 %vm1791_vm5, %v1889_v17  ;;  %v8998_v7 = vld [vmem:[#allocation2 + $0x32] ss:$2 sm:$0xff]  ;;  %v8135_v17 = vld [vmem:[#allocation2 + $0x31] ss:$2 sm:$0xff] }
 0x220   : > { %v9072_v21 = vld [vmem:[#allocation2 + $0xa2] ss:$2 sm:$0xff] }
 0x224   : > { %v8960_v26 = vpop.f32.mrf.mxu3  ;;  %v8975_v42 = vpop.f32.mrf.mxu2 }
 0x225   : > { %12310 = vst [vmem:[#allocation24_spill] sm:$0xff] %v8960_v26 }
 0x226   : > { %7120 = vmatmul.msk.f32.gmra.mxu0 %vm1791_vm5, %v8945_v22  ;;  %7144 = vmatmul.msk.f32.gmra.mxu1 %vm1791_vm5, %v8947_v23  ;;  %12312 = vst [vmem:[#allocation26_spill] sm:$0xff] %v8975_v42  ;;  %v9010_v49 = vld [vmem:[#allocation2 + $0x163] ss:$2 sm:$0xff]  ;;  %v9042_v42 = vld [vmem:[#allocation2 + $0x72] ss:$2 sm:$0xff] }
 0x227   : > { %6998 = vmatmul.msk.f32.vlgmr.msrb.gmra.mxu2 %vm1791_vm5, %v8949_v25  ;;  %7022 = vmatmul.msk.f32.vlgmr.msrb.gmra.mxu3 %vm1791_vm5, %v8132_v35  ;;  %v9152_v23 = vld [vmem:[#allocation2 + $0x132] ss:$2 sm:$0xff]  ;;  %v9181_v14 = vld [vmem:[#allocation2 + $0x162] ss:$2 sm:$0xff] }
 0x22c   : > { %v8977_v48 = vpop.f32.mrf.mxu3  ;;  %v8992_v54 = vpop.f32.mrf.mxu2 }
 0x22d   : > { %12313 = vst [vmem:[#allocation27_spill] sm:$0xff] %v8977_v48  ;;  %v9033_v48 = vld [vmem:[#allocation2 + $0x62] ss:$2 sm:$0xff] }
 0x22e   : > { %7121 = vmatmul.msk.f32.gmra.mxu0 %vm1791_vm5, %v8962_v1  ;;  %7145 = vmatmul.msk.f32.gmra.mxu1 %vm1791_vm5, %v8964_v30  ;;  %12314 = vst [vmem:[#allocation28_spill] sm:$0xff] %v8992_v54  ;;  %v9128_v30 = vld [vmem:[#allocation2 + $0x102] ss:$2 sm:$0xff] }
 0x22f   : > { %6999 = vmatmul.msk.f32.gmra.mxu2 %vm1791_vm5, %v8966_v40  ;;  %7023 = vmatmul.msk.f32.gmra.mxu3 %vm1791_vm5, %v8133_v41 }
 0x234   : > { %v8994_v3 = vpop.f32.mrf.mxu3  ;;  %v9006_v35 = vpop.f32.mrf.mxu2 }
 0x235   : > { %12315 = vst [vmem:[#allocation29_spill] sm:$0xff] %v8994_v3  ;;  %v8137_v3 = vld [vmem:[#allocation2 + $0x51] ss:$2 sm:$0xff] }
 0x236   : > { %7122 = vmatmul.msk.f32.gmra.mxu0 %vm1791_vm5, %v8982_v52  ;;  %7146 = vmatmul.msk.f32.gmra.mxu1 %vm1791_vm5, %v3044_v53  ;;  %12316 = vst [vmem:[#allocation30_spill] sm:$0xff] %v9006_v35  ;;  %v3048_v53 = vld [vmem:[#allocation2 + $0x164] ss:$2 sm:$0xff] }
 0x237   : > { %7000 = vmatmul.msk.f32.gmra.mxu2 %vm1791_vm5, %v8984_v63  ;;  %7024 = vmatmul.msk.f32.gmra.mxu3 %vm1791_vm5, %v8134_v0  ;;  %v9012_v0 = vld [vmem:[#allocation2 + $0x42] ss:$2 sm:$0xff] }
 0x23c   : > { %v9008_v41 = vpop.f32.mrf.mxu3 }
 0x23d   : > { %12317 = vst [vmem:[#allocation31_spill] sm:$0xff] %v9008_v41  ;;  %v9024_v41 = vld [vmem:[#allocation2 + $0x52] ss:$2 sm:$0xff] }
 0x23e   : > { %7123 = vmatmul.msk.f32.gmra.mxu0 %vm1791_vm5, %v8996_v4  ;;  %7147 = vmatmul.msk.f32.gmra.mxu1 %vm1791_vm5, %v3046_v5  ;;  %v8136_v5 = vld [vmem:[#allocation2 + $0x41] ss:$2 sm:$0xff] }
 0x23f   : > { %7001 = vmatmul.msk.f32.gmra.mxu2 %vm1791_vm5, %v8998_v7  ;;  %7025 = vmatmul.msk.f32.gmra.mxu3 %vm1791_vm5, %v8135_v17  ;;  %v9020_v17 = vpop.f32.mrf.mxu2 }
 0x240   : > { %12318 = vst [vmem:[#allocation32_spill] sm:$0xff] %v9020_v17 }
 0x244   : > { %v9022_v35 = vpop.f32.mrf.mxu3 }
 0x245   : > { %12319 = vst [vmem:[#allocation33_spill] sm:$0xff] %v9022_v35 }
 0x246   : > { %7124 = vmatmul.msk.f32.gmra.mxu0 %vm1791_vm5, %v9010_v49  ;;  %7148 = vmatmul.msk.f32.gmra.mxu1 %vm1791_vm5, %v3048_v53 }
 0x247   : > { %7002 = vmatmul.msk.f32.gmra.mxu2 %vm1791_vm5, %v9012_v0  ;;  %7026 = vmatmul.msk.f32.gmra.mxu3 %vm1791_vm5, %v8136_v5  ;;  %v9029_v54 = vpop.f32.mrf.mxu2  ;;  %v8138_v5 = vld [vmem:[#allocation2 + $0x61] ss:$2 sm:$0xff] }
 0x248   : > { %12320 = vst [vmem:[#allocation34_spill] sm:$0xff] %v9029_v54 }
 0x24c   : > { %v9031_v53 = vpop.f32.mrf.mxu3 }
 0x24d   : > { %12321 = vst [vmem:[#allocation35_spill] sm:$0xff] %v9031_v53 }
 0x24f   : > { %7003 = vmatmul.msk.f32.gmra.mxu2 %vm1791_vm5, %v9024_v41  ;;  %7027 = vmatmul.msk.f32.gmra.mxu3 %vm1791_vm5, %v8137_v3  ;;  %v9038_v35 = vpop.f32.mrf.mxu2  ;;  %v8139_v3 = vld [vmem:[#allocation2 + $0x71] ss:$2 sm:$0xff] }
 0x250   : > { %12322 = vst [vmem:[#allocation36_spill] sm:$0xff] %v9038_v35  ;;  %v9054_v35 = vld [vmem:[#allocation2 + $0x82] ss:$2 sm:$0xff] }
 0x254   : > { %v9040_v17 = vpop.f32.mrf.mxu3 }
 0x255   : > { %12323 = vst [vmem:[#allocation37_spill] sm:$0xff] %v9040_v17  ;;  %v8140_v17 = vld [vmem:[#allocation2 + $0x81] ss:$2 sm:$0xff] }
 0x257   : > { %7004 = vmatmul.msk.f32.gmra.mxu2 %vm1791_vm5, %v9033_v48  ;;  %7028 = vmatmul.msk.f32.gmra.mxu3 %vm1791_vm5, %v8138_v5  ;;  %v9047_v53 = vpop.f32.mrf.mxu2  ;;  %v7046_v5 = vld [vmem:[%s12273_s3 + $0x48] sm:$0xff] }
 0x258   : > { %12324 = vst [vmem:[#allocation38_spill] sm:$0xff] %v9047_v53  ;;  %2567 = vmatpush.msra.mxu2 %v7046_v5  ;;  %2791 = vmatpush.msra.mxu3 %v7046_v5  ;;  %v9063_v53 = vld [vmem:[#allocation2 + $0x92] ss:$2 sm:$0xff] }
 0x25c   : > { %v9049_v54 = vpop.f32.mrf.mxu3 }
 0x25d   : > { %12325 = vst [vmem:[#allocation39_spill] sm:$0xff] %v9049_v54  ;;  %v8141_v54 = vld [vmem:[#allocation2 + $0x91] ss:$2 sm:$0xff] }
 0x25f   : > { %7005 = vmatmul.msk.f32.gmra.mxu2 %vm1791_vm5, %v9042_v42  ;;  %7029 = vmatmul.msk.f32.gmra.mxu3 %vm1791_vm5, %v8139_v3  ;;  %v9059_v26 = vpop.f32.mrf.mxu2 }
 0x260   : > { %12326 = vst [vmem:[#allocation40_spill] sm:$0xff] %v9059_v26 }
 0x264   : > { %v9061_v3 = vpop.f32.mrf.mxu3 }
 0x265   : > { %12327 = vst [vmem:[#allocation41_spill] sm:$0xff] %v9061_v3 }
 0x267   : > { %7006 = vmatmul.msk.f32.gmra.mxu2 %vm1791_vm5, %v9054_v35  ;;  %7030 = vmatmul.msk.f32.gmra.mxu3 %vm1791_vm5, %v8140_v17  ;;  %v9068_v5 = vpop.f32.mrf.mxu2  ;;  %v8142_v17 = vld [vmem:[#allocation2 + $0xa1] ss:$2 sm:$0xff] }
 0x268   : > { %12328 = vst [vmem:[#allocation42_spill] sm:$0xff] %v9068_v5 }
 0x26c   : > { %v9070_v39 = vpop.f32.mrf.mxu3 }
 0x26d   : > { %12329 = vst [vmem:[#allocation43_spill] sm:$0xff] %v9070_v39 }
 0x26f   : > { %7007 = vmatmul.msk.f32.gmra.mxu2 %vm1791_vm5, %v9063_v53  ;;  %7031 = vmatmul.msk.f32.gmra.mxu3 %vm1791_vm5, %v8141_v54  ;;  %v9077_v3 = vpop.f32.mrf.mxu2  ;;  %v8143_v54 = vld [vmem:[#allocation2 + $0xb1] ss:$2 sm:$0xff] }
 0x270   : > { %12330 = vst [vmem:[#allocation44_spill] sm:$0xff] %v9077_v3 }
 0x274   : > { %v9079_v26 = vpop.f32.mrf.mxu3 }
 0x275   : > { %12331 = vst [vmem:[#allocation45_spill] sm:$0xff] %v9079_v26 }
 0x277   : > { %7008 = vmatmul.msk.f32.gmra.mxu2 %vm1791_vm5, %v9072_v21  ;;  %7032 = vmatmul.msk.f32.gmra.mxu3 %vm1791_vm5, %v8142_v17  ;;  %v9086_v39 = vpop.f32.mrf.mxu2  ;;  %v8144_v17 = vld [vmem:[#allocation2 + $0xc1] ss:$2 sm:$0xff] }
 0x278   : > { %12332 = vst [vmem:[#allocation46_spill] sm:$0xff] %v9086_v39 }
 0x27c   : > { %v9088_v5 = vpop.f32.mrf.mxu3 }
 0x27d   : > { %12333 = vst [vmem:[#allocation47_spill] sm:$0xff] %v9088_v5  ;;  %v7045_v5 = vld [vmem:[%s12273_s3 + $0x40] sm:$0xff] }
 0x27e   : > { %2568 = vmatpush.msra.mxu2 %v7045_v5  ;;  %2792 = vmatpush.msra.mxu3 %v7045_v5 }
 0x27f   : > { %7009 = vmatmul.msk.f32.gmra.mxu2 %vm1791_vm5, %v9081_v18  ;;  %7033 = vmatmul.msk.f32.gmra.mxu3 %vm1791_vm5, %v8143_v54  ;;  %v9095_v26 = vpop.f32.mrf.mxu2  ;;  %v8145_v54 = vld [vmem:[#allocation2 + $0xd1] ss:$2 sm:$0xff] }
 0x280   : > { %12334 = vst [vmem:[#allocation48_spill] sm:$0xff] %v9095_v26  ;;  %v9111_v26 = vld [vmem:[#allocation2 + $0xe2] ss:$2 sm:$0xff] }
 0x284   : > { %v9097_v3 = vpop.f32.mrf.mxu3 }
 0x285   : > { %12335 = vst [vmem:[#allocation49_spill] sm:$0xff] %v9097_v3  ;;  %v8146_v3 = vld [vmem:[#allocation2 + $0xe1] ss:$2 sm:$0xff] }
 0x287   : > { %7010 = vmatmul.msk.f32.gmra.mxu2 %vm1791_vm5, %v9090_v57  ;;  %7034 = vmatmul.msk.f32.gmra.mxu3 %vm1791_vm5, %v8144_v17  ;;  %v9107_v39 = vpop.f32.mrf.mxu2 }
 0x288   : > { %12336 = vst [vmem:[#allocation50_spill] sm:$0xff] %v9107_v39 }
 0x28c   : > { %v9109_v17 = vpop.f32.mrf.mxu3 }
 0x28d   : > { %12337 = vst [vmem:[#allocation51_spill] sm:$0xff] %v9109_v17 }
 0x28f   : > { %7011 = vmatmul.msk.f32.gmra.mxu2 %vm1791_vm5, %v9099_v2  ;;  %7035 = vmatmul.msk.f32.gmra.mxu3 %vm1791_vm5, %v8145_v54 }
 0x292   : > { %v9116_v44 = vpop.f32.mrf.mxu2 }
 0x293   : > { %12338 = vst [vmem:[#allocation52_spill] sm:$0xff] %v9116_v44 }
 0x294   : > { %v9118_v54 = vpop.f32.mrf.mxu3 }
 0x295   : > { %12339 = vst [vmem:[#allocation53_spill] sm:$0xff] %v9118_v54 }
 0x297   : > { %7012 = vmatmul.msk.f32.gmra.mxu2 %vm1791_vm5, %v9111_v26  ;;  %7036 = vmatmul.msk.f32.gmra.mxu3 %vm1791_vm5, %v8146_v3 }
 0x29f   : > { %7013 = vmatmul.msk.f32.gmra.mxu2 %vm1791_vm5, %v9120_v43  ;;  %7037 = vmatmul.msk.f32.gmra.mxu3 %vm1791_vm5, %v8742_v24 }
 0x2a2   : > { %v2097_v5 = vpop.f32.mrf.mxu2  ;;  %v2255_v17 = vpop.f32.mrf.mxu3 }
 0x2a3   : > { %v9126_v39 = vadd.f32 %v2255_v17, %v2097_v5 }
 0x2a7   : > { %7014 = vmatmul.msk.f32.gmra.mxu2 %vm1791_vm5, %v9128_v30  ;;  %7038 = vmatmul.msk.f32.gmra.mxu3 %vm1791_vm5, %v8759_v61 }
 0x2aa   : > { %v2390_v3 = vpop.f32.mrf.mxu2  ;;  %v2476_v54 = vpop.f32.mrf.mxu3 }
 0x2ab   : > { %v9134_v44 = vadd.f32 %v2476_v54, %v2390_v3 }
 0x2af   : > { %7015 = vmatmul.msk.f32.gmra.mxu2 %vm1791_vm5, %v9136_v13  ;;  %7039 = vmatmul.msk.f32.gmra.mxu3 %vm1791_vm5, %v8780_v34  ;;  %v7152_v34 = vld [vmem:[%s12273_s3 + $0x98] sm:$0x1] }
 0x2b0   : > { %7153 = vmatpush.msk.msrb.mxu2 %vm2010_vm2, %v7152_v34  ;;  %7177 = vmatpush.msk.msrb.mxu3 %vm2010_vm2, %v7152_v34 }
 0x2b2   : > { %v2393_v24 = vpop.f32.mrf.mxu2  ;;  %v2479_v17 = vpop.f32.mrf.mxu3 }
 0x2b3   : > { %v9142_v5 = vadd.f32 %v2479_v17, %v2393_v24 }
 0x2b7   : > { %7016 = vmatmul.msk.f32.gmra.mxu2 %vm1791_vm5, %v9144_v11  ;;  %7040 = vmatmul.msk.f32.gmra.mxu3 %vm1791_vm5, %v8806_v9 }
 0x2ba   : > { %v2396_v61 = vpop.f32.mrf.mxu2  ;;  %v2482_v54 = vpop.f32.mrf.mxu3 }
 0x2bb   : > { %v9150_v3 = vadd.f32 %v2482_v54, %v2396_v61  ;;  %v9165_v61 = vld [vmem:[#allocation2 + $0x142] ss:$2 sm:$0xff] }
 0x2bf   : > { %7017 = vmatmul.msk.f32.gmra.mxu2 %vm1791_vm5, %v9152_v23  ;;  %7041 = vmatmul.msk.f32.gmra.mxu3 %vm1791_vm5, %v8827_v50 }
 0x2c2   : > { %v2399_v9 = vpop.f32.mrf.mxu2  ;;  %v2485_v24 = vpop.f32.mrf.mxu3 }
 0x2c3   : > { %v9163_v17 = vadd.f32 %v2485_v24, %v2399_v9 }
 0x2c7   : > { %7018 = vmatmul.msk.f32.gmra.mxu2 %vm1791_vm5, %v9165_v61  ;;  %7042 = vmatmul.msk.f32.gmra.mxu3 %vm1791_vm5, %v8861_v37 }
 0x2ca   : > { %v2402_v50 = vpop.f32.mrf.mxu2  ;;  %v2488_v54 = vpop.f32.mrf.mxu3 }
 0x2cb   : > { %v9171_v46 = vadd.f32 %v2488_v54, %v2402_v50 }
 0x2cf   : > { %7019 = vmatmul.msk.f32.gmra.mxu2 %vm1791_vm5, %v9173_v45  ;;  %7043 = vmatmul.msk.f32.gmra.mxu3 %vm1791_vm5, %v8901_v38  ;;  %v8147_v38 = vld [vmem:[#allocation2 + $0x3] ss:$2 sm:$0xff] }
 0x2d2   : > { %v2405_v34 = vpop.f32.mrf.mxu2  ;;  %v2491_v9 = vpop.f32.mrf.mxu3 }
 0x2d3   : > { %v9179_v24 = vadd.f32 %v2491_v9, %v2405_v34 }
 0x2d7   : > { %7020 = vmatmul.msk.f32.gmra.mxu2 %vm1791_vm5, %v9181_v14  ;;  %7044 = vmatmul.msk.f32.gmra.mxu3 %vm1791_vm5, %v8932_v16 }
 0x2da   : > { %v2408_v37 = vpop.f32.mrf.mxu2  ;;  %v2494_v50 = vpop.f32.mrf.mxu3 }
 0x2db   : > { %v9187_v54 = vadd.f32 %v2494_v50, %v2408_v37  ;;  %v8149_v50 = vld [vmem:[#allocation2 + $0x23] ss:$2 sm:$0xff] }
 0x2df   : > { %7050 = vmatmul.msk.f32.vlgmr.msra.gmra.mxu2 %vm1791_vm5, %v8949_v25  ;;  %7074 = vmatmul.msk.f32.vlgmr.msra.gmra.mxu3 %vm1791_vm5, %v8147_v38  ;;  %v7151_v25 = vld [vmem:[%s12273_s3 + $0x90] sm:$0xff] }
 0x2e0   : > { %3248 = vmatpush.msrb.mxu2 %v7151_v25  ;;  %3472 = vmatpush.msrb.mxu3 %v7151_v25 }
 0x2e2   : > { %v2411_v34 = vpop.f32.mrf.mxu2  ;;  %v2497_v9 = vpop.f32.mrf.mxu3 }
 0x2e3   : > { %v9192_v20 = vadd.f32 %v2497_v9, %v2411_v34 }
 0x2e7   : > { %7051 = vmatmul.msk.f32.gmra.mxu2 %vm1791_vm5, %v8966_v40  ;;  %7075 = vmatmul.msk.f32.gmra.mxu3 %vm1791_vm5, %v8148_v19  ;;  %v8150_v19 = vld [vmem:[#allocation2 + $0x33] ss:$2 sm:$0xff] }
 0x2ea   : > { %v2414_v16 = vpop.f32.mrf.mxu2  ;;  %v2500_v56 = vpop.f32.mrf.mxu3 }
 0x2eb   : > { %v9197_v37 = vadd.f32 %v2500_v56, %v2414_v16 }
 0x2ef   : > { %7052 = vmatmul.msk.f32.gmra.mxu2 %vm1791_vm5, %v8984_v63  ;;  %7076 = vmatmul.msk.f32.gmra.mxu3 %vm1791_vm5, %v8149_v50  ;;  %v8151_v63 = vld [vmem:[#allocation2 + $0x43] ss:$2 sm:$0xff] }
 0x2f2   : > { %v2417_v40 = vpop.f32.mrf.mxu2  ;;  %v2503_v38 = vpop.f32.mrf.mxu3 }
 0x2f3   : > { %v9205_v34 = vadd.f32 %v2503_v38, %v2417_v40 }
 0x2f7   : > { %7053 = vmatmul.msk.f32.gmra.mxu2 %vm1791_vm5, %v8998_v7  ;;  %7077 = vmatmul.msk.f32.gmra.mxu3 %vm1791_vm5, %v8150_v19 }
 0x2fa   : > { %v2420_v56 = vpop.f32.mrf.mxu2  ;;  %v2506_v9 = vpop.f32.mrf.mxu3 }
 0x2fb   : > { %v9210_v16 = vadd.f32 %v2506_v9, %v2420_v56 }
 0x2ff   : > { %7054 = vmatmul.msk.f32.gmra.mxu2 %vm1791_vm5, %v9012_v0  ;;  %7078 = vmatmul.msk.f32.gmra.mxu3 %vm1791_vm5, %v8151_v63 }
 0x302   : > { %v2423_v25 = vpop.f32.mrf.mxu2  ;;  %v2509_v50 = vpop.f32.mrf.mxu3 }
 0x303   : > { %v9215_v40 = vadd.f32 %v2509_v50, %v2423_v25 }
 0x307   : > { %7055 = vmatmul.msk.f32.gmra.mxu2 %vm1791_vm5, %v9024_v41  ;;  %7079 = vmatmul.msk.f32.gmra.mxu3 %vm1791_vm5, %v8757_v58 }
 0x30a   : > { %v2426_v7 = vpop.f32.mrf.mxu2  ;;  %v2512_v38 = vpop.f32.mrf.mxu3 }
 0x30b   : > { %v9221_v19 = vadd.f32 %v2512_v38, %v2426_v7 }
 0x30f   : > { %7056 = vmatmul.msk.f32.gmra.mxu2 %vm1791_vm5, %v9033_v48  ;;  %7080 = vmatmul.msk.f32.gmra.mxu3 %vm1791_vm5, %v8770_v12  ;;  %v7150_v48 = vld [vmem:[%s12273_s3 + $0x88] sm:$0xff] }
 0x310   : > { %3249 = vmatpush.msrb.mxu2 %v7150_v48  ;;  %3473 = vmatpush.msrb.mxu3 %v7150_v48 }
 0x312   : > { %v2429_v0 = vpop.f32.mrf.mxu2  ;;  %v2515_v56 = vpop.f32.mrf.mxu3 }
 0x313   : > { %v9227_v9 = vadd.f32 %v2515_v56, %v2429_v0 }
 0x317   : > { %7057 = vmatmul.msk.f32.gmra.mxu2 %vm1791_vm5, %v9042_v42  ;;  %7081 = vmatmul.msk.f32.gmra.mxu3 %vm1791_vm5, %v8778_v31 }
 0x31a   : > { %v2432_v58 = vpop.f32.mrf.mxu2  ;;  %v2518_v41 = vpop.f32.mrf.mxu3 }
 0x31b   : > { %v9233_v63 = vadd.f32 %v2518_v41, %v2432_v58 }
 0x31f   : > { %7058 = vmatmul.msk.f32.gmra.mxu2 %vm1791_vm5, %v9054_v35  ;;  %7082 = vmatmul.msk.f32.gmra.mxu3 %vm1791_vm5, %v8791_v51 }
 0x322   : > { %v2435_v12 = vpop.f32.mrf.mxu2  ;;  %v2521_v42 = vpop.f32.mrf.mxu3 }
 0x323   : > { %v9242_v25 = vadd.f32 %v2521_v42, %v2435_v12 }
 0x327   : > { %7059 = vmatmul.msk.f32.gmra.mxu2 %vm1791_vm5, %v9063_v53  ;;  %7083 = vmatmul.msk.f32.gmra.mxu3 %vm1791_vm5, %v8804_v6 }
 0x32a   : > { %v2438_v31 = vpop.f32.mrf.mxu2  ;;  %v2524_v50 = vpop.f32.mrf.mxu3 }
 0x32b   : > { %v9248_v7 = vadd.f32 %v2524_v50, %v2438_v31  ;;  %v3345_v31 = vld [vmem:[#allocation2 + $0x5] ss:$2 sm:$0xff] }
 0x32f   : > { %7060 = vmatmul.msk.f32.gmra.mxu2 %vm1791_vm5, %v9072_v21  ;;  %7084 = vmatmul.msk.f32.gmra.mxu3 %vm1791_vm5, %v8817_v27 }
 0x332   : > { %v2441_v51 = vpop.f32.mrf.mxu2  ;;  %v2527_v35 = vpop.f32.mrf.mxu3 }
 0x333   : > { %v9254_v38 = vadd.f32 %v2527_v35, %v2441_v51  ;;  %v3347_v51 = vld [vmem:[#allocation2 + $0x15] ss:$2 sm:$0xff] }
 0x337   : > { %7061 = vmatmul.msk.f32.gmra.mxu2 %vm1791_vm5, %v9081_v18  ;;  %7085 = vmatmul.msk.f32.gmra.mxu3 %vm1791_vm5, %v8825_v47  ;;  %v7149_v47 = vld [vmem:[%s12273_s3 + $0x80] sm:$0xff] }
 0x338   : > { %3250 = vmatpush.msrb.mxu2 %v7149_v47  ;;  %3474 = vmatpush.msrb.mxu3 %v7149_v47 }
 0x33a   : > { %v2444_v6 = vpop.f32.mrf.mxu2  ;;  %v2530_v53 = vpop.f32.mrf.mxu3 }
 0x33b   : > { %v9260_v0 = vadd.f32 %v2530_v53, %v2444_v6  ;;  %v3349_v53 = vld [vmem:[#allocation2 + $0x25] ss:$2 sm:$0xff] }
 0x33f   : > { %7062 = vmatmul.msk.f32.gmra.mxu2 %vm1791_vm5, %v9090_v57  ;;  %7086 = vmatmul.msk.f32.gmra.mxu3 %vm1791_vm5, %v8842_v8 }
 0x342   : > { %v2447_v27 = vpop.f32.mrf.mxu2  ;;  %v2533_v21 = vpop.f32.mrf.mxu3 }
 0x343   : > { %v9266_v56 = vadd.f32 %v2533_v21, %v2447_v27  ;;  %v8154_v27 = vld [vmem:[#allocation2 + $0x24] ss:$2 sm:$0xff] }
 0x347   : > { %7063 = vmatmul.msk.f32.gmra.mxu2 %vm1791_vm5, %v9099_v2  ;;  %7087 = vmatmul.msk.f32.gmra.mxu3 %vm1791_vm5, %v8857_v32 }
 0x34a   : > { %v2450_v57 = vpop.f32.mrf.mxu2  ;;  %v2536_v18 = vpop.f32.mrf.mxu3 }
 0x34b   : > { %v9275_v58 = vadd.f32 %v2536_v18, %v2450_v57  ;;  %v3351_v57 = vld [vmem:[#allocation2 + $0x35] ss:$2 sm:$0xff]  ;;  %v8155_v18 = vld [vmem:[#allocation2 + $0x34] ss:$2 sm:$0xff] }
 0x34f   : > { %7064 = vmatmul.msk.f32.gmra.mxu2 %vm1791_vm5, %v9111_v26  ;;  %7088 = vmatmul.msk.f32.gmra.mxu3 %vm1791_vm5, %v8877_v59 }
 0x352   : > { %v2453_v8 = vpop.f32.mrf.mxu2  ;;  %v2539_v2 = vpop.f32.mrf.mxu3 }
 0x353   : > { %v9281_v41 = vadd.f32 %v2539_v2, %v2453_v8 }
 0x357   : > { %7065 = vmatmul.msk.f32.gmra.mxu2 %vm1791_vm5, %v9120_v43  ;;  %7089 = vmatmul.msk.f32.gmra.mxu3 %vm1791_vm5, %v8897_v28 }
 0x35a   : > { %v2456_v32 = vpop.f32.mrf.mxu2  ;;  %v2542_v48 = vpop.f32.mrf.mxu3 }
 0x35b   : > { %v9287_v12 = vadd.f32 %v2542_v48, %v2456_v32  ;;  %v3353_v32 = vld [vmem:[#allocation2 + $0x45] ss:$2 sm:$0xff]  ;;  %v8156_v48 = vld [vmem:[#allocation2 + $0x44] ss:$2 sm:$0xff] }
 0x35f   : > { %7066 = vmatmul.msk.f32.gmra.mxu2 %vm1791_vm5, %v9128_v30  ;;  %7090 = vmatmul.msk.f32.gmra.mxu3 %vm1791_vm5, %v8915_v55 }
 0x362   : > { %v9293_v59 = vpop.f32.mrf.mxu2  ;;  %v2794_v26 = vpop.f32.mrf.mxu3 }
 0x363   : > { %v9296_v42 = vadd.f32 %v2794_v26, %v9134_v44  ;;  %v9390_v26 = vld [vmem:[%s12275_s5 + $0x30] sm:$0x3] }
 0x364   : > { %7267 = vmatpush.msk.msra.mxu1 %vm719_vm0, %v9390_v26 }
 0x367   : > { %7067 = vmatmul.msk.f32.gmra.mxu2 %vm1791_vm5, %v9136_v13  ;;  %7091 = vmatmul.msk.f32.gmra.mxu3 %vm1791_vm5, %v8928_v10 }
 0x36a   : > { %v9302_v28 = vpop.f32.mrf.mxu2  ;;  %v2797_v43 = vpop.f32.mrf.mxu3 }
 0x36b   : > { %v9305_v30 = vadd.f32 %v2797_v43, %v9142_v5 }
 0x36f   : > { %7068 = vmatmul.msk.f32.gmra.mxu2 %vm1791_vm5, %v9144_v11  ;;  %7092 = vmatmul.msk.f32.gmra.mxu3 %vm1791_vm5, %v8945_v22 }
 0x372   : > { %v9311_v44 = vpop.f32.mrf.mxu2  ;;  %v2800_v55 = vpop.f32.mrf.mxu3 }
 0x373   : > { %v9314_v13 = vadd.f32 %v2800_v55, %v9150_v3 }
 0x377   : > { %7069 = vmatmul.msk.f32.gmra.mxu2 %vm1791_vm5, %v9152_v23  ;;  %7093 = vmatmul.msk.f32.gmra.mxu3 %vm1791_vm5, %v8962_v1 }
 0x37a   : > { %v9320_v10 = vpop.f32.mrf.mxu2  ;;  %v2803_v5 = vpop.f32.mrf.mxu3 }
 0x37b   : > { %v9323_v11 = vadd.f32 %v2803_v5, %v9163_v17  ;;  %v3355_v5 = vld [vmem:[#allocation2 + $0x55] ss:$2 sm:$0xff] }
 0x37f   : > { %7070 = vmatmul.msk.f32.gmra.mxu2 %vm1791_vm5, %v9165_v61  ;;  %7094 = vmatmul.msk.f32.gmra.mxu3 %vm1791_vm5, %v8982_v52 }
 0x382   : > { %v9329_v22 = vpop.f32.mrf.mxu2  ;;  %v2806_v3 = vpop.f32.mrf.mxu3 }
 0x383   : > { %v9332_v23 = vadd.f32 %v2806_v3, %v9171_v46  ;;  %v8157_v3 = vld [vmem:[#allocation2 + $0x54] ss:$2 sm:$0xff] }
 0x387   : > { %7071 = vmatmul.msk.f32.gmra.mxu2 %vm1791_vm5, %v9173_v45  ;;  %7095 = vmatmul.msk.f32.gmra.mxu3 %vm1791_vm5, %v8996_v4  ;;  %v8152_v4 = vld [vmem:[#allocation2 + $0x4] ss:$2 sm:$0xff] }
 0x38a   : > { %v9338_v1 = vpop.f32.mrf.mxu2  ;;  %v2809_v17 = vpop.f32.mrf.mxu3 }
 0x38b   : > { %v9341_v61 = vadd.f32 %v2809_v17, %v9179_v24 }
 0x38f   : > { %7072 = vmatmul.msk.f32.gmra.mxu2 %vm1791_vm5, %v9181_v14  ;;  %7096 = vmatmul.msk.f32.gmra.mxu3 %vm1791_vm5, %v9010_v49  ;;  %v8153_v49 = vld [vmem:[#allocation2 + $0x14] ss:$2 sm:$0xff] }
 0x392   : > { %v9347_v46 = vpop.f32.mrf.mxu2  ;;  %v2812_v52 = vpop.f32.mrf.mxu3 }
 0x393   : > { %v9350_v45 = vadd.f32 %v2812_v52, %v9187_v54 }
 0x397   : > { %7154 = vmatmul.msk.f32.vlgmr.msrb.gmra.mxu2 %vm1791_vm5, %v8152_v4  ;;  %7178 = vmatmul.msk.f32.vlgmr.msrb.gmra.mxu3 %vm1791_vm5, %v3345_v31  ;;  %v3357_v4 = vld [vmem:[#allocation2 + $0x65] ss:$2 sm:$0xff] }
 0x39a   : > { %v9354_v24 = vpop.f32.mrf.mxu2  ;;  %v2815_v50 = vpop.f32.mrf.mxu3 }
 0x39b   : > { %v9357_v14 = vadd.f32 %v2815_v50, %v9192_v20  ;;  %v8158_v50 = vld [vmem:[#allocation2 + $0x64] ss:$2 sm:$0xff] }
 0x39f   : > { %7155 = vmatmul.msk.f32.gmra.mxu2 %vm1791_vm5, %v8153_v49  ;;  %7179 = vmatmul.msk.f32.gmra.mxu3 %vm1791_vm5, %v3347_v51 }
 0x3a2   : > { %v9361_v54 = vpop.f32.mrf.mxu2  ;;  %v2818_v35 = vpop.f32.mrf.mxu3 }
 0x3a3   : > { %v9364_v6 = vadd.f32 %v2818_v35, %v9197_v37  ;;  %v3359_v35 = vld [vmem:[#allocation2 + $0x75] ss:$2 sm:$0xff] }
 0x3a7   : > { %7156 = vmatmul.msk.f32.gmra.mxu2 %vm1791_vm5, %v8154_v27  ;;  %7180 = vmatmul.msk.f32.gmra.mxu3 %vm1791_vm5, %v3349_v53  ;;  %v8159_v53 = vld [vmem:[#allocation2 + $0x74] ss:$2 sm:$0xff] }
 0x3aa   : > { %v9368_v20 = vpop.f32.mrf.mxu2  ;;  %v2821_v21 = vpop.f32.mrf.mxu3 }
 0x3ab   : > { %v9371_v47 = vadd.f32 %v2821_v21, %v9205_v34  ;;  %v9385_v34 = vld [vmem:[%s12275_s5 + $0x68] sm:$0x3] }
 0x3ac   : > { %7254 = vmatpush.msk.msra.mxu0 %vm719_vm0, %v9385_v34 }
 0x3af   : > { %7157 = vmatmul.msk.f32.gmra.mxu2 %vm1791_vm5, %v8155_v18  ;;  %7181 = vmatmul.msk.f32.gmra.mxu3 %vm1791_vm5, %v3351_v57  ;;  %v9425_v57 = vld [vmem:[%s12275_s5 + $0x60] sm:$0xff] }
 0x3b0   : > { %4052 = vmatpush.msra.mxu0 %v9425_v57  ;;  %v3361_v18 = vld [vmem:[#allocation2 + $0x85] ss:$2 sm:$0xff] }
 0x3b2   : > { %v9375_v37 = vpop.f32.mrf.mxu2  ;;  %v2824_v8 = vpop.f32.mrf.mxu3 }
 0x3b3   : > { %v9378_v2 = vadd.f32 %v2824_v8, %v9210_v16  ;;  %v8160_v8 = vld [vmem:[#allocation2 + $0x84] ss:$2 sm:$0xff] }
 0x3b7   : > { %7158 = vmatmul.msk.f32.gmra.mxu2 %vm1791_vm5, %v8156_v48  ;;  %7182 = vmatmul.msk.f32.gmra.mxu3 %vm1791_vm5, %v3353_v32 }
 0x3ba   : > { %v9396_v16 = vpop.f32.mrf.mxu2  ;;  %v2827_v43 = vpop.f32.mrf.mxu3 }
 0x3bb   : > { %v9399_v55 = vadd.f32 %v2827_v43, %v9215_v40  ;;  %v3363_v43 = vld [vmem:[#allocation2 + $0x95] ss:$2 sm:$0xff] }
 0x3bf   : > { %7159 = vmatmul.msk.f32.gmra.mxu2 %vm1791_vm5, %v8157_v3  ;;  %7183 = vmatmul.msk.f32.gmra.mxu3 %vm1791_vm5, %v3355_v5  ;;  %v8161_v5 = vld [vmem:[#allocation2 + $0x94] ss:$2 sm:$0xff] }
 0x3c2   : > { %v9403_v17 = vpop.f32.mrf.mxu2  ;;  %v2830_v52 = vpop.f32.mrf.mxu3 }
 0x3c3   : > { %v9406_v31 = vadd.f32 %v2830_v52, %v9221_v19 }
 0x3c7   : > { %7160 = vmatmul.msk.f32.gmra.mxu2 %vm1791_vm5, %v8158_v50  ;;  %7184 = vmatmul.msk.f32.gmra.mxu3 %vm1791_vm5, %v3357_v4  ;;  %v3365_v50 = vld [vmem:[#allocation2 + $0xa5] ss:$2 sm:$0xff] }
 0x3ca   : > { %v9410_v40 = vpop.f32.mrf.mxu2  ;;  %v2833_v51 = vpop.f32.mrf.mxu3 }
 0x3cb   : > { %12340 = vst [vmem:[#allocation54_spill] sm:$0xff] %v9410_v40  ;;  %v9413_v49 = vadd.f32 %v2833_v51, %v9227_v9  ;;  %v9430_v9 = vld [vmem:[%s12275_s5 + $0x28] sm:$0xff] }
 0x3cc   : > { %4144 = vmatpush.msra.mxu1 %v9430_v9  ;;  %v8162_v51 = vld [vmem:[#allocation2 + $0xa4] ss:$2 sm:$0xff] }
 0x3cd   : > { %12341 = vst [vmem:[#allocation55_spill] sm:$0xff] %v9413_v49 }
 0x3cf   : > { %7161 = vmatmul.msk.f32.gmra.mxu2 %vm1791_vm5, %v8159_v53  ;;  %7185 = vmatmul.msk.f32.gmra.mxu3 %vm1791_vm5, %v3359_v35  ;;  %v2911_v53 = vpop.f32.mrf.mxu0 }
 0x3d2   : > { %v9417_v19 = vpop.f32.mrf.mxu2  ;;  %v2836_v27 = vpop.f32.mrf.mxu3 }
 0x3d3   : > { %12342 = vst [vmem:[#allocation56_spill] sm:$0xff] %v9417_v19  ;;  %v9420_v21 = vadd.f32 %v2836_v27, %v9233_v63  ;;  %v3135_v27 = vpop.f32.mrf.mxu1 }
 0x3d5   : > { %12343 = vst [vmem:[#allocation57_spill] sm:$0xff] %v9420_v21  ;;  %v12365_v21 = vld [vmem:[#allocation11_spill] sm:$0xff] }
 0x3d7   : > { %7162 = vmatmul.msk.f32.gmra.mxu2 %vm1791_vm5, %v8160_v8  ;;  %7186 = vmatmul.msk.f32.gmra.mxu3 %vm1791_vm5, %v3361_v18  ;;  %v9458_v8 = vld [vmem:[%s12275_s5 + $0x58] sm:$0xff] }
 0x3d8   : > { %4053 = vmatpush.msra.mxu0 %v9458_v8 }
 0x3da   : > { %v9436_v63 = vpop.f32.mrf.mxu2  ;;  %v2839_v32 = vpop.f32.mrf.mxu3 }
 0x3db   : > { %12344 = vst [vmem:[#allocation58_spill] sm:$0xff] %v9436_v63  ;;  %v9439_v48 = vadd.f32 %v2839_v32, %v9242_v25  ;;  %v3367_v32 = vld [vmem:[#allocation2 + $0xb5] ss:$2 sm:$0xff] }
 0x3dc   : > { %v12364_v63 = vld [vmem:[#allocation10_spill] sm:$0xff] }
 0x3dd   : > { %12345 = vst [vmem:[#allocation59_spill] sm:$0xff] %v9439_v48  ;;  %v2196_v19 = vadd.f32 %v12365_v21, %v12364_v63  ;;  %v12366_v63 = vld [vmem:[#allocation22_spill] sm:$0xff] }
 0x3df   : > { %7163 = vmatmul.msk.f32.gmra.mxu2 %vm1791_vm5, %v8161_v5  ;;  %7187 = vmatmul.msk.f32.gmra.mxu3 %vm1791_vm5, %v3363_v43  ;;  %v8163_v43 = vld [vmem:[#allocation2 + $0xb4] ss:$2 sm:$0xff] }
 0x3e2   : > { %v9443_v3 = vpop.f32.mrf.mxu2  ;;  %v2842_v52 = vpop.f32.mrf.mxu3 }
 0x3e3   : > { %12346 = vst [vmem:[#allocation60_spill] sm:$0xff] %v9443_v3  ;;  %v9446_v4 = vadd.f32 %v2842_v52, %v9248_v7  ;;  %v9463_v7 = vld [vmem:[%s12275_s5 + $0x20] sm:$0xff] }
 0x3e4   : > { %4145 = vmatpush.msra.mxu1 %v9463_v7 }
 0x3e5   : > { %12347 = vst [vmem:[#allocation61_spill] sm:$0xff] %v9446_v4 }
 0x3e7   : > { %7164 = vmatmul.msk.f32.gmra.mxu2 %vm1791_vm5, %v8162_v51  ;;  %7188 = vmatmul.msk.f32.gmra.mxu3 %vm1791_vm5, %v3365_v50  ;;  %v9474_v50 = vpop.f32.mrf.mxu0  ;;  %v9476_v51 = vpop.f32.mrf.mxu1 }
 0x3ea   : > { %v9450_v25 = vpop.f32.mrf.mxu2  ;;  %v2845_v35 = vpop.f32.mrf.mxu3 }
 0x3eb   : > { %12348 = vst [vmem:[#allocation62_spill] sm:$0xff] %v9450_v25  ;;  %v9453_v18 = vadd.f32 %v2845_v35, %v9254_v38  ;;  %v3369_v35 = vld [vmem:[#allocation2 + $0xc5] ss:$2 sm:$0xff] }
 0x3ed   : > { %12349 = vst [vmem:[#allocation63_spill] sm:$0xff] %v9453_v18 }
 0x3ef   : > { %7165 = vmatmul.msk.f32.gmra.mxu2 %vm1791_vm5, %v8163_v43  ;;  %7189 = vmatmul.msk.f32.gmra.mxu3 %vm1791_vm5, %v3367_v32  ;;  %v9486_v25 = vpop.f32.mrf.mxu0 }
 0x3f2   : > { %v9469_v38 = vpop.f32.mrf.mxu2  ;;  %v2848_v5 = vpop.f32.mrf.mxu3 }
 0x3f3   : > { %12350 = vst [vmem:[#allocation64_spill] sm:$0xff] %v9469_v38  ;;  %v9472_v52 = vadd.f32 %v2848_v5, %v9260_v0  ;;  %v3371_v38 = vld [vmem:[#allocation2 + $0xd5] ss:$2 sm:$0xff]  ;;  %v9488_v0 = vpop.f32.mrf.mxu1 }
 0x3f5   : > { %12351 = vst [vmem:[#allocation65_spill] sm:$0xff] %v9472_v52 }
 0x3f7   : > { %7166 = vmatmul.msk.f32.gmra.mxu2 %vm1791_vm5, %v8844_v36  ;;  %7190 = vmatmul.msk.f32.gmra.mxu3 %vm1791_vm5, %v3369_v35 }
 0x3fa   : > { %v9481_v18 = vpop.f32.mrf.mxu2  ;;  %v2851_v43 = vpop.f32.mrf.mxu3 }
 0x3fb   : > { %12352 = vst [vmem:[#allocation66_spill] sm:$0xff] %v9481_v18  ;;  %v9484_v32 = vadd.f32 %v2851_v43, %v9266_v56  ;;  %v3373_v18 = vld [vmem:[#allocation2 + $0xe5] ss:$2 sm:$0xff]  ;;  %v9501_v56 = vpop.f32.mrf.mxu0  ;;  %v9503_v43 = vpop.f32.mrf.mxu1 }
 0x3fd   : > { %12353 = vst [vmem:[#allocation67_spill] sm:$0xff] %v9484_v32 }
 0x3ff   : > { %7167 = vmatmul.msk.f32.gmra.mxu2 %vm1791_vm5, %v8859_v33  ;;  %7191 = vmatmul.msk.f32.gmra.mxu3 %vm1791_vm5, %v3371_v38 }
 0x402   : > { %v9493_v5 = vpop.f32.mrf.mxu2  ;;  %v2854_v36 = vpop.f32.mrf.mxu3 }
 0x403   : > { %12354 = vst [vmem:[#allocation68_spill] sm:$0xff] %v9493_v5  ;;  %v9496_v35 = vadd.f32 %v2854_v36, %v9275_v58  ;;  %v3375_v5 = vld [vmem:[#allocation2 + $0xf5] ss:$2 sm:$0xff]  ;;  %v9515_v36 = vpop.f32.mrf.mxu0 }
 0x405   : > { %12355 = vst [vmem:[#allocation69_spill] sm:$0xff] %v9496_v35  ;;  %v9517_v35 = vpop.f32.mrf.mxu1 }
 0x407   : > { %7168 = vmatmul.msk.f32.gmra.mxu2 %vm1791_vm5, %v8879_v15  ;;  %7192 = vmatmul.msk.f32.gmra.mxu3 %vm1791_vm5, %v3373_v18  ;;  %v2190_v18 = vadd.f32 %v8838_v62, %v8836_v60  ;;  %v9532_v60 = vld [vmem:[%s12275_s5 + $0x50] sm:$0xff]  ;;  %v9537_v62 = vld [vmem:[%s12275_s5 + $0x18] sm:$0xff] }
 0x408   : > { %4054 = vmatpush.msra.mxu0 %v9532_v60  ;;  %4146 = vmatpush.msra.mxu1 %v9537_v62 }
 0x40a   : > { %v9505_v32 = vpop.f32.mrf.mxu2  ;;  %v2857_v33 = vpop.f32.mrf.mxu3 }
 0x40b   : > { %12356 = vst [vmem:[#allocation70_spill] sm:$0xff] %v9505_v32  ;;  %v9508_v38 = vadd.f32 %v2857_v33, %v9281_v41  ;;  %v2639_v33 = vadd.f32 %v9293_v59, %v2190_v18  ;;  %v3204_v59 = vadd.f32 %v3135_v27, %v9296_v42  ;;  %v9557_v42 = vld [vmem:[%s12275_s5 + $0x10] sm:$0xff]  ;;  %v9559_v27 = vpop.f32.mrf.mxu0 }
 0x40c   : > { %4147 = vmatpush.msra.mxu1 %v9557_v42 }
 0x40d   : > { %12357 = vst [vmem:[#allocation71_spill] sm:$0xff] %v9508_v38  ;;  %v12360_v38 = vld [vmem:[#allocation16_spill] sm:$0xff] }
 0x40f   : > { %7169 = vmatmul.msk.f32.gmra.mxu2 %vm1791_vm5, %v8899_v29  ;;  %7193 = vmatmul.msk.f32.gmra.mxu3 %vm1791_vm5, %v3375_v5  ;;  %v3377_v29 = vld [vmem:[#allocation2 + $0x105] ss:$2 sm:$0xff] }
 0x412   : > { %v2636_v58 = vpop.f32.mrf.mxu2  ;;  %v2860_v15 = vpop.f32.mrf.mxu3 }
 0x413   : > { %v9520_v32 = vadd.f32 %v2636_v58, %v9126_v39  ;;  %v9523_v41 = vadd.f32 %v2860_v15, %v9287_v12  ;;  %v2980_v39 = vadd.f32 %v2911_v53, %v2639_v33  ;;  %v9542_v12 = vld [vmem:[%s12274_s4] ss:$0 sm:$0xff]  ;;  %v12361_v58 = vld [vmem:[#allocation8_spill] sm:$0xff]  ;;  %v9552_v53 = vld [vmem:[%s12275_s5 + $0x48] sm:$0xff]  ;;  %v9561_v33 = vpop.f32.mrf.mxu1 }
 0x414   : > { %v12362_v15 = vld [vmem:[#allocation9_spill] sm:$0xff]  ;;  %4055 = vmatpush.msra.mxu0 %v9552_v53 }
 0x415   : > { %12358 = vst [vmem:[#allocation72_spill] sm:$0xff] %v9520_v32  ;;  %v2193_v18 = vadd.f32 %v12362_v15, %v12361_v58  ;;  %v12363_v15 = vld [vmem:[#allocation19_spill] sm:$0xff] }
 0x416   : > { %12359 = vst [vmem:[#allocation73_spill] sm:$0xff] %v9523_v41 }
 0x417   : > { %7170 = vmatmul.msk.f32.gmra.mxu2 %vm1791_vm5, %v12360_v38  ;;  %7194 = vmatmul.msk.f32.gmra.mxu3 %vm1791_vm5, %v3377_v29  ;;  %v2640_v32 = vadd.f32 %v9302_v28, %v2193_v18  ;;  %v9580_v28 = vld [vmem:[%s12275_s5 + $0x8] sm:$0xff]  ;;  %v9592_v18 = vld [vmem:[%s12275_s5 + $0x38] sm:$0xff] }
 0x418   : > { %4148 = vmatpush.msra.mxu1 %v9580_v28 }
 0x41a   : > { %v3252_v5 = vpop.f32.mrf.mxu2  ;;  %v3476_v38 = vpop.f32.mrf.mxu3 }
 0x41b   : > { %v3321_v29 = vadd.f32 %v3252_v5, %v2980_v39  ;;  %v3545_v41 = vadd.f32 %v3476_v38, %v3204_v59  ;;  %v3379_v59 = vld [vmem:[#allocation2 + $0x115] ss:$2 sm:$0xff] }
 0x41c   : > { %v9575_v5 = vld [vmem:[%s12275_s5 + $0x40] sm:$0xff] }
 0x41d   : > { %v9565_v58 = vadd.f32 %v9542_v12, %v3321_v29  ;;  %v9568_v39 = vadd.f32 %v9542_v12, %v3545_v41  ;;  %4056 = vmatpush.msra.mxu0 %v9575_v5  ;;  %v9597_v29 = vld [vmem:[%s12275_s5] sm:$0xff] }
 0x41e   : > { %4149 = vmatpush.msra.mxu1 %v9597_v29 }
 0x41f   : > { %v3617_v38 = vmin.f32 %v9565_v58, 0.0  ;;  %v3778_v41 = vmin.f32 %v9568_v39, 0.0  ;;  %7171 = vmatmul.msk.f32.gmra.mxu2 %vm1791_vm5, %v12363_v15  ;;  %7195 = vmatmul.msk.f32.gmra.mxu3 %vm1791_vm5, %v3379_v59  ;;  %v2981_v15 = vadd.f32 %v9474_v50, %v2640_v32  ;;  %v3205_v59 = vadd.f32 %v9476_v51, %v9305_v30  ;;  %v7312_v30 = vld [vmem:[%s12275_s5 + $0xa0] sm:$0x3] }
 0x420   : > { %4057 = vmatpush.msra.mxu0 %v9592_v18  ;;  %7293 = vmatpush.msk.msrb.mxu1 %vm719_vm0, %v9390_v26  ;;  %v2641_v50 = vadd.f32 %v9311_v44, %v2196_v19  ;;  %v7311_v26 = vld [vmem:[%s12275_s5 + $0x98] sm:$0xff]  ;;  %v9627_v44 = vpop.f32.mrf.mxu0  ;;  %vm3594_vm2 = vcmp.gt.f32.partialorder %v9565_v58, 0.0  ;;  %vm3755_vm12 = vcmp.gt.f32.partialorder %v9568_v39, 0.0 }
 0x421   : > { %v3640_v52 = vmul.f32 1.442695, %v3617_v38  ;;  %v3801_v4 = vmul.f32 1.442695, %v3778_v41  ;;  %7313 = vmatpush.msk.msra.mxu2 %vm719_vm0, %v7312_v30  ;;  %7326 = vmatpush.msk.msra.mxu3 %vm719_vm0, %v7312_v30  ;;  %v12367_v38 = vld [vmem:[#allocation12_spill] sm:$0xff]  ;;  %v12368_v41 = vld [vmem:[#allocation13_spill] sm:$0xff] }
 0x422   : > { %v3255_v3 = vpop.f32.mrf.mxu2  ;;  %v3479_v48 = vpop.f32.mrf.mxu3  ;;  %7280 = vmatpush.msk.msrb.mxu0 %vm719_vm0, %v9385_v34  ;;  %v3381_v34 = vld [vmem:[#allocation2 + $0x125] ss:$2 sm:$0xff]  ;;  %4310 = vmatpush.msrb.mxu1 %v9430_v9 }
 0x423   : > { %7942 = vpow2.f32 %v3640_v52  ;;  %v3322_v49 = vadd.f32 %v3255_v3, %v2981_v15  ;;  %v3546_v40 = vadd.f32 %v3479_v48, %v3205_v59  ;;  %4374 = vmatpush.msra.mxu2 %v7311_v26  ;;  %4499 = vmatpush.msra.mxu3 %v7311_v26  ;;  %v3206_v52 = vadd.f32 %v9488_v0, %v9314_v13  ;;  %v7308_v26 = vld [vmem:[%s12275_s5 + $0x80] sm:$0xff] }
 0x424   : > { %7944 = vpow2.f32 %v3801_v4  ;;  %4257 = vmatpush.msrb.mxu0 %v9425_v57  ;;  %v7310_v57 = vld [vmem:[%s12275_s5 + $0x90] sm:$0xff]  ;;  %v2982_v4 = vadd.f32 %v9486_v25, %v2641_v50  ;;  %4311 = vmatpush.msrb.mxu1 %v9463_v7  ;;  %v2199_v15 = vadd.f32 %v12368_v41, %v12367_v38  ;;  %v7309_v25 = vld [vmem:[%s12275_s5 + $0x88] sm:$0xff] }
 0x425   : > { %v9615_v51 = vadd.f32 %v9542_v12, %v3322_v49  ;;  %v9618_v21 = vadd.f32 %v9542_v12, %v3546_v40  ;;  %v9629_v49 = vpop.f32.mrf.mxu1  ;;  %4375 = vmatpush.msra.mxu2 %v7310_v57  ;;  %4500 = vmatpush.msra.mxu3 %v7310_v57  ;;  %v12369_v57 = vld [vmem:[#allocation25_spill] sm:$0xff]  ;;  %v12370_v41 = vld [vmem:[#allocation14_spill] sm:$0xff] }
 0x426   : > { %4258 = vmatpush.msrb.mxu0 %v9458_v8  ;;  %4312 = vmatpush.msrb.mxu1 %v9537_v62  ;;  %v2642_v7 = vadd.f32 %v9320_v10, %v2199_v15  ;;  %v12371_v15 = vld [vmem:[#allocation15_spill] sm:$0xff] }
 0x427   : > { %v3618_v40 = vmin.f32 %v9615_v51, 0.0  ;;  %v3779_v19 = vmin.f32 %v9618_v21, 0.0  ;;  %7172 = vmatmul.msk.f32.gmra.mxu2 %vm1791_vm5, %v12366_v63  ;;  %7196 = vmatmul.msk.f32.gmra.mxu3 %vm1791_vm5, %v3381_v34  ;;  %vm3595_vm14 = vcmp.gt.f32.partialorder %v9615_v51, 0.0  ;;  %vm3756_vm15 = vcmp.gt.f32.partialorder %v9618_v21, 0.0 }
 0x428   : > { %4259 = vmatpush.msrb.mxu0 %v9532_v60  ;;  %4376 = vmatpush.msra.mxu2 %v7309_v25 }
 0x429   : > { %v7943_v9 = vpop.eup %7942  ;;  %v3642_v48 = vmul.f32 1.442695, %v3618_v40  ;;  %v3803_v3 = vmul.f32 1.442695, %v3779_v19  ;;  %4501 = vmatpush.msra.mxu3 %v7309_v25  ;;  %4313 = vmatpush.msrb.mxu1 %v9557_v42  ;;  %v7307_v19 = vld [vmem:[%s12275_s5 + $0x78] sm:$0xff] }
 0x42a   : > { %v7945_v32 = vpop.eup %7944  ;;  %v7201_v59 = vadd.f32 -1.0, %v7943_v9  ;;  %v3258_v30 = vpop.f32.mrf.mxu2  ;;  %4260 = vmatpush.msrb.mxu0 %v9552_v53  ;;  %4377 = vmatpush.msra.mxu2 %v7308_v26  ;;  %v7306_v53 = vld [vmem:[%s12275_s5 + $0x70] sm:$0xff] }
 0x42b   : > { %v3482_v34 = vpop.f32.mrf.mxu3  ;;  %v7224_v13 = vadd.f32 -1.0, %v7945_v32  ;;  %7946 = vpow2.f32 %v3642_v48  ;;  %v3323_v8 = vadd.f32 %v3258_v30, %v2982_v4  ;;  %4502 = vmatpush.msra.mxu3 %v7308_v26  ;;  %v9679_v9 = vpop.f32.mrf.mxu0  ;;  %v3207_v32 = vadd.f32 %v9503_v43, %v9323_v11  ;;  %4314 = vmatpush.msrb.mxu1 %v9580_v28 }
 0x42c   : > { %v3547_v0 = vadd.f32 %v3482_v34, %v3206_v52  ;;  %v3709_v50 = vsel %vm3594_vm2, %v9565_v58, %v7201_v59  ;;  %7948 = vpow2.f32 %v3803_v3  ;;  %v3383_v58 = vld [vmem:[#allocation2 + $0x135] ss:$2 sm:$0xff]  ;;  %4378 = vmatpush.msra.mxu2 %v7307_v19  ;;  %v2983_v52 = vadd.f32 %v9501_v56, %v2642_v7  ;;  %4261 = vmatpush.msrb.mxu0 %v9575_v5 }
 0x42d   : > { %v3870_v40 = vsel %vm3755_vm12, %v9568_v39, %v7224_v13  ;;  %v9660_v60 = vadd.f32 %v9542_v12, %v3323_v8  ;;  %4503 = vmatpush.msra.mxu3 %v7307_v19  ;;  %v9681_v48 = vpop.f32.mrf.mxu1  ;;  %v2202_v59 = vadd.f32 %v12371_v15, %v12370_v41  ;;  %4315 = vmatpush.msrb.mxu1 %v9597_v29  ;;  %v8164_v29 = vld [vmem:[#allocation2 + $0x144] ss:$2 sm:$0xff]  ;;  %v12372_v19 = vld [vmem:[#allocation17_spill] sm:$0xff] }
 0x42e   : > { %v9663_v62 = vadd.f32 %v9542_v12, %v3547_v0  ;;  %v3893_v10 = vmax.f32 %v3709_v50, %v3870_v40  ;;  %4379 = vmatpush.msra.mxu2 %v7306_v53  ;;  %4262 = vmatpush.msrb.mxu0 %v9592_v18  ;;  %v3385_v50 = vld [vmem:[#allocation2 + $0x145] ss:$2 sm:$0xff] }
 0x42f   : > { %v3619_v39 = vmin.f32 %v9660_v60, 0.0  ;;  %7173 = vmatmul.msk.f32.gmra.mxu2 %vm1791_vm5, %v12369_v57  ;;  %7197 = vmatmul.msk.f32.gmra.mxu3 %vm1791_vm5, %v3383_v58  ;;  %v2643_v43 = vadd.f32 %v9329_v22, %v2202_v59  ;;  %vm3596_vm1 = vcmp.gt.f32.partialorder %v9660_v60, 0.0 }
 0x430   : > { %v3780_v63 = vmin.f32 %v9663_v62, 0.0  ;;  %3917 = vst.msk [vmem:[#allocation3] sm:$0xff] %vm3916_vm13, %v3893_v10  ;;  %4504 = vmatpush.msra.mxu3 %v7306_v53  ;;  %v3208_v10 = vadd.f32 %v9517_v35, %v9332_v23  ;;  %vm3757_vm3 = vcmp.gt.f32.partialorder %v9663_v62, 0.0 }
 0x431   : > { %v7947_v42 = vpop.eup %7946  ;;  %v3644_v3 = vmul.f32 1.442695, %v3619_v39  ;;  %v2984_v40 = vadd.f32 %v9515_v36, %v2643_v43  ;;  %v12373_v39 = vld [vmem:[#allocation18_spill] sm:$0xff]  ;;  %v3209_v43 = vadd.f32 %v9561_v33, %v9341_v61 }
 0x432   : > { %v3805_v4 = vmul.f32 1.442695, %v3780_v63  ;;  %v7949_v38 = vpop.eup %7948  ;;  %v7202_v30 = vadd.f32 -1.0, %v7947_v42  ;;  %v3261_v34 = vpop.f32.mrf.mxu2  ;;  %v2205_v63 = vadd.f32 %v12373_v39, %v12372_v19 }
 0x433   : > { %v3485_v25 = vpop.f32.mrf.mxu3  ;;  %v7225_v13 = vadd.f32 -1.0, %v7949_v38  ;;  %7950 = vpow2.f32 %v3644_v3  ;;  %v3324_v56 = vadd.f32 %v3261_v34, %v2983_v52  ;;  %v9711_v3 = vpop.f32.mrf.mxu0 }
 0x434   : > { %v3548_v8 = vadd.f32 %v3485_v25, %v3207_v32  ;;  %v3710_v11 = vsel %vm3595_vm14, %v9615_v51, %v7202_v30  ;;  %7952 = vpow2.f32 %v3805_v4  ;;  %v2644_v23 = vadd.f32 %v9338_v1, %v2205_v63  ;;  %v3387_v30 = vld [vmem:[#allocation2 + $0x155] ss:$2 sm:$0xff] }
 0x435   : > { %v3871_v5 = vsel %vm3756_vm15, %v9618_v21, %v7225_v13  ;;  %v3574_v28 = vadd.f32 %v9542_v12, %v3324_v56  ;;  %v9713_v4 = vpop.f32.mrf.mxu1  ;;  %v8165_v13 = vld [vmem:[#allocation2 + $0x154] ss:$2 sm:$0xff] }
 0x436   : > { %v9699_v0 = vadd.f32 %v9542_v12, %v3548_v8  ;;  %v3894_v7 = vmax.f32 %v3710_v11, %v3871_v5  ;;  %v2985_v11 = vadd.f32 %v9559_v27, %v2644_v23  ;;  %v12376_v23 = vld [vmem:[#allocation23_spill] sm:$0xff] }
 0x437   : > { %v3620_v26 = vmin.f32 %v3574_v28, 0.0  ;;  %7174 = vmatmul.msk.f32.gmra.mxu2 %vm1791_vm5, %v8164_v29  ;;  %7198 = vmatmul.msk.f32.gmra.mxu3 %vm1791_vm5, %v3385_v50  ;;  %v12375_v50 = vld [vmem:[#allocation21_spill] sm:$0xff]  ;;  %vm3597_vm4 = vcmp.gt.f32.partialorder %v3574_v28, 0.0 }
 0x438   : > { %v3781_v18 = vmin.f32 %v9699_v0, 0.0  ;;  %3918 = vst.msk [vmem:[#allocation3 + $0x8] sm:$0xff] %vm3916_vm13, %v3894_v7  ;;  %v12374_v7 = vld [vmem:[#allocation20_spill] sm:$0xff]  ;;  %vm3758_vm6 = vcmp.gt.f32.partialorder %v9699_v0, 0.0 }
 0x439   : > { %v7951_v22 = vpop.eup %7950  ;;  %v3646_v51 = vmul.f32 1.442695, %v3620_v26  ;;  %v2208_v26 = vadd.f32 %v12375_v50, %v12374_v7 }
 0x43a   : > { %v3807_v21 = vmul.f32 1.442695, %v3781_v18  ;;  %v7953_v58 = vpop.eup %7952  ;;  %v7203_v57 = vadd.f32 -1.0, %v7951_v22  ;;  %v3264_v53 = vpop.f32.mrf.mxu2 }
 0x43b   : > { %v3488_v42 = vpop.f32.mrf.mxu3  ;;  %v7226_v52 = vadd.f32 -1.0, %v7953_v58  ;;  %7954 = vpow2.f32 %v3646_v51  ;;  %v3325_v32 = vadd.f32 %v3264_v53, %v2984_v40  ;;  %v9735_v27 = vpop.f32.mrf.mxu0  ;;  %v2645_v61 = vadd.f32 %v9347_v46, %v2208_v26 }
 0x43c   : > { %v3549_v36 = vadd.f32 %v3488_v42, %v3208_v10  ;;  %v3711_v38 = vsel %vm3596_vm1, %v9660_v60, %v7203_v57  ;;  %7956 = vpow2.f32 %v3807_v21  ;;  %v3389_v57 = vld [vmem:[#allocation2 + $0x165] ss:$2 sm:$0xff]  ;;  %v8166_v42 = vld [vmem:[#allocation2 + $0x164] ss:$2 sm:$0xff] }
 0x43d   : > { %v3872_v35 = vsel %vm3757_vm3, %v9663_v62, %v7226_v52  ;;  %v3575_v41 = vadd.f32 %v9542_v12, %v3325_v32  ;;  %v9737_v58 = vpop.f32.mrf.mxu1  ;;  %v2986_v32 = vadd.f32 %v9627_v44, %v2645_v61 }
 0x43e   : > { %v9721_v15 = vadd.f32 %v9542_v12, %v3549_v36  ;;  %v3895_v59 = vmax.f32 %v3711_v38, %v3872_v35  ;;  %v3210_v36 = vadd.f32 %v9629_v49, %v9350_v45  ;;  %v12377_v35 = vld [vmem:[#allocation24_spill] sm:$0xff] }
 0x43f   : > { %v3621_v34 = vmin.f32 %v3575_v41, 0.0  ;;  %7175 = vmatmul.msk.f32.gmra.mxu2 %vm1791_vm5, %v8165_v13  ;;  %7199 = vmatmul.msk.f32.gmra.mxu3 %vm1791_vm5, %v3387_v30  ;;  %v3972_v60 = vld [vmem:[#allocation3 + $0x1] ss:$2 sm:$0xff]  ;;  %v3948_v1 = vld [vmem:[#allocation3] ss:$2 sm:$0xff]  ;;  %vm3598_vm7 = vcmp.gt.f32.partialorder %v3575_v41, 0.0 }
 0x440   : > { %v3782_v25 = vmin.f32 %v9721_v15, 0.0  ;;  %3919 = vst.msk [vmem:[#allocation3 + $0x10] sm:$0xff] %vm3916_vm13, %v3895_v59  ;;  %7255 = vmatmul.msk.f32.vlgmr.msra.gmra.mxu0 %vm3916_vm13, %v3972_v60  ;;  %7268 = vmatmul.msk.f32.vlgmr.msra.gmra.mxu1 %vm3916_vm13, %v3948_v1  ;;  %v2211_v59 = vadd.f32 %v12377_v35, %v12376_v23 }
 0x441   : > { %v7955_v62 = vpop.eup %7954  ;;  %v3648_v56 = vmul.f32 1.442695, %v3621_v34 }
 0x442   : > { %v3809_v8 = vmul.f32 1.442695, %v3782_v25  ;;  %v7957_v5 = vpop.eup %7956  ;;  %v7204_v18 = vadd.f32 -1.0, %v7955_v62  ;;  %v3267_v29 = vpop.f32.mrf.mxu2  ;;  %v2646_v44 = vadd.f32 %v9354_v24, %v2211_v59 }
 0x443   : > { %v3491_v22 = vpop.f32.mrf.mxu3  ;;  %v7227_v51 = vadd.f32 -1.0, %v7957_v5  ;;  %7958 = vpow2.f32 %v3648_v56  ;;  %v3326_v21 = vadd.f32 %v3267_v29, %v2985_v11  ;;  %v9763_v5 = vpop.f32.mrf.mxu0 }
 0x444   : > { %v3550_v40 = vadd.f32 %v3491_v22, %v3209_v43  ;;  %v3712_v10 = vsel %vm3597_vm4, %v3574_v28, %v7204_v18  ;;  %7960 = vpow2.f32 %v3809_v8  ;;  %v2987_v22 = vadd.f32 %v9679_v9, %v2646_v44 }
 0x445   : > { %v3873_v33 = vsel %vm3758_vm6, %v9699_v0, %v7227_v51  ;;  %v3576_v19 = vadd.f32 %v9542_v12, %v3326_v21  ;;  %v9765_v7 = vpop.f32.mrf.mxu1  ;;  %v3211_v51 = vadd.f32 %v9681_v48, %v9357_v14 }
 0x446   : > { %v9743_v39 = vadd.f32 %v9542_v12, %v3550_v40  ;;  %v3896_v63 = vmax.f32 %v3712_v10, %v3873_v33  ;;  %v12378_v40 = vld [vmem:[#allocation26_spill] sm:$0xff]  ;;  %v12379_v10 = vld [vmem:[#allocation27_spill] sm:$0xff] }
 0x447   : > { %v3622_v53 = vmin.f32 %v3576_v19, 0.0  ;;  %7176 = vmatmul.msk.f32.gmra.mxu2 %vm1791_vm5, %v8166_v42  ;;  %7200 = vmatmul.msk.f32.gmra.mxu3 %vm1791_vm5, %v3389_v57  ;;  %vm3759_vm5 = vcmp.gt.f32.partialorder %v9721_v15, 0.0  ;;  %v4188_v11 = vld [vmem:[#allocation3 + $0x2] ss:$2 sm:$0xff]  ;;  %v4430_v43 = vld [vmem:[#allocation3 + $0x3] ss:$2 sm:$0xff]  ;;  %v2214_v61 = vadd.f32 %v12379_v10, %v12378_v40 }
 0x448   : > { %v3783_v28 = vmin.f32 %v9743_v39, 0.0  ;;  %3920 = vst.msk [vmem:[#allocation3 + $0x18] sm:$0xff] %vm3916_vm13, %v3896_v63  ;;  %vm3599_vm8 = vcmp.gt.f32.partialorder %v3576_v19, 0.0  ;;  %vm3760_vm9 = vcmp.gt.f32.partialorder %v9743_v39, 0.0  ;;  %v12382_v40 = vld [vmem:[#allocation30_spill] sm:$0xff]  ;;  %v12383_v10 = vld [vmem:[#allocation31_spill] sm:$0xff] }
 0x449   : > { %v7959_v46 = vpop.eup %7958  ;;  %v3650_v52 = vmul.f32 1.442695, %v3622_v53  ;;  %v2647_v9 = vadd.f32 %v9361_v54, %v2214_v61  ;;  %v2220_v61 = vadd.f32 %v12383_v10, %v12382_v40 }
 0x44a   : > { %v3811_v0 = vmul.f32 1.442695, %v3783_v28  ;;  %v7961_v38 = vpop.eup %7960  ;;  %v7205_v30 = vadd.f32 -1.0, %v7959_v46  ;;  %v3270_v34 = vpop.f32.mrf.mxu2 }
 0x44b   : > { %v3494_v25 = vpop.f32.mrf.mxu3  ;;  %v7228_v13 = vadd.f32 -1.0, %v7961_v38  ;;  %7962 = vpow2.f32 %v3650_v52  ;;  %v3327_v60 = vadd.f32 %v3270_v34, %v2986_v32  ;;  %v9789_v35 = vpop.f32.mrf.mxu0  ;;  %v3212_v34 = vadd.f32 %v9713_v4, %v9364_v6 }
 0x44c   : > { %v3551_v1 = vadd.f32 %v3494_v25, %v3210_v36  ;;  %v3713_v62 = vsel %vm3598_vm7, %v3575_v41, %v7205_v30  ;;  %7964 = vpow2.f32 %v3811_v0  ;;  %v2988_v30 = vadd.f32 %v9711_v3, %v2647_v9 }
 0x44d   : > { %v3874_v45 = vsel %vm3759_vm5, %v9721_v15, %v7228_v13  ;;  %v9758_v49 = vadd.f32 %v9542_v12, %v3327_v60  ;;  %v9791_v54 = vpop.f32.mrf.mxu1  ;;  %v12380_v13 = vld [vmem:[#allocation28_spill] sm:$0xff]  ;;  %v12381_v60 = vld [vmem:[#allocation29_spill] sm:$0xff] }
 0x44e   : > { %v9761_v56 = vadd.f32 %v9542_v12, %v3551_v1  ;;  %v3897_v8 = vmax.f32 %v3713_v62, %v3874_v45  ;;  %v2217_v1 = vadd.f32 %v12381_v60, %v12380_v13 }
 0x44f   : > { %v3623_v41 = vmin.f32 %v9758_v49, 0.0  ;;  %v3974_v24 = vld [vmem:[#allocation3 + $0x11] ss:$2 sm:$0xff]  ;;  %7314 = vmatmul.msk.f32.vlgmr.msra.gmra.mxu2 %vm3916_vm13, %v4188_v11  ;;  %7327 = vmatmul.msk.f32.vlgmr.msra.gmra.mxu3 %vm3916_vm13, %v4430_v43  ;;  %v3950_v15 = vld [vmem:[#allocation3 + $0x10] ss:$2 sm:$0xff]  ;;  %vm3600_vm10 = vcmp.gt.f32.partialorder %v9758_v49, 0.0 }
 0x450   : > { %v3784_v50 = vmin.f32 %v9761_v56, 0.0  ;;  %3921 = vst.msk [vmem:[#allocation3 + $0x20] sm:$0xff] %vm3916_vm13, %v3897_v8  ;;  %7256 = vmatmul.msk.f32.gmra.mxu0 %vm3916_vm13, %v3974_v24  ;;  %7269 = vmatmul.msk.f32.gmra.mxu1 %vm3916_vm13, %v3950_v15  ;;  %vm3761_vm11 = vcmp.gt.f32.partialorder %v9761_v56, 0.0  ;;  %v2648_v6 = vadd.f32 %v9368_v20, %v2217_v1 }
 0x451   : > { %v7963_v26 = vpop.eup %7962  ;;  %v3652_v18 = vmul.f32 1.442695, %v3623_v41 }
 0x452   : > { %v3813_v29 = vmul.f32 1.442695, %v3784_v50  ;;  %v7965_v21 = vpop.eup %7964  ;;  %v7206_v33 = vadd.f32 -1.0, %v7963_v26  ;;  %v3273_v63 = vpop.f32.mrf.mxu2 }
 0x453   : > { %v3497_v57 = vpop.f32.mrf.mxu3  ;;  %v7229_v53 = vadd.f32 -1.0, %v7965_v21  ;;  %7966 = vpow2.f32 %v3652_v18  ;;  %v3328_v28 = vadd.f32 %v3273_v63, %v2987_v22 }
 0x454   : > { %v3552_v42 = vadd.f32 %v3497_v57, %v3211_v51  ;;  %v3714_v46 = vsel %vm3599_vm8, %v3576_v19, %v7206_v33  ;;  %7968 = vpow2.f32 %v3813_v29  ;;  %v3213_v51 = vadd.f32 %v9737_v58, %v9371_v47 }
 0x455   : > { %v3875_v14 = vsel %vm3760_vm9, %v9743_v39, %v7229_v53  ;;  %v3578_v48 = vadd.f32 %v9542_v12, %v3328_v28  ;;  %v9817_v53 = vpop.f32.mrf.mxu0  ;;  %v9819_v28 = vpop.f32.mrf.mxu1  ;;  %v2649_v47 = vadd.f32 %v9375_v37, %v2220_v61 }
 0x456   : > { %v9784_v52 = vadd.f32 %v9542_v12, %v3552_v42  ;;  %v3898_v0 = vmax.f32 %v3714_v46, %v3875_v14 }
 0x457   : > { %v3624_v32 = vmin.f32 %v3578_v48, 0.0  ;;  %v4190_v38 = vld [vmem:[#allocation3 + $0x12] ss:$2 sm:$0xff]  ;;  %v4432_v19 = vld [vmem:[#allocation3 + $0x13] ss:$2 sm:$0xff]  ;;  %vm3601_vm2 = vcmp.gt.f32.partialorder %v3578_v48, 0.0 }
 0x458   : > { %v3785_v36 = vmin.f32 %v9784_v52, 0.0  ;;  %3922 = vst.msk [vmem:[#allocation3 + $0x28] sm:$0xff] %vm3916_vm13, %v3898_v0  ;;  %7315 = vmatmul.msk.f32.gmra.mxu2 %vm3916_vm13, %v4190_v38  ;;  %7328 = vmatmul.msk.f32.gmra.mxu3 %vm3916_vm13, %v4432_v19  ;;  %vm3762_vm12 = vcmp.gt.f32.partialorder %v9784_v52, 0.0 }
 0x459   : > { %v7967_v23 = vpop.eup %7966  ;;  %v3654_v39 = vmul.f32 1.442695, %v3624_v32 }
 0x45a   : > { %v3815_v59 = vmul.f32 1.442695, %v3785_v36  ;;  %v7969_v25 = vpop.eup %7968  ;;  %v7207_v62 = vadd.f32 -1.0, %v7967_v23  ;;  %v3276_v44 = vpop.f32.mrf.mxu2 }
 0x45b   : > { %v3500_v45 = vpop.f32.mrf.mxu3  ;;  %v7230_v8 = vadd.f32 -1.0, %v7969_v25  ;;  %7970 = vpow2.f32 %v3654_v39  ;;  %v3329_v11 = vadd.f32 %v3276_v44, %v2988_v30  ;;  %v12385_v25 = vld [vmem:[#allocation33_spill] sm:$0xff] }
 0x45c   : > { %v3553_v43 = vadd.f32 %v3500_v45, %v3212_v34  ;;  %v3715_v41 = vsel %vm3600_vm10, %v9758_v49, %v7207_v62  ;;  %7972 = vpow2.f32 %v3815_v59  ;;  %v3214_v59 = vadd.f32 %v9765_v7, %v9378_v2  ;;  %v12384_v34 = vld [vmem:[#allocation32_spill] sm:$0xff] }
 0x45d   : > { %v3876_v3 = vsel %vm3761_vm11, %v9761_v56, %v7230_v8  ;;  %v3579_v4 = vadd.f32 %v9542_v12, %v3329_v11  ;;  %v2989_v56 = vadd.f32 %v9735_v27, %v2648_v6  ;;  %v2223_v13 = vadd.f32 %v12385_v25, %v12384_v34 }
 0x45e   : > { %v9806_v50 = vadd.f32 %v9542_v12, %v3553_v43  ;;  %v3899_v24 = vmax.f32 %v3715_v41, %v3876_v3  ;;  %v9840_v43 = vpop.f32.mrf.mxu1 }
 0x45f   : > { %v3625_v15 = vmin.f32 %v3579_v4, 0.0  ;;  %v3976_v18 = vld [vmem:[#allocation3 + $0x21] ss:$2 sm:$0xff]  ;;  %v3952_v49 = vld [vmem:[#allocation3 + $0x20] ss:$2 sm:$0xff]  ;;  %vm3602_vm14 = vcmp.gt.f32.partialorder %v3579_v4, 0.0  ;;  %v2650_v2 = vadd.f32 %v9396_v16, %v2223_v13 }
 0x460   : > { %v3786_v26 = vmin.f32 %v9806_v50, 0.0  ;;  %3923 = vst.msk [vmem:[#allocation3 + $0x30] sm:$0xff] %vm3916_vm13, %v3899_v24  ;;  %7257 = vmatmul.msk.f32.gmra.mxu0 %vm3916_vm13, %v3976_v18  ;;  %7270 = vmatmul.msk.f32.gmra.mxu1 %vm3916_vm13, %v3952_v49  ;;  %vm3763_vm15 = vcmp.gt.f32.partialorder %v9806_v50, 0.0 }
 0x461   : > { %v7971_v29 = vpop.eup %7970  ;;  %v3656_v22 = vmul.f32 1.442695, %v3625_v15 }
 0x462   : > { %v3817_v20 = vmul.f32 1.442695, %v3786_v26  ;;  %v7973_v21 = vpop.eup %7972  ;;  %v7208_v33 = vadd.f32 -1.0, %v7971_v29  ;;  %v3279_v63 = vpop.f32.mrf.mxu2  ;;  %v3215_v29 = vadd.f32 %v9791_v54, %v9399_v55 }
 0x463   : > { %v3503_v57 = vpop.f32.mrf.mxu3  ;;  %v7231_v42 = vadd.f32 -1.0, %v7973_v21  ;;  %7974 = vpow2.f32 %v3656_v22  ;;  %v3330_v46 = vadd.f32 %v3279_v63, %v2989_v56  ;;  %v12387_v56 = vld [vmem:[#allocation35_spill] sm:$0xff] }
 0x464   : > { %v3554_v9 = vadd.f32 %v3503_v57, %v3213_v51  ;;  %v3716_v27 = vsel %vm3601_vm2, %v3578_v48, %v7208_v33  ;;  %7976 = vpow2.f32 %v3817_v20  ;;  %v12386_v20 = vld [vmem:[#allocation34_spill] sm:$0xff] }
 0x465   : > { %v3877_v58 = vsel %vm3762_vm12, %v9784_v52, %v7231_v42  ;;  %v3580_v14 = vadd.f32 %v9542_v12, %v3330_v46  ;;  %v2990_v52 = vadd.f32 %v9763_v5, %v2649_v47  ;;  %v9838_v5 = vpop.f32.mrf.mxu0  ;;  %v2226_v51 = vadd.f32 %v12387_v56, %v12386_v20 }
 0x466   : > { %v3741_v0 = vadd.f32 %v9542_v12, %v3554_v9  ;;  %v3900_v32 = vmax.f32 %v3716_v27, %v3877_v58  ;;  %v9864_v27 = vpop.f32.mrf.mxu1 }
 0x467   : > { %v3626_v36 = vmin.f32 %v3580_v14, 0.0  ;;  %v9826_v19 = vld [vmem:[#allocation3 + $0x22] ss:$2 sm:$0xff]  ;;  %v4434_v48 = vld [vmem:[#allocation3 + $0x23] ss:$2 sm:$0xff]  ;;  %vm3603_vm1 = vcmp.gt.f32.partialorder %v3580_v14, 0.0 }
 0x468   : > { %v3787_v38 = vmin.f32 %v3741_v0, 0.0  ;;  %3924 = vst.msk [vmem:[#allocation3 + $0x38] sm:$0xff] %vm3916_vm13, %v3900_v32  ;;  %7316 = vmatmul.msk.f32.gmra.mxu2 %vm3916_vm13, %v9826_v19  ;;  %7329 = vmatmul.msk.f32.gmra.mxu3 %vm3916_vm13, %v4434_v48  ;;  %vm3764_vm3 = vcmp.gt.f32.partialorder %v3741_v0, 0.0  ;;  %v3216_v48 = vadd.f32 %v9819_v28, %v9406_v31 }
 0x469   : > { %v7975_v23 = vpop.eup %7974  ;;  %v3658_v39 = vmul.f32 1.442695, %v3626_v36 }
 0x46a   : > { %v3819_v37 = vmul.f32 1.442695, %v3787_v38  ;;  %v7977_v30 = vpop.eup %7976  ;;  %v7209_v60 = vadd.f32 -1.0, %v7975_v23  ;;  %v3282_v1 = vpop.f32.mrf.mxu2 }
 0x46b   : > { %v3506_v62 = vpop.f32.mrf.mxu3  ;;  %v7232_v44 = vadd.f32 -1.0, %v7977_v30  ;;  %7978 = vpow2.f32 %v3658_v39  ;;  %v3331_v45 = vadd.f32 %v3282_v1, %v2990_v52  ;;  %v12388_v39 = vld [vmem:[#allocation36_spill] sm:$0xff] }
 0x46c   : > { %v3555_v8 = vadd.f32 %v3506_v62, %v3214_v59  ;;  %v3717_v11 = vsel %vm3602_vm14, %v3579_v4, %v7209_v60  ;;  %7980 = vpow2.f32 %v3819_v37  ;;  %v12389_v37 = vld [vmem:[#allocation37_spill] sm:$0xff]  ;;  %v12390_v62 = vld [vmem:[#allocation54_spill] sm:$0xff] }
 0x46d   : > { %v3878_v7 = vsel %vm3763_vm15, %v9806_v50, %v7232_v44  ;;  %v3581_v41 = vadd.f32 %v9542_v12, %v3331_v45  ;;  %v2991_v50 = vadd.f32 %v9789_v35, %v2650_v2  ;;  %v2651_v35 = vadd.f32 %v9403_v17, %v2226_v51  ;;  %v9862_v9 = vpop.f32.mrf.mxu0 }
 0x46e   : > { %v3742_v6 = vadd.f32 %v9542_v12, %v3555_v8  ;;  %v3901_v3 = vmax.f32 %v3717_v11, %v3878_v7  ;;  %v2229_v52 = vadd.f32 %v12389_v37, %v12388_v39 }
 0x46f   : > { %v3627_v24 = vmin.f32 %v3581_v41, 0.0  ;;  %v9846_v26 = vld [vmem:[#allocation3 + $0x31] ss:$2 sm:$0xff]  ;;  %v3954_v4 = vld [vmem:[#allocation3 + $0x30] ss:$2 sm:$0xff]  ;;  %v2992_v38 = vadd.f32 %v9817_v53, %v2651_v35  ;;  %vm3604_vm4 = vcmp.gt.f32.partialorder %v3581_v41, 0.0 }
 0x470   : > { %v3788_v15 = vmin.f32 %v3742_v6, 0.0  ;;  %3925 = vst.msk [vmem:[#allocation3 + $0x40] sm:$0xff] %vm3916_vm13, %v3901_v3  ;;  %7258 = vmatmul.msk.f32.gmra.mxu0 %vm3916_vm13, %v9846_v26  ;;  %7271 = vmatmul.msk.f32.gmra.mxu1 %vm3916_vm13, %v3954_v4  ;;  %vm3765_vm6 = vcmp.gt.f32.partialorder %v3742_v6, 0.0  ;;  %v2652_v53 = vadd.f32 %v12390_v62, %v2229_v52 }
 0x471   : > { %v7979_v18 = vpop.eup %7978  ;;  %v3660_v49 = vmul.f32 1.442695, %v3627_v24 }
 0x472   : > { %v3821_v16 = vmul.f32 1.442695, %v3788_v15  ;;  %v7981_v22 = vpop.eup %7980  ;;  %v7210_v21 = vadd.f32 -1.0, %v7979_v18  ;;  %v3285_v40 = vpop.f32.mrf.mxu2  ;;  %v2993_v4 = vadd.f32 %v9838_v5, %v2652_v53  ;;  %v12391_v18 = vld [vmem:[#allocation55_spill] sm:$0xff]  ;;  %v12394_v5 = vld [vmem:[#allocation56_spill] sm:$0xff] }
 0x473   : > { %v3509_v10 = vpop.f32.mrf.mxu3  ;;  %v7233_v61 = vadd.f32 -1.0, %v7981_v22  ;;  %7982 = vpow2.f32 %v3660_v49  ;;  %v3332_v33 = vadd.f32 %v3285_v40, %v2991_v50  ;;  %v3217_v49 = vadd.f32 %v9840_v43, %v12391_v18  ;;  %v12392_v50 = vld [vmem:[#allocation38_spill] sm:$0xff] }
 0x474   : > { %v3556_v63 = vadd.f32 %v3509_v10, %v3215_v29  ;;  %v3718_v57 = vsel %vm3603_vm1, %v3580_v14, %v7210_v21  ;;  %7984 = vpow2.f32 %v3821_v16  ;;  %v12393_v29 = vld [vmem:[#allocation39_spill] sm:$0xff] }
 0x475   : > { %v3879_v42 = vsel %vm3764_vm3, %v3741_v0, %v7233_v61  ;;  %v3582_v55 = vadd.f32 %v9542_v12, %v3332_v33  ;;  %v9889_v3 = vpop.f32.mrf.mxu0  ;;  %v2232_v22 = vadd.f32 %v12393_v29, %v12392_v50 }
 0x476   : > { %v9860_v54 = vadd.f32 %v9542_v12, %v3556_v63  ;;  %v3902_v46 = vmax.f32 %v3718_v57, %v3879_v42 }
 0x477   : > { %v3628_v47 = vmin.f32 %v3582_v55, 0.0  ;;  %v9867_v32 = vld [vmem:[#allocation3 + $0x32] ss:$2 sm:$0xff]  ;;  %v4436_v17 = vld [vmem:[#allocation3 + $0x33] ss:$2 sm:$0xff]  ;;  %vm3605_vm7 = vcmp.gt.f32.partialorder %v3582_v55, 0.0  ;;  %v2653_v33 = vadd.f32 %v12394_v5, %v2232_v22 }
 0x478   : > { %v3789_v58 = vmin.f32 %v9860_v54, 0.0  ;;  %3926 = vst.msk [vmem:[#allocation3 + $0x48] sm:$0xff] %vm3916_vm13, %v3902_v46  ;;  %7317 = vmatmul.msk.f32.gmra.mxu2 %vm3916_vm13, %v9867_v32  ;;  %7330 = vmatmul.msk.f32.gmra.mxu3 %vm3916_vm13, %v4436_v17  ;;  %vm3766_vm5 = vcmp.gt.f32.partialorder %v9860_v54, 0.0 }
 0x479   : > { %v7983_v14 = vpop.eup %7982  ;;  %v3662_v0 = vmul.f32 1.442695, %v3628_v47 }
 0x47a   : > { %v3823_v36 = vmul.f32 1.442695, %v3789_v58  ;;  %v7985_v23 = vpop.eup %7984  ;;  %v7211_v59 = vadd.f32 -1.0, %v7983_v14  ;;  %v3288_v30 = vpop.f32.mrf.mxu2  ;;  %v2994_v14 = vadd.f32 %v9862_v9, %v2653_v33  ;;  %v12398_v9 = vld [vmem:[#allocation58_spill] sm:$0xff]  ;;  %v9943_v33 = vld [vmem:[%s12274_s4] ss:$0 sm:$0xff] }
 0x47b   : > { %v3512_v34 = vpop.f32.mrf.mxu3  ;;  %v7234_v25 = vadd.f32 -1.0, %v7985_v23  ;;  %7986 = vpow2.f32 %v3662_v0  ;;  %v3333_v13 = vadd.f32 %v3288_v30, %v2992_v38  ;;  %v12395_v0 = vld [vmem:[#allocation57_spill] sm:$0xff] }
 0x47c   : > { %v3557_v60 = vadd.f32 %v3512_v34, %v3216_v48  ;;  %v3719_v1 = vsel %vm3604_vm4, %v3581_v41, %v7211_v59  ;;  %7988 = vpow2.f32 %v3823_v36  ;;  %v3218_v36 = vadd.f32 %v9864_v27, %v12395_v0  ;;  %v12396_v48 = vld [vmem:[#allocation40_spill] sm:$0xff]  ;;  %v12397_v23 = vld [vmem:[#allocation41_spill] sm:$0xff] }
 0x47d   : > { %v3880_v44 = vsel %vm3765_vm6, %v3742_v6, %v7234_v25  ;;  %v3583_v31 = vadd.f32 %v9542_v12, %v3333_v13  ;;  %v9891_v6 = vpop.f32.mrf.mxu1  ;;  %v2235_v39 = vadd.f32 %v12397_v23, %v12396_v48  ;;  %v2959_v30 = vpop.f32.mrf.mxu0  ;;  %v12404_v23 = vld [vmem:[#allocation44_spill] sm:$0xff] }
 0x47e   : > { %v9881_v28 = vadd.f32 %v9542_v12, %v3557_v60  ;;  %v3903_v45 = vmax.f32 %v3719_v1, %v3880_v44 }
 0x47f   : > { %v3629_v8 = vmin.f32 %v3583_v31, 0.0  ;;  %v9884_v2 = vld [vmem:[#allocation3 + $0x41] ss:$2 sm:$0xff]  ;;  %v3956_v7 = vld [vmem:[#allocation3 + $0x40] ss:$2 sm:$0xff]  ;;  %vm3606_vm8 = vcmp.gt.f32.partialorder %v3583_v31, 0.0  ;;  %v2654_v27 = vadd.f32 %v12398_v9, %v2235_v39 }
 0x480   : > { %v3790_v11 = vmin.f32 %v9881_v28, 0.0  ;;  %3927 = vst.msk [vmem:[#allocation3 + $0x50] sm:$0xff] %vm3916_vm13, %v3903_v45  ;;  %7259 = vmatmul.msk.f32.gmra.mxu0 %vm3916_vm13, %v9884_v2  ;;  %7272 = vmatmul.msk.f32.gmra.mxu1 %vm3916_vm13, %v3956_v7  ;;  %vm3767_vm9 = vcmp.gt.f32.partialorder %v9881_v28, 0.0  ;;  %v12405_v39 = vld [vmem:[#allocation45_spill] sm:$0xff] }
 0x481   : > { %v7987_v41 = vpop.eup %7986  ;;  %v3664_v24 = vmul.f32 1.442695, %v3629_v8 }
 0x482   : > { %v3825_v15 = vmul.f32 1.442695, %v3790_v11  ;;  %v7989_v16 = vpop.eup %7988  ;;  %v7212_v20 = vadd.f32 -1.0, %v7987_v41  ;;  %v3291_v56 = vpop.f32.mrf.mxu2 }
 0x483   : > { %v3515_v51 = vpop.f32.mrf.mxu3  ;;  %v7235_v21 = vadd.f32 -1.0, %v7989_v16  ;;  %7990 = vpow2.f32 %v3664_v24  ;;  %v3334_v40 = vadd.f32 %v3291_v56, %v2993_v4  ;;  %v12399_v4 = vld [vmem:[#allocation59_spill] sm:$0xff] }
 0x484   : > { %v3558_v10 = vadd.f32 %v3515_v51, %v3217_v49  ;;  %v3720_v61 = vsel %vm3605_vm7, %v3582_v55, %v7212_v20  ;;  %7992 = vpow2.f32 %v3825_v15  ;;  %v12400_v49 = vld [vmem:[#allocation42_spill] sm:$0xff]  ;;  %v12401_v16 = vld [vmem:[#allocation43_spill] sm:$0xff] }
 0x485   : > { %v3881_v43 = vsel %vm3766_vm5, %v9860_v54, %v7235_v21  ;;  %v3584_v63 = vadd.f32 %v9542_v12, %v3334_v40  ;;  %v3183_v34 = vpop.f32.mrf.mxu1  ;;  %v2238_v50 = vadd.f32 %v12401_v16, %v12400_v49 }
 0x486   : > { %v9904_v57 = vadd.f32 %v9542_v12, %v3558_v10  ;;  %v3904_v35 = vmax.f32 %v3720_v61, %v3881_v43  ;;  %v12402_v61 = vld [vmem:[#allocation60_spill] sm:$0xff] }
 0x487   : > { %v3630_v42 = vmin.f32 %v3584_v63, 0.0  ;;  %v9907_v47 = vld [vmem:[#allocation3 + $0x42] ss:$2 sm:$0xff]  ;;  %v9912_v55 = vld [vmem:[#allocation3 + $0x43] ss:$2 sm:$0xff]  ;;  %vm3607_vm10 = vcmp.gt.f32.partialorder %v3584_v63, 0.0 }
 0x488   : > { %v3791_v46 = vmin.f32 %v9904_v57, 0.0  ;;  %3928 = vst.msk [vmem:[#allocation3 + $0x58] sm:$0xff] %vm3916_vm13, %v3904_v35  ;;  %7318 = vmatmul.msk.f32.gmra.mxu2 %vm3916_vm13, %v9907_v47  ;;  %7331 = vmatmul.msk.f32.gmra.mxu3 %vm3916_vm13, %v9912_v55  ;;  %vm3768_vm11 = vcmp.gt.f32.partialorder %v9904_v57, 0.0 }
 0x489   : > { %v7991_v58 = vpop.eup %7990  ;;  %v3666_v54 = vmul.f32 1.442695, %v3630_v42 }
 0x48a   : > { %v3827_v17 = vmul.f32 1.442695, %v3791_v46  ;;  %v7993_v38 = vpop.eup %7992  ;;  %v7213_v37 = vadd.f32 -1.0, %v7991_v58  ;;  %v3294_v52 = vpop.f32.mrf.mxu2 }
 0x48b   : > { %v3518_v59 = vpop.f32.mrf.mxu3  ;;  %v7236_v25 = vadd.f32 -1.0, %v7993_v38  ;;  %7994 = vpow2.f32 %v3666_v54  ;;  %v3335_v13 = vadd.f32 %v3294_v52, %v2994_v14 }
 0x48c   : > { %v3559_v60 = vadd.f32 %v3518_v59, %v3218_v36  ;;  %v3721_v1 = vsel %vm3606_vm8, %v3583_v31, %v7213_v37  ;;  %7996 = vpow2.f32 %v3827_v17  ;;  %v12403_v36 = vld [vmem:[#allocation61_spill] sm:$0xff]  ;;  %v2241_v37 = vadd.f32 %v12405_v39, %v12404_v23 }
 0x48d   : > { %v3882_v62 = vsel %vm3767_vm9, %v9881_v28, %v7236_v25  ;;  %v3585_v53 = vadd.f32 %v9542_v12, %v3335_v13  ;;  %v2995_v28 = vadd.f32 %v9889_v3, %v2654_v27  ;;  %v2962_v3 = vpop.f32.mrf.mxu0  ;;  %v3186_v10 = vpop.f32.mrf.mxu1  ;;  %v3220_v38 = vadd.f32 %v3183_v34, %v12403_v36  ;;  %v12406_v27 = vld [vmem:[#allocation62_spill] sm:$0xff]  ;;  %v12411_v39 = vld [vmem:[#allocation65_spill] sm:$0xff] }
 0x48e   : > { %v3746_v44 = vadd.f32 %v9542_v12, %v3559_v60  ;;  %v3905_v45 = vmax.f32 %v3721_v1, %v3882_v62  ;;  %v3219_v12 = vadd.f32 %v9891_v6, %v12399_v4  ;;  %v2655_v6 = vadd.f32 %v12402_v61, %v2238_v50  ;;  %v12408_v50 = vld [vmem:[#allocation46_spill] sm:$0xff] }
 0x48f   : > { %v3631_v8 = vmin.f32 %v3585_v53, 0.0  ;;  %v9926_v7 = vld [vmem:[#allocation3 + $0x51] ss:$2 sm:$0xff]  ;;  %v3958_v31 = vld [vmem:[#allocation3 + $0x50] ss:$2 sm:$0xff]  ;;  %vm3608_vm2 = vcmp.gt.f32.partialorder %v3585_v53, 0.0  ;;  %v2656_v62 = vadd.f32 %v12406_v27, %v2241_v37 }
 0x490   : > { %v3792_v11 = vmin.f32 %v3746_v44, 0.0  ;;  %3929 = vst.msk [vmem:[#allocation3 + $0x60] sm:$0xff] %vm3916_vm13, %v3905_v45  ;;  %7260 = vmatmul.msk.f32.gmra.mxu0 %vm3916_vm13, %v9926_v7  ;;  %7273 = vmatmul.msk.f32.gmra.mxu1 %vm3916_vm13, %v3958_v31  ;;  %v2996_v0 = vadd.f32 %v2959_v30, %v2655_v6  ;;  %vm3769_vm12 = vcmp.gt.f32.partialorder %v3746_v44, 0.0 }
 0x491   : > { %v7995_v41 = vpop.eup %7994  ;;  %v3668_v24 = vmul.f32 1.442695, %v3631_v8 }
 0x492   : > { %v3829_v15 = vmul.f32 1.442695, %v3792_v11  ;;  %v7997_v18 = vpop.eup %7996  ;;  %v7214_v29 = vadd.f32 -1.0, %v7995_v41  ;;  %v3297_v22 = vpop.f32.mrf.mxu2 }
 0x493   : > { %v3521_v20 = vpop.f32.mrf.mxu3  ;;  %v7237_v56 = vadd.f32 -1.0, %v7997_v18  ;;  %7998 = vpow2.f32 %v3668_v24  ;;  %v3336_v51 = vadd.f32 %v3297_v22, %v2995_v28  ;;  %v12407_v18 = vld [vmem:[#allocation63_spill] sm:$0xff] }
 0x494   : > { %v3560_v21 = vadd.f32 %v3521_v20, %v3219_v12  ;;  %v3722_v40 = vsel %vm3607_vm10, %v3584_v63, %v7214_v29  ;;  %8000 = vpow2.f32 %v3829_v15  ;;  %v2997_v12 = vadd.f32 %v2962_v3, %v2656_v62  ;;  %v12409_v29 = vld [vmem:[#allocation47_spill] sm:$0xff] }
 0x495   : > { %v3883_v5 = vsel %vm3768_vm11, %v9904_v57, %v7237_v56  ;;  %v3586_v43 = vadd.f32 %v9943_v33, %v3336_v51  ;;  %v2965_v11 = vpop.f32.mrf.mxu0  ;;  %v3189_v31 = vpop.f32.mrf.mxu1  ;;  %v3221_v49 = vadd.f32 %v3186_v10, %v12407_v18  ;;  %v2244_v22 = vadd.f32 %v12409_v29, %v12408_v50  ;;  %v12415_v50 = vld [vmem:[#allocation67_spill] sm:$0xff] }
 0x496   : > { %v3747_v35 = vadd.f32 %v9943_v33, %v3560_v21  ;;  %v3906_v42 = vmax.f32 %v3722_v40, %v3883_v5  ;;  %v12410_v5 = vld [vmem:[#allocation64_spill] sm:$0xff]  ;;  %v3222_v37 = vadd.f32 %v3189_v31, %v12411_v39 }
 0x497   : > { %v3632_v63 = vmin.f32 %v3586_v43, 0.0  ;;  %v9947_v58 = vld [vmem:[#allocation3 + $0x52] ss:$2 sm:$0xff]  ;;  %v9952_v57 = vld [vmem:[#allocation3 + $0x53] ss:$2 sm:$0xff]  ;;  %vm3609_vm14 = vcmp.gt.f32.partialorder %v3586_v43, 0.0 }
 0x498   : > { %v3793_v46 = vmin.f32 %v3747_v35, 0.0  ;;  %3930 = vst.msk [vmem:[#allocation3 + $0x68] sm:$0xff] %vm3916_vm13, %v3906_v42  ;;  %7319 = vmatmul.msk.f32.gmra.mxu2 %vm3916_vm13, %v9947_v58  ;;  %7332 = vmatmul.msk.f32.gmra.mxu3 %vm3916_vm13, %v9952_v57  ;;  %vm3770_vm15 = vcmp.gt.f32.partialorder %v3747_v35, 0.0  ;;  %v2657_v42 = vadd.f32 %v12410_v5, %v2244_v22 }
 0x499   : > { %v7999_v54 = vpop.eup %7998  ;;  %v3670_v17 = vmul.f32 1.442695, %v3632_v63 }
 0x49a   : > { %v3831_v14 = vmul.f32 1.442695, %v3793_v46  ;;  %v8001_v48 = vpop.eup %8000  ;;  %v7215_v52 = vadd.f32 -1.0, %v7999_v54  ;;  %v3300_v59 = vpop.f32.mrf.mxu2  ;;  %v2998_v23 = vadd.f32 %v2965_v11, %v2657_v42 }
 0x49b   : > { %v3524_v25 = vpop.f32.mrf.mxu3  ;;  %v7238_v13 = vadd.f32 -1.0, %v8001_v48  ;;  %8002 = vpow2.f32 %v3670_v17  ;;  %v3337_v60 = vadd.f32 %v3300_v59, %v2996_v0  ;;  %v12412_v59 = vld [vmem:[#allocation48_spill] sm:$0xff] }
 0x49c   : > { %v3561_v1 = vadd.f32 %v3524_v25, %v3220_v38  ;;  %v3723_v9 = vsel %vm3608_vm2, %v3585_v53, %v7215_v52  ;;  %8004 = vpow2.f32 %v3831_v14  ;;  %v12413_v25 = vld [vmem:[#allocation49_spill] sm:$0xff] }
 0x49d   : > { %v3884_v30 = vsel %vm3769_vm12, %v3746_v44, %v7238_v13  ;;  %v3587_v34 = vadd.f32 %v9943_v33, %v3337_v60  ;;  %v3192_v36 = vpop.f32.mrf.mxu1  ;;  %v2247_v13 = vadd.f32 %v12413_v25, %v12412_v59 }
 0x49e   : > { %v9962_v45 = vadd.f32 %v9943_v33, %v3561_v1  ;;  %v3907_v8 = vmax.f32 %v3723_v9, %v3884_v30  ;;  %v3223_v29 = vadd.f32 %v3192_v36, %v12415_v50 }
 0x49f   : > { %v3633_v41 = vmin.f32 %v3587_v34, 0.0  ;;  %v9965_v15 = vld [vmem:[#allocation3 + $0x61] ss:$2 sm:$0xff]  ;;  %v3960_v53 = vld [vmem:[#allocation3 + $0x60] ss:$2 sm:$0xff]  ;;  %vm3610_vm1 = vcmp.gt.f32.partialorder %v3587_v34, 0.0 }
 0x4a0   : > { %v3794_v24 = vmin.f32 %v9962_v45, 0.0  ;;  %3931 = vst.msk [vmem:[#allocation3 + $0x70] sm:$0xff] %vm3916_vm13, %v3907_v8  ;;  %7261 = vmatmul.msk.f32.gmra.mxu0 %vm3916_vm13, %v9965_v15  ;;  %7274 = vmatmul.msk.f32.gmra.mxu1 %vm3916_vm13, %v3960_v53  ;;  %vm3771_vm3 = vcmp.gt.f32.partialorder %v9962_v45, 0.0 }
 0x4a1   : > { %v8003_v44 = vpop.eup %8002  ;;  %v3672_v28 = vmul.f32 1.442695, %v3633_v41  ;;  %v12414_v41 = vld [vmem:[#allocation66_spill] sm:$0xff] }
 0x4a2   : > { %v3833_v4 = vmul.f32 1.442695, %v3794_v24  ;;  %v8005_v16 = vpop.eup %8004  ;;  %v7216_v20 = vadd.f32 -1.0, %v8003_v44  ;;  %v3303_v56 = vpop.f32.mrf.mxu2  ;;  %v2658_v11 = vadd.f32 %v12414_v41, %v2247_v13  ;;  %v12419_v13 = vld [vmem:[#allocation69_spill] sm:$0xff] }
 0x4a3   : > { %v3527_v51 = vpop.f32.mrf.mxu3  ;;  %v7239_v21 = vadd.f32 -1.0, %v8005_v16  ;;  %8006 = vpow2.f32 %v3672_v28  ;;  %v3338_v40 = vadd.f32 %v3303_v56, %v2997_v12  ;;  %v12417_v56 = vld [vmem:[#allocation51_spill] sm:$0xff] }
 0x4a4   : > { %v3562_v61 = vadd.f32 %v3527_v51, %v3221_v49  ;;  %v3724_v6 = vsel %vm3609_vm14, %v3586_v43, %v7216_v20  ;;  %8008 = vpow2.f32 %v3833_v4  ;;  %v12416_v20 = vld [vmem:[#allocation50_spill] sm:$0xff] }
 0x4a5   : > { %v3885_v3 = vsel %vm3770_vm15, %v3747_v35, %v7239_v21  ;;  %v3588_v10 = vadd.f32 %v9943_v33, %v3338_v40  ;;  %v2968_v35 = vpop.f32.mrf.mxu0  ;;  %v2250_v51 = vadd.f32 %v12417_v56, %v12416_v20  ;;  %vm5248_vm15 = vcmask 1043456  }
 0x4a6   : > { %v9977_v63 = vadd.f32 %v9943_v33, %v3562_v61  ;;  %v3908_v46 = vmax.f32 %v3724_v6, %v3885_v3 }
 0x4a7   : > { %v3634_v54 = vmin.f32 %v3588_v10, 0.0  ;;  %v9980_v14 = vld [vmem:[#allocation3 + $0x62] ss:$2 sm:$0xff]  ;;  %v9985_v43 = vld [vmem:[#allocation3 + $0x63] ss:$2 sm:$0xff]  ;;  %vm3611_vm4 = vcmp.gt.f32.partialorder %v3588_v10, 0.0 }
 0x4a8   : > { %v3795_v17 = vmin.f32 %v9977_v63, 0.0  ;;  %3932 = vst.msk [vmem:[#allocation3 + $0x78] sm:$0xff] %vm3916_vm13, %v3908_v46  ;;  %7320 = vmatmul.msk.f32.gmra.mxu2 %vm3916_vm13, %v9980_v14  ;;  %7333 = vmatmul.msk.f32.gmra.mxu3 %vm3916_vm13, %v9985_v43  ;;  %v3195_v46 = vpop.f32.mrf.mxu1  ;;  %vm3772_vm6 = vcmp.gt.f32.partialorder %v9977_v63, 0.0 }
 0x4a9   : > { %v8007_v0 = vpop.eup %8006  ;;  %v3674_v38 = vmul.f32 1.442695, %v3634_v54 }
 0x4aa   : > { %v3835_v48 = vmul.f32 1.442695, %v3795_v17  ;;  %v8009_v52 = vpop.eup %8008  ;;  %v7217_v60 = vadd.f32 -1.0, %v8007_v0  ;;  %v3306_v1 = vpop.f32.mrf.mxu2  ;;  %v12418_v17 = vld [vmem:[#allocation68_spill] sm:$0xff] }
 0x4ab   : > { %v3530_v9 = vpop.f32.mrf.mxu3  ;;  %v7240_v27 = vadd.f32 -1.0, %v8009_v52  ;;  %8010 = vpow2.f32 %v3674_v38  ;;  %v3339_v62 = vadd.f32 %v3306_v1, %v2998_v23  ;;  %v2659_v0 = vadd.f32 %v12418_v17, %v2250_v51 }
 0x4ac   : > { %v3563_v30 = vadd.f32 %v3530_v9, %v3222_v37  ;;  %v3725_v8 = vsel %vm3610_vm1, %v3587_v34, %v7217_v60  ;;  %8012 = vpow2.f32 %v3835_v48  ;;  %v3224_v60 = vadd.f32 %v3195_v46, %v12419_v13  ;;  %v12420_v9 = vld [vmem:[#allocation52_spill] sm:$0xff] }
 0x4ad   : > { %v3886_v31 = vsel %vm3771_vm3, %v9962_v45, %v7240_v27  ;;  %v3589_v24 = vadd.f32 %v9943_v33, %v3339_v62  ;;  %v2999_v45 = vadd.f32 %v2968_v35, %v2658_v11  ;;  %v2971_v3 = vpop.f32.mrf.mxu0  ;;  %v12421_v27 = vld [vmem:[#allocation53_spill] sm:$0xff]  ;;  %vm5139_vm3 = vcmask 818176  }
 0x4ae   : > { %v3750_v53 = vadd.f32 %v9943_v33, %v3563_v30  ;;  %v3909_v44 = vmax.f32 %v3725_v8, %v3886_v31  ;;  %v2253_v62 = vadd.f32 %v12421_v27, %v12420_v9  ;;  %v12424_v27 = vld [vmem:[#allocation72_spill] sm:$0xff] }
 0x4af   : > { %v3635_v28 = vmin.f32 %v3589_v24, 0.0  ;;  %v9997_v12 = vld [vmem:[#allocation3 + $0x71] ss:$2 sm:$0xff]  ;;  %v3962_v34 = vld [vmem:[#allocation3 + $0x70] ss:$2 sm:$0xff]  ;;  %vm3612_vm7 = vcmp.gt.f32.partialorder %v3589_v24, 0.0 }
 0x4b0   : > { %v3796_v4 = vmin.f32 %v3750_v53, 0.0  ;;  %3933 = vst.msk [vmem:[#allocation3 + $0x80] sm:$0xff] %vm3916_vm13, %v3909_v44  ;;  %7262 = vmatmul.msk.f32.gmra.mxu0 %vm3916_vm13, %v9997_v12  ;;  %7275 = vmatmul.msk.f32.gmra.mxu1 %vm3916_vm13, %v3962_v34  ;;  %vm3773_vm5 = vcmp.gt.f32.partialorder %v3750_v53, 0.0  ;;  %v3198_v50 = vpop.f32.mrf.mxu1 }
 0x4b1   : > { %v8011_v18 = vpop.eup %8010  ;;  %v3676_v49 = vmul.f32 1.442695, %v3635_v28 }
 0x4b2   : > { %v3837_v16 = vmul.f32 1.442695, %v3796_v4  ;;  %v8013_v22 = vpop.eup %8012  ;;  %v7218_v21 = vadd.f32 -1.0, %v8011_v18  ;;  %v3309_v40 = vpop.f32.mrf.mxu2  ;;  %v12422_v4 = vld [vmem:[#allocation70_spill] sm:$0xff] }
 0x4b3   : > { %v3533_v61 = vpop.f32.mrf.mxu3  ;;  %v7241_v6 = vadd.f32 -1.0, %v8013_v22  ;;  %8014 = vpow2.f32 %v3676_v49  ;;  %v3340_v5 = vadd.f32 %v3309_v40, %v2999_v45  ;;  %v2660_v34 = vadd.f32 %v12422_v4, %v2253_v62 }
 0x4b4   : > { %v3564_v42 = vadd.f32 %v3533_v61, %v3223_v29  ;;  %v3726_v54 = vsel %vm3611_vm4, %v3588_v10, %v7218_v21  ;;  %8016 = vpow2.f32 %v3837_v16  ;;  %v12423_v61 = vld [vmem:[#allocation71_spill] sm:$0xff] }
 0x4b5   : > { %v3887_v35 = vsel %vm3772_vm6, %v9977_v63, %v7241_v6  ;;  %v3590_v36 = vadd.f32 %v9943_v33, %v3340_v5  ;;  %v3000_v63 = vadd.f32 %v2971_v3, %v2659_v0  ;;  %v2974_v45 = vpop.f32.mrf.mxu0  ;;  %v3225_v6 = vadd.f32 %v3198_v50, %v12423_v61 }
 0x4b6   : > { %v3751_v38 = vadd.f32 %v9943_v33, %v3564_v42  ;;  %v3910_v48 = vmax.f32 %v3726_v54, %v3887_v35  ;;  %v3001_v40 = vadd.f32 %v2974_v45, %v2660_v34  ;;  %v7378_v45 = vld [vmem:[%s12275_s5 + $0x110] sm:$0x3] }
 0x4b7   : > { %v3636_v23 = vmin.f32 %v3590_v36, 0.0  ;;  %v10011_v37 = vld [vmem:[#allocation3 + $0x72] ss:$2 sm:$0xff]  ;;  %v10016_v10 = vld [vmem:[#allocation3 + $0x73] ss:$2 sm:$0xff]  ;;  %vm3613_vm8 = vcmp.gt.f32.partialorder %v3590_v36, 0.0  ;;  %7379 = vmatpush.msk.msrb.mxu2 %vm719_vm0, %v7378_v45  ;;  %7392 = vmatpush.msk.msrb.mxu3 %vm719_vm0, %v7378_v45 }
 0x4b8   : > { %v3797_v39 = vmin.f32 %v3751_v38, 0.0  ;;  %3934 = vst.msk [vmem:[#allocation3 + $0x88] sm:$0xff] %vm3916_vm13, %v3910_v48  ;;  %7321 = vmatmul.msk.f32.gmra.mxu2 %vm3916_vm13, %v10011_v37  ;;  %7334 = vmatmul.msk.f32.gmra.mxu3 %vm3916_vm13, %v10016_v10  ;;  %vm3774_vm9 = vcmp.gt.f32.partialorder %v3751_v38, 0.0  ;;  %v8170_v45 = vld [vmem:[#allocation3 + $0x12] ss:$2 sm:$0xff] }
 0x4b9   : > { %v8015_v52 = vpop.eup %8014  ;;  %v3678_v59 = vmul.f32 1.442695, %v3636_v23 }
 0x4ba   : > { %v3839_v25 = vmul.f32 1.442695, %v3797_v39  ;;  %v8017_v1 = vpop.eup %8016  ;;  %v7219_v30 = vadd.f32 -1.0, %v8015_v52  ;;  %v3312_v8 = vpop.f32.mrf.mxu2 }
 0x4bb   : > { %v3536_v41 = vpop.f32.mrf.mxu3  ;;  %v7242_v11 = vadd.f32 -1.0, %v8017_v1  ;;  %8018 = vpow2.f32 %v3678_v59  ;;  %v3341_v31 = vadd.f32 %v3312_v8, %v3000_v63 }
 0x4bc   : > { %v3565_v44 = vadd.f32 %v3536_v41, %v3224_v60  ;;  %v3727_v28 = vsel %vm3612_vm7, %v3589_v24, %v7219_v30  ;;  %8020 = vpow2.f32 %v3839_v25  ;;  %v3201_v60 = vpop.f32.mrf.mxu1  ;;  %v12425_v30 = vld [vmem:[#allocation73_spill] sm:$0xff] }
 0x4bd   : > { %v3888_v18 = vsel %vm3773_vm5, %v3750_v53, %v7242_v11  ;;  %v3591_v49 = vadd.f32 %v9943_v33, %v3341_v31  ;;  %v2977_v13 = vpop.f32.mrf.mxu0  ;;  %v3226_v8 = vadd.f32 %v3201_v60, %v12425_v30  ;;  %v7344_v30 = vld [vmem:[%s12275_s5 + $0xd0] sm:$0xff] }
 0x4be   : > { %v3752_v16 = vadd.f32 %v9943_v33, %v3565_v44  ;;  %v3911_v29 = vmax.f32 %v3727_v28, %v3888_v18  ;;  %v3002_v62 = vadd.f32 %v2977_v13, %v12424_v27 }
 0x4bf   : > { %v3637_v22 = vmin.f32 %v3591_v49, 0.0  ;;  %v10026_v56 = vld [vmem:[#allocation3 + $0x81] ss:$2 sm:$0xff]  ;;  %v3964_v24 = vld [vmem:[#allocation3 + $0x80] ss:$2 sm:$0xff]  ;;  %vm3614_vm10 = vcmp.gt.f32.partialorder %v3591_v49, 0.0 }
 0x4c0   : > { %v3798_v20 = vmin.f32 %v3752_v16, 0.0  ;;  %3935 = vst.msk [vmem:[#allocation3 + $0x90] sm:$0xff] %vm3916_vm13, %v3911_v29  ;;  %7263 = vmatmul.msk.f32.gmra.mxu0 %vm3916_vm13, %v10026_v56  ;;  %7276 = vmatmul.msk.f32.gmra.mxu1 %vm3916_vm13, %v3964_v24  ;;  %vm3775_vm11 = vcmp.gt.f32.partialorder %v3752_v16, 0.0 }
 0x4c1   : > { %v8019_v51 = vpop.eup %8018  ;;  %v3680_v21 = vmul.f32 1.442695, %v3637_v22 }
 0x4c2   : > { %v3841_v53 = vmul.f32 1.442695, %v3798_v20  ;;  %v8021_v5 = vpop.eup %8020  ;;  %v7220_v42 = vadd.f32 -1.0, %v8019_v51  ;;  %v3315_v3 = vpop.f32.mrf.mxu2 }
 0x4c3   : > { %v3539_v46 = vpop.f32.mrf.mxu3  ;;  %v7243_v54 = vadd.f32 -1.0, %v8021_v5  ;;  %8022 = vpow2.f32 %v3680_v21  ;;  %v3342_v17 = vadd.f32 %v3315_v3, %v3001_v40  ;;  %v7375_v3 = vld [vmem:[%s12275_s5 + $0xf8] sm:$0xff] }
 0x4c4   : > { %v3566_v0 = vadd.f32 %v3539_v46, %v3225_v6  ;;  %v3728_v35 = vsel %vm3613_vm8, %v3590_v36, %v7220_v42  ;;  %8024 = vpow2.f32 %v3841_v53  ;;  %v7345_v6 = vld [vmem:[%s12275_s5 + $0xd8] sm:$0x3]  ;;  %v7374_v46 = vld [vmem:[%s12275_s5 + $0xf0] sm:$0xff] }
 0x4c5   : > { %v3889_v48 = vsel %vm3774_vm9, %v3751_v38, %v7243_v54  ;;  %v10034_v23 = vadd.f32 %v9943_v33, %v3342_v17  ;;  %7346 = vmatpush.msk.msra.mxu0 %vm719_vm0, %v7345_v6  ;;  %7359 = vmatpush.msk.msra.mxu1 %vm719_vm0, %v7345_v6 }
 0x4c6   : > { %v10037_v39 = vadd.f32 %v9943_v33, %v3566_v0  ;;  %v3912_v52 = vmax.f32 %v3728_v35, %v3889_v48  ;;  %v7373_v0 = vld [vmem:[%s12275_s5 + $0xe8] sm:$0xff] }
 0x4c7   : > { %v3638_v59 = vmin.f32 %v10034_v23, 0.0  ;;  %v10041_v63 = vld [vmem:[#allocation3 + $0x82] ss:$2 sm:$0xff]  ;;  %v10046_v36 = vld [vmem:[#allocation3 + $0x83] ss:$2 sm:$0xff]  ;;  %vm3615_vm2 = vcmp.gt.f32.partialorder %v10034_v23, 0.0  ;;  %4575 = vmatpush.msra.mxu0 %v7344_v30  ;;  %4700 = vmatpush.msra.mxu1 %v7344_v30 }
 0x4c8   : > { %v3799_v25 = vmin.f32 %v10037_v39, 0.0  ;;  %3936 = vst.msk [vmem:[#allocation3 + $0x98] sm:$0xff] %vm3916_vm13, %v3912_v52  ;;  %7322 = vmatmul.msk.f32.gmra.mxu2 %vm3916_vm13, %v10041_v63  ;;  %7335 = vmatmul.msk.f32.gmra.mxu3 %vm3916_vm13, %v10046_v36  ;;  %vm3776_vm12 = vcmp.gt.f32.partialorder %v10037_v39, 0.0  ;;  %v7372_v52 = vld [vmem:[%s12275_s5 + $0xe0] sm:$0xff] }
 0x4c9   : > { %v8023_v38 = vpop.eup %8022  ;;  %v3682_v1 = vmul.f32 1.442695, %v3638_v59 }
 0x4ca   : > { %v3843_v9 = vmul.f32 1.442695, %v3799_v25  ;;  %v8025_v41 = vpop.eup %8024  ;;  %v7221_v11 = vadd.f32 -1.0, %v8023_v38  ;;  %v3318_v31 = vpop.f32.mrf.mxu2 }
 0x4cb   : > { %v3542_v44 = vpop.f32.mrf.mxu3  ;;  %v7244_v28 = vadd.f32 -1.0, %v8025_v41  ;;  %8026 = vpow2.f32 %v3682_v1  ;;  %v3343_v4 = vadd.f32 %v3318_v31, %v3002_v62 }
 0x4cc   : > { %v3567_v34 = vadd.f32 %v3542_v44, %v3226_v8  ;;  %v3729_v18 = vsel %vm3614_vm10, %v3591_v49, %v7221_v11  ;;  %8028 = vpow2.f32 %v3843_v9  ;;  %v7377_v49 = vld [vmem:[%s12275_s5 + $0x108] sm:$0xff] }
 0x4cd   : > { %v3890_v50 = vsel %vm3775_vm11, %v3752_v16, %v7244_v28  ;;  %v3593_v29 = vadd.f32 %v9943_v33, %v3343_v4  ;;  %4776 = vmatpush.msrb.mxu2 %v7377_v49  ;;  %4901 = vmatpush.msrb.mxu3 %v7377_v49  ;;  %v7376_v16 = vld [vmem:[%s12275_s5 + $0x100] sm:$0xff]  ;;  %v7343_v44 = vld [vmem:[%s12275_s5 + $0xc8] sm:$0xff] }
 0x4ce   : > { %v3754_v22 = vadd.f32 %v9943_v33, %v3567_v34  ;;  %v3913_v20 = vmax.f32 %v3729_v18, %v3890_v50  ;;  %4576 = vmatpush.msra.mxu0 %v7343_v44  ;;  %4701 = vmatpush.msra.mxu1 %v7343_v44  ;;  %v8168_v28 = vld [vmem:[#allocation3 + $0x2] ss:$2 sm:$0xff]  ;;  %v8169_v4 = vld [vmem:[#allocation3 + $0x1] ss:$2 sm:$0xff]  ;;  %v8171_v50 = vld [vmem:[#allocation3 + $0x11] ss:$2 sm:$0xff] }
 0x4cf   : > { %v3639_v24 = vmin.f32 %v3593_v29, 0.0  ;;  %v10062_v21 = vld [vmem:[#allocation3 + $0x91] ss:$2 sm:$0xff]  ;;  %v3966_v33 = vld [vmem:[#allocation3 + $0x90] ss:$2 sm:$0xff]  ;;  %4777 = vmatpush.msrb.mxu2 %v7376_v16  ;;  %4902 = vmatpush.msrb.mxu3 %v7376_v16  ;;  %vm3616_vm0 = vcmp.gt.f32.partialorder %v3593_v29, 0.0 }
 0x4d0   : > { %v3800_v51 = vmin.f32 %v3754_v22, 0.0  ;;  %3937 = vst.msk [vmem:[#allocation3 + $0xa0] sm:$0xff] %vm3916_vm13, %v3913_v20  ;;  %7264 = vmatmul.msk.f32.gmra.mxu0 %vm3916_vm13, %v10062_v21  ;;  %7277 = vmatmul.msk.f32.gmra.mxu1 %vm3916_vm13, %v3966_v33  ;;  %vm3777_vm14 = vcmp.gt.f32.partialorder %v3754_v22, 0.0  ;;  %v7342_v20 = vld [vmem:[%s12275_s5 + $0xc0] sm:$0xff]  ;;  %v7341_v33 = vld [vmem:[%s12275_s5 + $0xb8] sm:$0xff] }
 0x4d1   : > { %v8027_v53 = vpop.eup %8026  ;;  %v3684_v40 = vmul.f32 1.442695, %v3639_v24  ;;  %4778 = vmatpush.msrb.mxu2 %v7375_v3  ;;  %4903 = vmatpush.msrb.mxu3 %v7375_v3  ;;  %v8172_v49 = vld [vmem:[#allocation3 + $0x21] ss:$2 sm:$0xff]  ;;  %v10149_v24 = vld [vmem:[#allocation3 + $0x14] ss:$2 sm:$0xff] }
 0x4d2   : > { %v3845_v61 = vmul.f32 1.442695, %v3800_v51  ;;  %v8029_v5 = vpop.eup %8028  ;;  %v7222_v42 = vadd.f32 -1.0, %v8027_v53  ;;  %4577 = vmatpush.msra.mxu0 %v7342_v20  ;;  %4702 = vmatpush.msra.mxu1 %v7342_v20  ;;  %v4834_v51 = vld [vmem:[#allocation3 + $0x15] ss:$2 sm:$0xff]  ;;  %v10166_v53 = vpop.f32.mrf.mxu0 }
 0x4d3   : > { %v7245_v54 = vadd.f32 -1.0, %v8029_v5  ;;  %8030 = vpow2.f32 %v3684_v40  ;;  %4779 = vmatpush.msrb.mxu2 %v7374_v46  ;;  %4904 = vmatpush.msrb.mxu3 %v7374_v46  ;;  %v4836_v16 = vld [vmem:[#allocation3 + $0x25] ss:$2 sm:$0xff]  ;;  %v10168_v40 = vpop.f32.mrf.mxu1 }
 0x4d4   : > { %v3730_v17 = vsel %vm3615_vm2, %v10034_v23, %v7222_v42  ;;  %8032 = vpow2.f32 %v3845_v61  ;;  %4578 = vmatpush.msra.mxu0 %v7341_v33  ;;  %4703 = vmatpush.msra.mxu1 %v7341_v33  ;;  %v7340_v61 = vld [vmem:[%s12275_s5 + $0xb0] sm:$0xff]  ;;  %v4840_v5 = vld [vmem:[#allocation3 + $0x45] ss:$2 sm:$0xff] }
 0x4d5   : > { %v3891_v35 = vsel %vm3776_vm12, %v10037_v39, %v7245_v54  ;;  %4780 = vmatpush.msrb.mxu2 %v7373_v0  ;;  %4905 = vmatpush.msrb.mxu3 %v7373_v0  ;;  %v7339_v46 = vld [vmem:[%s12275_s5 + $0xa8] sm:$0xff] }
 0x4d6   : > { %v3914_v48 = vmax.f32 %v3730_v17, %v3891_v35  ;;  %4579 = vmatpush.msra.mxu0 %v7340_v61  ;;  %4704 = vmatpush.msra.mxu1 %v7340_v61  ;;  %v4844_v17 = vld [vmem:[#allocation3 + $0x65] ss:$2 sm:$0xff] }
 0x4d7   : > { %v10092_v59 = vld [vmem:[#allocation3 + $0x92] ss:$2 sm:$0xff]  ;;  %v10094_v23 = vld [vmem:[#allocation3 + $0x93] ss:$2 sm:$0xff]  ;;  %4781 = vmatpush.msrb.mxu2 %v7372_v52  ;;  %4906 = vmatpush.msrb.mxu3 %v7372_v52 }
 0x4d8   : > { %3938 = vst.msk [vmem:[#allocation3 + $0xa8] sm:$0xff] %vm3916_vm13, %v3914_v48  ;;  %7323 = vmatmul.msk.f32.gmra.mxu2 %vm3916_vm13, %v10092_v59  ;;  %7336 = vmatmul.msk.f32.gmra.mxu3 %vm3916_vm13, %v10094_v23  ;;  %v8176_v33 = vld [vmem:[#allocation3 + $0x33] ss:$2 sm:$0xff] }
 0x4d9   : > { %v8031_v39 = vpop.eup %8030  ;;  %4580 = vmatpush.msra.mxu0 %v7339_v46  ;;  %4705 = vmatpush.msra.mxu1 %v7339_v46 }
 0x4da   : > { %v8033_v25 = vpop.eup %8032  ;;  %v7223_v13 = vadd.f32 -1.0, %v8031_v39  ;;  %v10182_v6 = vpop.f32.mrf.mxu0 }
 0x4db   : > { %v7246_v60 = vadd.f32 -1.0, %v8033_v25 }
 0x4dc   : > { %v3731_v38 = vsel %vm3616_vm0, %v3593_v29, %v7223_v13  ;;  %v10138_v29 = vld [vmem:[#allocation3 + $0x4] ss:$2 sm:$0xff] }
 0x4dd   : > { %v3892_v1 = vsel %vm3777_vm14, %v3754_v22, %v7246_v60  ;;  %v4832_v22 = vld [vmem:[#allocation3 + $0x5] ss:$2 sm:$0xff] }
 0x4de   : > { %v3915_v9 = vmax.f32 %v3731_v38, %v3892_v1 }
 0x4df   : > { %v10101_v27 = vld [vmem:[#allocation3 + $0xa1] ss:$2 sm:$0xff]  ;;  %v3968_v62 = vld [vmem:[#allocation3 + $0xa0] ss:$2 sm:$0xff] }
 0x4e0   : > { %3939 = vst.msk [vmem:[#allocation3 + $0xb0] sm:$0xff] %vm3916_vm13, %v3915_v9  ;;  %7265 = vmatmul.msk.f32.gmra.mxu0 %vm3916_vm13, %v10101_v27  ;;  %7278 = vmatmul.msk.f32.gmra.mxu1 %vm3916_vm13, %v3968_v62  ;;  %v8173_v62 = vld [vmem:[#allocation3 + $0x3] ss:$2 sm:$0xff] }
 0x4e2   : > { %v10195_v42 = vpop.f32.mrf.mxu0 }
 0x4e7   : > { %v10110_v8 = vld [vmem:[#allocation3 + $0xb1] ss:$2 sm:$0x3]  ;;  %v3970_v41 = vld [vmem:[#allocation3 + $0xb0] ss:$2 sm:$0x3] }
 0x4e8   : > { %7266 = vmatmul.msk.f32.gmra.mxu0 %vm3916_vm13, %v10110_v8  ;;  %7279 = vmatmul.msk.f32.gmra.mxu1 %vm3916_vm13, %v3970_v41  ;;  %v10115_v11 = vld [vmem:[#allocation3 + $0xa2] ss:$2 sm:$0xff]  ;;  %v10117_v31 = vld [vmem:[#allocation3 + $0xa3] ss:$2 sm:$0xff]  ;;  %v10288_v41 = vpop.f32.mrf.mxu2 }
 0x4e9   : > { %7324 = vmatmul.msk.f32.gmra.mxu2 %vm3916_vm13, %v10115_v11  ;;  %7337 = vmatmul.msk.f32.gmra.mxu3 %vm3916_vm13, %v10117_v31  ;;  %v10128_v34 = vld [vmem:[#allocation3 + $0xb2] ss:$2 sm:$0x3]  ;;  %v10130_v18 = vld [vmem:[#allocation3 + $0xb3] ss:$2 sm:$0x3] }
 0x4ea   : > { %v10271_v38 = vld [vmem:[#allocation3 + $0xa4] ss:$2 sm:$0xff]  ;;  %v4852_v1 = vld [vmem:[#allocation3 + $0xa5] ss:$2 sm:$0xff] }
 0x4eb   : > { %v10283_v30 = vld [vmem:[#allocation3 + $0xb4] ss:$2 sm:$0x3] }
 0x4ed   : > { %v10211_v54 = vpop.f32.mrf.mxu0 }
 0x4f0   : > { %7281 = vmatmul.msk.f32.vlgmr.msrb.gmra.mxu0 %vm3916_vm13, %v8168_v28  ;;  %7294 = vmatmul.msk.f32.vlgmr.msrb.gmra.mxu1 %vm3916_vm13, %v8169_v4  ;;  %v8174_v4 = vld [vmem:[#allocation3 + $0x13] ss:$2 sm:$0xff] }
 0x4f1   : > { %7325 = vmatmul.msk.f32.gmra.mxu2 %vm3916_vm13, %v10128_v34  ;;  %7338 = vmatmul.msk.f32.gmra.mxu3 %vm3916_vm13, %v10130_v18 }
 0x4f8   : > { %7282 = vmatmul.msk.f32.gmra.mxu0 %vm3916_vm13, %v8170_v45  ;;  %7295 = vmatmul.msk.f32.gmra.mxu1 %vm3916_vm13, %v8171_v50 }
 0x4f9   : > { %7380 = vmatmul.msk.f32.vlgmr.msrb.gmra.mxu2 %vm3916_vm13, %v10138_v29  ;;  %7393 = vmatmul.msk.f32.vlgmr.msrb.gmra.mxu3 %vm3916_vm13, %v4832_v22  ;;  %v8175_v22 = vld [vmem:[#allocation3 + $0x23] ss:$2 sm:$0xff] }
 0x4fd   : > { %v10224_v0 = vpop.f32.mrf.mxu0 }
 0x500   : > { %7283 = vmatmul.msk.f32.gmra.mxu0 %vm3916_vm13, %v9826_v19  ;;  %7296 = vmatmul.msk.f32.gmra.mxu1 %vm3916_vm13, %v8172_v49  ;;  %v10161_v19 = vld [vmem:[#allocation3 + $0x24] ss:$2 sm:$0xff] }
 0x501   : > { %7381 = vmatmul.msk.f32.gmra.mxu2 %vm3916_vm13, %v10149_v24  ;;  %7394 = vmatmul.msk.f32.gmra.mxu3 %vm3916_vm13, %v4834_v51 }
 0x508   : > { %7284 = vmatmul.msk.f32.gmra.mxu0 %vm3916_vm13, %v9867_v32  ;;  %7297 = vmatmul.msk.f32.gmra.mxu1 %vm3916_vm13, %v9846_v26  ;;  %v10174_v32 = vld [vmem:[#allocation3 + $0x34] ss:$2 sm:$0xff]  ;;  %v4838_v26 = vld [vmem:[#allocation3 + $0x35] ss:$2 sm:$0xff] }
 0x509   : > { %7382 = vmatmul.msk.f32.gmra.mxu2 %vm3916_vm13, %v10161_v19  ;;  %7395 = vmatmul.msk.f32.gmra.mxu3 %vm3916_vm13, %v4836_v16 }
 0x50d   : > { %v10237_v48 = vpop.f32.mrf.mxu0 }
 0x510   : > { %7285 = vmatmul.msk.f32.gmra.mxu0 %vm3916_vm13, %v9907_v47  ;;  %7298 = vmatmul.msk.f32.gmra.mxu1 %vm3916_vm13, %v9884_v2  ;;  %v10184_v47 = vpop.f32.mrf.mxu1  ;;  %v10190_v2 = vld [vmem:[#allocation3 + $0x44] ss:$2 sm:$0xff] }
 0x511   : > { %7383 = vmatmul.msk.f32.gmra.mxu2 %vm3916_vm13, %v10174_v32  ;;  %7396 = vmatmul.msk.f32.gmra.mxu3 %vm3916_vm13, %v4838_v26 }
 0x518   : > { %7286 = vmatmul.msk.f32.gmra.mxu0 %vm3916_vm13, %v9947_v58  ;;  %7299 = vmatmul.msk.f32.gmra.mxu1 %vm3916_vm13, %v9926_v7  ;;  %v10197_v3 = vpop.f32.mrf.mxu1  ;;  %v10203_v58 = vld [vmem:[#allocation3 + $0x54] ss:$2 sm:$0xff]  ;;  %v4842_v7 = vld [vmem:[#allocation3 + $0x55] ss:$2 sm:$0xff] }
 0x519   : > { %7384 = vmatmul.msk.f32.gmra.mxu2 %vm3916_vm13, %v10190_v2  ;;  %7397 = vmatmul.msk.f32.gmra.mxu3 %vm3916_vm13, %v4840_v5 }
 0x51d   : > { %v10250_v39 = vpop.f32.mrf.mxu0 }
 0x520   : > { %7287 = vmatmul.msk.f32.gmra.mxu0 %vm3916_vm13, %v9980_v14  ;;  %7300 = vmatmul.msk.f32.gmra.mxu1 %vm3916_vm13, %v9965_v15  ;;  %v10213_v14 = vpop.f32.mrf.mxu1  ;;  %v10219_v15 = vld [vmem:[#allocation3 + $0x64] ss:$2 sm:$0xff] }
 0x521   : > { %7385 = vmatmul.msk.f32.gmra.mxu2 %vm3916_vm13, %v10203_v58  ;;  %7398 = vmatmul.msk.f32.gmra.mxu3 %vm3916_vm13, %v4842_v7 }
 0x528   : > { %7288 = vmatmul.msk.f32.gmra.mxu0 %vm3916_vm13, %v10011_v37  ;;  %7301 = vmatmul.msk.f32.gmra.mxu1 %vm3916_vm13, %v9997_v12  ;;  %v10226_v35 = vpop.f32.mrf.mxu1  ;;  %v10232_v37 = vld [vmem:[#allocation3 + $0x74] ss:$2 sm:$0xff]  ;;  %v4846_v12 = vld [vmem:[#allocation3 + $0x75] ss:$2 sm:$0xff] }
 0x529   : > { %7386 = vmatmul.msk.f32.gmra.mxu2 %vm3916_vm13, %v10219_v15  ;;  %7399 = vmatmul.msk.f32.gmra.mxu3 %vm3916_vm13, %v4844_v17 }
 0x52d   : > { %v10263_v13 = vpop.f32.mrf.mxu0 }
 0x530   : > { %7289 = vmatmul.msk.f32.gmra.mxu0 %vm3916_vm13, %v10041_v63  ;;  %7302 = vmatmul.msk.f32.gmra.mxu1 %vm3916_vm13, %v10026_v56  ;;  %v10239_v52 = vpop.f32.mrf.mxu1  ;;  %v10245_v63 = vld [vmem:[#allocation3 + $0x84] ss:$2 sm:$0xff]  ;;  %v4848_v56 = vld [vmem:[#allocation3 + $0x85] ss:$2 sm:$0xff] }
 0x531   : > { %7387 = vmatmul.msk.f32.gmra.mxu2 %vm3916_vm13, %v10232_v37  ;;  %7400 = vmatmul.msk.f32.gmra.mxu3 %vm3916_vm13, %v4846_v12 }
 0x538   : > { %7290 = vmatmul.msk.f32.gmra.mxu0 %vm3916_vm13, %v10092_v59  ;;  %7303 = vmatmul.msk.f32.gmra.mxu1 %vm3916_vm13, %v10062_v21  ;;  %v10252_v25 = vpop.f32.mrf.mxu1  ;;  %v10258_v59 = vld [vmem:[#allocation3 + $0x94] ss:$2 sm:$0xff]  ;;  %v4850_v21 = vld [vmem:[#allocation3 + $0x95] ss:$2 sm:$0xff] }
 0x539   : > { %7388 = vmatmul.msk.f32.gmra.mxu2 %vm3916_vm13, %v10245_v63  ;;  %7401 = vmatmul.msk.f32.gmra.mxu3 %vm3916_vm13, %v4848_v56 }
 0x53d   : > { %v10276_v9 = vpop.f32.mrf.mxu0 }
 0x540   : > { %7291 = vmatmul.msk.f32.gmra.mxu0 %vm3916_vm13, %v10115_v11  ;;  %7304 = vmatmul.msk.f32.gmra.mxu1 %vm3916_vm13, %v10101_v27  ;;  %v10265_v60 = vpop.f32.mrf.mxu1  ;;  %v10290_v11 = vpop.f32.mrf.mxu3 }
 0x541   : > { %7389 = vmatmul.msk.f32.gmra.mxu2 %vm3916_vm13, %v10258_v59  ;;  %7402 = vmatmul.msk.f32.gmra.mxu3 %vm3916_vm13, %v4850_v21 }
 0x548   : > { %7292 = vmatmul.msk.f32.gmra.mxu0 %vm3916_vm13, %v10128_v34  ;;  %7305 = vmatmul.msk.f32.gmra.mxu1 %vm3916_vm13, %v10110_v8  ;;  %v10278_v27 = vpop.f32.mrf.mxu1  ;;  %v4854_v8 = vld [vmem:[#allocation3 + $0xb5] ss:$2 sm:$0x3]  ;;  %v10299_v34 = vpop.f32.mrf.mxu2 }
 0x549   : > { %7390 = vmatmul.msk.f32.gmra.mxu2 %vm3916_vm13, %v10271_v38  ;;  %7403 = vmatmul.msk.f32.gmra.mxu3 %vm3916_vm13, %v4852_v1  ;;  %12426 = vst [vmem:[#allocation16_spill] sm:$0xff] %v10278_v27  ;;  %v10301_v45 = vpop.f32.mrf.mxu3 }
 0x54d   : > { %v10292_v44 = vpop.f32.mrf.mxu0 }
 0x54e   : > { %12427 = vst [vmem:[#allocation8_spill] sm:$0xff] %v10292_v44 }
 0x550   : > { %7347 = vmatmul.msk.f32.vlgmr.msra.gmra.mxu0 %vm3916_vm13, %v8173_v62  ;;  %7360 = vmatmul.msk.f32.vlgmr.msra.gmra.mxu1 %vm3916_vm13, %v10138_v29  ;;  %v10294_v28 = vpop.f32.mrf.mxu1  ;;  %v10310_v20 = vpop.f32.mrf.mxu2 }
 0x551   : > { %7391 = vmatmul.msk.f32.gmra.mxu2 %vm3916_vm13, %v10283_v30  ;;  %7404 = vmatmul.msk.f32.gmra.mxu3 %vm3916_vm13, %v4854_v8  ;;  %12428 = vst [vmem:[#allocation9_spill] sm:$0xff] %v10294_v28  ;;  %v10312_v49 = vpop.f32.mrf.mxu3 }
 0x558   : > { %7348 = vmatmul.msk.f32.gmra.mxu0 %vm3916_vm13, %v8174_v4  ;;  %7361 = vmatmul.msk.f32.gmra.mxu1 %vm3916_vm13, %v10149_v24  ;;  %v10321_v16 = vpop.f32.mrf.mxu2  ;;  %v7454_v4 = vld [vmem:[%s12277_s7 + $0x198] sm:$0xf] }
 0x559   : > { %v10323_v26 = vpop.f32.mrf.mxu3  ;;  %7462 = vmatpush.msk.msrb.mxu1 %vm5248_vm15, %v7454_v4  ;;  %7490 = vmatpush.msk.msra.mxu3 %vm5248_vm15, %v7454_v4 }
 0x55d   : > { %v10303_v50 = vpop.f32.mrf.mxu0  ;;  %v10305_v29 = vpop.f32.mrf.mxu1 }
 0x55e   : > { %12429 = vst [vmem:[#allocation19_spill] sm:$0xff] %v10303_v50  ;;  %v7450_v50 = vld [vmem:[%s12277_s7 + $0x178] sm:$0xff] }
 0x55f   : > { %12430 = vst [vmem:[#allocation10_spill] sm:$0xff] %v10305_v29  ;;  %v7449_v29 = vld [vmem:[%s12277_s7 + $0x170] sm:$0xff] }
 0x560   : > { %7349 = vmatmul.msk.f32.gmra.mxu0 %vm3916_vm13, %v8175_v22  ;;  %7362 = vmatmul.msk.f32.gmra.mxu1 %vm3916_vm13, %v10161_v19  ;;  %v10333_v5 = vpop.f32.mrf.mxu2 }
 0x561   : > { %v10335_v7 = vpop.f32.mrf.mxu3 }
 0x565   : > { %v10314_v51 = vpop.f32.mrf.mxu0  ;;  %v10316_v24 = vpop.f32.mrf.mxu1 }
 0x566   : > { %12431 = vst [vmem:[#allocation11_spill] sm:$0xff] %v10314_v51 }
 0x567   : > { %12432 = vst [vmem:[#allocation22_spill] sm:$0xff] %v10316_v24  ;;  %v7451_v24 = vld [vmem:[%s12277_s7 + $0x180] sm:$0xff] }
 0x568   : > { %7350 = vmatmul.msk.f32.gmra.mxu0 %vm3916_vm13, %v8176_v33  ;;  %7363 = vmatmul.msk.f32.gmra.mxu1 %vm3916_vm13, %v10174_v32  ;;  %v10345_v17 = vpop.f32.mrf.mxu2 }
 0x56d   : > { %v10325_v61 = vpop.f32.mrf.mxu0  ;;  %v10327_v19 = vpop.f32.mrf.mxu1 }
 0x570   : > { %7351 = vmatmul.msk.f32.gmra.mxu0 %vm3916_vm13, %v9912_v55  ;;  %7364 = vmatmul.msk.f32.gmra.mxu1 %vm3916_vm13, %v10190_v2  ;;  %v10347_v55 = vpop.f32.mrf.mxu3  ;;  %v10357_v56 = vpop.f32.mrf.mxu2 }
 0x575   : > { %v10337_v46 = vpop.f32.mrf.mxu0  ;;  %v10339_v32 = vpop.f32.mrf.mxu1 }
 0x578   : > { %7352 = vmatmul.msk.f32.gmra.mxu0 %vm3916_vm13, %v9952_v57  ;;  %7365 = vmatmul.msk.f32.gmra.mxu1 %vm3916_vm13, %v10203_v58  ;;  %v10359_v57 = vpop.f32.mrf.mxu3  ;;  %v10369_v1 = vpop.f32.mrf.mxu2 }
 0x57d   : > { %v10349_v12 = vpop.f32.mrf.mxu0  ;;  %v10351_v2 = vpop.f32.mrf.mxu1 }
 0x580   : > { %7353 = vmatmul.msk.f32.gmra.mxu0 %vm3916_vm13, %v9985_v43  ;;  %7366 = vmatmul.msk.f32.gmra.mxu1 %vm3916_vm13, %v10219_v15  ;;  %v10371_v43 = vpop.f32.mrf.mxu3  ;;  %v10381_v8 = vpop.f32.mrf.mxu2 }
 0x581   : > { %12433 = vst [vmem:[#allocation12_spill] sm:$0xff] %v10381_v8 }
 0x585   : > { %v10361_v21 = vpop.f32.mrf.mxu0  ;;  %v10363_v58 = vpop.f32.mrf.mxu1 }
 0x588   : > { %7354 = vmatmul.msk.f32.gmra.mxu0 %vm3916_vm13, %v10016_v10  ;;  %7367 = vmatmul.msk.f32.gmra.mxu1 %vm3916_vm13, %v10232_v37  ;;  %v10383_v10 = vpop.f32.mrf.mxu3  ;;  %v7453_v37 = vld [vmem:[%s12277_s7 + $0x190] sm:$0xf] }
 0x589   : > { %12434 = vst [vmem:[#allocation13_spill] sm:$0xff] %v10383_v10  ;;  %7455 = vmatpush.msk.msrb.mxu0 %vm5248_vm15, %v7453_v37  ;;  %7483 = vmatpush.msk.msra.mxu2 %vm5248_vm15, %v7453_v37  ;;  %v7452_v37 = vld [vmem:[%s12277_s7 + $0x188] sm:$0xff] }
 0x58a   : > { %5294 = vmatpush.msrb.mxu1 %v7452_v37  ;;  %5488 = vmatpush.msra.mxu3 %v7452_v37 }
 0x58b   : > { %5259 = vmatpush.msrb.mxu0 %v7451_v24  ;;  %5453 = vmatpush.msra.mxu2 %v7451_v24 }
 0x58c   : > { %5295 = vmatpush.msrb.mxu1 %v7450_v50  ;;  %5489 = vmatpush.msra.mxu3 %v7450_v50 }
 0x58d   : > { %v10373_v62 = vpop.f32.mrf.mxu0  ;;  %v10375_v15 = vpop.f32.mrf.mxu1  ;;  %5260 = vmatpush.msrb.mxu0 %v7449_v29  ;;  %5454 = vmatpush.msra.mxu2 %v7449_v29 }
 0x590   : > { %7355 = vmatmul.msk.f32.gmra.mxu0 %vm3916_vm13, %v10046_v36  ;;  %7368 = vmatmul.msk.f32.gmra.mxu1 %vm3916_vm13, %v10245_v63  ;;  %v10403_v36 = vpop.f32.mrf.mxu2  ;;  %v10405_v63 = vpop.f32.mrf.mxu3 }
 0x591   : > { %12435 = vst [vmem:[#allocation25_spill] sm:$0xff] %v10403_v36 }
 0x592   : > { %12436 = vst [vmem:[#allocation14_spill] sm:$0xff] %v10405_v63 }
 0x595   : > { %v10391_v22 = vpop.f32.mrf.mxu0  ;;  %v10393_v33 = vpop.f32.mrf.mxu1 }
 0x598   : > { %7356 = vmatmul.msk.f32.gmra.mxu0 %vm3916_vm13, %v10094_v23  ;;  %7369 = vmatmul.msk.f32.gmra.mxu1 %vm3916_vm13, %v10258_v59  ;;  %v10421_v23 = vpop.f32.mrf.mxu2  ;;  %v10423_v59 = vpop.f32.mrf.mxu3 }
 0x599   : > { %12437 = vst [vmem:[#allocation15_spill] sm:$0xff] %v10421_v23 }
 0x59a   : > { %12438 = vst [vmem:[#allocation17_spill] sm:$0xff] %v10423_v59 }
 0x59d   : > { %v10413_v51 = vpop.f32.mrf.mxu0  ;;  %v10415_v4 = vpop.f32.mrf.mxu1 }
 0x5a0   : > { %7357 = vmatmul.msk.f32.gmra.mxu0 %vm3916_vm13, %v10117_v31  ;;  %7370 = vmatmul.msk.f32.gmra.mxu1 %vm3916_vm13, %v10271_v38  ;;  %v7447_v31 = vld [vmem:[%s12277_s7 + $0x160] sm:$0xff]  ;;  %v7448_v38 = vld [vmem:[%s12277_s7 + $0x168] sm:$0xff]  ;;  %v10449_v50 = vpop.f32.mrf.mxu2 }
 0x5a1   : > { %5261 = vmatpush.msrb.mxu0 %v7447_v31  ;;  %5296 = vmatpush.msrb.mxu1 %v7448_v38  ;;  %12439 = vst [vmem:[#allocation18_spill] sm:$0xff] %v10449_v50 }
 0x5a2   : > { %5455 = vmatpush.msra.mxu2 %v7447_v31  ;;  %5490 = vmatpush.msra.mxu3 %v7448_v38  ;;  %v7445_v31 = vld [vmem:[%s12277_s7 + $0x150] sm:$0xff]  ;;  %v7446_v38 = vld [vmem:[%s12277_s7 + $0x158] sm:$0xff] }
 0x5a3   : > { %5262 = vmatpush.msrb.mxu0 %v7445_v31  ;;  %5297 = vmatpush.msrb.mxu1 %v7446_v38 }
 0x5a4   : > { %5456 = vmatpush.msra.mxu2 %v7445_v31  ;;  %5491 = vmatpush.msra.mxu3 %v7446_v38  ;;  %v7441_v31 = vld [vmem:[%s12277_s7 + $0x130] sm:$0xff] }
 0x5a5   : > { %v10431_v24 = vpop.f32.mrf.mxu0  ;;  %v10433_v37 = vpop.f32.mrf.mxu1 }
 0x5a8   : > { %7358 = vmatmul.msk.f32.gmra.mxu0 %vm3916_vm13, %v10130_v18  ;;  %7371 = vmatmul.msk.f32.gmra.mxu1 %vm3916_vm13, %v10283_v30  ;;  %v10451_v18 = vpop.f32.mrf.mxu3  ;;  %v4783_v63 = vpop.f32.mrf.mxu2 }
 0x5a9   : > { %12440 = vst [vmem:[#allocation20_spill] sm:$0xff] %v10451_v18  ;;  %v4318_v18 = vadd.f32 %v10327_v19, %v10325_v61  ;;  %v7442_v61 = vld [vmem:[%s12277_s7 + $0x138] sm:$0xff] }
 0x5ad   : > { %v10445_v59 = vpop.f32.mrf.mxu0  ;;  %v10447_v23 = vpop.f32.mrf.mxu1 }
 0x5b0   : > { %v4908_v36 = vpop.f32.mrf.mxu3  ;;  %v10461_v10 = vpop.f32.mrf.mxu2 }
 0x5b5   : > { %v10453_v30 = vpop.f32.mrf.mxu0  ;;  %v10455_v29 = vpop.f32.mrf.mxu1 }
 0x5b6   : > { %12441 = vst [vmem:[#allocation21_spill] sm:$0xff] %v10455_v29  ;;  %v7440_v29 = vld [vmem:[%s12277_s7 + $0x128] sm:$0xff] }
 0x5b8   : > { %v10463_v8 = vpop.f32.mrf.mxu3  ;;  %v10492_v38 = vpop.f32.mrf.mxu2 }
 0x5bd   : > { %v10457_v28 = vpop.f32.mrf.mxu0  ;;  %v10459_v44 = vpop.f32.mrf.mxu1 }
 0x5be   : > { %12442 = vst [vmem:[#allocation23_spill] sm:$0xff] %v10457_v28 }
 0x5bf   : > { %12443 = vst [vmem:[#allocation24_spill] sm:$0xff] %v10459_v44  ;;  %v4152_v44 = vadd.f32 %v10168_v40, %v10166_v53  ;;  %v4542_v53 = vadd.f32 %v10290_v11, %v4318_v18  ;;  %v7439_v40 = vld [vmem:[%s12277_s7 + $0x120] sm:$0xff]  ;;  %v7437_v18 = vld [vmem:[%s12277_s7 + $0x110] sm:$0xff] }
 0x5c0   : > { %v10494_v28 = vpop.f32.mrf.mxu3 }
 0x5c1   : > { %v4417_v19 = vadd.f32 %v10288_v41, %v4152_v44  ;;  %v10506_v44 = vld [vmem:[%s12276_s6] ss:$0 sm:$0xff] }
 0x5c5   : > { %v10465_v27 = vpop.f32.mrf.mxu0  ;;  %v10467_v50 = vpop.f32.mrf.mxu1 }
 0x5c6   : > { %12444 = vst [vmem:[#allocation26_spill] sm:$0xff] %v10465_v27  ;;  %v7443_v27 = vld [vmem:[%s12277_s7 + $0x140] sm:$0xff] }
 0x5c7   : > { %12445 = vst [vmem:[#allocation27_spill] sm:$0xff] %v10467_v50  ;;  %v7444_v50 = vld [vmem:[%s12277_s7 + $0x148] sm:$0xff]  ;;  %5263 = vmatpush.msrb.mxu0 %v7443_v27  ;;  %5457 = vmatpush.msra.mxu2 %v7443_v27 }
 0x5c8   : > { %5298 = vmatpush.msrb.mxu1 %v7444_v50  ;;  %5492 = vmatpush.msra.mxu3 %v7444_v50 }
 0x5c9   : > { %5264 = vmatpush.msrb.mxu0 %v7441_v31  ;;  %5458 = vmatpush.msra.mxu2 %v7441_v31  ;;  %v7438_v31 = vld [vmem:[%s12277_s7 + $0x118] sm:$0xff] }
 0x5ca   : > { %5299 = vmatpush.msrb.mxu1 %v7442_v61  ;;  %5493 = vmatpush.msra.mxu3 %v7442_v61  ;;  %v4321_v61 = vadd.f32 %v10339_v32, %v10337_v46  ;;  %v7433_v32 = vld [vmem:[%s12277_s7 + $0xf0] sm:$0xff] }
 0x5cb   : > { %5265 = vmatpush.msrb.mxu0 %v7439_v40  ;;  %5459 = vmatpush.msra.mxu2 %v7439_v40 }
 0x5cc   : > { %5300 = vmatpush.msrb.mxu1 %v7440_v29  ;;  %5494 = vmatpush.msra.mxu3 %v7440_v29  ;;  %v4155_v29 = vadd.f32 %v10184_v47, %v10182_v6 }
 0x5cd   : > { %v4582_v27 = vpop.f32.mrf.mxu0  ;;  %v4707_v50 = vpop.f32.mrf.mxu1  ;;  %5266 = vmatpush.msrb.mxu0 %v7437_v18  ;;  %5460 = vmatpush.msra.mxu2 %v7437_v18  ;;  %v7432_v18 = vld [vmem:[%s12277_s7 + $0xe8] sm:$0xff] }
 0x5ce   : > { %v4618_v41 = vadd.f32 %v4582_v27, %v4417_v19  ;;  %v4743_v11 = vadd.f32 %v4707_v50, %v4542_v53  ;;  %5301 = vmatpush.msrb.mxu1 %v7438_v31  ;;  %v7435_v53 = vld [vmem:[%s12277_s7 + $0x100] sm:$0xff]  ;;  %v7436_v50 = vld [vmem:[%s12277_s7 + $0x108] sm:$0xff]  ;;  %5495 = vmatpush.msra.mxu3 %v7438_v31  ;;  %v4418_v6 = vadd.f32 %v10299_v34, %v4155_v29  ;;  %v10546_v34 = vpop.f32.mrf.mxu2  ;;  %v7429_v29 = vld [vmem:[%s12277_s7 + $0xd0] sm:$0xff] }
 0x5cf   : > { %5267 = vmatpush.msrb.mxu0 %v7435_v53  ;;  %5461 = vmatpush.msra.mxu2 %v7435_v53 }
 0x5d0   : > { %v4819_v19 = vadd.f32 %v4783_v63, %v4618_v41  ;;  %v4944_v27 = vadd.f32 %v4908_v36, %v4743_v11  ;;  %5302 = vmatpush.msrb.mxu1 %v7436_v50  ;;  %v7434_v36 = vld [vmem:[%s12277_s7 + $0xf8] sm:$0xff]  ;;  %5496 = vmatpush.msra.mxu3 %v7436_v50  ;;  %v4543_v41 = vadd.f32 %v10301_v45, %v4321_v61  ;;  %v7431_v11 = vld [vmem:[%s12277_s7 + $0xe0] sm:$0xff] }
 0x5d1   : > { %5268 = vmatpush.msrb.mxu0 %v7433_v32  ;;  %5462 = vmatpush.msra.mxu2 %v7433_v32  ;;  %v7430_v32 = vld [vmem:[%s12277_s7 + $0xd8] sm:$0xff] }
 0x5d2   : > { %v10525_v40 = vadd.f32 %v10506_v44, %v4819_v19  ;;  %v10528_v46 = vadd.f32 %v10506_v44, %v4944_v27  ;;  %5303 = vmatpush.msrb.mxu1 %v7434_v36  ;;  %5497 = vmatpush.msra.mxu3 %v7434_v36  ;;  %v10548_v27 = vpop.f32.mrf.mxu3  ;;  %v4324_v36 = vadd.f32 %v10351_v2, %v10349_v12 }
 0x5d3   : > { %5269 = vmatpush.msrb.mxu0 %v7431_v11  ;;  %5463 = vmatpush.msra.mxu2 %v7431_v11 }
 0x5d4   : > { %v4983_v47 = vmin.f32 %v10525_v40, 0.0  ;;  %v5067_v63 = vmin.f32 %v10528_v46, 0.0  ;;  %5304 = vmatpush.msrb.mxu1 %v7432_v18  ;;  %5498 = vmatpush.msra.mxu3 %v7432_v18  ;;  %v4544_v12 = vadd.f32 %v10312_v49, %v4324_v36  ;;  %vm4971_vm13 = vcmp.gt.f32.partialorder %v10525_v40, 0.0 }
 0x5d5   : > { %v4585_v31 = vpop.f32.mrf.mxu0  ;;  %v4710_v19 = vpop.f32.mrf.mxu1  ;;  %5270 = vmatpush.msrb.mxu0 %v7429_v29  ;;  %5464 = vmatpush.msra.mxu2 %v7429_v29  ;;  %vm5055_vm1 = vcmp.gt.f32.partialorder %v10528_v46, 0.0 }
 0x5d6   : > { %v4995_v53 = vmul.f32 1.442695, %v4983_v47  ;;  %v5079_v45 = vmul.f32 1.442695, %v5067_v63  ;;  %v4619_v61 = vadd.f32 %v4585_v31, %v4418_v6  ;;  %v4744_v50 = vadd.f32 %v4710_v19, %v4543_v41  ;;  %5305 = vmatpush.msrb.mxu1 %v7430_v32  ;;  %5499 = vmatpush.msra.mxu3 %v7430_v32  ;;  %v10569_v32 = vpop.f32.mrf.mxu2 }
 0x5d7   : > { %v4158_v63 = vadd.f32 %v10197_v3, %v10195_v42  ;;  %v4327_v42 = vadd.f32 %v10363_v58, %v10361_v21 }
 0x5d8   : > { %8034 = vpow2.f32 %v4995_v53  ;;  %v4820_v47 = vadd.f32 %v10461_v10, %v4619_v61  ;;  %v4945_v6 = vadd.f32 %v10463_v8, %v4744_v50 }
 0x5d9   : > { %8036 = vpow2.f32 %v5079_v45  ;;  %v4419_v18 = vadd.f32 %v10310_v20, %v4158_v63 }
 0x5da   : > { %v4960_v41 = vadd.f32 %v10506_v44, %v4820_v47  ;;  %v5044_v11 = vadd.f32 %v10506_v44, %v4945_v6  ;;  %v10571_v20 = vpop.f32.mrf.mxu3  ;;  %v4161_v6 = vadd.f32 %v10213_v14, %v10211_v54 }
 0x5dc   : > { %v4984_v31 = vmin.f32 %v4960_v41, 0.0  ;;  %v5068_v19 = vmin.f32 %v5044_v11, 0.0  ;;  %vm4972_vm4 = vcmp.gt.f32.partialorder %v4960_v41, 0.0  ;;  %vm5056_vm6 = vcmp.gt.f32.partialorder %v5044_v11, 0.0 }
 0x5dd   : > { %v4588_v2 = vpop.f32.mrf.mxu0  ;;  %v4713_v10 = vpop.f32.mrf.mxu1 }
 0x5de   : > { %v8035_v53 = vpop.eup %8034  ;;  %v4997_v8 = vmul.f32 1.442695, %v4984_v31  ;;  %v5081_v61 = vmul.f32 1.442695, %v5068_v19  ;;  %v4620_v50 = vadd.f32 %v4588_v2, %v4419_v18  ;;  %v4745_v45 = vadd.f32 %v4713_v10, %v4544_v12 }
 0x5df   : > { %v8037_v29 = vpop.eup %8036  ;;  %v7405_v3 = vadd.f32 -1.0, %v8035_v53  ;;  %v4545_v12 = vadd.f32 %v10323_v26, %v4327_v42  ;;  %v4164_v42 = vadd.f32 %v10226_v35, %v10224_v0 }
 0x5e0   : > { %v7417_v47 = vadd.f32 -1.0, %v8037_v29  ;;  %8038 = vpow2.f32 %v4997_v8  ;;  %v4821_v49 = vadd.f32 %v10492_v38, %v4620_v50  ;;  %v4946_v36 = vadd.f32 %v10494_v28, %v4745_v45 }
 0x5e1   : > { %v5031_v63 = vsel %vm4971_vm13, %v10525_v40, %v7405_v3  ;;  %8040 = vpow2.f32 %v5081_v61  ;;  %v4420_v38 = vadd.f32 %v10321_v16, %v4161_v6  ;;  %v4330_v61 = vadd.f32 %v10375_v15, %v10373_v62  ;;  %v4798_v3 = vpop.f32.mrf.mxu2 }
 0x5e2   : > { %v5115_v21 = vsel %vm5055_vm1, %v10528_v46, %v7417_v47  ;;  %v4961_v58 = vadd.f32 %v10506_v44, %v4821_v49  ;;  %v5045_v18 = vadd.f32 %v10506_v44, %v4946_v36  ;;  %v4923_v47 = vpop.f32.mrf.mxu3  ;;  %v4421_v6 = vadd.f32 %v10333_v5, %v4164_v42 }
 0x5e3   : > { %v5127_v31 = vmax.f32 %v5031_v63, %v5115_v21 }
 0x5e4   : > { %v4985_v19 = vmin.f32 %v4961_v58, 0.0  ;;  %v5069_v28 = vmin.f32 %v5045_v18, 0.0  ;;  %vm4973_vm7 = vcmp.gt.f32.partialorder %v4961_v58, 0.0  ;;  %vm5057_vm5 = vcmp.gt.f32.partialorder %v5045_v18, 0.0 }
 0x5e5   : > { %5140 = vst.msk [vmem:[#allocation4] sm:$0xff] %vm5139_vm3, %v5127_v31  ;;  %v4591_v54 = vpop.f32.mrf.mxu0  ;;  %v4716_v14 = vpop.f32.mrf.mxu1 }
 0x5e6   : > { %v8039_v40 = vpop.eup %8038  ;;  %v4999_v2 = vmul.f32 1.442695, %v4985_v19  ;;  %v5083_v10 = vmul.f32 1.442695, %v5069_v28  ;;  %v4621_v46 = vadd.f32 %v4591_v54, %v4420_v38  ;;  %v4746_v53 = vadd.f32 %v4716_v14, %v4545_v12 }
 0x5e7   : > { %v8041_v8 = vpop.eup %8040  ;;  %v7406_v50 = vadd.f32 -1.0, %v8039_v40  ;;  %v4333_v28 = vadd.f32 %v10393_v33, %v10391_v22  ;;  %v4167_v40 = vadd.f32 %v10239_v52, %v10237_v48 }
 0x5e8   : > { %v7418_v16 = vadd.f32 -1.0, %v8041_v8  ;;  %8042 = vpow2.f32 %v4999_v2  ;;  %v4822_v45 = vadd.f32 %v10546_v34, %v4621_v46  ;;  %v4947_v26 = vadd.f32 %v10548_v27, %v4746_v53 }
 0x5e9   : > { %v5032_v29 = vsel %vm4972_vm4, %v4960_v41, %v7406_v50  ;;  %8044 = vpow2.f32 %v5083_v10  ;;  %v4546_v27 = vadd.f32 %v10335_v7, %v4330_v61  ;;  %v4422_v33 = vadd.f32 %v10345_v17, %v4167_v40  ;;  %v4801_v53 = vpop.f32.mrf.mxu2 }
 0x5ea   : > { %v5116_v49 = vsel %vm5056_vm6, %v5044_v11, %v7418_v16  ;;  %v4962_v36 = vadd.f32 %v10506_v44, %v4822_v45  ;;  %v5046_v62 = vadd.f32 %v10506_v44, %v4947_v26  ;;  %v4926_v8 = vpop.f32.mrf.mxu3  ;;  %v4547_v61 = vadd.f32 %v10347_v55, %v4333_v28 }
 0x5eb   : > { %v5128_v15 = vmax.f32 %v5032_v29, %v5116_v49  ;;  %v4336_v29 = vadd.f32 %v10415_v4, %v10413_v51 }
 0x5ec   : > { %v4986_v63 = vmin.f32 %v4962_v36, 0.0  ;;  %v5070_v34 = vmin.f32 %v5046_v62, 0.0  ;;  %vm4974_vm8 = vcmp.gt.f32.partialorder %v4962_v36, 0.0  ;;  %vm5058_vm9 = vcmp.gt.f32.partialorder %v5046_v62, 0.0 }
 0x5ed   : > { %5141 = vst.msk [vmem:[#allocation4 + $0x8] sm:$0xff] %vm5139_vm3, %v5128_v15  ;;  %v4594_v41 = vpop.f32.mrf.mxu0  ;;  %v4719_v21 = vpop.f32.mrf.mxu1 }
 0x5ee   : > { %v8043_v31 = vpop.eup %8042  ;;  %v5001_v0 = vmul.f32 1.442695, %v4986_v63  ;;  %v5085_v35 = vmul.f32 1.442695, %v5070_v34  ;;  %v4622_v38 = vadd.f32 %v4594_v41, %v4421_v6  ;;  %v4747_v11 = vadd.f32 %v4719_v21, %v4546_v27 }
 0x5ef   : > { %v8045_v19 = vpop.eup %8044  ;;  %v7407_v12 = vadd.f32 -1.0, %v8043_v31  ;;  %v4170_v63 = vadd.f32 %v10252_v25, %v10250_v39 }
 0x5f0   : > { %v7419_v5 = vadd.f32 -1.0, %v8045_v19  ;;  %8046 = vpow2.f32 %v5001_v0  ;;  %v4823_v54 = vadd.f32 %v10569_v32, %v4622_v38  ;;  %v4948_v7 = vadd.f32 %v10571_v20, %v4747_v11 }
 0x5f1   : > { %v5033_v14 = vsel %vm4973_vm7, %v4961_v58, %v7407_v12  ;;  %8048 = vpow2.f32 %v5085_v35  ;;  %v4423_v4 = vadd.f32 %v10357_v56, %v4170_v63  ;;  %v4804_v56 = vpop.f32.mrf.mxu2  ;;  %v12447_v63 = vld [vmem:[#allocation12_spill] sm:$0xff] }
 0x5f2   : > { %v5117_v2 = vsel %vm5057_vm5, %v5045_v18, %v7419_v5  ;;  %v4963_v10 = vadd.f32 %v10506_v44, %v4823_v54  ;;  %v10604_v46 = vadd.f32 %v10506_v44, %v4948_v7  ;;  %v4929_v31 = vpop.f32.mrf.mxu3 }
 0x5f3   : > { %v5129_v22 = vmax.f32 %v5033_v14, %v5117_v2  ;;  %v4173_v14 = vadd.f32 %v10265_v60, %v10263_v13 }
 0x5f4   : > { %v4987_v32 = vmin.f32 %v4963_v10, 0.0  ;;  %v5071_v20 = vmin.f32 %v10604_v46, 0.0  ;;  %v10608_v58 = vld [vmem:[#allocation4 + $0x1] ss:$2 sm:$0xff]  ;;  %vm4975_vm10 = vcmp.gt.f32.partialorder %v4963_v10, 0.0  ;;  %vm5059_vm11 = vcmp.gt.f32.partialorder %v10604_v46, 0.0 }
 0x5f5   : > { %5142 = vst.msk [vmem:[#allocation4 + $0x10] sm:$0xff] %vm5139_vm3, %v5129_v22  ;;  %7456 = vmatmul.msk.f32.vlgmr.msrb.gmra.mxu0 %vm5139_vm3, %v10608_v58  ;;  %7463 = vmatmul.msk.f32.vlgmr.msrb.gmra.mxu1 %vm5139_vm3, %v10608_v58  ;;  %v4597_v48 = vpop.f32.mrf.mxu0  ;;  %v4722_v52 = vpop.f32.mrf.mxu1  ;;  %v4424_v22 = vadd.f32 %v10369_v1, %v4173_v14  ;;  %v10663_v1 = vld [vmem:[%s12277_s7 + $0xc0] sm:$0xf]  ;;  %v12450_v14 = vld [vmem:[#allocation8_spill] sm:$0xff] }
 0x5f6   : > { %v8047_v17 = vpop.eup %8046  ;;  %v5003_v18 = vmul.f32 1.442695, %v4987_v32  ;;  %v5087_v50 = vmul.f32 1.442695, %v5071_v20  ;;  %v4623_v16 = vadd.f32 %v4597_v48, %v4422_v33  ;;  %v4748_v45 = vadd.f32 %v4722_v52, %v4547_v61  ;;  %7469 = vmatpush.msk.msra.mxu0 %vm5248_vm15, %v10663_v1 }
 0x5f7   : > { %v8049_v26 = vpop.eup %8048  ;;  %v7408_v55 = vadd.f32 -1.0, %v8047_v17  ;;  %v4342_v17 = vadd.f32 %v10447_v23, %v10445_v59 }
 0x5f8   : > { %v7420_v42 = vadd.f32 -1.0, %v8049_v26  ;;  %8050 = vpow2.f32 %v5003_v18  ;;  %v4824_v49 = vadd.f32 %v4798_v3, %v4623_v16  ;;  %v4949_v15 = vadd.f32 %v4923_v47, %v4748_v45 }
 0x5f9   : > { %v5034_v6 = vsel %vm4974_vm8, %v4962_v36, %v7408_v55  ;;  %8052 = vpow2.f32 %v5087_v50  ;;  %v4548_v36 = vadd.f32 %v10359_v57, %v4336_v29  ;;  %v4339_v57 = vadd.f32 %v10433_v37, %v10431_v24  ;;  %v4807_v50 = vpop.f32.mrf.mxu2 }
 0x5fa   : > { %v5118_v34 = vsel %vm5058_vm9, %v5046_v62, %v7420_v42  ;;  %v10621_v27 = vadd.f32 %v10506_v44, %v4824_v49  ;;  %v10624_v41 = vadd.f32 %v10506_v44, %v4949_v15  ;;  %v4932_v16 = vpop.f32.mrf.mxu3  ;;  %v12446_v42 = vld [vmem:[#allocation16_spill] sm:$0xff] }
 0x5fb   : > { %v5130_v51 = vmax.f32 %v5034_v6, %v5118_v34  ;;  %v4176_v49 = vadd.f32 %v12446_v42, %v10276_v9  ;;  %v10768_v42 = vld [vmem:[%s12277_s7 + $0x88] sm:$0xff] }
 0x5fc   : > { %v4988_v21 = vmin.f32 %v10621_v27, 0.0  ;;  %v5072_v3 = vmin.f32 %v10624_v41, 0.0  ;;  %v10629_v47 = vld [vmem:[#allocation4 + $0x2] ss:$2 sm:$0xff]  ;;  %vm4976_vm2 = vcmp.gt.f32.partialorder %v10621_v27, 0.0  ;;  %vm5060_vm12 = vcmp.gt.f32.partialorder %v10624_v41, 0.0 }
 0x5fd   : > { %5143 = vst.msk [vmem:[#allocation4 + $0x18] sm:$0xff] %vm5139_vm3, %v5130_v51  ;;  %7484 = vmatmul.msk.f32.vlgmr.msra.gmra.mxu2 %vm5139_vm3, %v10629_v47  ;;  %7491 = vmatmul.msk.f32.vlgmr.msra.gmra.mxu3 %vm5139_vm3, %v10629_v47  ;;  %v4600_v39 = vpop.f32.mrf.mxu0  ;;  %v4725_v25 = vpop.f32.mrf.mxu1  ;;  %v4425_v34 = vadd.f32 %v12447_v63, %v4176_v49 }
 0x5fe   : > { %v8051_v62 = vpop.eup %8050  ;;  %v5005_v0 = vmul.f32 1.442695, %v4988_v21  ;;  %v5089_v35 = vmul.f32 1.442695, %v5072_v3  ;;  %v4624_v38 = vadd.f32 %v4600_v39, %v4423_v4  ;;  %v4749_v11 = vadd.f32 %v4725_v25, %v4548_v36  ;;  %v12448_v21 = vld [vmem:[#allocation13_spill] sm:$0xff]  ;;  %v10702_v36 = vld [vmem:[%s12277_s7 + $0xb0] sm:$0xff] }
 0x5ff   : > { %v8053_v19 = vpop.eup %8052  ;;  %v7409_v28 = vadd.f32 -1.0, %v8051_v62  ;;  %v4550_v3 = vadd.f32 %v12448_v21, %v4342_v17  ;;  %v10707_v39 = vld [vmem:[%s12277_s7 + $0xb8] sm:$0xff]  ;;  %v10712_v25 = vld [vmem:[%s12277_s7 + $0xa0] sm:$0xff]  ;;  %5353 = vmatpush.msra.mxu0 %v10702_v36  ;;  %v10751_v17 = vld [vmem:[%s12277_s7 + $0x90] sm:$0xff] }
 0x600   : > { %v7421_v12 = vadd.f32 -1.0, %v8053_v19  ;;  %8054 = vpow2.f32 %v5005_v0  ;;  %v4825_v5 = vadd.f32 %v4801_v53, %v4624_v38  ;;  %v4950_v54 = vadd.f32 %v4926_v8, %v4749_v11  ;;  %v10719_v38 = vld [vmem:[%s12277_s7 + $0xa8] sm:$0xff]  ;;  %v12449_v19 = vld [vmem:[#allocation21_spill] sm:$0xff] }
 0x601   : > { %v5035_v7 = vsel %vm4975_vm10, %v4963_v10, %v7409_v28  ;;  %8056 = vpow2.f32 %v5089_v35  ;;  %v4549_v8 = vadd.f32 %v10371_v43, %v4339_v57  ;;  %v4345_v57 = vadd.f32 %v12449_v19, %v10453_v30  ;;  %5354 = vmatpush.msra.mxu0 %v10712_v25  ;;  %v4810_v30 = vpop.f32.mrf.mxu2  ;;  %v10811_v19 = vld [vmem:[%s12277_s7 + $0x258] sm:$0xff] }
 0x602   : > { %v5119_v40 = vsel %vm5059_vm11, %v10604_v46, %v7421_v12  ;;  %v10644_v2 = vadd.f32 %v10506_v44, %v4825_v5  ;;  %v10647_v24 = vadd.f32 %v10506_v44, %v4950_v54  ;;  %v10668_v46 = vld [vmem:[%s12277_s7 + $0xc8] sm:$0xf] }
 0x603   : > { %v5131_v37 = vmax.f32 %v5035_v7, %v5119_v40  ;;  %7476 = vmatpush.msk.msra.mxu1 %vm5248_vm15, %v10668_v46  ;;  %v12451_v40 = vld [vmem:[#allocation9_spill] sm:$0xff]  ;;  %5355 = vmatpush.msra.mxu0 %v10751_v17 }
 0x604   : > { %v4989_v33 = vmin.f32 %v10644_v2, 0.0  ;;  %v5073_v10 = vmin.f32 %v10647_v24, 0.0  ;;  %v10652_v53 = vld [vmem:[#allocation4 + $0x11] ss:$2 sm:$0xff]  ;;  %vm4977_vm0 = vcmp.gt.f32.partialorder %v10644_v2, 0.0  ;;  %vm5061_vm14 = vcmp.gt.f32.partialorder %v10647_v24, 0.0 }
 0x605   : > { %5144 = vst.msk [vmem:[#allocation4 + $0x20] sm:$0xff] %vm5139_vm3, %v5131_v37  ;;  %7457 = vmatmul.msk.f32.gmra.mxu0 %vm5139_vm3, %v10652_v53  ;;  %7464 = vmatmul.msk.f32.gmra.mxu1 %vm5139_vm3, %v10652_v53  ;;  %v4603_v13 = vpop.f32.mrf.mxu0  ;;  %v4728_v60 = vpop.f32.mrf.mxu1  ;;  %v4179_v37 = vadd.f32 %v12451_v40, %v12450_v14 }
 0x606   : > { %v8055_v43 = vpop.eup %8054  ;;  %v5007_v32 = vmul.f32 1.442695, %v4989_v33  ;;  %v5091_v20 = vmul.f32 1.442695, %v5073_v10  ;;  %v4625_v61 = vadd.f32 %v4603_v13, %v4424_v22  ;;  %v4750_v48 = vadd.f32 %v4728_v60, %v4549_v8  ;;  %5388 = vmatpush.msra.mxu1 %v10707_v39  ;;  %v4935_v22 = vpop.f32.mrf.mxu3  ;;  %v12452_v60 = vld [vmem:[#allocation25_spill] sm:$0xff] }
 0x607   : > { %v8057_v52 = vpop.eup %8056  ;;  %v7410_v18 = vadd.f32 -1.0, %v8055_v43  ;;  %v4426_v43 = vadd.f32 %v12452_v60, %v4179_v37  ;;  %v10845_v60 = vld [vmem:[%s12277_s7 + $0x240] sm:$0xff] }
 0x608   : > { %v7422_v45 = vadd.f32 -1.0, %v8057_v52  ;;  %8058 = vpow2.f32 %v5007_v32  ;;  %v4826_v26 = vadd.f32 %v4804_v56, %v4625_v61  ;;  %v4951_v29 = vadd.f32 %v4929_v31, %v4750_v48  ;;  %5389 = vmatpush.msra.mxu1 %v10719_v38  ;;  %v12454_v61 = vld [vmem:[#allocation14_spill] sm:$0xff] }
 0x609   : > { %v5036_v55 = vsel %vm4976_vm2, %v10621_v27, %v7410_v18  ;;  %8060 = vpow2.f32 %v5091_v20  ;;  %v4551_v48 = vadd.f32 %v12454_v61, %v4345_v57  ;;  %v10756_v18 = vld [vmem:[%s12277_s7 + $0x98] sm:$0xff]  ;;  %v4813_v14 = vpop.f32.mrf.mxu2  ;;  %v10860_v61 = vld [vmem:[%s12277_s7 + $0x50] sm:$0xff]  ;;  %vm5151_vm2 = vcmask 812032  }
 0x60a   : > { %v5120_v15 = vsel %vm5060_vm12, %v10624_v41, %v7422_v45  ;;  %v10683_v23 = vadd.f32 %v10506_v44, %v4826_v26  ;;  %v10686_v59 = vadd.f32 %v10506_v44, %v4951_v29  ;;  %5390 = vmatpush.msra.mxu1 %v10756_v18 }
 0x60b   : > { %v5132_v6 = vmax.f32 %v5036_v55, %v5120_v15  ;;  %v12455_v15 = vld [vmem:[#allocation23_spill] sm:$0xff] }
 0x60c   : > { %v4990_v51 = vmin.f32 %v10683_v23, 0.0  ;;  %v5074_v27 = vmin.f32 %v10686_v59, 0.0  ;;  %v10691_v4 = vld [vmem:[#allocation4 + $0x12] ss:$2 sm:$0xff]  ;;  %vm4978_vm13 = vcmp.gt.f32.partialorder %v10683_v23, 0.0  ;;  %5391 = vmatpush.msra.mxu1 %v10768_v42  ;;  %vm5062_vm1 = vcmp.gt.f32.partialorder %v10686_v59, 0.0 }
 0x60d   : > { %5145 = vst.msk [vmem:[#allocation4 + $0x28] sm:$0xff] %vm5139_vm3, %v5132_v6  ;;  %7485 = vmatmul.msk.f32.gmra.mxu2 %vm5139_vm3, %v10691_v4  ;;  %7492 = vmatmul.msk.f32.gmra.mxu3 %vm5139_vm3, %v10691_v4  ;;  %v4606_v9 = vpop.f32.mrf.mxu0  ;;  %v4731_v41 = vpop.f32.mrf.mxu1  ;;  %v12456_v6 = vld [vmem:[#allocation24_spill] sm:$0xff] }
 0x60e   : > { %v8059_v62 = vpop.eup %8058  ;;  %v5009_v56 = vmul.f32 1.442695, %v4990_v51  ;;  %v5093_v31 = vmul.f32 1.442695, %v5074_v27  ;;  %v4626_v0 = vadd.f32 %v4606_v9, %v4425_v34  ;;  %v4751_v35 = vadd.f32 %v4731_v41, %v4550_v3  ;;  %v10776_v51 = vld [vmem:[%s12277_s7 + $0x260] sm:$0xf]  ;;  %v4938_v40 = vpop.f32.mrf.mxu3 }
 0x60f   : > { %v8061_v11 = vpop.eup %8060  ;;  %v7411_v28 = vadd.f32 -1.0, %v8059_v62  ;;  %v4348_v63 = vadd.f32 %v12456_v6, %v12455_v15  ;;  %v10781_v27 = vld [vmem:[%s12277_s7 + $0x268] sm:$0xf]  ;;  %v10788_v41 = vld [vmem:[%s12277_s7 + $0x70] sm:$0xff]  ;;  %v10793_v62 = vld [vmem:[%s12277_s7 + $0x78] sm:$0xff]  ;;  %7537 = vmatpush.msk.msrb.mxu2 %vm5248_vm15, %v10776_v51 }
 0x610   : > { %v7423_v12 = vadd.f32 -1.0, %v8061_v11  ;;  %8062 = vpow2.f32 %v5009_v56  ;;  %v4827_v5 = vadd.f32 %v4807_v50, %v4626_v0  ;;  %v4952_v54 = vadd.f32 %v4932_v16, %v4751_v35  ;;  %v10761_v50 = vld [vmem:[%s12277_s7 + $0x80] sm:$0xff]  ;;  %v10798_v56 = vld [vmem:[%s12277_s7 + $0x250] sm:$0xff]  ;;  %7544 = vmatpush.msk.msrb.mxu3 %vm5248_vm15, %v10781_v27  ;;  %5392 = vmatpush.msra.mxu1 %v10793_v62 }
 0x611   : > { %v5037_v7 = vsel %vm4977_vm0, %v10644_v2, %v7411_v28  ;;  %8064 = vpow2.f32 %v5093_v31  ;;  %5356 = vmatpush.msra.mxu0 %v10761_v50  ;;  %v12457_v31 = vld [vmem:[#allocation19_spill] sm:$0xff]  ;;  %v12458_v0 = vld [vmem:[#allocation10_spill] sm:$0xff]  ;;  %5626 = vmatpush.msrb.mxu2 %v10798_v56 }
 0x612   : > { %v5121_v33 = vsel %vm5061_vm14, %v10647_v24, %v7423_v12  ;;  %v10732_v10 = vadd.f32 %v10506_v44, %v4827_v5  ;;  %v10735_v8 = vadd.f32 %v10506_v44, %v4952_v54  ;;  %v4182_v35 = vadd.f32 %v12458_v0, %v12457_v31  ;;  %v10825_v12 = vld [vmem:[%s12277_s7 + $0x60] sm:$0xff]  ;;  %v10830_v5 = vld [vmem:[%s12277_s7 + $0x68] sm:$0xff]  ;;  %5661 = vmatpush.msrb.mxu3 %v10811_v19 }
 0x613   : > { %v5133_v13 = vmax.f32 %v5037_v7, %v5121_v33  ;;  %5357 = vmatpush.msra.mxu0 %v10788_v41  ;;  %v12459_v54 = vld [vmem:[#allocation15_spill] sm:$0xff]  ;;  %v12460_v33 = vld [vmem:[#allocation17_spill] sm:$0xff]  ;;  %5393 = vmatpush.msra.mxu1 %v10830_v5  ;;  %v12461_v15 = vld [vmem:[#allocation26_spill] sm:$0xff] }
 0x614   : > { %v4991_v2 = vmin.f32 %v10732_v10, 0.0  ;;  %v5075_v32 = vmin.f32 %v10735_v8, 0.0  ;;  %v10740_v20 = vld [vmem:[#allocation4 + $0x21] ss:$2 sm:$0xff]  ;;  %v4427_v7 = vadd.f32 %v12459_v54, %v4182_v35  ;;  %vm4979_vm4 = vcmp.gt.f32.partialorder %v10732_v10, 0.0  ;;  %5627 = vmatpush.msrb.mxu2 %v10845_v60  ;;  %v12464_v54 = vld [vmem:[#allocation22_spill] sm:$0xff] }
 0x615   : > { %12453 = vst [vmem:[#allocation28_spill] sm:$0xff] %v10740_v20  ;;  %7458 = vmatmul.msk.f32.gmra.mxu0 %vm5139_vm3, %v10740_v20  ;;  %7465 = vmatmul.msk.f32.gmra.mxu1 %vm5139_vm3, %v10740_v20  ;;  %v4609_v24 = vpop.f32.mrf.mxu0  ;;  %v4734_v52 = vpop.f32.mrf.mxu1  ;;  %v12462_v6 = vld [vmem:[#allocation27_spill] sm:$0xff]  ;;  %vm5063_vm6 = vcmp.gt.f32.partialorder %v10735_v8, 0.0 }
 0x616   : > { %5146 = vst.msk [vmem:[#allocation4 + $0x30] sm:$0xff] %vm5139_vm3, %v5133_v13  ;;  %v8063_v16 = vpop.eup %8062  ;;  %v5011_v45 = vmul.f32 1.442695, %v4991_v2  ;;  %v5095_v26 = vmul.f32 1.442695, %v5075_v32  ;;  %v4627_v29 = vadd.f32 %v4609_v24, %v4426_v43  ;;  %v4752_v55 = vadd.f32 %v4734_v52, %v4551_v48  ;;  %5358 = vmatpush.msra.mxu0 %v10825_v12  ;;  %v10850_v43 = vld [vmem:[%s12277_s7 + $0x248] sm:$0xff] }
 0x617   : > { %v8065_v49 = vpop.eup %8064  ;;  %v7412_v34 = vadd.f32 -1.0, %v8063_v16  ;;  %v4552_v13 = vadd.f32 %v12460_v33, %v4348_v63  ;;  %v10865_v48 = vld [vmem:[%s12277_s7 + $0x58] sm:$0xff]  ;;  %v10870_v24 = vld [vmem:[%s12277_s7 + $0x40] sm:$0xff]  ;;  %v4351_v63 = vadd.f32 %v12462_v6, %v12461_v15  ;;  %5662 = vmatpush.msrb.mxu3 %v10850_v43  ;;  %v10899_v35 = vld [vmem:[%s12277_s7 + $0x230] sm:$0xff] }
 0x618   : > { %v7424_v21 = vadd.f32 -1.0, %v8065_v49  ;;  %8066 = vpow2.f32 %v5011_v45  ;;  %v4828_v3 = vadd.f32 %v4810_v30, %v4627_v29  ;;  %v4953_v9 = vadd.f32 %v4935_v22, %v4752_v55  ;;  %5359 = vmatpush.msra.mxu0 %v10860_v61  ;;  %5394 = vmatpush.msra.mxu1 %v10865_v48  ;;  %v10877_v55 = vld [vmem:[%s12277_s7 + $0x48] sm:$0xff]  ;;  %v10966_v6 = vld [vmem:[%s12277_s7 + $0x210] sm:$0xff] }
 0x619   : > { %v5038_v11 = vsel %vm4978_vm13, %v10683_v23, %v7412_v34  ;;  %8068 = vpow2.f32 %v5095_v26  ;;  %5628 = vmatpush.msrb.mxu2 %v10899_v35 }
 0x61a   : > { %v5122_v57 = vsel %vm5062_vm1, %v10686_v59, %v7424_v21  ;;  %v10815_v28 = vadd.f32 %v10506_v44, %v4828_v3  ;;  %v10818_v23 = vadd.f32 %v10506_v44, %v4953_v9  ;;  %v10885_v21 = vld [vmem:[%s12277_s7 + $0x30] sm:$0xff]  ;;  %v10890_v3 = vld [vmem:[%s12277_s7 + $0x38] sm:$0xff]  ;;  %5360 = vmatpush.msra.mxu0 %v10870_v24  ;;  %5395 = vmatpush.msra.mxu1 %v10877_v55 }
 0x61b   : > { %v5134_v59 = vmax.f32 %v5038_v11, %v5122_v57  ;;  %v10904_v11 = vld [vmem:[%s12277_s7 + $0x238] sm:$0xff]  ;;  %v10909_v57 = vld [vmem:[%s12277_s7 + $0x220] sm:$0xff] }
 0x61c   : > { %v4992_v37 = vmin.f32 %v10815_v28, 0.0  ;;  %v5076_v30 = vmin.f32 %v10818_v23, 0.0  ;;  %5663 = vmatpush.msrb.mxu3 %v10904_v11  ;;  %5361 = vmatpush.msra.mxu0 %v10885_v21  ;;  %vm4980_vm7 = vcmp.gt.f32.partialorder %v10815_v28, 0.0  ;;  %vm5064_vm5 = vcmp.gt.f32.partialorder %v10818_v23, 0.0 }
 0x61d   : > { %v10837_v22 = vld [vmem:[#allocation4 + $0x22] ss:$2 sm:$0xff]  ;;  %5147 = vst.msk [vmem:[#allocation4 + $0x38] sm:$0xff] %vm5139_vm3, %v5134_v59  ;;  %v4612_v2 = vpop.f32.mrf.mxu0  ;;  %v4737_v32 = vpop.f32.mrf.mxu1  ;;  %v12463_v59 = vld [vmem:[#allocation11_spill] sm:$0xff]  ;;  %5396 = vmatpush.msra.mxu1 %v10890_v3  ;;  %5629 = vmatpush.msrb.mxu2 %v10909_v57 }
 0x61e   : > { %7486 = vmatmul.msk.f32.gmra.mxu2 %vm5139_vm3, %v10837_v22  ;;  %7493 = vmatmul.msk.f32.gmra.mxu3 %vm5139_vm3, %v10837_v22  ;;  %v8067_v52 = vpop.eup %8066  ;;  %v5013_v16 = vmul.f32 1.442695, %v4992_v37  ;;  %v5097_v45 = vmul.f32 1.442695, %v5076_v30  ;;  %v4628_v26 = vadd.f32 %v4612_v2, %v4427_v7  ;;  %v4753_v29 = vadd.f32 %v4737_v32, %v4552_v13  ;;  %v10925_v37 = vld [vmem:[%s12277_s7 + $0x28] sm:$0xff]  ;;  %v10948_v32 = vld [vmem:[%s12277_s7 + $0x10] sm:$0xff] }
 0x61f   : > { %v8069_v49 = vpop.eup %8068  ;;  %v7413_v34 = vadd.f32 -1.0, %v8067_v52  ;;  %v4185_v7 = vadd.f32 %v12464_v54, %v12463_v59  ;;  %v12465_v52 = vld [vmem:[#allocation18_spill] sm:$0xff]  ;;  %5397 = vmatpush.msra.mxu1 %v10925_v37  ;;  %5630 = vmatpush.msrb.mxu2 %v10966_v6 }
 0x620   : > { %v7425_v9 = vadd.f32 -1.0, %v8069_v49  ;;  %8070 = vpow2.f32 %v5013_v16  ;;  %v4829_v31 = vadd.f32 %v4813_v14, %v4628_v26  ;;  %v4954_v0 = vadd.f32 %v4938_v40, %v4753_v29  ;;  %v10920_v40 = vld [vmem:[%s12277_s7 + $0x20] sm:$0xff]  ;;  %v12467_v49 = vld [vmem:[#allocation20_spill] sm:$0xff] }
 0x621   : > { %v5039_v14 = vsel %vm4979_vm4, %v10732_v10, %v7413_v34  ;;  %8072 = vpow2.f32 %v5097_v45  ;;  %v10932_v10 = vld [vmem:[%s12277_s7 + $0x228] sm:$0xff]  ;;  %v4428_v16 = vadd.f32 %v12465_v52, %v4185_v7  ;;  %v4553_v15 = vadd.f32 %v12467_v49, %v4351_v63  ;;  %5362 = vmatpush.msra.mxu0 %v10920_v40  ;;  %v10971_v34 = vld [vmem:[%s12277_s7 + $0x218] sm:$0xff] }
 0x622   : > { %v5123_v30 = vsel %vm5063_vm6, %v10735_v8, %v7425_v9  ;;  %v10936_v33 = vadd.f32 %v10506_v44, %v4829_v31  ;;  %v10939_v13 = vadd.f32 %v10506_v44, %v4954_v0  ;;  %5664 = vmatpush.msrb.mxu3 %v10932_v10  ;;  %v10953_v8 = vld [vmem:[%s12277_s7 + $0x18] sm:$0xff]  ;;  %v10981_v31 = vld [vmem:[%s12277_s7] sm:$0xff]  ;;  %v10986_v0 = vld [vmem:[%s12277_s7 + $0x8] sm:$0xff]  ;;  %vm6479_vm6 = vcmask 588800  }
 0x623   : > { %v5135_v2 = vmax.f32 %v5039_v14, %v5123_v30  ;;  %5363 = vmatpush.msra.mxu0 %v10948_v32  ;;  %5398 = vmatpush.msra.mxu1 %v10953_v8  ;;  %v10998_v52 = vld [vmem:[%s12277_s7 + $0x208] sm:$0xff] }
 0x624   : > { %v4993_v45 = vmin.f32 %v10936_v33, 0.0  ;;  %v5077_v26 = vmin.f32 %v10939_v13, 0.0  ;;  %v10958_v29 = vld [vmem:[#allocation4 + $0x31] ss:$2 sm:$0xff]  ;;  %5665 = vmatpush.msrb.mxu3 %v10971_v34  ;;  %vm4981_vm8 = vcmp.gt.f32.partialorder %v10936_v33, 0.0  ;;  %vm5065_vm9 = vcmp.gt.f32.partialorder %v10939_v13, 0.0 }
 0x625   : > { %12466 = vst [vmem:[#allocation29_spill] sm:$0xff] %v10958_v29  ;;  %7459 = vmatmul.msk.f32.gmra.mxu0 %vm5139_vm3, %v10958_v29  ;;  %7466 = vmatmul.msk.f32.gmra.mxu1 %vm5139_vm3, %v10958_v29  ;;  %v4615_v63 = vpop.f32.mrf.mxu0  ;;  %v4740_v9 = vpop.f32.mrf.mxu1 }
 0x626   : > { %5148 = vst.msk [vmem:[#allocation4 + $0x40] sm:$0xff] %vm5139_vm3, %v5135_v2  ;;  %v8071_v59 = vpop.eup %8070  ;;  %v5015_v54 = vmul.f32 1.442695, %v4993_v45  ;;  %v5099_v7 = vmul.f32 1.442695, %v5077_v26  ;;  %v4629_v14 = vadd.f32 %v4615_v63, %v4428_v16  ;;  %v4754_v30 = vadd.f32 %v4740_v9, %v4553_v15  ;;  %v10993_v2 = vld [vmem:[%s12277_s7 + $0x200] sm:$0xff]  ;;  %v4816_v29 = vpop.f32.mrf.mxu2  ;;  %5364 = vmatpush.msra.mxu0 %v10981_v31  ;;  %5399 = vmatpush.msra.mxu1 %v10986_v0 }
 0x627   : > { %v8073_v49 = vpop.eup %8072  ;;  %v4941_v45 = vpop.f32.mrf.mxu3  ;;  %v7414_v16 = vadd.f32 -1.0, %v8071_v59  ;;  %v11008_v9 = vld [vmem:[%s12277_s7 + $0x1f0] sm:$0xff]  ;;  %v11013_v59 = vld [vmem:[%s12277_s7 + $0x1f8] sm:$0xff]  ;;  %5631 = vmatpush.msrb.mxu2 %v10993_v2  ;;  %5666 = vmatpush.msrb.mxu3 %v10998_v52 }
 0x628   : > { %v7426_v26 = vadd.f32 -1.0, %v8073_v49  ;;  %8074 = vpow2.f32 %v5015_v54  ;;  %v4830_v15 = vadd.f32 %v4816_v29, %v4629_v14  ;;  %v4955_v63 = vadd.f32 %v4941_v45, %v4754_v30  ;;  %7497 = vmatpush.msk.msrb.mxu0 %vm5248_vm15, %v10663_v1  ;;  %7504 = vmatpush.msk.msrb.mxu1 %vm5248_vm15, %v10668_v46  ;;  %v11061_v30 = vld [vmem:[%s12277_s7 + $0x1d8] sm:$0xff] }
 0x629   : > { %v5040_v20 = vsel %vm4980_vm7, %v10815_v28, %v7414_v16  ;;  %8076 = vpow2.f32 %v5099_v7  ;;  %5632 = vmatpush.msrb.mxu2 %v11008_v9  ;;  %5667 = vmatpush.msrb.mxu3 %v11013_v59 }
 0x62a   : > { %v5124_v29 = vsel %vm5064_vm5, %v10818_v23, %v7426_v26  ;;  %v11021_v54 = vadd.f32 %v10506_v44, %v4830_v15  ;;  %v11024_v14 = vadd.f32 %v10506_v44, %v4955_v63  ;;  %v11035_v23 = vld [vmem:[%s12277_s7 + $0x1e0] sm:$0xff]  ;;  %v11040_v44 = vld [vmem:[%s12277_s7 + $0x1e8] sm:$0xff]  ;;  %5523 = vmatpush.msrb.mxu0 %v10702_v36  ;;  %5558 = vmatpush.msrb.mxu1 %v10707_v39 }
 0x62b   : > { %v5136_v28 = vmax.f32 %v5040_v20, %v5124_v29  ;;  %v11056_v20 = vld [vmem:[%s12277_s7 + $0x1d0] sm:$0xff]  ;;  %5633 = vmatpush.msrb.mxu2 %v11035_v23  ;;  %5668 = vmatpush.msrb.mxu3 %v11040_v44  ;;  %v11068_v26 = vld [vmem:[%s12277_s7 + $0x1c0] sm:$0xff]  ;;  %v11073_v15 = vld [vmem:[%s12277_s7 + $0x1c8] sm:$0xff] }
 0x62c   : > { %v4994_v1 = vmin.f32 %v11021_v54, 0.0  ;;  %v5078_v7 = vmin.f32 %v11024_v14, 0.0  ;;  %5524 = vmatpush.msrb.mxu0 %v10712_v25  ;;  %5559 = vmatpush.msrb.mxu1 %v10719_v38  ;;  %v11090_v25 = vld [vmem:[%s12277_s7 + $0x1b8] sm:$0xff]  ;;  %vm4982_vm10 = vcmp.gt.f32.partialorder %v11021_v54, 0.0  ;;  %vm5066_vm11 = vcmp.gt.f32.partialorder %v11024_v14, 0.0 }
 0x62d   : > { %v11044_v46 = vld [vmem:[#allocation4 + $0x32] ss:$2 sm:$0xff]  ;;  %5149 = vst.msk [vmem:[#allocation4 + $0x48] sm:$0xff] %vm5139_vm3, %v5136_v28  ;;  %5634 = vmatpush.msrb.mxu2 %v11056_v20  ;;  %5669 = vmatpush.msrb.mxu3 %v11061_v30 }
 0x62e   : > { %7487 = vmatmul.msk.f32.gmra.mxu2 %vm5139_vm3, %v11044_v46  ;;  %7494 = vmatmul.msk.f32.gmra.mxu3 %vm5139_vm3, %v11044_v46  ;;  %v8075_v36 = vpop.eup %8074  ;;  %v5017_v39 = vmul.f32 1.442695, %v4994_v1  ;;  %v5101_v49 = vmul.f32 1.442695, %v5078_v7  ;;  %v11085_v28 = vld [vmem:[%s12277_s7 + $0x1b0] sm:$0xff]  ;;  %v11100_v1 = vld [vmem:[%s12277_s7 + $0x1a0] sm:$0xff] }
 0x62f   : > { %v8077_v45 = vpop.eup %8076  ;;  %v7415_v16 = vadd.f32 -1.0, %v8075_v36  ;;  %5525 = vmatpush.msrb.mxu0 %v10751_v17  ;;  %5560 = vmatpush.msrb.mxu1 %v10756_v18  ;;  %v11105_v7 = vld [vmem:[%s12277_s7 + $0x1a8] sm:$0xff] }
 0x630   : > { %v7427_v63 = vadd.f32 -1.0, %v8077_v45  ;;  %8078 = vpow2.f32 %v5017_v39  ;;  %5635 = vmatpush.msrb.mxu2 %v11068_v26  ;;  %5670 = vmatpush.msrb.mxu3 %v11073_v15  ;;  %v11443_v45 = vld [vmem:[%s12277_s7 + $0x3c0] sm:$0xff] }
 0x631   : > { %v5041_v29 = vsel %vm4981_vm8, %v10936_v33, %v7415_v16  ;;  %8080 = vpow2.f32 %v5101_v49  ;;  %5526 = vmatpush.msrb.mxu0 %v10761_v50  ;;  %5561 = vmatpush.msrb.mxu1 %v10768_v42  ;;  %v11448_v16 = vld [vmem:[%s12277_s7 + $0x3c8] sm:$0xff] }
 0x632   : > { %v5125_v38 = vsel %vm5065_vm9, %v10939_v13, %v7427_v63  ;;  %5636 = vmatpush.msrb.mxu2 %v11085_v28  ;;  %5671 = vmatpush.msrb.mxu3 %v11090_v25  ;;  %v11470_v63 = vld [vmem:[%s12277_s7 + $0x3b8] sm:$0xff] }
 0x633   : > { %v5137_v33 = vmax.f32 %v5041_v29, %v5125_v38  ;;  %5527 = vmatpush.msrb.mxu0 %v10788_v41  ;;  %5562 = vmatpush.msrb.mxu1 %v10793_v62  ;;  %v11482_v29 = vld [vmem:[%s12277_s7 + $0x3a8] sm:$0xff]  ;;  %v12468_v38 = vld [vmem:[#allocation28_spill] sm:$0xff] }
 0x634   : > { %v11109_v17 = vld [vmem:[#allocation4 + $0x41] ss:$2 sm:$0xff]  ;;  %5637 = vmatpush.msrb.mxu2 %v11100_v1  ;;  %5672 = vmatpush.msrb.mxu3 %v11105_v7 }
 0x635   : > { %5150 = vst.msk [vmem:[#allocation4 + $0x50] sm:$0xff] %vm5139_vm3, %v5137_v33  ;;  %7460 = vmatmul.msk.f32.gmra.mxu0 %vm5139_vm3, %v11109_v17  ;;  %7467 = vmatmul.msk.f32.gmra.mxu1 %vm5139_vm3, %v11109_v17  ;;  %v11508_v33 = vld [vmem:[#allocation4 + $0x13] ss:$2 sm:$0xff] }
 0x636   : > { %v8079_v18 = vpop.eup %8078  ;;  %5528 = vmatpush.msrb.mxu0 %v10825_v12  ;;  %5563 = vmatpush.msrb.mxu1 %v10830_v5  ;;  %v11145_v12 = vld [vmem:[%s12277_s7 + $0x330] sm:$0xf]  ;;  %v11150_v5 = vld [vmem:[%s12277_s7 + $0x338] sm:$0xf] }
 0x637   : > { %v8081_v50 = vpop.eup %8080  ;;  %v7416_v42 = vadd.f32 -1.0, %v8079_v18  ;;  %7591 = vmatpush.msk.msra.mxu2 %vm5248_vm15, %v11145_v12  ;;  %7598 = vmatpush.msk.msra.mxu3 %vm5248_vm15, %v11150_v5  ;;  %v11529_v18 = vld [vmem:[%s12277_s7 + $0x370] sm:$0xff] }
 0x638   : > { %v7428_v13 = vadd.f32 -1.0, %v8081_v50  ;;  %5529 = vmatpush.msrb.mxu0 %v10860_v61  ;;  %5564 = vmatpush.msrb.mxu1 %v10865_v48  ;;  %v5180_v61 = vld [vmem:[#allocation4] ss:$2 sm:$0xff] }
 0x639   : > { %v5042_v36 = vsel %vm4982_vm10, %v11021_v54, %v7416_v42  ;;  %v5182_v54 = vld [vmem:[#allocation4 + $0x10] ss:$2 sm:$0xff]  ;;  %v11534_v50 = vld [vmem:[%s12277_s7 + $0x378] sm:$0xff] }
 0x63a   : > { %v5126_v39 = vsel %vm5066_vm11, %v11024_v14, %v7428_v13  ;;  %5530 = vmatpush.msrb.mxu0 %v10870_v24  ;;  %5565 = vmatpush.msrb.mxu1 %v10877_v55  ;;  %v11173_v24 = vld [vmem:[%s12277_s7 + $0x320] sm:$0xff]  ;;  %v11178_v55 = vld [vmem:[%s12277_s7 + $0x328] sm:$0xff]  ;;  %v11213_v14 = vld [vmem:[%s12277_s7 + $0x2f0] sm:$0xff] }
 0x63b   : > { %v5138_v49 = vmax.f32 %v5042_v36, %v5126_v39  ;;  %5853 = vmatpush.msra.mxu2 %v11173_v24  ;;  %5888 = vmatpush.msra.mxu3 %v11178_v55  ;;  %v11547_v42 = vld [vmem:[%s12277_s7 + $0x360] sm:$0xff]  ;;  %v11552_v13 = vld [vmem:[%s12277_s7 + $0x368] sm:$0xff] }
 0x63c   : > { %v11130_v41 = vld [vmem:[#allocation4 + $0x51] ss:$2 sm:$0x7]  ;;  %v11132_v62 = vld [vmem:[#allocation4 + $0x42] ss:$2 sm:$0xff]  ;;  %5531 = vmatpush.msrb.mxu0 %v10885_v21  ;;  %5566 = vmatpush.msrb.mxu1 %v10890_v3 }
 0x63d   : > { %5152 = vst.msk [vmem:[#allocation4 + $0x58] sm:$0x3] %vm5151_vm2, %v5138_v49  ;;  %7461 = vmatmul.msk.f32.gmra.mxu0 %vm5139_vm3, %v11130_v41  ;;  %7468 = vmatmul.msk.f32.gmra.mxu1 %vm5139_vm3, %v11130_v41  ;;  %v11164_v48 = vld [vmem:[#allocation4 + $0x52] ss:$2 sm:$0x7]  ;;  %v11183_v21 = vld [vmem:[%s12277_s7 + $0x310] sm:$0xff] }
 0x63e   : > { %7488 = vmatmul.msk.f32.gmra.mxu2 %vm5139_vm3, %v11132_v62  ;;  %7495 = vmatmul.msk.f32.gmra.mxu3 %vm5139_vm3, %v11132_v62  ;;  %v11190_v3 = vld [vmem:[%s12277_s7 + $0x318] sm:$0xff]  ;;  %v11569_v49 = vld [vmem:[%s12277_s7 + $0x350] sm:$0xff] }
 0x63f   : > { %5532 = vmatpush.msrb.mxu0 %v10920_v40  ;;  %5567 = vmatpush.msrb.mxu1 %v10925_v37  ;;  %v11195_v40 = vld [vmem:[%s12277_s7 + $0x300] sm:$0xff]  ;;  %v11200_v37 = vld [vmem:[%s12277_s7 + $0x308] sm:$0xff] }
 0x640   : > { %5854 = vmatpush.msra.mxu2 %v11183_v21  ;;  %5889 = vmatpush.msra.mxu3 %v11190_v3  ;;  %v12469_v36 = vld [vmem:[#allocation29_spill] sm:$0xff] }
 0x641   : > { %5533 = vmatpush.msrb.mxu0 %v10948_v32  ;;  %5568 = vmatpush.msrb.mxu1 %v10953_v8  ;;  %v11218_v32 = vld [vmem:[%s12277_s7 + $0x2f8] sm:$0xff]  ;;  %v11233_v8 = vld [vmem:[%s12277_s7 + $0x2e0] sm:$0xff] }
 0x642   : > { %5855 = vmatpush.msra.mxu2 %v11195_v40  ;;  %5890 = vmatpush.msra.mxu3 %v11200_v37  ;;  %v11560_v39 = vld [vmem:[#allocation4 + $0x23] ss:$2 sm:$0xff] }
 0x643   : > { %5534 = vmatpush.msrb.mxu0 %v10981_v31  ;;  %5569 = vmatpush.msrb.mxu1 %v10986_v0  ;;  %v5184_v31 = vld [vmem:[#allocation4 + $0x20] ss:$2 sm:$0xff]  ;;  %v11263_v0 = vld [vmem:[%s12277_s7 + $0x2c0] sm:$0xff] }
 0x644   : > { %5856 = vmatpush.msra.mxu2 %v11213_v14  ;;  %5891 = vmatpush.msra.mxu3 %v11218_v32 }
 0x645   : > { %7470 = vmatmul.msk.f32.vlgmr.msra.gmra.mxu0 %vm5139_vm3, %v5180_v61  ;;  %7477 = vmatmul.msk.f32.vlgmr.msra.gmra.mxu1 %vm5139_vm3, %v5180_v61 }
 0x646   : > { %7489 = vmatmul.msk.f32.gmra.mxu2 %vm5139_vm3, %v11164_v48  ;;  %7496 = vmatmul.msk.f32.gmra.mxu3 %vm5139_vm3, %v11164_v48 }
 0x647   : > { %7551 = vmatpush.msk.msra.mxu0 %vm5248_vm15, %v10776_v51  ;;  %7558 = vmatpush.msk.msra.mxu1 %vm5248_vm15, %v10781_v27  ;;  %v11238_v51 = vld [vmem:[%s12277_s7 + $0x2e8] sm:$0xff]  ;;  %v11245_v27 = vld [vmem:[%s12277_s7 + $0x2d0] sm:$0xff] }
 0x648   : > { %5857 = vmatpush.msra.mxu2 %v11233_v8  ;;  %5892 = vmatpush.msra.mxu3 %v11238_v51 }
 0x649   : > { %5738 = vmatpush.msra.mxu0 %v10798_v56  ;;  %5773 = vmatpush.msra.mxu1 %v10811_v19  ;;  %v11268_v56 = vld [vmem:[%s12277_s7 + $0x2c8] sm:$0xff]  ;;  %v11281_v19 = vld [vmem:[%s12277_s7 + $0x2b0] sm:$0xff] }
 0x64a   : > { %5858 = vmatpush.msra.mxu2 %v11245_v27 }
 0x64b   : > { %5739 = vmatpush.msra.mxu0 %v10845_v60  ;;  %5774 = vmatpush.msra.mxu1 %v10850_v43  ;;  %v11286_v60 = vld [vmem:[%s12277_s7 + $0x2b8] sm:$0xff]  ;;  %v11293_v43 = vld [vmem:[%s12277_s7 + $0x2a0] sm:$0xff] }
 0x64c   : > { %5859 = vmatpush.msra.mxu2 %v11263_v0 }
 0x64d   : > { %7471 = vmatmul.msk.f32.gmra.mxu0 %vm5139_vm3, %v5182_v54  ;;  %7478 = vmatmul.msk.f32.gmra.mxu1 %vm5139_vm3, %v5182_v54 }
 0x64e   : > { %7538 = vmatmul.msk.f32.vlgmr.msrb.gmra.mxu2 %vm5139_vm3, %v10629_v47  ;;  %7545 = vmatmul.msk.f32.vlgmr.msrb.gmra.mxu3 %vm5139_vm3, %v10629_v47  ;;  %v11250_v47 = vld [vmem:[%s12277_s7 + $0x2d8] sm:$0xff] }
 0x64f   : > { %5893 = vmatpush.msra.mxu3 %v11250_v47  ;;  %5740 = vmatpush.msra.mxu0 %v10899_v35  ;;  %v5186_v35 = vld [vmem:[#allocation4 + $0x30] ss:$2 sm:$0xff] }
 0x650   : > { %5775 = vmatpush.msra.mxu1 %v10904_v11  ;;  %5860 = vmatpush.msra.mxu2 %v11281_v19  ;;  %v11311_v11 = vld [vmem:[%s12277_s7 + $0x290] sm:$0xff] }
 0x651   : > { %5894 = vmatpush.msra.mxu3 %v11268_v56  ;;  %5741 = vmatpush.msra.mxu0 %v10909_v57  ;;  %v11316_v57 = vld [vmem:[%s12277_s7 + $0x298] sm:$0xff] }
 0x652   : > { %5776 = vmatpush.msra.mxu1 %v10932_v10  ;;  %5861 = vmatpush.msra.mxu2 %v11293_v43  ;;  %v11329_v10 = vld [vmem:[%s12277_s7 + $0x280] sm:$0xff] }
 0x653   : > { %5895 = vmatpush.msra.mxu3 %v11286_v60  ;;  %5742 = vmatpush.msra.mxu0 %v10966_v6  ;;  %v11334_v6 = vld [vmem:[%s12277_s7 + $0x288] sm:$0xff] }
 0x654   : > { %5777 = vmatpush.msra.mxu1 %v10971_v34  ;;  %5862 = vmatpush.msra.mxu2 %v11311_v11  ;;  %v11341_v34 = vld [vmem:[%s12277_s7 + $0x270] sm:$0xff] }
 0x655   : > { %7472 = vmatmul.msk.f32.gmra.mxu0 %vm5139_vm3, %v5184_v31  ;;  %7479 = vmatmul.msk.f32.gmra.mxu1 %vm5139_vm3, %v5184_v31 }
 0x656   : > { %7539 = vmatmul.msk.f32.gmra.mxu2 %vm5139_vm3, %v10691_v4  ;;  %7546 = vmatmul.msk.f32.gmra.mxu3 %vm5139_vm3, %v10691_v4  ;;  %v11298_v4 = vld [vmem:[%s12277_s7 + $0x2a8] sm:$0xff] }
 0x657   : > { %5896 = vmatpush.msra.mxu3 %v11298_v4  ;;  %5743 = vmatpush.msra.mxu0 %v10993_v2  ;;  %v5188_v2 = vld [vmem:[#allocation4 + $0x40] ss:$2 sm:$0xff] }
 0x658   : > { %5778 = vmatpush.msra.mxu1 %v10998_v52  ;;  %5863 = vmatpush.msra.mxu2 %v11329_v10  ;;  %v5190_v52 = vld [vmem:[#allocation4 + $0x50] ss:$2 sm:$0x7] }
 0x659   : > { %5897 = vmatpush.msra.mxu3 %v11316_v57  ;;  %5744 = vmatpush.msra.mxu0 %v11008_v9  ;;  %v11379_v9 = vld [vmem:[%s12277_s7 + $0x400] sm:$0xf] }
 0x65a   : > { %5779 = vmatpush.msra.mxu1 %v11013_v59  ;;  %5864 = vmatpush.msra.mxu2 %v11341_v34  ;;  %v11384_v59 = vld [vmem:[%s12277_s7 + $0x408] sm:$0xf] }
 0x65b   : > { %5898 = vmatpush.msra.mxu3 %v11334_v6  ;;  %5745 = vmatpush.msra.mxu0 %v11035_v23  ;;  %v11401_v23 = vld [vmem:[%s12277_s7 + $0x3f0] sm:$0xff] }
 0x65c   : > { %5780 = vmatpush.msra.mxu1 %v11040_v44  ;;  %7645 = vmatpush.msk.msrb.mxu2 %vm5248_vm15, %v11379_v9  ;;  %v11406_v44 = vld [vmem:[%s12277_s7 + $0x3f8] sm:$0xff] }
 0x65d   : > { %7473 = vmatmul.msk.f32.gmra.mxu0 %vm5139_vm3, %v5186_v35  ;;  %7480 = vmatmul.msk.f32.gmra.mxu1 %vm5139_vm3, %v5186_v35 }
 0x65e   : > { %7540 = vmatmul.msk.f32.gmra.mxu2 %vm5139_vm3, %v10837_v22  ;;  %7547 = vmatmul.msk.f32.gmra.mxu3 %vm5139_vm3, %v10837_v22  ;;  %v11346_v22 = vld [vmem:[%s12277_s7 + $0x278] sm:$0xff] }
 0x65f   : > { %5899 = vmatpush.msra.mxu3 %v11346_v22  ;;  %5746 = vmatpush.msra.mxu0 %v11056_v20  ;;  %v11423_v20 = vld [vmem:[%s12277_s7 + $0x3d0] sm:$0xff] }
 0x660   : > { %5781 = vmatpush.msra.mxu1 %v11061_v30  ;;  %6080 = vmatpush.msrb.mxu2 %v11401_v23  ;;  %v11428_v30 = vld [vmem:[%s12277_s7 + $0x3d8] sm:$0xff] }
 0x661   : > { %5747 = vmatpush.msra.mxu0 %v11068_v26  ;;  %7652 = vmatpush.msk.msrb.mxu3 %vm5248_vm15, %v11384_v59  ;;  %v11456_v26 = vld [vmem:[#allocation4 + $0x3] ss:$2 sm:$0xff] }
 0x662   : > { %5782 = vmatpush.msra.mxu1 %v11073_v15  ;;  %v11465_v15 = vld [vmem:[%s12277_s7 + $0x3b0] sm:$0xff] }
 0x663   : > { %5748 = vmatpush.msra.mxu0 %v11085_v28  ;;  %6115 = vmatpush.msrb.mxu3 %v11406_v44  ;;  %v11495_v28 = vld [vmem:[%s12277_s7 + $0x390] sm:$0xff] }
 0x664   : > { %5783 = vmatpush.msra.mxu1 %v11090_v25  ;;  %v11500_v25 = vld [vmem:[%s12277_s7 + $0x398] sm:$0xff] }
 0x665   : > { %7474 = vmatmul.msk.f32.gmra.mxu0 %vm5139_vm3, %v5188_v2  ;;  %7481 = vmatmul.msk.f32.gmra.mxu1 %vm5139_vm3, %v5188_v2 }
 0x666   : > { %7541 = vmatmul.msk.f32.gmra.mxu2 %vm5139_vm3, %v11044_v46  ;;  %7548 = vmatmul.msk.f32.gmra.mxu3 %vm5139_vm3, %v11044_v46  ;;  %v11418_v46 = vld [vmem:[%s12277_s7 + $0x3e8] sm:$0xff] }
 0x667   : > { %5749 = vmatpush.msra.mxu0 %v11100_v1  ;;  %5784 = vmatpush.msra.mxu1 %v11105_v7  ;;  %v11517_v1 = vld [vmem:[%s12277_s7 + $0x380] sm:$0xff]  ;;  %v11522_v7 = vld [vmem:[%s12277_s7 + $0x388] sm:$0xff] }
 0x668   : > { %6116 = vmatpush.msrb.mxu3 %v11418_v46 }
 0x66a   : > { %6117 = vmatpush.msrb.mxu3 %v11428_v30 }
 0x66c   : > { %6118 = vmatpush.msrb.mxu3 %v11448_v16 }
 0x66d   : > { %7475 = vmatmul.msk.f32.gmra.mxu0 %vm5139_vm3, %v5190_v52  ;;  %7482 = vmatmul.msk.f32.gmra.mxu1 %vm5139_vm3, %v5190_v52 }
 0x66e   : > { %7542 = vmatmul.msk.f32.gmra.mxu2 %vm5139_vm3, %v11132_v62  ;;  %7549 = vmatmul.msk.f32.gmra.mxu3 %vm5139_vm3, %v11132_v62  ;;  %v11574_v62 = vld [vmem:[%s12277_s7 + $0x358] sm:$0xff] }
 0x66f   : > { %6119 = vmatpush.msrb.mxu3 %v11470_v63 }
 0x671   : > { %6120 = vmatpush.msrb.mxu3 %v11482_v29 }
 0x672   : > { %v11592_v61 = vpop.f32.mrf.mxu0 }
 0x673   : > { %6121 = vmatpush.msrb.mxu3 %v11500_v25 }
 0x675   : > { %7498 = vmatmul.msk.f32.vlgmr.msrb.gmra.mxu0 %vm5139_vm3, %v10608_v58  ;;  %7505 = vmatmul.msk.f32.vlgmr.msrb.gmra.mxu1 %vm5139_vm3, %v10608_v58  ;;  %v11411_v58 = vld [vmem:[%s12277_s7 + $0x3e0] sm:$0xff] }
 0x676   : > { %7543 = vmatmul.msk.f32.gmra.mxu2 %vm5139_vm3, %v11164_v48  ;;  %7550 = vmatmul.msk.f32.gmra.mxu3 %vm5139_vm3, %v11164_v48  ;;  %v11594_v48 = vpop.f32.mrf.mxu1 }
 0x677   : > { %7605 = vmatpush.msk.msrb.mxu0 %vm5248_vm15, %v11145_v12  ;;  %7612 = vmatpush.msk.msrb.mxu1 %vm5248_vm15, %v11150_v5  ;;  %v11581_v12 = vld [vmem:[%s12277_s7 + $0x340] sm:$0xff]  ;;  %v11586_v5 = vld [vmem:[%s12277_s7 + $0x348] sm:$0xff] }
 0x678   : > { %6081 = vmatpush.msrb.mxu2 %v11411_v58  ;;  %6122 = vmatpush.msrb.mxu3 %v11522_v7 }
 0x679   : > { %5965 = vmatpush.msrb.mxu0 %v11173_v24  ;;  %6000 = vmatpush.msrb.mxu1 %v11178_v55  ;;  %v5711_v24 = vld [vmem:[#allocation4 + $0x33] ss:$2 sm:$0xff] }
 0x67a   : > { %6082 = vmatpush.msrb.mxu2 %v11423_v20  ;;  %6123 = vmatpush.msrb.mxu3 %v11534_v50 }
 0x67b   : > { %5966 = vmatpush.msrb.mxu0 %v11183_v21  ;;  %6001 = vmatpush.msrb.mxu1 %v11190_v3 }
 0x67c   : > { %6083 = vmatpush.msrb.mxu2 %v11443_v45  ;;  %6124 = vmatpush.msrb.mxu3 %v11552_v13 }
 0x67d   : > { %7499 = vmatmul.msk.f32.gmra.mxu0 %vm5139_vm3, %v10652_v53  ;;  %7506 = vmatmul.msk.f32.gmra.mxu1 %vm5139_vm3, %v10652_v53  ;;  %v11477_v53 = vld [vmem:[%s12277_s7 + $0x3a0] sm:$0xff] }
 0x67e   : > { %7592 = vmatmul.msk.f32.vlgmr.msra.gmra.mxu2 %vm5139_vm3, %v11456_v26  ;;  %7599 = vmatmul.msk.f32.vlgmr.msra.gmra.mxu3 %vm5139_vm3, %v11456_v26 }
 0x67f   : > { %5967 = vmatpush.msrb.mxu0 %v11195_v40  ;;  %6002 = vmatpush.msrb.mxu1 %v11200_v37 }
 0x680   : > { %6084 = vmatpush.msrb.mxu2 %v11465_v15  ;;  %6125 = vmatpush.msrb.mxu3 %v11574_v62  ;;  %v11624_v3 = vpop.f32.mrf.mxu2  ;;  %v11626_v40 = vpop.f32.mrf.mxu3 }
 0x681   : > { %5968 = vmatpush.msrb.mxu0 %v11213_v14  ;;  %6003 = vmatpush.msrb.mxu1 %v11218_v32 }
 0x682   : > { %6085 = vmatpush.msrb.mxu2 %v11477_v53  ;;  %6126 = vmatpush.msrb.mxu3 %v11586_v5  ;;  %v11610_v55 = vpop.f32.mrf.mxu0  ;;  %v11612_v21 = vpop.f32.mrf.mxu1 }
 0x683   : > { %5969 = vmatpush.msrb.mxu0 %v11233_v8  ;;  %6004 = vmatpush.msrb.mxu1 %v11238_v51 }
 0x684   : > { %6086 = vmatpush.msrb.mxu2 %v11495_v28 }
 0x685   : > { %7500 = vmatmul.msk.f32.gmra.mxu0 %vm5139_vm3, %v12468_v38  ;;  %7507 = vmatmul.msk.f32.gmra.mxu1 %vm5139_vm3, %v12468_v38 }
 0x686   : > { %7593 = vmatmul.msk.f32.gmra.mxu2 %vm5139_vm3, %v11508_v33  ;;  %7600 = vmatmul.msk.f32.gmra.mxu3 %vm5139_vm3, %v11508_v33 }
 0x687   : > { %5970 = vmatpush.msrb.mxu0 %v11245_v27  ;;  %6005 = vmatpush.msrb.mxu1 %v11250_v47  ;;  %v11662_v27 = vld [vmem:[#allocation4 + $0x4] ss:$2 sm:$0xff] }
 0x688   : > { %6087 = vmatpush.msrb.mxu2 %v11517_v1 }
 0x689   : > { %5971 = vmatpush.msrb.mxu0 %v11263_v0  ;;  %6006 = vmatpush.msrb.mxu1 %v11268_v56 }
 0x68a   : > { %6088 = vmatpush.msrb.mxu2 %v11529_v18 }
 0x68b   : > { %5972 = vmatpush.msrb.mxu0 %v11281_v19  ;;  %6007 = vmatpush.msrb.mxu1 %v11286_v60  ;;  %v5934_v19 = vld [vmem:[#allocation4 + $0x14] ss:$2 sm:$0xff] }
 0x68c   : > { %6089 = vmatpush.msrb.mxu2 %v11547_v42 }
 0x68d   : > { %7501 = vmatmul.msk.f32.gmra.mxu0 %vm5139_vm3, %v12469_v36  ;;  %7508 = vmatmul.msk.f32.gmra.mxu1 %vm5139_vm3, %v12469_v36 }
 0x68e   : > { %7594 = vmatmul.msk.f32.gmra.mxu2 %vm5139_vm3, %v11560_v39  ;;  %7601 = vmatmul.msk.f32.gmra.mxu3 %vm5139_vm3, %v11560_v39 }
 0x68f   : > { %5973 = vmatpush.msrb.mxu0 %v11293_v43  ;;  %6008 = vmatpush.msrb.mxu1 %v11298_v4 }
 0x690   : > { %6090 = vmatpush.msrb.mxu2 %v11569_v49  ;;  %v11646_v14 = vpop.f32.mrf.mxu2  ;;  %v11648_v32 = vpop.f32.mrf.mxu3 }
 0x691   : > { %5974 = vmatpush.msrb.mxu0 %v11311_v11  ;;  %6009 = vmatpush.msrb.mxu1 %v11316_v57  ;;  %v5936_v11 = vld [vmem:[#allocation4 + $0x24] ss:$2 sm:$0xff] }
 0x692   : > { %6091 = vmatpush.msrb.mxu2 %v11581_v12  ;;  %v11628_v37 = vpop.f32.mrf.mxu0  ;;  %v11630_v54 = vpop.f32.mrf.mxu1 }
 0x693   : > { %5975 = vmatpush.msrb.mxu0 %v11329_v10  ;;  %6010 = vmatpush.msrb.mxu1 %v11334_v6 }
 0x695   : > { %7502 = vmatmul.msk.f32.gmra.mxu0 %vm5139_vm3, %v11109_v17  ;;  %7509 = vmatmul.msk.f32.gmra.mxu1 %vm5139_vm3, %v11109_v17  ;;  %v11618_v17 = vld [vmem:[#allocation4 + $0x43] ss:$2 sm:$0xff] }
 0x696   : > { %7595 = vmatmul.msk.f32.gmra.mxu2 %vm5139_vm3, %v5711_v24  ;;  %7602 = vmatmul.msk.f32.gmra.mxu3 %vm5139_vm3, %v5711_v24 }
 0x697   : > { %5976 = vmatpush.msrb.mxu0 %v11341_v34  ;;  %6011 = vmatpush.msrb.mxu1 %v11346_v22  ;;  %v5938_v22 = vld [vmem:[#allocation4 + $0x34] ss:$2 sm:$0xff] }
 0x69d   : > { %7503 = vmatmul.msk.f32.gmra.mxu0 %vm5139_vm3, %v11130_v41  ;;  %7510 = vmatmul.msk.f32.gmra.mxu1 %vm5139_vm3, %v11130_v41  ;;  %v11636_v41 = vld [vmem:[#allocation4 + $0x53] ss:$2 sm:$0x7] }
 0x69e   : > { %7596 = vmatmul.msk.f32.gmra.mxu2 %vm5139_vm3, %v11618_v17  ;;  %7603 = vmatmul.msk.f32.gmra.mxu3 %vm5139_vm3, %v11618_v17 }
 0x6a1   : > { %v11670_v47 = vpop.f32.mrf.mxu2  ;;  %v11672_v31 = vpop.f32.mrf.mxu3 }
 0x6a2   : > { %v11652_v8 = vpop.f32.mrf.mxu0  ;;  %v11654_v51 = vpop.f32.mrf.mxu1 }
 0x6a5   : > { %7552 = vmatmul.msk.f32.vlgmr.msra.gmra.mxu0 %vm5139_vm3, %v11456_v26  ;;  %7559 = vmatmul.msk.f32.vlgmr.msra.gmra.mxu1 %vm5139_vm3, %v11456_v26 }
 0x6a6   : > { %7597 = vmatmul.msk.f32.gmra.mxu2 %vm5139_vm3, %v11636_v41  ;;  %7604 = vmatmul.msk.f32.gmra.mxu3 %vm5139_vm3, %v11636_v41 }
 0x6a7   : > { %7659 = vmatpush.msk.msra.mxu0 %vm5248_vm15, %v11379_v9  ;;  %7666 = vmatpush.msk.msra.mxu1 %vm5248_vm15, %v11384_v59 }
 0x6a9   : > { %6192 = vmatpush.msra.mxu0 %v11401_v23  ;;  %6227 = vmatpush.msra.mxu1 %v11406_v44  ;;  %v5940_v23 = vld [vmem:[#allocation4 + $0x44] ss:$2 sm:$0xff] }
 0x6ab   : > { %6193 = vmatpush.msra.mxu0 %v11411_v58  ;;  %6228 = vmatpush.msra.mxu1 %v11418_v46 }
 0x6ad   : > { %7553 = vmatmul.msk.f32.gmra.mxu0 %vm5139_vm3, %v11508_v33  ;;  %7560 = vmatmul.msk.f32.gmra.mxu1 %vm5139_vm3, %v11508_v33 }
 0x6ae   : > { %7646 = vmatmul.msk.f32.vlgmr.msrb.gmra.mxu2 %vm5139_vm3, %v11662_v27  ;;  %7653 = vmatmul.msk.f32.vlgmr.msrb.gmra.mxu3 %vm5139_vm3, %v11662_v27 }
 0x6af   : > { %6194 = vmatpush.msra.mxu0 %v11423_v20  ;;  %6229 = vmatpush.msra.mxu1 %v11428_v30  ;;  %v5942_v30 = vld [vmem:[#allocation4 + $0x54] ss:$2 sm:$0x7] }
 0x6b1   : > { %6195 = vmatpush.msra.mxu0 %v11443_v45  ;;  %6230 = vmatpush.msra.mxu1 %v11448_v16  ;;  %v11690_v60 = vpop.f32.mrf.mxu2  ;;  %v11692_v43 = vpop.f32.mrf.mxu3 }
 0x6b2   : > { %v11676_v0 = vpop.f32.mrf.mxu0  ;;  %v11678_v56 = vpop.f32.mrf.mxu1 }
 0x6b3   : > { %6196 = vmatpush.msra.mxu0 %v11465_v15  ;;  %6231 = vmatpush.msra.mxu1 %v11470_v63 }
 0x6b5   : > { %7554 = vmatmul.msk.f32.gmra.mxu0 %vm5139_vm3, %v11560_v39  ;;  %7561 = vmatmul.msk.f32.gmra.mxu1 %vm5139_vm3, %v11560_v39 }
 0x6b6   : > { %7647 = vmatmul.msk.f32.gmra.mxu2 %vm5139_vm3, %v5934_v19  ;;  %7654 = vmatmul.msk.f32.gmra.mxu3 %vm5139_vm3, %v5934_v19 }
 0x6b7   : > { %6197 = vmatpush.msra.mxu0 %v11477_v53  ;;  %6232 = vmatpush.msra.mxu1 %v11482_v29 }
 0x6b9   : > { %6198 = vmatpush.msra.mxu0 %v11495_v28  ;;  %6233 = vmatpush.msra.mxu1 %v11500_v25 }
 0x6ba   : > { %v11696_v4 = vpop.f32.mrf.mxu0  ;;  %v11698_v35 = vpop.f32.mrf.mxu1 }
 0x6bb   : > { %6199 = vmatpush.msra.mxu0 %v11517_v1  ;;  %6234 = vmatpush.msra.mxu1 %v11522_v7 }
 0x6bd   : > { %7555 = vmatmul.msk.f32.gmra.mxu0 %vm5139_vm3, %v5711_v24  ;;  %7562 = vmatmul.msk.f32.gmra.mxu1 %vm5139_vm3, %v5711_v24 }
 0x6be   : > { %7648 = vmatmul.msk.f32.gmra.mxu2 %vm5139_vm3, %v5936_v11  ;;  %7655 = vmatmul.msk.f32.gmra.mxu3 %vm5139_vm3, %v5936_v11 }
 0x6bf   : > { %6200 = vmatpush.msra.mxu0 %v11529_v18  ;;  %6235 = vmatpush.msra.mxu1 %v11534_v50 }
 0x6c1   : > { %v11708_v57 = vpop.f32.mrf.mxu2  ;;  %v11710_v10 = vpop.f32.mrf.mxu3  ;;  %6201 = vmatpush.msra.mxu0 %v11547_v42  ;;  %6236 = vmatpush.msra.mxu1 %v11552_v13 }
 0x6c2   : > { %v11714_v6 = vpop.f32.mrf.mxu0  ;;  %v11716_v34 = vpop.f32.mrf.mxu1 }
 0x6c3   : > { %6202 = vmatpush.msra.mxu0 %v11569_v49  ;;  %6237 = vmatpush.msra.mxu1 %v11574_v62 }
 0x6c5   : > { %7556 = vmatmul.msk.f32.gmra.mxu0 %vm5139_vm3, %v11618_v17  ;;  %7563 = vmatmul.msk.f32.gmra.mxu1 %vm5139_vm3, %v11618_v17 }
 0x6c6   : > { %7649 = vmatmul.msk.f32.gmra.mxu2 %vm5139_vm3, %v5938_v22  ;;  %7656 = vmatmul.msk.f32.gmra.mxu3 %vm5139_vm3, %v5938_v22 }
 0x6c7   : > { %6203 = vmatpush.msra.mxu0 %v11581_v12  ;;  %6238 = vmatpush.msra.mxu1 %v11586_v5 }
 0x6c9   : > { %v11728_v2 = vpop.f32.mrf.mxu2  ;;  %v11730_v52 = vpop.f32.mrf.mxu3 }
 0x6ca   : > { %v11732_v9 = vpop.f32.mrf.mxu0  ;;  %v11734_v59 = vpop.f32.mrf.mxu1 }
 0x6cd   : > { %7557 = vmatmul.msk.f32.gmra.mxu0 %vm5139_vm3, %v11636_v41  ;;  %7564 = vmatmul.msk.f32.gmra.mxu1 %vm5139_vm3, %v11636_v41 }
 0x6ce   : > { %7650 = vmatmul.msk.f32.gmra.mxu2 %vm5139_vm3, %v5940_v23  ;;  %7657 = vmatmul.msk.f32.gmra.mxu3 %vm5139_vm3, %v5940_v23 }
 0x6d1   : > { %v11742_v44 = vpop.f32.mrf.mxu2  ;;  %v11744_v58 = vpop.f32.mrf.mxu3 }
 0x6d2   : > { %v11746_v46 = vpop.f32.mrf.mxu0  ;;  %v11748_v20 = vpop.f32.mrf.mxu1 }
 0x6d5   : > { %7606 = vmatmul.msk.f32.vlgmr.msrb.gmra.mxu0 %vm5139_vm3, %v11662_v27  ;;  %7613 = vmatmul.msk.f32.vlgmr.msrb.gmra.mxu1 %vm5139_vm3, %v11662_v27 }
 0x6d6   : > { %7651 = vmatmul.msk.f32.gmra.mxu2 %vm5139_vm3, %v5942_v30  ;;  %7658 = vmatmul.msk.f32.gmra.mxu3 %vm5139_vm3, %v5942_v30 }
 0x6d9   : > { %v11756_v45 = vpop.f32.mrf.mxu2  ;;  %v11758_v16 = vpop.f32.mrf.mxu3 }
 0x6da   : > { %v5375_v26 = vpop.f32.mrf.mxu0  ;;  %v5410_v15 = vpop.f32.mrf.mxu1 }
 0x6db   : > { %v5376_v25 = vadd.f32 %v5375_v26, %v11652_v8  ;;  %v5411_v38 = vadd.f32 %v5410_v15, %v11654_v51  ;;  %v6159_v26 = vld [vmem:[#allocation4 + $0x5] ss:$2 sm:$0xff] }
 0x6dd   : > { %7607 = vmatmul.msk.f32.gmra.mxu0 %vm5139_vm3, %v5934_v19  ;;  %7614 = vmatmul.msk.f32.gmra.mxu1 %vm5139_vm3, %v5934_v19 }
 0x6e1   : > { %v11762_v63 = vpop.f32.mrf.mxu2  ;;  %v11764_v53 = vpop.f32.mrf.mxu3 }
 0x6e2   : > { %v5378_v29 = vpop.f32.mrf.mxu0  ;;  %v5413_v28 = vpop.f32.mrf.mxu1 }
 0x6e3   : > { %v5379_v13 = vadd.f32 %v5378_v29, %v11676_v0  ;;  %v5414_v36 = vadd.f32 %v5413_v28, %v11678_v56  ;;  %v6163_v28 = vld [vmem:[#allocation4 + $0x25] ss:$2 sm:$0xff] }
 0x6e5   : > { %7608 = vmatmul.msk.f32.gmra.mxu0 %vm5139_vm3, %v5936_v11  ;;  %7615 = vmatmul.msk.f32.gmra.mxu1 %vm5139_vm3, %v5936_v11 }
 0x6e9   : > { %v5648_v33 = vpop.f32.mrf.mxu2  ;;  %v5683_v1 = vpop.f32.mrf.mxu3 }
 0x6ea   : > { %v11770_v7 = vadd.f32 %v5648_v33, %v5376_v25  ;;  %v11772_v18 = vadd.f32 %v5683_v1, %v5411_v38  ;;  %v5381_v50 = vpop.f32.mrf.mxu0  ;;  %v5416_v42 = vpop.f32.mrf.mxu1  ;;  %v6165_v38 = vld [vmem:[#allocation4 + $0x35] ss:$2 sm:$0xff] }
 0x6eb   : > { %v5382_v17 = vadd.f32 %v5381_v50, %v11696_v4  ;;  %v5417_v41 = vadd.f32 %v5416_v42, %v11698_v35 }
 0x6ed   : > { %7609 = vmatmul.msk.f32.gmra.mxu0 %vm5139_vm3, %v5938_v22  ;;  %7616 = vmatmul.msk.f32.gmra.mxu1 %vm5139_vm3, %v5938_v22 }
 0x6f1   : > { %v5651_v39 = vpop.f32.mrf.mxu2  ;;  %v5686_v49 = vpop.f32.mrf.mxu3 }
 0x6f2   : > { %v11778_v62 = vadd.f32 %v5651_v39, %v5379_v13  ;;  %v11780_v12 = vadd.f32 %v5686_v49, %v5414_v36  ;;  %v5536_v5 = vpop.f32.mrf.mxu0  ;;  %v5571_v24 = vpop.f32.mrf.mxu1 }
 0x6f3   : > { %v5537_v50 = vadd.f32 %v5536_v5, %v11624_v3  ;;  %v5572_v42 = vadd.f32 %v5571_v24, %v11626_v40 }
 0x6f5   : > { %7610 = vmatmul.msk.f32.gmra.mxu0 %vm5139_vm3, %v5940_v23  ;;  %7617 = vmatmul.msk.f32.gmra.mxu1 %vm5139_vm3, %v5940_v23  ;;  %v6161_v23 = vld [vmem:[#allocation4 + $0x15] ss:$2 sm:$0xff] }
 0x6f9   : > { %v5654_v8 = vpop.f32.mrf.mxu2  ;;  %v5689_v51 = vpop.f32.mrf.mxu3 }
 0x6fa   : > { %v11786_v27 = vadd.f32 %v5654_v8, %v5382_v17  ;;  %v11788_v0 = vadd.f32 %v5689_v51, %v5417_v41  ;;  %v5539_v56 = vpop.f32.mrf.mxu0  ;;  %v5574_v19 = vpop.f32.mrf.mxu1  ;;  %v6167_v17 = vld [vmem:[#allocation4 + $0x45] ss:$2 sm:$0xff] }
 0x6fb   : > { %v5540_v51 = vadd.f32 %v5539_v56, %v11646_v14  ;;  %v5575_v3 = vadd.f32 %v5574_v19, %v11648_v32 }
 0x6fd   : > { %7611 = vmatmul.msk.f32.gmra.mxu0 %vm5139_vm3, %v5942_v30  ;;  %7618 = vmatmul.msk.f32.gmra.mxu1 %vm5139_vm3, %v5942_v30 }
 0x701   : > { %v11798_v33 = vpop.f32.mrf.mxu2  ;;  %v11800_v1 = vpop.f32.mrf.mxu3 }
 0x702   : > { %v5542_v11 = vpop.f32.mrf.mxu0  ;;  %v5577_v22 = vpop.f32.mrf.mxu1 }
 0x705   : > { %7660 = vmatmul.msk.f32.vlgmr.msra.gmra.mxu0 %vm5139_vm3, %v6159_v26  ;;  %7667 = vmatmul.msk.f32.vlgmr.msra.gmra.mxu1 %vm5139_vm3, %v6159_v26 }
 0x709   : > { %v11812_v41 = vpop.f32.mrf.mxu2  ;;  %v11814_v8 = vpop.f32.mrf.mxu3 }
 0x70a   : > { %v5545_v4 = vpop.f32.mrf.mxu0  ;;  %v5580_v35 = vpop.f32.mrf.mxu1 }
 0x70d   : > { %7661 = vmatmul.msk.f32.gmra.mxu0 %vm5139_vm3, %v6161_v23  ;;  %7668 = vmatmul.msk.f32.gmra.mxu1 %vm5139_vm3, %v6161_v23  ;;  %v6169_v23 = vld [vmem:[#allocation4 + $0x55] ss:$2 sm:$0x7] }
 0x711   : > { %v11828_v14 = vpop.f32.mrf.mxu3 }
 0x712   : > { %v5548_v15 = vpop.f32.mrf.mxu0  ;;  %v5583_v29 = vpop.f32.mrf.mxu1 }
 0x715   : > { %7662 = vmatmul.msk.f32.gmra.mxu0 %vm5139_vm3, %v6163_v28  ;;  %7669 = vmatmul.msk.f32.gmra.mxu1 %vm5139_vm3, %v6163_v28  ;;  %v5543_v28 = vadd.f32 %v5542_v11, %v11670_v47 }
 0x719   : > { %v11838_v47 = vpop.f32.mrf.mxu3 }
 0x71a   : > { %v5551_v30 = vpop.f32.mrf.mxu0  ;;  %v5586_v25 = vpop.f32.mrf.mxu1 }
 0x71d   : > { %7663 = vmatmul.msk.f32.gmra.mxu0 %vm5139_vm3, %v6165_v38  ;;  %7670 = vmatmul.msk.f32.gmra.mxu1 %vm5139_vm3, %v6165_v38  ;;  %v5578_v38 = vadd.f32 %v5577_v22, %v11672_v31  ;;  %v5549_v22 = vadd.f32 %v5548_v15, %v11708_v57 }
 0x722   : > { %v5751_v13 = vpop.f32.mrf.mxu0  ;;  %v5786_v36 = vpop.f32.mrf.mxu1 }
 0x723   : > { %v11806_v39 = vadd.f32 %v5751_v13, %v5537_v50  ;;  %v11808_v49 = vadd.f32 %v5786_v36, %v5572_v42  ;;  %v11826_v50 = vpop.f32.mrf.mxu2  ;;  %v5546_v13 = vadd.f32 %v5545_v4, %v11690_v60  ;;  %v5581_v36 = vadd.f32 %v5580_v35, %v11692_v43  ;;  %v11852_v4 = vpop.f32.mrf.mxu3 }
 0x724   : > { %v5552_v35 = vadd.f32 %v5551_v30, %v11728_v2 }
 0x725   : > { %7664 = vmatmul.msk.f32.gmra.mxu0 %vm5139_vm3, %v6167_v17  ;;  %7671 = vmatmul.msk.f32.gmra.mxu1 %vm5139_vm3, %v6167_v17 }
 0x72a   : > { %v5754_v40 = vpop.f32.mrf.mxu0  ;;  %v5789_v5 = vpop.f32.mrf.mxu1 }
 0x72b   : > { %v11818_v24 = vadd.f32 %v5754_v40, %v5540_v51  ;;  %v11820_v26 = vadd.f32 %v5789_v5, %v5575_v3  ;;  %v11836_v3 = vpop.f32.mrf.mxu2  ;;  %v5584_v40 = vadd.f32 %v5583_v29, %v11710_v10  ;;  %v11862_v15 = vpop.f32.mrf.mxu3 }
 0x72d   : > { %7665 = vmatmul.msk.f32.gmra.mxu0 %vm5139_vm3, %v6169_v23  ;;  %7672 = vmatmul.msk.f32.gmra.mxu1 %vm5139_vm3, %v6169_v23 }
 0x732   : > { %v5757_v32 = vpop.f32.mrf.mxu0  ;;  %v5792_v56 = vpop.f32.mrf.mxu1 }
 0x733   : > { %v11830_v19 = vadd.f32 %v5757_v32, %v5543_v28  ;;  %v11832_v42 = vadd.f32 %v5792_v56, %v5578_v38  ;;  %v11850_v43 = vpop.f32.mrf.mxu2  ;;  %v5587_v38 = vadd.f32 %v5586_v25, %v11730_v52 }
 0x73a   : > { %v5760_v17 = vpop.f32.mrf.mxu0  ;;  %v5795_v51 = vpop.f32.mrf.mxu1 }
 0x73b   : > { %v11840_v31 = vadd.f32 %v5760_v17, %v5546_v13  ;;  %v11842_v11 = vadd.f32 %v5795_v51, %v5581_v36  ;;  %v11860_v10 = vpop.f32.mrf.mxu2  ;;  %v6128_v51 = vpop.f32.mrf.mxu3 }
 0x742   : > { %v5763_v5 = vpop.f32.mrf.mxu0  ;;  %v5798_v23 = vpop.f32.mrf.mxu1 }
 0x743   : > { %v11846_v28 = vadd.f32 %v5763_v5, %v5549_v22  ;;  %v11848_v60 = vadd.f32 %v5798_v23, %v5584_v40  ;;  %v6093_v17 = vpop.f32.mrf.mxu2  ;;  %v6131_v40 = vpop.f32.mrf.mxu3  ;;  %v5367_v5 = vadd.f32 %v11714_v6, %v11592_v61  ;;  %v5402_v23 = vadd.f32 %v11716_v34, %v11594_v48  ;;  %v5153_v61 = vld [vmem:[%s12278_s8] sm:$0x3] }
 0x744   : > { %v5373_v48 = vadd.f32 %v11746_v46, %v11628_v37  ;;  %v5408_v34 = vadd.f32 %v11748_v20, %v11630_v54 }
 0x745   : > { %12470 = vst [vmem:[#allocation30_spill] sm:$0xff] %v11848_v60  ;;  %v11903_v60 = vperm.slane %v5153_v61, 0 }
 0x746   : > { %v5697_v37 = vadd.f32 %v11764_v53, %v5408_v34 }
 0x74a   : > { %v5766_v32 = vpop.f32.mrf.mxu0  ;;  %v5801_v56 = vpop.f32.mrf.mxu1 }
 0x74b   : > { %v11856_v13 = vadd.f32 %v5766_v32, %v5552_v35  ;;  %v11858_v57 = vadd.f32 %v5801_v56, %v5587_v38  ;;  %v6096_v25 = vpop.f32.mrf.mxu2  ;;  %v5370_v35 = vadd.f32 %v11732_v9, %v11610_v55  ;;  %v5692_v38 = vadd.f32 %v11742_v44, %v5367_v5  ;;  %v6134_v44 = vpop.f32.mrf.mxu3 }
 0x74d   : > { %12471 = vst [vmem:[#allocation31_spill] sm:$0xff] %v11856_v13  ;;  %v5693_v13 = vadd.f32 %v11744_v58, %v5402_v23  ;;  %v5694_v55 = vadd.f32 %v11756_v45, %v5370_v35  ;;  %v5919_v6 = vadd.f32 %v11798_v33, %v5692_v38  ;;  %v5696_v58 = vadd.f32 %v11762_v63, %v5373_v48 }
 0x74e   : > { %12472 = vst [vmem:[#allocation32_spill] sm:$0xff] %v11858_v57  ;;  %v5405_v57 = vadd.f32 %v11734_v59, %v11612_v21  ;;  %v11907_v33 = vperm.slane %v5153_v61, 1  ;;  %v5925_v61 = vadd.f32 %v11836_v3, %v11770_v7 }
 0x74f   : > { %v5920_v21 = vadd.f32 %v11800_v1, %v5693_v13  ;;  %v5921_v5 = vadd.f32 %v11812_v41, %v5694_v55  ;;  %v6146_v23 = vadd.f32 %v6093_v17, %v5919_v6  ;;  %v5923_v54 = vadd.f32 %v11826_v50, %v5696_v58 }
 0x750   : > { %v5695_v9 = vadd.f32 %v11758_v16, %v5405_v57  ;;  %v5924_v16 = vadd.f32 %v11828_v14, %v5697_v37 }
 0x751   : > { %v6147_v45 = vadd.f32 %v6128_v51, %v5920_v21  ;;  %v6148_v20 = vadd.f32 %v6096_v25, %v5921_v5  ;;  %v11912_v63 = vadd.f32 %v11903_v60, %v6146_v23  ;;  %v5926_v5 = vadd.f32 %v11838_v47, %v11772_v18 }
 0x752   : > { %v11864_v29 = vpop.f32.mrf.mxu0  ;;  %v11866_v36 = vpop.f32.mrf.mxu1  ;;  %v5922_v46 = vadd.f32 %v11814_v8, %v5695_v9  ;;  %v6151_v8 = vadd.f32 %v6134_v44, %v5924_v16 }
 0x753   : > { %v6099_v59 = vpop.f32.mrf.mxu2  ;;  %v11919_v53 = vadd.f32 %v11907_v33, %v6147_v45  ;;  %v11922_v17 = vadd.f32 %v11903_v60, %v6148_v20  ;;  %v6299_v14 = vmin.f32 %v11912_v63, 0.0  ;;  %v6137_v38 = vpop.f32.mrf.mxu3  ;;  %v6031_v18 = vadd.f32 %v11864_v29, %v11806_v39 }
 0x754   : > { %v6149_v1 = vadd.f32 %v6131_v40, %v5922_v46  ;;  %v6150_v41 = vadd.f32 %v6099_v59, %v5923_v54  ;;  %v11933_v40 = vadd.f32 %v11907_v33, %v6151_v8  ;;  %v6153_v46 = vadd.f32 %v6137_v38, %v5926_v5 }
 0x755   : > { %v6300_v25 = vmin.f32 %v11919_v53, 0.0  ;;  %v6301_v48 = vmin.f32 %v11922_v17, 0.0  ;;  %v6311_v6 = vmul.f32 1.442695, %v6299_v14  ;;  %v5927_v54 = vadd.f32 %v11850_v43, %v11778_v62 }
 0x756   : > { %v11925_v50 = vadd.f32 %v11907_v33, %v6149_v1  ;;  %v11929_v51 = vadd.f32 %v11903_v60, %v6150_v41  ;;  %v6304_v58 = vmin.f32 %v11933_v40, 0.0  ;;  %v6032_v47 = vadd.f32 %v11866_v36, %v11808_v49 }
 0x757   : > { %v6313_v44 = vmul.f32 1.442695, %v6300_v25  ;;  %v6315_v23 = vmul.f32 1.442695, %v6301_v48  ;;  %8082 = vpow2.f32 %v6311_v6  ;;  %v5928_v1 = vadd.f32 %v11852_v4, %v11780_v12 }
 0x758   : > { %v6302_v55 = vmin.f32 %v11925_v50, 0.0  ;;  %v6303_v34 = vmin.f32 %v11929_v51, 0.0  ;;  %v6321_v45 = vmul.f32 1.442695, %v6304_v58  ;;  %v11960_v8 = vadd.f32 %v11907_v33, %v6153_v46 }
 0x759   : > { %8084 = vpow2.f32 %v6313_v44  ;;  %v5929_v49 = vadd.f32 %v11860_v10, %v11786_v27  ;;  %vm6287_vm15 = vcmp.gt.f32.partialorder %v11912_v63, 0.0  ;;  %vm6288_vm3 = vcmp.gt.f32.partialorder %v11919_v53, 0.0 }
 0x75a   : > { %v11868_v22 = vpop.f32.mrf.mxu0  ;;  %v11870_v2 = vpop.f32.mrf.mxu1  ;;  %v6317_v7 = vmul.f32 1.442695, %v6302_v55  ;;  %v6319_v3 = vmul.f32 1.442695, %v6303_v34  ;;  %8086 = vpow2.f32 %v6315_v23  ;;  %v6306_v55 = vmin.f32 %v11960_v8, 0.0 }
 0x75b   : > { %v6102_v35 = vpop.f32.mrf.mxu2  ;;  %v6140_v16 = vpop.f32.mrf.mxu3  ;;  %vm6289_vm12 = vcmp.gt.f32.partialorder %v11922_v17, 0.0  ;;  %v6033_v5 = vadd.f32 %v11868_v22, %v11818_v24  ;;  %v6034_v23 = vadd.f32 %v11870_v2, %v11820_v26  ;;  %vm6290_vm0 = vcmp.gt.f32.partialorder %v11925_v50, 0.0 }
 0x75c   : > { %v6152_v9 = vadd.f32 %v6102_v35, %v5925_v61  ;;  %8088 = vpow2.f32 %v6317_v7  ;;  %v6155_v39 = vadd.f32 %v6140_v16, %v5928_v1  ;;  %v5930_v61 = vadd.f32 %v11862_v15, %v11788_v0 }
 0x75d   : > { %8090 = vpow2.f32 %v6319_v3  ;;  %v8083_v35 = vpop.eup %8082  ;;  %vm6291_vm14 = vcmp.gt.f32.partialorder %v11929_v51, 0.0  ;;  %vm6292_vm13 = vcmp.gt.f32.partialorder %v11933_v40, 0.0  ;;  %vm6294_vm9 = vcmp.gt.f32.partialorder %v11960_v8, 0.0 }
 0x75e   : > { %v11948_v37 = vadd.f32 %v11903_v60, %v6152_v9  ;;  %8092 = vpow2.f32 %v6321_v45  ;;  %v11982_v0 = vadd.f32 %v11907_v33, %v6155_v39  ;;  %v7673_v15 = vadd.f32 -1.0, %v8083_v35 }
 0x75f   : > { %v8085_v29 = vpop.eup %8084 }
 0x760   : > { %v6305_v41 = vmin.f32 %v11948_v37, 0.0  ;;  %v8087_v36 = vpop.eup %8086  ;;  %v7674_v9 = vadd.f32 -1.0, %v8085_v29  ;;  %v6308_v24 = vmin.f32 %v11982_v0, 0.0  ;;  %v6347_v2 = vsel %vm6287_vm15, %v11912_v63, %v7673_v15 }
 0x761   : > { %v7675_v46 = vadd.f32 -1.0, %v8087_v36  ;;  %vm6293_vm8 = vcmp.gt.f32.partialorder %v11948_v37, 0.0 }
 0x762   : > { %v11872_v52 = vpop.f32.mrf.mxu0  ;;  %v11874_v30 = vpop.f32.mrf.mxu1  ;;  %v6323_v48 = vmul.f32 1.442695, %v6305_v41 }
 0x763   : > { %v6105_v20 = vpop.f32.mrf.mxu2  ;;  %v8089_v6 = vpop.eup %8088 }
 0x764   : > { %v6154_v38 = vadd.f32 %v6105_v20, %v5927_v54  ;;  %v8091_v34 = vpop.eup %8090  ;;  %v7676_v45 = vadd.f32 -1.0, %v8089_v6  ;;  %8094 = vpow2.f32 %v6323_v48  ;;  %v6325_v54 = vmul.f32 1.442695, %v6306_v55 }
 0x765   : > { %v8093_v58 = vpop.eup %8092  ;;  %v7677_v1 = vadd.f32 -1.0, %v8091_v34  ;;  %v12015_v48 = vmul.f32 1.442695, %v6308_v24  ;;  %v6036_v6 = vadd.f32 %v11874_v30, %v11832_v42  ;;  %v7697_v42 = vld [vmem:[%s12279_s9 + $0x60] sm:$0xff] }
 0x766   : > { %v11979_v44 = vadd.f32 %v11903_v60, %v6154_v38  ;;  %v7678_v41 = vadd.f32 -1.0, %v8093_v58  ;;  %v6143_v38 = vpop.f32.mrf.mxu3 }
 0x767   : > { %v6157_v15 = vadd.f32 %v6143_v38, %v5930_v61 }
 0x76a   : > { %v11883_v32 = vpop.f32.mrf.mxu0  ;;  %v11885_v56 = vpop.f32.mrf.mxu1 }
 0x76b   : > { %v6108_v35 = vpop.f32.mrf.mxu2  ;;  %v8095_v29 = vpop.eup %8094  ;;  %v6038_v38 = vadd.f32 %v11885_v56, %v11842_v11 }
 0x772   : > { %v11914_v13 = vpop.f32.mrf.mxu0  ;;  %v11916_v57 = vpop.f32.mrf.mxu1 }
 0x77a   : > { %v11940_v21 = vpop.f32.mrf.mxu0  ;;  %v11942_v59 = vpop.f32.mrf.mxu1 }
 0x782   : > { %v6205_v14 = vpop.f32.mrf.mxu0  ;;  %v6240_v62 = vpop.f32.mrf.mxu1 }
 0x783   : > { %v6258_v43 = vadd.f32 %v6205_v14, %v6031_v18  ;;  %v6259_v25 = vadd.f32 %v6240_v62, %v6032_v47  ;;  %v6307_v14 = vmin.f32 %v11979_v44, 0.0  ;;  %v6348_v62 = vsel %vm6288_vm3, %v11919_v53, %v7674_v9 }
 0x784   : > { %v12018_v53 = vsel %vm6291_vm14, %v11929_v51, %v7677_v1  ;;  %v6156_v9 = vadd.f32 %v6108_v35, %v5929_v49  ;;  %vm6295_vm3 = vcmp.gt.f32.partialorder %v11979_v44, 0.0 }
 0x785   : > { %v11965_v12 = vadd.f32 %v11903_v60, %v6258_v43  ;;  %v11968_v4 = vadd.f32 %v11907_v33, %v6259_v25  ;;  %v12008_v43 = vsel %vm6289_vm12, %v11922_v17, %v7675_v46  ;;  %v12011_v25 = vsel %vm6290_vm0, %v11925_v50, %v7676_v45  ;;  %v7698_v45 = vld [vmem:[%s12279_s9 + $0x68] sm:$0xff] }
 0x786   : > { %v6327_v36 = vmul.f32 1.442695, %v6307_v14  ;;  %v12021_v17 = vsel %vm6292_vm13, %v11933_v40, %v7678_v41  ;;  %v6035_v50 = vadd.f32 %v11872_v52, %v11830_v19  ;;  %vm6296_vm12 = vcmp.gt.f32.partialorder %v11982_v0, 0.0 }
 0x787   : > { %v6383_v27 = vmin.f32 %v11965_v12, 0.0  ;;  %v6384_v10 = vmin.f32 %v11968_v4, 0.0  ;;  %vm6371_vm1 = vcmp.gt.f32.partialorder %v11965_v12, 0.0  ;;  %vm6372_vm4 = vcmp.gt.f32.partialorder %v11968_v4, 0.0 }
 0x789   : > { %v6395_v7 = vmul.f32 1.442695, %v6383_v27  ;;  %v6397_v3 = vmul.f32 1.442695, %v6384_v10 }
 0x78a   : > { %v6208_v20 = vpop.f32.mrf.mxu0  ;;  %v6243_v16 = vpop.f32.mrf.mxu1 }
 0x78b   : > { %8096 = vpow2.f32 %v6395_v7  ;;  %v6260_v18 = vadd.f32 %v6208_v20, %v6033_v5  ;;  %v6261_v47 = vadd.f32 %v6243_v16, %v6034_v23  ;;  %v12052_v20 = vadd.f32 %v11903_v60, %v6156_v9  ;;  %v7699_v9 = vld [vmem:[%s12279_s9 + $0x70] sm:$0xff] }
 0x78c   : > { %8098 = vpow2.f32 %v6397_v3  ;;  %v12028_v3 = vadd.f32 -1.0, %v8095_v29  ;;  %v12055_v16 = vadd.f32 %v11907_v33, %v6157_v15 }
 0x78d   : > { %v11992_v26 = vadd.f32 %v11903_v60, %v6260_v18  ;;  %v11995_v22 = vadd.f32 %v11907_v33, %v6261_v47  ;;  %8100 = vpow2.f32 %v6325_v54  ;;  %v6456_v54 = vld [vmem:[%s12279_s9 + $0x8] sm:$0xff]  ;;  %v6037_v18 = vadd.f32 %v11883_v32, %v11840_v31 }
 0x78e   : > { %vm6297_vm13 = vcmp.gt.f32.partialorder %v12052_v20, 0.0 }
 0x78f   : > { %v6385_v63 = vmin.f32 %v11992_v26, 0.0  ;;  %v6386_v39 = vmin.f32 %v11995_v22, 0.0  ;;  %vm6373_vm7 = vcmp.gt.f32.partialorder %v11992_v26, 0.0  ;;  %vm6374_vm5 = vcmp.gt.f32.partialorder %v11995_v22, 0.0 }
 0x791   : > { %v8097_v55 = vpop.eup %8096  ;;  %v6399_v27 = vmul.f32 1.442695, %v6385_v63  ;;  %v6401_v10 = vmul.f32 1.442695, %v6386_v39 }
 0x792   : > { %v8099_v34 = vpop.eup %8098  ;;  %v6211_v58 = vpop.f32.mrf.mxu0  ;;  %v7685_v5 = vadd.f32 -1.0, %v8097_v55 }
 0x793   : > { %v6246_v51 = vpop.f32.mrf.mxu1  ;;  %v7686_v23 = vadd.f32 -1.0, %v8099_v34  ;;  %8102 = vpow2.f32 %v6399_v27  ;;  %v6262_v40 = vadd.f32 %v6211_v58, %v6035_v50  ;;  %v8101_v52 = vpop.eup %8100 }
 0x794   : > { %v6263_v7 = vadd.f32 %v6246_v51, %v6036_v6  ;;  %8104 = vpow2.f32 %v6401_v10  ;;  %v6431_v19 = vsel %vm6371_vm1, %v11965_v12, %v7685_v5  ;;  %v6455_v12 = vld [vmem:[%s12279_s9] sm:$0xff]  ;;  %v7700_v5 = vld [vmem:[%s12279_s9 + $0x78] sm:$0xff] }
 0x795   : > { %v12036_v30 = vadd.f32 %v11903_v60, %v6262_v40  ;;  %v6432_v61 = vsel %vm6372_vm4, %v11968_v4, %v7686_v23  ;;  %v6443_v46 = vmax.f32 %v6347_v2, %v6431_v19  ;;  %8106 = vpow2.f32 %v6327_v36  ;;  %v6457_v23 = vld [vmem:[%s12279_s9 + $0x10] sm:$0xff] }
 0x796   : > { %v12039_v49 = vadd.f32 %v11907_v33, %v6263_v7  ;;  %v6444_v4 = vmax.f32 %v6348_v62, %v6432_v61  ;;  %v7680_v40 = vadd.f32 -1.0, %v8101_v52  ;;  %v6309_v7 = vmin.f32 %v12052_v20, 0.0 }
 0x797   : > { %v6387_v47 = vmin.f32 %v12036_v30, 0.0  ;;  %v6520_v41 = vmul.f32 %v7697_v42, %v6443_v46  ;;  %v6467_v24 = vmul.f32 %v6455_v12, %v6443_v46  ;;  %v6310_v19 = vmin.f32 %v12055_v16, 0.0 }
 0x798   : > { %v6388_v1 = vmin.f32 %v12039_v49, 0.0  ;;  %v6521_v14 = vmul.f32 %v7698_v45, %v6444_v4  ;;  %v6468_v2 = vmul.f32 %v6456_v54, %v6444_v4  ;;  %v6039_v42 = vadd.f32 %v11914_v13, %v11846_v28  ;;  %v12473_v4 = vld [vmem:[#allocation30_spill] sm:$0xff] }
 0x799   : > { %v8103_v35 = vpop.eup %8102  ;;  %v6403_v63 = vmul.f32 1.442695, %v6387_v47  ;;  %vm6375_vm10 = vcmp.gt.f32.partialorder %v12036_v30, 0.0  ;;  %vm6376_vm11 = vcmp.gt.f32.partialorder %v12039_v49, 0.0  ;;  %vm6298_vm4 = vcmp.gt.f32.partialorder %v12055_v16, 0.0 }
 0x79a   : > { %v6405_v62 = vmul.f32 1.442695, %v6388_v1  ;;  %v8105_v39 = vpop.eup %8104  ;;  %v7687_v29 = vadd.f32 -1.0, %v8103_v35  ;;  %v6214_v31 = vpop.f32.mrf.mxu0  ;;  %v6532_v36 = vsel %vm6479_vm6, %v6521_v14, 0.0  ;;  %v6480_v55 = vsel %vm6479_vm6, %v6468_v2, 0.0 }
 0x79b   : > { %v6249_v32 = vpop.f32.mrf.mxu1  ;;  %v7688_v50 = vadd.f32 -1.0, %v8105_v39  ;;  %8108 = vpow2.f32 %v6403_v63  ;;  %v6264_v6 = vadd.f32 %v6214_v31, %v6037_v18  ;;  %v12067_v10 = vpop.eup %8106  ;;  %v6533_v11 = vadd.f32 %v6532_v36, %v6520_v41 }
 0x79c   : > { %v6265_v27 = vadd.f32 %v6249_v32, %v6038_v38  ;;  %8110 = vpow2.f32 %v6405_v62  ;;  %v6481_v56 = vadd.f32 %v6480_v55, %v6467_v24  ;;  %v6433_v34 = vsel %vm6373_vm7, %v11992_v26, %v7687_v29  ;;  %v6459_v29 = vld [vmem:[%s12279_s9 + $0x20] sm:$0xff] }
 0x79d   : > { %v6434_v15 = vsel %vm6374_vm5, %v11995_v22, %v7688_v50  ;;  %v12081_v58 = vadd.f32 %v11903_v60, %v6264_v6  ;;  %v6445_v26 = vmax.f32 %v12008_v43, %v6433_v34  ;;  %v6458_v22 = vld [vmem:[%s12279_s9 + $0x18] sm:$0xff]  ;;  %8112 = vpow2.f32 %v12015_v48  ;;  %6534 = vadd.xlane.f32.xlu1 %v6533_v11  ;;  %v7701_v50 = vld [vmem:[%s12279_s9 + $0x80] sm:$0xff]  ;;  %v7702_v6 = vld [vmem:[%s12279_s9 + $0x88] sm:$0xff] }
 0x79e   : > { %v12084_v51 = vadd.f32 %v11907_v33, %v6265_v27  ;;  %6482 = vadd.xlane.f32.xlu0 %v6481_v56  ;;  %v6446_v43 = vmax.f32 %v12011_v25, %v6434_v15  ;;  %v6040_v18 = vadd.f32 %v11916_v57, %v12473_v4  ;;  %v6354_v27 = vsel %vm6294_vm9, %v11960_v8, %v7680_v40  ;;  %v12474_v34 = vld [vmem:[#allocation31_spill] sm:$0xff] }
 0x79f   : > { %v6389_v61 = vmin.f32 %v12081_v58, 0.0  ;;  %v6522_v45 = vmul.f32 %v7699_v9, %v6445_v26  ;;  %v6469_v52 = vmul.f32 %v6457_v23, %v6445_v26  ;;  %v6331_v11 = vmul.f32 1.442695, %v6309_v7  ;;  %v12475_v7 = vld [vmem:[#allocation32_spill] sm:$0xff] }
 0x7a0   : > { %v6390_v46 = vmin.f32 %v12084_v51, 0.0  ;;  %v6523_v12 = vmul.f32 %v7700_v5, %v6446_v43  ;;  %v6470_v54 = vmul.f32 %v6458_v22, %v6446_v43  ;;  %v6333_v56 = vmul.f32 1.442695, %v6310_v19  ;;  %v7703_v4 = vld [vmem:[%s12279_s9 + $0x90] sm:$0xff] }
 0x7a1   : > { %v8109_v48 = vpop.eup %8108  ;;  %v6407_v25 = vmul.f32 1.442695, %v6389_v61  ;;  %v6041_v9 = vadd.f32 %v11940_v21, %v12474_v34  ;;  %vm6377_vm2 = vcmp.gt.f32.partialorder %v12081_v58, 0.0  ;;  %vm6378_vm15 = vcmp.gt.f32.partialorder %v12084_v51, 0.0 }
 0x7a2   : > { %v6409_v47 = vmul.f32 1.442695, %v6390_v46  ;;  %v8111_v1 = vpop.eup %8110  ;;  %v6217_v28 = vpop.f32.mrf.mxu0  ;;  %v6536_v41 = vsel %vm6479_vm6, %v6523_v12, 0.0  ;;  %v6484_v14 = vsel %vm6479_vm6, %v6470_v54, 0.0  ;;  %v7689_v24 = vadd.f32 -1.0, %v8109_v48 }
 0x7a3   : > { %v6252_v13 = vpop.f32.mrf.mxu1  ;;  %v7690_v2 = vadd.f32 -1.0, %v8111_v1  ;;  %8114 = vpow2.f32 %v6407_v25  ;;  %v6266_v35 = vadd.f32 %v6217_v28, %v6039_v42  ;;  %v12110_v63 = vpop.eup %8112  ;;  %v6537_v57 = vadd.f32 %v6536_v41, %v6522_v45  ;;  %v7704_v28 = vld [vmem:[%s12279_s9 + $0x98] sm:$0xff] }
 0x7a4   : > { %v6267_v38 = vadd.f32 %v6252_v13, %v6040_v18  ;;  %8116 = vpow2.f32 %v6409_v47  ;;  %v6485_v62 = vadd.f32 %v6484_v14, %v6469_v52  ;;  %v6435_v39 = vsel %vm6375_vm10, %v12036_v30, %v7689_v24  ;;  %v6460_v30 = vld [vmem:[%s12279_s9 + $0x28] sm:$0xff]  ;;  %v6462_v13 = vld [vmem:[%s12279_s9 + $0x38] sm:$0xff] }
 0x7a5   : > { %v12119_v31 = vadd.f32 %v11903_v60, %v6266_v35  ;;  %v6436_v36 = vsel %vm6376_vm11, %v12039_v49, %v7690_v2  ;;  %v6447_v55 = vmax.f32 %v12018_v53, %v6435_v39  ;;  %6538 = vadd.xlane.f32.xlu1 %v6537_v57  ;;  %v6353_v49 = vsel %vm6293_vm8, %v11948_v37, %v12028_v3 }
 0x7a6   : > { %v12122_v32 = vadd.f32 %v11907_v33, %v6267_v38  ;;  %6486 = vadd.xlane.f32.xlu0 %v6485_v62  ;;  %v6448_v53 = vmax.f32 %v12021_v17, %v6436_v36  ;;  %v6042_v17 = vadd.f32 %v11942_v59, %v12475_v7  ;;  %v7682_v57 = vadd.f32 -1.0, %v12110_v63 }
 0x7a7   : > { %v6391_v15 = vmin.f32 %v12119_v31, 0.0  ;;  %v6471_v5 = vmul.f32 %v6459_v29, %v6447_v55  ;;  %v6524_v23 = vmul.f32 %v7701_v50, %v6447_v55  ;;  %vm6379_vm0 = vcmp.gt.f32.partialorder %v12119_v31, 0.0 }
 0x7a8   : > { %v6392_v26 = vmin.f32 %v12122_v32, 0.0  ;;  %v6472_v8 = vmul.f32 %v6460_v30, %v6448_v53  ;;  %v6525_v22 = vmul.f32 %v7702_v6, %v6448_v53  ;;  %vm6380_vm14 = vcmp.gt.f32.partialorder %v12122_v32, 0.0  ;;  %v6463_v53 = vld [vmem:[%s12279_s9 + $0x40] sm:$0xff] }
 0x7a9   : > { %v8115_v40 = vpop.eup %8114  ;;  %v6411_v43 = vmul.f32 1.442695, %v6391_v15  ;;  %v6356_v34 = vsel %vm6296_vm12, %v11982_v0, %v7682_v57  ;;  %v7706_v15 = vld [vmem:[%s12279_s9 + $0xa8] sm:$0xff]  ;;  %vm6502_vm5 = vcmask 583680   ;;  %vm6566_vm9 = vcmask 15360  }
 0x7aa   : > { %v6413_v37 = vmul.f32 1.442695, %v6392_v26  ;;  %v8117_v3 = vpop.eup %8116  ;;  %v7691_v19 = vadd.f32 -1.0, %v8115_v40  ;;  %v6220_v21 = vpop.f32.mrf.mxu0  ;;  %v6488_v61 = vsel %vm6479_vm6, %v6472_v8, 0.0  ;;  %v6540_v46 = vsel %vm6479_vm6, %v6525_v22, 0.0 }
 0x7ab   : > { %v6255_v42 = vpop.f32.mrf.mxu1  ;;  %v7692_v45 = vadd.f32 -1.0, %v8117_v3  ;;  %8118 = vpow2.f32 %v6411_v43  ;;  %v6268_v12 = vadd.f32 %v6220_v21, %v6041_v9  ;;  %v6489_v59 = vadd.f32 %v6488_v61, %v6471_v5 }
 0x7ac   : > { %v6269_v52 = vadd.f32 %v6255_v42, %v6042_v17  ;;  %8120 = vpow2.f32 %v6413_v37  ;;  %v6541_v54 = vadd.f32 %v6540_v46, %v6524_v23  ;;  %v6437_v48 = vsel %vm6377_vm2, %v12081_v58, %v7691_v19  ;;  %v6461_v58 = vld [vmem:[%s12279_s9 + $0x30] sm:$0xff] }
 0x7ad   : > { %v6438_v18 = vsel %vm6378_vm15, %v12084_v51, %v7692_v45  ;;  %v12163_v25 = vadd.f32 %v11903_v60, %v6268_v12  ;;  %v6449_v1 = vmax.f32 %v6353_v49, %v6437_v48  ;;  %8122 = vpow2.f32 %v6331_v11  ;;  %6490 = vadd.xlane.f32.xlu2 %v6489_v59  ;;  %v7705_v49 = vld [vmem:[%s12279_s9 + $0xa0] sm:$0xff]  ;;  %v7707_v46 = vld [vmem:[%s12279_s9 + $0xb0] sm:$0x7]  ;;  %v7708_v59 = vld [vmem:[%s12279_s9 + $0xb8] sm:$0x7] }
 0x7ae   : > { %v12166_v47 = vadd.f32 %v11907_v33, %v6269_v52  ;;  %v6450_v60 = vmax.f32 %v6354_v27, %v6438_v18  ;;  %v7681_v33 = vadd.f32 -1.0, %v12067_v10  ;;  %8124 = vpow2.f32 %v6333_v56  ;;  %v6465_v45 = vld [vmem:[%s12279_s9 + $0x50] sm:$0x7] }
 0x7af   : > { %v6393_v51 = vmin.f32 %v12163_v25, 0.0  ;;  %v6526_v14 = vmul.f32 %v7703_v4, %v6449_v1  ;;  %v6473_v2 = vmul.f32 %v6461_v58, %v6449_v1  ;;  %vm6381_vm1 = vcmp.gt.f32.partialorder %v12163_v25, 0.0 }
 0x7b0   : > { %v6394_v41 = vmin.f32 %v12166_v47, 0.0  ;;  %v6527_v24 = vmul.f32 %v7704_v28, %v6450_v60  ;;  %v6474_v35 = vmul.f32 %v6462_v13, %v6450_v60  ;;  %v6355_v63 = vsel %vm6295_vm3, %v11979_v44, %v7681_v33 }
 0x7b1   : > { %v8119_v38 = vpop.eup %8118  ;;  %v6415_v62 = vmul.f32 1.442695, %v6393_v51  ;;  %vm6382_vm7 = vcmp.gt.f32.partialorder %v12166_v47, 0.0  ;;  %vm6576_vm10 = vcmask 10240   ;;  %vm6587_vm11 = vcmask 8192  }
 0x7b2   : > { %v6417_v39 = vmul.f32 1.442695, %v6394_v41  ;;  %v8121_v29 = vpop.eup %8120  ;;  %v7693_v10 = vadd.f32 -1.0, %v8119_v38  ;;  %v6544_v36 = vsel %vm6479_vm6, %v6527_v24, 0.0  ;;  %v6492_v55 = vsel %vm6479_vm6, %v6474_v35, 0.0 }
 0x7b3   : > { %v7694_v30 = vadd.f32 -1.0, %v8121_v29  ;;  %8126 = vpow2.f32 %v6415_v62  ;;  %v6545_v50 = vadd.f32 %v6544_v36, %v6526_v14  ;;  %v6493_v6 = vadd.f32 %v6492_v55, %v6473_v2  ;;  %v8123_v27 = vpop.eup %8122 }
 0x7b4   : > { %8128 = vpow2.f32 %v6417_v39  ;;  %v6439_v11 = vsel %vm6379_vm0, %v12119_v31, %v7693_v10  ;;  %v8125_v56 = vpop.eup %8124  ;;  %v6464_v31 = vld [vmem:[%s12279_s9 + $0x48] sm:$0xff]  ;;  %v7683_v23 = vadd.f32 -1.0, %v8123_v27  ;;  %v6557_v24 = vlaneseq }
 0x7b5   : > { %v6440_v9 = vsel %vm6380_vm14, %v12122_v32, %v7694_v30  ;;  %6546 = vadd.xlane.f32.xlu1 %v6545_v50  ;;  %6494 = vadd.xlane.f32.xlu0 %v6493_v6  ;;  %v6451_v44 = vmax.f32 %v6355_v63, %v6439_v11  ;;  %v7684_v32 = vadd.f32 -1.0, %v8125_v56 }
 0x7b6   : > { %6542 = vadd.xlane.f32.xlu2 %v6541_v54  ;;  %v6452_v26 = vmax.f32 %v6356_v34, %v6440_v9  ;;  %v6357_v42 = vsel %vm6297_vm13, %v12052_v20, %v7683_v23  ;;  %v6466_v54 = vld [vmem:[%s12279_s9 + $0x58] sm:$0x7]  ;;  %v6558_v2 = vand.u32 127, %v6557_v24 }
 0x7b7   : > { %v6475_v5 = vmul.f32 %v6463_v53, %v6451_v44  ;;  %v6528_v8 = vmul.f32 %v7705_v49, %v6451_v44  ;;  %v6358_v12 = vsel %vm6298_vm4, %v12055_v16, %v7684_v32  ;;  %v6585_v32 = vld [vmem:[%s12280_s10] sm:$0x1] }
 0x7b8   : > { %v6476_v22 = vmul.f32 %v6464_v31, %v6452_v26  ;;  %v6529_v0 = vmul.f32 %v7706_v15, %v6452_v26  ;;  %vm6559_vm8 = vcmp.eq.s32.totalorder %v6558_v2, 0 }
 0x7b9   : > { %v8127_v40 = vpop.eup %8126 }
 0x7ba   : > { %v8129_v7 = vpop.eup %8128  ;;  %v7695_v17 = vadd.f32 -1.0, %v8127_v40  ;;  %v6496_v43 = vsel %vm6479_vm6, %v6476_v22, 0.0  ;;  %v6548_v37 = vsel %vm6479_vm6, %v6529_v0, 0.0  ;;  %vm6500_vm6 = vcmask 1042432  }
 0x7bb   : > { %v7696_v3 = vadd.f32 -1.0, %v8129_v7  ;;  %v6497_v19 = vadd.f32 %v6496_v43, %v6475_v5  ;;  %v6549_v21 = vadd.f32 %v6548_v37, %v6528_v8 }
 0x7bc   : > { %v6441_v61 = vsel %vm6381_vm1, %v12163_v25, %v7695_v17 }
 0x7bd   : > { %v6442_v52 = vsel %vm6382_vm7, %v12166_v47, %v7696_v3  ;;  %6550 = vadd.xlane.f32.xlu0 %v6549_v21  ;;  %v6453_v20 = vmax.f32 %v6357_v42, %v6441_v61 }
 0x7be   : > { %6498 = vadd.xlane.f32.xlu2 %v6497_v19  ;;  %v6454_v48 = vmax.f32 %v6358_v12, %v6442_v52 }
 0x7bf   : > { %v6530_v4 = vmul.f32 %v7707_v46, %v6453_v20  ;;  %v6477_v18 = vmul.f32 %v6465_v45, %v6453_v20 }
 0x7c0   : > { %v6531_v25 = vmul.f32 %v7708_v59, %v6454_v48  ;;  %v6478_v16 = vmul.f32 %v6466_v54, %v6454_v48 }
 0x7c1   : > { %v6552_v1 = vsel %vm6500_vm6, %v6530_v4, 0.0  ;;  %v6501_v47 = vsel %vm6500_vm6, %v6477_v18, 0.0 }
 0x7c2   : > { %v6553_v28 = vsel %vm6502_vm5, %v6531_v25, 0.0  ;;  %v6503_v58 = vsel %vm6502_vm5, %v6478_v16, 0.0 }
 0x7c3   : > { %v6554_v13 = vadd.f32 %v6553_v28, %v6552_v1  ;;  %v6504_v60 = vadd.f32 %v6503_v58, %v6501_v47 }
 0x7c5   : > { %6505 = vadd.xlane.f32.xlu1 %v6504_v60 }
 0x7c6   : > { %6555 = vadd.xlane.f32.xlu2 %v6554_v13 }
 0x810   : > { %v6535_v51 = vpop.xlane.xlu1 %6534 }
 0x811   : > { %v6483_v33 = vpop.xlane.xlu0 %6482 }
 0x812   : > { %v6560_v39 = vsel %vm6559_vm8, %v6483_v33, %v6535_v51 }
 0x813   : > { %v6567_v55 = vsel %vm6566_vm9, %v6560_v39, 0.0 }
 0x818   : > { %v6539_v35 = vpop.xlane.xlu1 %6538 }
 0x819   : > { %v6487_v41 = vpop.xlane.xlu0 %6486 }
 0x81a   : > { %v6561_v62 = vsel %vm6559_vm8, %v6487_v41, %v6539_v35 }
 0x81b   : > { %v6568_v10 = vsel %vm6566_vm9, %v6561_v62, 0.0 }
 0x81c   : > { %v6569_v27 = vadd.f32 %v6568_v10, %v6567_v55 }
 0x820   : > { %v6491_v14 = vpop.xlane.xlu2 %6490 }
 0x828   : > { %v6495_v38 = vpop.xlane.xlu0 %6494  ;;  %v6547_v36 = vpop.xlane.xlu1 %6546 }
 0x829   : > { %v6543_v57 = vpop.xlane.xlu2 %6542  ;;  %v6563_v11 = vsel %vm6559_vm8, %v6495_v38, %v6547_v36 }
 0x82a   : > { %v6562_v29 = vsel %vm6559_vm8, %v6491_v14, %v6543_v57  ;;  %v6572_v49 = vsel %vm6566_vm9, %v6563_v11, 0.0 }
 0x82b   : > { %v6570_v30 = vsel %vm6566_vm9, %v6562_v29, 0.0 }
 0x82c   : > { %v6571_v63 = vadd.f32 %v6570_v30, %v6569_v27 }
 0x82e   : > { %v6573_v34 = vadd.f32 %v6572_v49, %v6571_v63 }
 0x830   : > { %v6551_v6 = vpop.xlane.xlu0 %6550 }
 0x831   : > { %v6499_v50 = vpop.xlane.xlu2 %6498 }
 0x832   : > { %v6564_v53 = vsel %vm6559_vm8, %v6499_v50, %v6551_v6 }
 0x833   : > { %v6574_v56 = vsel %vm6566_vm9, %v6564_v53, 0.0 }
 0x834   : > { %v6575_v31 = vadd.f32 %v6574_v56, %v6573_v34 }
 0x838   : > { %v6506_v9 = vpop.xlane.xlu1 %6505 }
 0x839   : > { %v6556_v44 = vpop.xlane.xlu2 %6555 }
 0x83a   : > { %v6565_v15 = vsel %vm6559_vm8, %v6506_v9, %v6556_v44 }
 0x83b   : > { %v6577_v26 = vsel %vm6576_vm10, %v6565_v15, 0.0 }
 0x83c   : > { %v6578_v5 = vadd.f32 %v6577_v26, %v6575_v31 }
 0x83e   : > { %v6579_v8 = vrot.slane %v6578_v5, 4 }
 0x840   : > { %v6580_v23 = vadd.f32 %v6579_v8, %v6578_v5 }
 0x842   : > { %v6581_v22 = vrot.slane %v6580_v23, 2 }
 0x844   : > { %v6582_v0 = vadd.f32 %v6581_v22, %v6580_v23 }
 0x846   : > { %v6583_v40 = vrot.slane %v6582_v0, 1 }
 0x848   : > { %v6584_v7 = vadd.f32 %v6583_v40, %v6582_v0 }
 0x84a   : > { %v6586_v17 = vadd.f32 %v6585_v32, %v6584_v7 }
 0x84c   : > { %6588 = vst.msk [vmem:[%s378_s24] sm:$0x1] %vm6587_vm11, %v6586_v17 }
 0x84d   : > { %8204 = shalt.err (!%p8201_p3)
}
 0x84e   : > { %7712 = dma.vmem_to_hbm [thread:$0]  (%p8339_p5), %s6601_s29, 16, %s6603_s30, %s6590_s12  }
 0x84f PF: > { %p7718_p4 = scmp.ge.s32.totalorder %s8239_s20, 2  ;;  %s6614_s13 = sand.u32 1, %s8227_s17  }
 0x850   : > { %s6615_s24 = scalar_lea.sflag [#allocation6], %s6614_s13 }
 0x851   : > { %p7715_p7 = pnand %p7718_p4, %p8343_p6 }
 0x853   : > { %p7716_p8 = pneg %p7715_p7 }
 0x855   : > { %8222 = dma.done.wait (%p7716_p8), %s6615_s24, 16  }
 0x856   : > { %8224 = vsyncadd (%p7716_p8), %s6615_s24, 4294967280  ;;  %p21_p9 = scmp.ge.s32.totalorder %s8326_s23, 4   ;;  %s12476_s17 = smov %s8231_s18 }
 0x857   : > { %s12477_s18 = smov %s8235_s19  ;;  %s12478_s19 = smov %s8337_s26 }
 0x858   : > { %s12479_s20 = smov %s8326_s23  ;;  %23 = sbr.rel (!%p21_p9) target bundleno = 5 (0x5), region = 448 }
 0x85d   :  { %6620 = vsyncpa [#allocation6], 1 }
 0x85e   :  { %6622 = vsyncpa [#allocation6 + $0x1], 1 }

</bundles_post_ra>
